<compile_context>
chip_gen: v6e
topology: v6e:2x2x1
jax: 0.10.0
libtpu: 0.0.40
codegen_flags: <defaults>
</compile_context>

<pallas_src>
import jax
import jax.numpy as jnp
from jax.experimental import pallas as pl
from jax.experimental.pallas import tpu as pltpu  # noqa: F401  (kept for scaling knobs)


def _bidrnn_kernel(x_ref, wih0_ref, wihL_ref, whh_ref, bx_ref, bhn_ref, o_ref):
    """Whole biDRNN forward, both directions, all layers.

    x_ref    : (2, T, B, D)        dir 0 = input, dir 1 = batch-flipped input
    wih0_ref : (2, 3, D, H)        layer-0 input->gate weights, gate-major (r,z,n)
    wihL_ref : (2*max(L-1,1), 3, H, H)  layer>=1 input->gate weights
    whh_ref  : (2*L, 3, H, H)      hidden->gate weights
    bx_ref   : (2*L*3, 1, H)       b_ih (+ b_hh for r,z) folded input-preact bias
    bhn_ref  : (2*L, 1, H)         hidden bias of the n gate (multiplied by r)
    o_ref    : (T, B, 2H)          concat(dir0, dir1) along features, first T steps
    """
    T, B, D = x_ref.shape[1], x_ref.shape[2], x_ref.shape[3]
    L = whh_ref.shape[0] // 2
    H = whh_ref.shape[-1]
    max_rate = 2 ** (L - 1)
    Tp = -(-T // max_rate) * max_rate          # single up-front pad (trace-time)

    # Per-time-step input rows for both directions, zero-padded to Tp.
    # dir 1 = batch flip (torch.flip(input1, dims=[1]) on a time-major tensor),
    # never flipped back -- faithful to the PyTorch module.  The flip itself is
    # done in the wrapper (one tiny XLA op on the raw input).
    zero_row = jnp.zeros((B, D), jnp.float32)
    seqs = [[x_ref[d, t] for t in range(T)] + [zero_row] * (Tp - T)
            for d in range(2)]

    for layer in range(L):
        rate = 2 ** layer
        S = Tp // rate
        Bd = rate * B

        gx = [None, None]          # hoisted input-projection preacts, per dir/gate
        whh = [None, None]         # hoisted bf16 hidden->gate weights
        bhn = [None, None]
        h = [None, None]
        outs = [[], []]

        for d in range(2):
            # Gate-major weights: gate selection is leading-dim indexing only.
            if layer == 0:
                wih_d = [wih0_ref[d, g].astype(jnp.bfloat16) for g in range(3)]
            else:
                wih_d = [wihL_ref[d * (L - 1) + layer - 1, g].astype(jnp.bfloat16)
                         for g in range(3)]
            whh[d] = [whh_ref[d * L + layer, g].astype(jnp.bfloat16)
                      for g in range(3)]
            bhn[d] = bhn_ref[d * L + layer]                      # (1, H)

            # Dilation: fold the `rate` phases onto the batch axis.  This is a
            # trace-time reshuffle of small values (sublane concats only).
            if rate == 1:
                dil = seqs[d]
            else:
                dil = [jnp.concatenate(
                           [seqs[d][s * rate + p] for p in range(rate)], axis=0)
                       for s in range(S)]
            big = (jnp.concatenate(dil, axis=0) if S > 1 else dil[0])  # (S*Bd, F)
            big = big.astype(jnp.bfloat16)
            # Hoisted input projection: one GEMM per gate over ALL steps
            # (independent of h -> off the serial chain), biases folded in.
            gx[d] = [jnp.dot(big, wih_d[g], preferred_element_type=jnp.float32)
                     + bx_ref[(d * L + layer) * 3 + g]
                     for g in range(3)]
            h[d] = jnp.zeros((Bd, H), jnp.float32)

        # Serial GRU recurrence, fully unrolled.  Both directions are emitted in
        # the same step body; the whole kernel is one basic block, so the LLO
        # scheduler overlaps the two independent dependency chains (key on the
        # single-TC v5e/v6e).
        for s in range(S):
            lo, hi = s * Bd, (s + 1) * Bd
            for d in range(2):
                hb = h[d].astype(jnp.bfloat16)           # single-pass bf16 MXU
                gh_r = jnp.dot(hb, whh[d][0], preferred_element_type=jnp.float32)
                gh_z = jnp.dot(hb, whh[d][1], preferred_element_type=jnp.float32)
                gh_n = jnp.dot(hb, whh[d][2], preferred_element_type=jnp.float32)
                r = jax.nn.sigmoid(gx[d][0][lo:hi] + gh_r)
                z = jax.nn.sigmoid(gx[d][1][lo:hi] + gh_z)
                n = jnp.tanh(gx[d][2][lo:hi] + r * (gh_n + bhn[d]))
                h[d] = (1.0 - z) * n + z * h[d]          # PyTorch GRU update
                outs[d].append(h[d])

        # De-interleave phases back onto the time axis (trace-time only; no
        # intermediate activation ever touches HBM or an output ref).
        for d in range(2):
            seqs[d] = [outs[d][s][p * B:(p + 1) * B]
                       for s in range(S) for p in range(rate)]

    # Final store: fwd||bwd feature concat, original T steps only.  Stores
    # happen once per time step AFTER all recurrences -- never inside the
    # serial loops of intermediate layers.
    for t in range(T):
        o_ref[t] = jnp.concatenate([seqs[0][t], seqs[1][t]], axis=-1)


def bi_drnn_forward(x, packed):
    """biDRNN forward.  x: (T, B, D) time-major -> (T, B, 2H)."""
    wih0, wihL, whh, bx, bhn = packed
    T, B, _ = x.shape
    H = whh.shape[-1]
    # dir 1 input = batch flip (dims=[1] of the time-major tensor), as in the
    # PyTorch module.  One tiny XLA stack on the raw input; everything else is
    # fused in the single kernel below (default whole-array VMEM blocks, no grid).
    xs = jnp.stack([x, jnp.flip(x, axis=1)], axis=0)                 # (2, T, B, D)
    return pl.pallas_call(
        _bidrnn_kernel,
        out_shape=jax.ShapeDtypeStruct((T, B, 2 * H), jnp.float32),
    )(xs, wih0, wihL, whh, bx, bhn)


# ------------------------- parameters (synthetic) --------------------------

def init_gru_params(key, in_dim, hidden):
    """Synthetic GRU params, fused gate layout (r, z, n) along the last axis."""
    k1, k2, k3, k4 = jax.random.split(key, 4)
    s = 1.0 / float(hidden) ** 0.5
    w_ih = jax.random.uniform(k1, (in_dim, 3 * hidden), jnp.float32, -s, s)
    w_hh = jax.random.uniform(k2, (hidden, 3 * hidden), jnp.float32, -s, s)
    b_ih = jax.random.uniform(k3, (3 * hidden,), jnp.float32, -s, s)
    b_hh = jax.random.uniform(k4, (3 * hidden,), jnp.float32, -s, s)
    return w_ih, w_hh, b_ih, b_hh


def pack_params(params1, params2, n_hidden):
    """Pack both directions' per-layer GRU params into the gate-major kernel
    layout, pre-folding biases (b_hh folds into the input preactivation for r
    and z only; the n-gate hidden bias stays separate -- it is multiplied by r)."""
    H = n_hidden

    def per_dir(params):
        wih0, wihL, whh, bx, bhn = None, [], [], [], []
        for i, (w_ih, w_hh, b_ih, b_hh) in enumerate(params):
            wg_ih = jnp.transpose(w_ih.reshape(w_ih.shape[0], 3, H), (1, 0, 2))  # (3,in,H)
            wg_hh = jnp.transpose(w_hh.reshape(H, 3, H), (1, 0, 2))              # (3,H,H)
            bi, bh = b_ih.reshape(3, H), b_hh.reshape(3, H)
            bx_l = jnp.stack([bi[0] + bh[0], bi[1] + bh[1], bi[2]])[:, None, :]  # (3,1,H)
            if i == 0:
                wih0 = wg_ih
            else:
                wihL.append(wg_ih)
            whh.append(wg_hh)
            bx.append(bx_l)
            bhn.append(bh[2][None, :])
        wihL = jnp.stack(wihL) if wihL else jnp.zeros((1, 3, H, H), jnp.float32)
        return (wih0, wihL, jnp.stack(whh),
                jnp.concatenate(bx, axis=0), jnp.stack(bhn))

    d0, d1 = per_dir(params1), per_dir(params2)
    wih0 = jnp.stack([d0[0], d1[0]])                       # (2, 3, D, H)
    wihL = jnp.concatenate([d0[1], d1[1]], axis=0)         # (2*max(L-1,1), 3, H, H)
    whh = jnp.concatenate([d0[2], d1[2]], axis=0)          # (2*L, 3, H, H)
    bx = jnp.concatenate([d0[3], d1[3]], axis=0)           # (2*L*3, 1, H)
    bhn = jnp.concatenate([d0[4], d1[4]], axis=0)          # (2*L, 1, H)
    return wih0, wihL, whh, bx, bhn


# ---------------------- plain-JAX reference (validation) -------------------

def _gru_seq_ref(xs, w_ih, w_hh, b_ih, b_hh):
    H = w_hh.shape[0]
    hp = jax.lax.Precision.HIGHEST

    def step(h, x_t):
        gi = jnp.dot(x_t, w_ih, precision=hp) + b_ih
        gh = jnp.dot(h, w_hh, precision=hp) + b_hh
        r = jax.nn.sigmoid(gi[:, :H] + gh[:, :H])
        z = jax.nn.sigmoid(gi[:, H:2 * H] + gh[:, H:2 * H])
        n = jnp.tanh(gi[:, 2 * H:] + r * gh[:, 2 * H:])
        h = (1.0 - z) * n + z * h
        return h, h

    h0 = jnp.zeros((xs.shape[1], H), jnp.float32)
    return jax.lax.scan(step, h0, xs)[1]


def _drnn_ref(x, params):
    inputs = x
    B = x.shape[1]
    for i, p in enumerate(params):
        rate = 2 ** i
        n_steps = inputs.shape[0]
        dil_steps = -(-n_steps // rate)
        pad = dil_steps * rate - n_steps
        if pad:
            inputs = jnp.concatenate(
                [inputs, jnp.zeros((pad, B, inputs.shape[-1]), inputs.dtype)],
                axis=0)
        dilated = jnp.concatenate([inputs[j::rate] for j in range(rate)], axis=1)
        dil_out = _gru_seq_ref(dilated, *p)
        H = dil_out.shape[-1]
        inputs = dil_out.reshape(dil_steps, rate, B, H).reshape(
            dil_steps * rate, B, H)[:n_steps]
    return inputs


def bi_drnn_reference(x, params1, params2):
    x2 = jnp.flip(x, axis=1)
    return jnp.concatenate([_drnn_ref(x, params1), _drnn_ref(x2, params2)], axis=-1)


if __name__ == "__main__":
    n_input, n_hidden, n_layers = 8, 32, 3     # dilations 1, 2, 4
    T, B = 10, 2                               # T=10 exercises the padding path

    key = jax.random.PRNGKey(0)
    kx, kp = jax.random.split(key)
    x = jax.random.normal(kx, (T, B, n_input), dtype=jnp.float32)

    pkeys = jax.random.split(kp, 2 * n_layers)
    params1 = [init_gru_params(pkeys[i], n_input if i == 0 else n_hidden, n_hidden)
               for i in range(n_layers)]
    params2 = [init_gru_params(pkeys[n_layers + i],
                               n_input if i == 0 else n_hidden, n_hidden)
               for i in range(n_layers)]
    packed = pack_params(params1, params2, n_hidden)

    fwd = jax.jit(bi_drnn_forward)
    out = jax.block_until_ready(fwd(x, packed))
    assert out.shape == (T, B, 2 * n_hidden), out.shape
    assert out.dtype == jnp.float32

    # End-to-end check against a plain-JAX lax.scan GRU-DRNN (f32, HIGHEST).
    # The kernel uses single-pass bf16 MXU matmuls (typical max-abs error here
    # is ~1e-3), so keep a conservative but still meaningful bound.
    ref = jax.block_until_ready(jax.jit(bi_drnn_reference)(x, params1, params2))
    err = float(jnp.max(jnp.abs(out - ref)))
    assert err < 3e-2, f"max |kernel - reference| = {err}"
    print("KERNEL_OK")
</pallas_src>

<mosaic_0001>
module attributes {stable_mosaic.version = 11 : i64} {
  func.func @_bidrnn_kernel(%arg0: memref<2x10x2x8xf32, #tpu.memory_space<vmem>>, %arg1: memref<2x3x8x32xf32, #tpu.memory_space<vmem>>, %arg2: memref<4x3x32x32xf32, #tpu.memory_space<vmem>>, %arg3: memref<6x3x32x32xf32, #tpu.memory_space<vmem>>, %arg4: memref<18x1x32xf32, #tpu.memory_space<vmem>>, %arg5: memref<6x1x32xf32, #tpu.memory_space<vmem>>, %arg6: memref<10x2x64xf32, #tpu.memory_space<vmem>>) attributes {dimension_semantics = [], scalar_prefetch = 0 : i64, scratch_operands = 0 : i64, tpu.core_type = #tpu.core_type<tc>} {
    %cst = arith.constant 0.000000e+00 : f32
    %0 = vector.broadcast %cst : f32 to vector<2x8xf32>
    %c0 = arith.constant 0 : index
    %c0_0 = arith.constant 0 : index
    %c0_1 = arith.constant 0 : index
    %c0_2 = arith.constant 0 : index
    %1 = vector.load %arg0[%c0, %c0_0, %c0_1, %c0_2] : memref<2x10x2x8xf32, #tpu.memory_space<vmem>>, vector<1x1x2x8xf32>
    %2 = vector.shape_cast %1 : vector<1x1x2x8xf32> to vector<2x8xf32>
    %c0_3 = arith.constant 0 : index
    %c1 = arith.constant 1 : index
    %c0_4 = arith.constant 0 : index
    %c0_5 = arith.constant 0 : index
    %3 = vector.load %arg0[%c0_3, %c1, %c0_4, %c0_5] : memref<2x10x2x8xf32, #tpu.memory_space<vmem>>, vector<1x1x2x8xf32>
    %4 = vector.shape_cast %3 : vector<1x1x2x8xf32> to vector<2x8xf32>
    %c0_6 = arith.constant 0 : index
    %c2 = arith.constant 2 : index
    %c0_7 = arith.constant 0 : index
    %c0_8 = arith.constant 0 : index
    %5 = vector.load %arg0[%c0_6, %c2, %c0_7, %c0_8] : memref<2x10x2x8xf32, #tpu.memory_space<vmem>>, vector<1x1x2x8xf32>
    %6 = vector.shape_cast %5 : vector<1x1x2x8xf32> to vector<2x8xf32>
    %c0_9 = arith.constant 0 : index
    %c3 = arith.constant 3 : index
    %c0_10 = arith.constant 0 : index
    %c0_11 = arith.constant 0 : index
    %7 = vector.load %arg0[%c0_9, %c3, %c0_10, %c0_11] : memref<2x10x2x8xf32, #tpu.memory_space<vmem>>, vector<1x1x2x8xf32>
    %8 = vector.shape_cast %7 : vector<1x1x2x8xf32> to vector<2x8xf32>
    %c0_12 = arith.constant 0 : index
    %c4 = arith.constant 4 : index
    %c0_13 = arith.constant 0 : index
    %c0_14 = arith.constant 0 : index
    %9 = vector.load %arg0[%c0_12, %c4, %c0_13, %c0_14] : memref<2x10x2x8xf32, #tpu.memory_space<vmem>>, vector<1x1x2x8xf32>
    %10 = vector.shape_cast %9 : vector<1x1x2x8xf32> to vector<2x8xf32>
    %c0_15 = arith.constant 0 : index
    %c5 = arith.constant 5 : index
    %c0_16 = arith.constant 0 : index
    %c0_17 = arith.constant 0 : index
    %11 = vector.load %arg0[%c0_15, %c5, %c0_16, %c0_17] : memref<2x10x2x8xf32, #tpu.memory_space<vmem>>, vector<1x1x2x8xf32>
    %12 = vector.shape_cast %11 : vector<1x1x2x8xf32> to vector<2x8xf32>
    %c0_18 = arith.constant 0 : index
    %c6 = arith.constant 6 : index
    %c0_19 = arith.constant 0 : index
    %c0_20 = arith.constant 0 : index
    %13 = vector.load %arg0[%c0_18, %c6, %c0_19, %c0_20] : memref<2x10x2x8xf32, #tpu.memory_space<vmem>>, vector<1x1x2x8xf32>
    %14 = vector.shape_cast %13 : vector<1x1x2x8xf32> to vector<2x8xf32>
    %c0_21 = arith.constant 0 : index
    %c7 = arith.constant 7 : index
    %c0_22 = arith.constant 0 : index
    %c0_23 = arith.constant 0 : index
    %15 = vector.load %arg0[%c0_21, %c7, %c0_22, %c0_23] : memref<2x10x2x8xf32, #tpu.memory_space<vmem>>, vector<1x1x2x8xf32>
    %16 = vector.shape_cast %15 : vector<1x1x2x8xf32> to vector<2x8xf32>
    %c0_24 = arith.constant 0 : index
    %c8 = arith.constant 8 : index
    %c0_25 = arith.constant 0 : index
    %c0_26 = arith.constant 0 : index
    %17 = vector.load %arg0[%c0_24, %c8, %c0_25, %c0_26] : memref<2x10x2x8xf32, #tpu.memory_space<vmem>>, vector<1x1x2x8xf32>
    %18 = vector.shape_cast %17 : vector<1x1x2x8xf32> to vector<2x8xf32>
    %c0_27 = arith.constant 0 : index
    %c9 = arith.constant 9 : index
    %c0_28 = arith.constant 0 : index
    %c0_29 = arith.constant 0 : index
    %19 = vector.load %arg0[%c0_27, %c9, %c0_28, %c0_29] : memref<2x10x2x8xf32, #tpu.memory_space<vmem>>, vector<1x1x2x8xf32>
    %20 = vector.shape_cast %19 : vector<1x1x2x8xf32> to vector<2x8xf32>
    %c1_30 = arith.constant 1 : index
    %c0_31 = arith.constant 0 : index
    %c0_32 = arith.constant 0 : index
    %c0_33 = arith.constant 0 : index
    %21 = vector.load %arg0[%c1_30, %c0_31, %c0_32, %c0_33] : memref<2x10x2x8xf32, #tpu.memory_space<vmem>>, vector<1x1x2x8xf32>
    %22 = vector.shape_cast %21 : vector<1x1x2x8xf32> to vector<2x8xf32>
    %c1_34 = arith.constant 1 : index
    %c1_35 = arith.constant 1 : index
    %c0_36 = arith.constant 0 : index
    %c0_37 = arith.constant 0 : index
    %23 = vector.load %arg0[%c1_34, %c1_35, %c0_36, %c0_37] : memref<2x10x2x8xf32, #tpu.memory_space<vmem>>, vector<1x1x2x8xf32>
    %24 = vector.shape_cast %23 : vector<1x1x2x8xf32> to vector<2x8xf32>
    %c1_38 = arith.constant 1 : index
    %c2_39 = arith.constant 2 : index
    %c0_40 = arith.constant 0 : index
    %c0_41 = arith.constant 0 : index
    %25 = vector.load %arg0[%c1_38, %c2_39, %c0_40, %c0_41] : memref<2x10x2x8xf32, #tpu.memory_space<vmem>>, vector<1x1x2x8xf32>
    %26 = vector.shape_cast %25 : vector<1x1x2x8xf32> to vector<2x8xf32>
    %c1_42 = arith.constant 1 : index
    %c3_43 = arith.constant 3 : index
    %c0_44 = arith.constant 0 : index
    %c0_45 = arith.constant 0 : index
    %27 = vector.load %arg0[%c1_42, %c3_43, %c0_44, %c0_45] : memref<2x10x2x8xf32, #tpu.memory_space<vmem>>, vector<1x1x2x8xf32>
    %28 = vector.shape_cast %27 : vector<1x1x2x8xf32> to vector<2x8xf32>
    %c1_46 = arith.constant 1 : index
    %c4_47 = arith.constant 4 : index
    %c0_48 = arith.constant 0 : index
    %c0_49 = arith.constant 0 : index
    %29 = vector.load %arg0[%c1_46, %c4_47, %c0_48, %c0_49] : memref<2x10x2x8xf32, #tpu.memory_space<vmem>>, vector<1x1x2x8xf32>
    %30 = vector.shape_cast %29 : vector<1x1x2x8xf32> to vector<2x8xf32>
    %c1_50 = arith.constant 1 : index
    %c5_51 = arith.constant 5 : index
    %c0_52 = arith.constant 0 : index
    %c0_53 = arith.constant 0 : index
    %31 = vector.load %arg0[%c1_50, %c5_51, %c0_52, %c0_53] : memref<2x10x2x8xf32, #tpu.memory_space<vmem>>, vector<1x1x2x8xf32>
    %32 = vector.shape_cast %31 : vector<1x1x2x8xf32> to vector<2x8xf32>
    %c1_54 = arith.constant 1 : index
    %c6_55 = arith.constant 6 : index
    %c0_56 = arith.constant 0 : index
    %c0_57 = arith.constant 0 : index
    %33 = vector.load %arg0[%c1_54, %c6_55, %c0_56, %c0_57] : memref<2x10x2x8xf32, #tpu.memory_space<vmem>>, vector<1x1x2x8xf32>
    %34 = vector.shape_cast %33 : vector<1x1x2x8xf32> to vector<2x8xf32>
    %c1_58 = arith.constant 1 : index
    %c7_59 = arith.constant 7 : index
    %c0_60 = arith.constant 0 : index
    %c0_61 = arith.constant 0 : index
    %35 = vector.load %arg0[%c1_58, %c7_59, %c0_60, %c0_61] : memref<2x10x2x8xf32, #tpu.memory_space<vmem>>, vector<1x1x2x8xf32>
    %36 = vector.shape_cast %35 : vector<1x1x2x8xf32> to vector<2x8xf32>
    %c1_62 = arith.constant 1 : index
    %c8_63 = arith.constant 8 : index
    %c0_64 = arith.constant 0 : index
    %c0_65 = arith.constant 0 : index
    %37 = vector.load %arg0[%c1_62, %c8_63, %c0_64, %c0_65] : memref<2x10x2x8xf32, #tpu.memory_space<vmem>>, vector<1x1x2x8xf32>
    %38 = vector.shape_cast %37 : vector<1x1x2x8xf32> to vector<2x8xf32>
    %c1_66 = arith.constant 1 : index
    %c9_67 = arith.constant 9 : index
    %c0_68 = arith.constant 0 : index
    %c0_69 = arith.constant 0 : index
    %39 = vector.load %arg0[%c1_66, %c9_67, %c0_68, %c0_69] : memref<2x10x2x8xf32, #tpu.memory_space<vmem>>, vector<1x1x2x8xf32>
    %40 = vector.shape_cast %39 : vector<1x1x2x8xf32> to vector<2x8xf32>
    %c0_70 = arith.constant 0 : index
    %c0_71 = arith.constant 0 : index
    %c0_72 = arith.constant 0 : index
    %c0_73 = arith.constant 0 : index
    %41 = vector.load %arg1[%c0_70, %c0_71, %c0_72, %c0_73] : memref<2x3x8x32xf32, #tpu.memory_space<vmem>>, vector<1x1x8x32xf32>
    %42 = vector.shape_cast %41 : vector<1x1x8x32xf32> to vector<8x32xf32>
    %43 = arith.truncf %42 : vector<8x32xf32> to vector<8x32xbf16>
    %c0_74 = arith.constant 0 : index
    %c1_75 = arith.constant 1 : index
    %c0_76 = arith.constant 0 : index
    %c0_77 = arith.constant 0 : index
    %44 = vector.load %arg1[%c0_74, %c1_75, %c0_76, %c0_77] : memref<2x3x8x32xf32, #tpu.memory_space<vmem>>, vector<1x1x8x32xf32>
    %45 = vector.shape_cast %44 : vector<1x1x8x32xf32> to vector<8x32xf32>
    %46 = arith.truncf %45 : vector<8x32xf32> to vector<8x32xbf16>
    %c0_78 = arith.constant 0 : index
    %c2_79 = arith.constant 2 : index
    %c0_80 = arith.constant 0 : index
    %c0_81 = arith.constant 0 : index
    %47 = vector.load %arg1[%c0_78, %c2_79, %c0_80, %c0_81] : memref<2x3x8x32xf32, #tpu.memory_space<vmem>>, vector<1x1x8x32xf32>
    %48 = vector.shape_cast %47 : vector<1x1x8x32xf32> to vector<8x32xf32>
    %49 = arith.truncf %48 : vector<8x32xf32> to vector<8x32xbf16>
    %c0_82 = arith.constant 0 : index
    %c0_83 = arith.constant 0 : index
    %c0_84 = arith.constant 0 : index
    %c0_85 = arith.constant 0 : index
    %50 = vector.load %arg3[%c0_82, %c0_83, %c0_84, %c0_85] : memref<6x3x32x32xf32, #tpu.memory_space<vmem>>, vector<1x1x32x32xf32>
    %51 = vector.shape_cast %50 : vector<1x1x32x32xf32> to vector<32x32xf32>
    %52 = arith.truncf %51 : vector<32x32xf32> to vector<32x32xbf16>
    %c0_86 = arith.constant 0 : index
    %c1_87 = arith.constant 1 : index
    %c0_88 = arith.constant 0 : index
    %c0_89 = arith.constant 0 : index
    %53 = vector.load %arg3[%c0_86, %c1_87, %c0_88, %c0_89] : memref<6x3x32x32xf32, #tpu.memory_space<vmem>>, vector<1x1x32x32xf32>
    %54 = vector.shape_cast %53 : vector<1x1x32x32xf32> to vector<32x32xf32>
    %55 = arith.truncf %54 : vector<32x32xf32> to vector<32x32xbf16>
    %c0_90 = arith.constant 0 : index
    %c2_91 = arith.constant 2 : index
    %c0_92 = arith.constant 0 : index
    %c0_93 = arith.constant 0 : index
    %56 = vector.load %arg3[%c0_90, %c2_91, %c0_92, %c0_93] : memref<6x3x32x32xf32, #tpu.memory_space<vmem>>, vector<1x1x32x32xf32>
    %57 = vector.shape_cast %56 : vector<1x1x32x32xf32> to vector<32x32xf32>
    %58 = arith.truncf %57 : vector<32x32xf32> to vector<32x32xbf16>
    %c0_94 = arith.constant 0 : index
    %c0_95 = arith.constant 0 : index
    %c0_96 = arith.constant 0 : index
    %59 = vector.load %arg5[%c0_94, %c0_95, %c0_96] : memref<6x1x32xf32, #tpu.memory_space<vmem>>, vector<1x1x32xf32>
    %60 = vector.shape_cast %59 : vector<1x1x32xf32> to vector<1x32xf32>
    %61 = tpu.concatenate %2, %4, %6, %8, %10, %12, %14, %16, %18, %20, %0, %0 in 0 : vector<2x8xf32>, vector<2x8xf32>, vector<2x8xf32>, vector<2x8xf32>, vector<2x8xf32>, vector<2x8xf32>, vector<2x8xf32>, vector<2x8xf32>, vector<2x8xf32>, vector<2x8xf32>, vector<2x8xf32>, vector<2x8xf32> -> vector<24x8xf32>
    %62 = arith.truncf %61 : vector<24x8xf32> to vector<24x8xbf16>
    %cst_97 = arith.constant dense<0.000000e+00> : vector<24x32xf32>
    %63 = tpu.matmul %62, %43, %cst_97 {dimension_numbers = #tpu.dot_dimension_numbers<[1], [0], [0], [1], [0, 0, 1, 1], [], []>} : vector<24x8xbf16>, vector<8x32xbf16>, vector<24x32xf32> -> vector<24x32xf32>
    %c0_98 = arith.constant 0 : index
    %c0_99 = arith.constant 0 : index
    %c0_100 = arith.constant 0 : index
    %64 = vector.load %arg4[%c0_98, %c0_99, %c0_100] : memref<18x1x32xf32, #tpu.memory_space<vmem>>, vector<1x1x32xf32>
    %65 = vector.shape_cast %64 : vector<1x1x32xf32> to vector<1x32xf32>
    %66 = vector.broadcast %65 : vector<1x32xf32> to vector<24x32xf32>
    %67 = arith.addf %63, %66 : vector<24x32xf32>
    %cst_101 = arith.constant dense<0.000000e+00> : vector<24x32xf32>
    %68 = tpu.matmul %62, %46, %cst_101 {dimension_numbers = #tpu.dot_dimension_numbers<[1], [0], [0], [1], [0, 0, 1, 1], [], []>} : vector<24x8xbf16>, vector<8x32xbf16>, vector<24x32xf32> -> vector<24x32xf32>
    %c1_102 = arith.constant 1 : index
    %c0_103 = arith.constant 0 : index
    %c0_104 = arith.constant 0 : index
    %69 = vector.load %arg4[%c1_102, %c0_103, %c0_104] : memref<18x1x32xf32, #tpu.memory_space<vmem>>, vector<1x1x32xf32>
    %70 = vector.shape_cast %69 : vector<1x1x32xf32> to vector<1x32xf32>
    %71 = vector.broadcast %70 : vector<1x32xf32> to vector<24x32xf32>
    %72 = arith.addf %68, %71 : vector<24x32xf32>
    %cst_105 = arith.constant dense<0.000000e+00> : vector<24x32xf32>
    %73 = tpu.matmul %62, %49, %cst_105 {dimension_numbers = #tpu.dot_dimension_numbers<[1], [0], [0], [1], [0, 0, 1, 1], [], []>} : vector<24x8xbf16>, vector<8x32xbf16>, vector<24x32xf32> -> vector<24x32xf32>
    %c2_106 = arith.constant 2 : index
    %c0_107 = arith.constant 0 : index
    %c0_108 = arith.constant 0 : index
    %74 = vector.load %arg4[%c2_106, %c0_107, %c0_108] : memref<18x1x32xf32, #tpu.memory_space<vmem>>, vector<1x1x32xf32>
    %75 = vector.shape_cast %74 : vector<1x1x32xf32> to vector<1x32xf32>
    %76 = vector.broadcast %75 : vector<1x32xf32> to vector<24x32xf32>
    %77 = arith.addf %73, %76 : vector<24x32xf32>
    %cst_109 = arith.constant 0.000000e+00 : f32
    %78 = vector.broadcast %cst_109 : f32 to vector<2x32xf32>
    %c1_110 = arith.constant 1 : index
    %c0_111 = arith.constant 0 : index
    %c0_112 = arith.constant 0 : index
    %c0_113 = arith.constant 0 : index
    %79 = vector.load %arg1[%c1_110, %c0_111, %c0_112, %c0_113] : memref<2x3x8x32xf32, #tpu.memory_space<vmem>>, vector<1x1x8x32xf32>
    %80 = vector.shape_cast %79 : vector<1x1x8x32xf32> to vector<8x32xf32>
    %81 = arith.truncf %80 : vector<8x32xf32> to vector<8x32xbf16>
    %c1_114 = arith.constant 1 : index
    %c1_115 = arith.constant 1 : index
    %c0_116 = arith.constant 0 : index
    %c0_117 = arith.constant 0 : index
    %82 = vector.load %arg1[%c1_114, %c1_115, %c0_116, %c0_117] : memref<2x3x8x32xf32, #tpu.memory_space<vmem>>, vector<1x1x8x32xf32>
    %83 = vector.shape_cast %82 : vector<1x1x8x32xf32> to vector<8x32xf32>
    %84 = arith.truncf %83 : vector<8x32xf32> to vector<8x32xbf16>
    %c1_118 = arith.constant 1 : index
    %c2_119 = arith.constant 2 : index
    %c0_120 = arith.constant 0 : index
    %c0_121 = arith.constant 0 : index
    %85 = vector.load %arg1[%c1_118, %c2_119, %c0_120, %c0_121] : memref<2x3x8x32xf32, #tpu.memory_space<vmem>>, vector<1x1x8x32xf32>
    %86 = vector.shape_cast %85 : vector<1x1x8x32xf32> to vector<8x32xf32>
    %87 = arith.truncf %86 : vector<8x32xf32> to vector<8x32xbf16>
    %c3_122 = arith.constant 3 : index
    %c0_123 = arith.constant 0 : index
    %c0_124 = arith.constant 0 : index
    %c0_125 = arith.constant 0 : index
    %88 = vector.load %arg3[%c3_122, %c0_123, %c0_124, %c0_125] : memref<6x3x32x32xf32, #tpu.memory_space<vmem>>, vector<1x1x32x32xf32>
    %89 = vector.shape_cast %88 : vector<1x1x32x32xf32> to vector<32x32xf32>
    %90 = arith.truncf %89 : vector<32x32xf32> to vector<32x32xbf16>
    %c3_126 = arith.constant 3 : index
    %c1_127 = arith.constant 1 : index
    %c0_128 = arith.constant 0 : index
    %c0_129 = arith.constant 0 : index
    %91 = vector.load %arg3[%c3_126, %c1_127, %c0_128, %c0_129] : memref<6x3x32x32xf32, #tpu.memory_space<vmem>>, vector<1x1x32x32xf32>
    %92 = vector.shape_cast %91 : vector<1x1x32x32xf32> to vector<32x32xf32>
    %93 = arith.truncf %92 : vector<32x32xf32> to vector<32x32xbf16>
    %c3_130 = arith.constant 3 : index
    %c2_131 = arith.constant 2 : index
    %c0_132 = arith.constant 0 : index
    %c0_133 = arith.constant 0 : index
    %94 = vector.load %arg3[%c3_130, %c2_131, %c0_132, %c0_133] : memref<6x3x32x32xf32, #tpu.memory_space<vmem>>, vector<1x1x32x32xf32>
    %95 = vector.shape_cast %94 : vector<1x1x32x32xf32> to vector<32x32xf32>
    %96 = arith.truncf %95 : vector<32x32xf32> to vector<32x32xbf16>
    %c3_134 = arith.constant 3 : index
    %c0_135 = arith.constant 0 : index
    %c0_136 = arith.constant 0 : index
    %97 = vector.load %arg5[%c3_134, %c0_135, %c0_136] : memref<6x1x32xf32, #tpu.memory_space<vmem>>, vector<1x1x32xf32>
    %98 = vector.shape_cast %97 : vector<1x1x32xf32> to vector<1x32xf32>
    %99 = tpu.concatenate %22, %24, %26, %28, %30, %32, %34, %36, %38, %40, %0, %0 in 0 : vector<2x8xf32>, vector<2x8xf32>, vector<2x8xf32>, vector<2x8xf32>, vector<2x8xf32>, vector<2x8xf32>, vector<2x8xf32>, vector<2x8xf32>, vector<2x8xf32>, vector<2x8xf32>, vector<2x8xf32>, vector<2x8xf32> -> vector<24x8xf32>
    %100 = arith.truncf %99 : vector<24x8xf32> to vector<24x8xbf16>
    %cst_137 = arith.constant dense<0.000000e+00> : vector<24x32xf32>
    %101 = tpu.matmul %100, %81, %cst_137 {dimension_numbers = #tpu.dot_dimension_numbers<[1], [0], [0], [1], [0, 0, 1, 1], [], []>} : vector<24x8xbf16>, vector<8x32xbf16>, vector<24x32xf32> -> vector<24x32xf32>
    %c9_138 = arith.constant 9 : index
    %c0_139 = arith.constant 0 : index
    %c0_140 = arith.constant 0 : index
    %102 = vector.load %arg4[%c9_138, %c0_139, %c0_140] : memref<18x1x32xf32, #tpu.memory_space<vmem>>, vector<1x1x32xf32>
    %103 = vector.shape_cast %102 : vector<1x1x32xf32> to vector<1x32xf32>
    %104 = vector.broadcast %103 : vector<1x32xf32> to vector<24x32xf32>
    %105 = arith.addf %101, %104 : vector<24x32xf32>
    %cst_141 = arith.constant dense<0.000000e+00> : vector<24x32xf32>
    %106 = tpu.matmul %100, %84, %cst_141 {dimension_numbers = #tpu.dot_dimension_numbers<[1], [0], [0], [1], [0, 0, 1, 1], [], []>} : vector<24x8xbf16>, vector<8x32xbf16>, vector<24x32xf32> -> vector<24x32xf32>
    %c10 = arith.constant 10 : index
    %c0_142 = arith.constant 0 : index
    %c0_143 = arith.constant 0 : index
    %107 = vector.load %arg4[%c10, %c0_142, %c0_143] : memref<18x1x32xf32, #tpu.memory_space<vmem>>, vector<1x1x32xf32>
    %108 = vector.shape_cast %107 : vector<1x1x32xf32> to vector<1x32xf32>
    %109 = vector.broadcast %108 : vector<1x32xf32> to vector<24x32xf32>
    %110 = arith.addf %106, %109 : vector<24x32xf32>
    %cst_144 = arith.constant dense<0.000000e+00> : vector<24x32xf32>
    %111 = tpu.matmul %100, %87, %cst_144 {dimension_numbers = #tpu.dot_dimension_numbers<[1], [0], [0], [1], [0, 0, 1, 1], [], []>} : vector<24x8xbf16>, vector<8x32xbf16>, vector<24x32xf32> -> vector<24x32xf32>
    %c11 = arith.constant 11 : index
    %c0_145 = arith.constant 0 : index
    %c0_146 = arith.constant 0 : index
    %112 = vector.load %arg4[%c11, %c0_145, %c0_146] : memref<18x1x32xf32, #tpu.memory_space<vmem>>, vector<1x1x32xf32>
    %113 = vector.shape_cast %112 : vector<1x1x32xf32> to vector<1x32xf32>
    %114 = vector.broadcast %113 : vector<1x32xf32> to vector<24x32xf32>
    %115 = arith.addf %111, %114 : vector<24x32xf32>
    %cst_147 = arith.constant 0.000000e+00 : f32
    %116 = vector.broadcast %cst_147 : f32 to vector<2x32xf32>
    %117 = arith.truncf %78 : vector<2x32xf32> to vector<2x32xbf16>
    %cst_148 = arith.constant dense<0.000000e+00> : vector<2x32xf32>
    %118 = tpu.matmul %117, %52, %cst_148 {dimension_numbers = #tpu.dot_dimension_numbers<[1], [0], [0], [1], [0, 0, 1, 1], [], []>} : vector<2x32xbf16>, vector<32x32xbf16>, vector<2x32xf32> -> vector<2x32xf32>
    %cst_149 = arith.constant dense<0.000000e+00> : vector<2x32xf32>
    %119 = tpu.matmul %117, %55, %cst_149 {dimension_numbers = #tpu.dot_dimension_numbers<[1], [0], [0], [1], [0, 0, 1, 1], [], []>} : vector<2x32xbf16>, vector<32x32xbf16>, vector<2x32xf32> -> vector<2x32xf32>
    %cst_150 = arith.constant dense<0.000000e+00> : vector<2x32xf32>
    %120 = tpu.matmul %117, %58, %cst_150 {dimension_numbers = #tpu.dot_dimension_numbers<[1], [0], [0], [1], [0, 0, 1, 1], [], []>} : vector<2x32xbf16>, vector<32x32xbf16>, vector<2x32xf32> -> vector<2x32xf32>
    %121 = vector.extract_strided_slice %67 {offsets = [0, 0], sizes = [2, 32], strides = [1, 1]} : vector<24x32xf32> to vector<2x32xf32>
    %122 = arith.addf %121, %118 : vector<2x32xf32>
    %123 = arith.negf %122 : vector<2x32xf32>
    %124 = math.exp %123 : vector<2x32xf32>
    %cst_151 = arith.constant 1.000000e+00 : f32
    %125 = vector.broadcast %cst_151 : f32 to vector<2x32xf32>
    %126 = arith.addf %125, %124 : vector<2x32xf32>
    %127 = arith.divf %125, %126 : vector<2x32xf32>
    %128 = vector.extract_strided_slice %72 {offsets = [0, 0], sizes = [2, 32], strides = [1, 1]} : vector<24x32xf32> to vector<2x32xf32>
    %129 = arith.addf %128, %119 : vector<2x32xf32>
    %130 = arith.negf %129 : vector<2x32xf32>
    %131 = math.exp %130 : vector<2x32xf32>
    %cst_152 = arith.constant 1.000000e+00 : f32
    %132 = vector.broadcast %cst_152 : f32 to vector<2x32xf32>
    %133 = arith.addf %132, %131 : vector<2x32xf32>
    %134 = arith.divf %132, %133 : vector<2x32xf32>
    %135 = vector.extract_strided_slice %77 {offsets = [0, 0], sizes = [2, 32], strides = [1, 1]} : vector<24x32xf32> to vector<2x32xf32>
    %136 = vector.broadcast %60 : vector<1x32xf32> to vector<2x32xf32>
    %137 = arith.addf %120, %136 : vector<2x32xf32>
    %138 = arith.mulf %127, %137 : vector<2x32xf32>
    %139 = arith.addf %135, %138 : vector<2x32xf32>
    %140 = math.tanh %139 : vector<2x32xf32>
    %cst_153 = arith.constant 1.000000e+00 : f32
    %141 = vector.broadcast %cst_153 : f32 to vector<2x32xf32>
    %142 = arith.subf %141, %134 : vector<2x32xf32>
    %143 = arith.mulf %142, %140 : vector<2x32xf32>
    %144 = arith.mulf %134, %78 : vector<2x32xf32>
    %145 = arith.addf %143, %144 : vector<2x32xf32>
    %146 = arith.truncf %116 : vector<2x32xf32> to vector<2x32xbf16>
    %cst_154 = arith.constant dense<0.000000e+00> : vector<2x32xf32>
    %147 = tpu.matmul %146, %90, %cst_154 {dimension_numbers = #tpu.dot_dimension_numbers<[1], [0], [0], [1], [0, 0, 1, 1], [], []>} : vector<2x32xbf16>, vector<32x32xbf16>, vector<2x32xf32> -> vector<2x32xf32>
    %cst_155 = arith.constant dense<0.000000e+00> : vector<2x32xf32>
    %148 = tpu.matmul %146, %93, %cst_155 {dimension_numbers = #tpu.dot_dimension_numbers<[1], [0], [0], [1], [0, 0, 1, 1], [], []>} : vector<2x32xbf16>, vector<32x32xbf16>, vector<2x32xf32> -> vector<2x32xf32>
    %cst_156 = arith.constant dense<0.000000e+00> : vector<2x32xf32>
    %149 = tpu.matmul %146, %96, %cst_156 {dimension_numbers = #tpu.dot_dimension_numbers<[1], [0], [0], [1], [0, 0, 1, 1], [], []>} : vector<2x32xbf16>, vector<32x32xbf16>, vector<2x32xf32> -> vector<2x32xf32>
    %150 = vector.extract_strided_slice %105 {offsets = [0, 0], sizes = [2, 32], strides = [1, 1]} : vector<24x32xf32> to vector<2x32xf32>
    %151 = arith.addf %150, %147 : vector<2x32xf32>
    %152 = arith.negf %151 : vector<2x32xf32>
    %153 = math.exp %152 : vector<2x32xf32>
    %cst_157 = arith.constant 1.000000e+00 : f32
    %154 = vector.broadcast %cst_157 : f32 to vector<2x32xf32>
    %155 = arith.addf %154, %153 : vector<2x32xf32>
    %156 = arith.divf %154, %155 : vector<2x32xf32>
    %157 = vector.extract_strided_slice %110 {offsets = [0, 0], sizes = [2, 32], strides = [1, 1]} : vector<24x32xf32> to vector<2x32xf32>
    %158 = arith.addf %157, %148 : vector<2x32xf32>
    %159 = arith.negf %158 : vector<2x32xf32>
    %160 = math.exp %159 : vector<2x32xf32>
    %cst_158 = arith.constant 1.000000e+00 : f32
    %161 = vector.broadcast %cst_158 : f32 to vector<2x32xf32>
    %162 = arith.addf %161, %160 : vector<2x32xf32>
    %163 = arith.divf %161, %162 : vector<2x32xf32>
    %164 = vector.extract_strided_slice %115 {offsets = [0, 0], sizes = [2, 32], strides = [1, 1]} : vector<24x32xf32> to vector<2x32xf32>
    %165 = vector.broadcast %98 : vector<1x32xf32> to vector<2x32xf32>
    %166 = arith.addf %149, %165 : vector<2x32xf32>
    %167 = arith.mulf %156, %166 : vector<2x32xf32>
    %168 = arith.addf %164, %167 : vector<2x32xf32>
    %169 = math.tanh %168 : vector<2x32xf32>
    %cst_159 = arith.constant 1.000000e+00 : f32
    %170 = vector.broadcast %cst_159 : f32 to vector<2x32xf32>
    %171 = arith.subf %170, %163 : vector<2x32xf32>
    %172 = arith.mulf %171, %169 : vector<2x32xf32>
    %173 = arith.mulf %163, %116 : vector<2x32xf32>
    %174 = arith.addf %172, %173 : vector<2x32xf32>
    %175 = arith.truncf %145 : vector<2x32xf32> to vector<2x32xbf16>
    %cst_160 = arith.constant dense<0.000000e+00> : vector<2x32xf32>
    %176 = tpu.matmul %175, %52, %cst_160 {dimension_numbers = #tpu.dot_dimension_numbers<[1], [0], [0], [1], [0, 0, 1, 1], [], []>} : vector<2x32xbf16>, vector<32x32xbf16>, vector<2x32xf32> -> vector<2x32xf32>
    %cst_161 = arith.constant dense<0.000000e+00> : vector<2x32xf32>
    %177 = tpu.matmul %175, %55, %cst_161 {dimension_numbers = #tpu.dot_dimension_numbers<[1], [0], [0], [1], [0, 0, 1, 1], [], []>} : vector<2x32xbf16>, vector<32x32xbf16>, vector<2x32xf32> -> vector<2x32xf32>
    %cst_162 = arith.constant dense<0.000000e+00> : vector<2x32xf32>
    %178 = tpu.matmul %175, %58, %cst_162 {dimension_numbers = #tpu.dot_dimension_numbers<[1], [0], [0], [1], [0, 0, 1, 1], [], []>} : vector<2x32xbf16>, vector<32x32xbf16>, vector<2x32xf32> -> vector<2x32xf32>
    %179 = vector.extract_strided_slice %67 {offsets = [2, 0], sizes = [2, 32], strides = [1, 1]} : vector<24x32xf32> to vector<2x32xf32>
    %180 = arith.addf %179, %176 : vector<2x32xf32>
    %181 = arith.negf %180 : vector<2x32xf32>
    %182 = math.exp %181 : vector<2x32xf32>
    %cst_163 = arith.constant 1.000000e+00 : f32
    %183 = vector.broadcast %cst_163 : f32 to vector<2x32xf32>
    %184 = arith.addf %183, %182 : vector<2x32xf32>
    %185 = arith.divf %183, %184 : vector<2x32xf32>
    %186 = vector.extract_strided_slice %72 {offsets = [2, 0], sizes = [2, 32], strides = [1, 1]} : vector<24x32xf32> to vector<2x32xf32>
    %187 = arith.addf %186, %177 : vector<2x32xf32>
    %188 = arith.negf %187 : vector<2x32xf32>
    %189 = math.exp %188 : vector<2x32xf32>
    %cst_164 = arith.constant 1.000000e+00 : f32
    %190 = vector.broadcast %cst_164 : f32 to vector<2x32xf32>
    %191 = arith.addf %190, %189 : vector<2x32xf32>
    %192 = arith.divf %190, %191 : vector<2x32xf32>
    %193 = vector.extract_strided_slice %77 {offsets = [2, 0], sizes = [2, 32], strides = [1, 1]} : vector<24x32xf32> to vector<2x32xf32>
    %194 = vector.broadcast %60 : vector<1x32xf32> to vector<2x32xf32>
    %195 = arith.addf %178, %194 : vector<2x32xf32>
    %196 = arith.mulf %185, %195 : vector<2x32xf32>
    %197 = arith.addf %193, %196 : vector<2x32xf32>
    %198 = math.tanh %197 : vector<2x32xf32>
    %cst_165 = arith.constant 1.000000e+00 : f32
    %199 = vector.broadcast %cst_165 : f32 to vector<2x32xf32>
    %200 = arith.subf %199, %192 : vector<2x32xf32>
    %201 = arith.mulf %200, %198 : vector<2x32xf32>
    %202 = arith.mulf %192, %145 : vector<2x32xf32>
    %203 = arith.addf %201, %202 : vector<2x32xf32>
    %204 = arith.truncf %174 : vector<2x32xf32> to vector<2x32xbf16>
    %cst_166 = arith.constant dense<0.000000e+00> : vector<2x32xf32>
    %205 = tpu.matmul %204, %90, %cst_166 {dimension_numbers = #tpu.dot_dimension_numbers<[1], [0], [0], [1], [0, 0, 1, 1], [], []>} : vector<2x32xbf16>, vector<32x32xbf16>, vector<2x32xf32> -> vector<2x32xf32>
    %cst_167 = arith.constant dense<0.000000e+00> : vector<2x32xf32>
    %206 = tpu.matmul %204, %93, %cst_167 {dimension_numbers = #tpu.dot_dimension_numbers<[1], [0], [0], [1], [0, 0, 1, 1], [], []>} : vector<2x32xbf16>, vector<32x32xbf16>, vector<2x32xf32> -> vector<2x32xf32>
    %cst_168 = arith.constant dense<0.000000e+00> : vector<2x32xf32>
    %207 = tpu.matmul %204, %96, %cst_168 {dimension_numbers = #tpu.dot_dimension_numbers<[1], [0], [0], [1], [0, 0, 1, 1], [], []>} : vector<2x32xbf16>, vector<32x32xbf16>, vector<2x32xf32> -> vector<2x32xf32>
    %208 = vector.extract_strided_slice %105 {offsets = [2, 0], sizes = [2, 32], strides = [1, 1]} : vector<24x32xf32> to vector<2x32xf32>
    %209 = arith.addf %208, %205 : vector<2x32xf32>
    %210 = arith.negf %209 : vector<2x32xf32>
    %211 = math.exp %210 : vector<2x32xf32>
    %cst_169 = arith.constant 1.000000e+00 : f32
    %212 = vector.broadcast %cst_169 : f32 to vector<2x32xf32>
    %213 = arith.addf %212, %211 : vector<2x32xf32>
    %214 = arith.divf %212, %213 : vector<2x32xf32>
    %215 = vector.extract_strided_slice %110 {offsets = [2, 0], sizes = [2, 32], strides = [1, 1]} : vector<24x32xf32> to vector<2x32xf32>
    %216 = arith.addf %215, %206 : vector<2x32xf32>
    %217 = arith.negf %216 : vector<2x32xf32>
    %218 = math.exp %217 : vector<2x32xf32>
    %cst_170 = arith.constant 1.000000e+00 : f32
    %219 = vector.broadcast %cst_170 : f32 to vector<2x32xf32>
    %220 = arith.addf %219, %218 : vector<2x32xf32>
    %221 = arith.divf %219, %220 : vector<2x32xf32>
    %222 = vector.extract_strided_slice %115 {offsets = [2, 0], sizes = [2, 32], strides = [1, 1]} : vector<24x32xf32> to vector<2x32xf32>
    %223 = vector.broadcast %98 : vector<1x32xf32> to vector<2x32xf32>
    %224 = arith.addf %207, %223 : vector<2x32xf32>
    %225 = arith.mulf %214, %224 : vector<2x32xf32>
    %226 = arith.addf %222, %225 : vector<2x32xf32>
    %227 = math.tanh %226 : vector<2x32xf32>
    %cst_171 = arith.constant 1.000000e+00 : f32
    %228 = vector.broadcast %cst_171 : f32 to vector<2x32xf32>
    %229 = arith.subf %228, %221 : vector<2x32xf32>
    %230 = arith.mulf %229, %227 : vector<2x32xf32>
    %231 = arith.mulf %221, %174 : vector<2x32xf32>
    %232 = arith.addf %230, %231 : vector<2x32xf32>
    %233 = arith.truncf %203 : vector<2x32xf32> to vector<2x32xbf16>
    %cst_172 = arith.constant dense<0.000000e+00> : vector<2x32xf32>
    %234 = tpu.matmul %233, %52, %cst_172 {dimension_numbers = #tpu.dot_dimension_numbers<[1], [0], [0], [1], [0, 0, 1, 1], [], []>} : vector<2x32xbf16>, vector<32x32xbf16>, vector<2x32xf32> -> vector<2x32xf32>
    %cst_173 = arith.constant dense<0.000000e+00> : vector<2x32xf32>
    %235 = tpu.matmul %233, %55, %cst_173 {dimension_numbers = #tpu.dot_dimension_numbers<[1], [0], [0], [1], [0, 0, 1, 1], [], []>} : vector<2x32xbf16>, vector<32x32xbf16>, vector<2x32xf32> -> vector<2x32xf32>
    %cst_174 = arith.constant dense<0.000000e+00> : vector<2x32xf32>
    %236 = tpu.matmul %233, %58, %cst_174 {dimension_numbers = #tpu.dot_dimension_numbers<[1], [0], [0], [1], [0, 0, 1, 1], [], []>} : vector<2x32xbf16>, vector<32x32xbf16>, vector<2x32xf32> -> vector<2x32xf32>
    %237 = vector.extract_strided_slice %67 {offsets = [4, 0], sizes = [2, 32], strides = [1, 1]} : vector<24x32xf32> to vector<2x32xf32>
    %238 = arith.addf %237, %234 : vector<2x32xf32>
    %239 = arith.negf %238 : vector<2x32xf32>
    %240 = math.exp %239 : vector<2x32xf32>
    %cst_175 = arith.constant 1.000000e+00 : f32
    %241 = vector.broadcast %cst_175 : f32 to vector<2x32xf32>
    %242 = arith.addf %241, %240 : vector<2x32xf32>
    %243 = arith.divf %241, %242 : vector<2x32xf32>
    %244 = vector.extract_strided_slice %72 {offsets = [4, 0], sizes = [2, 32], strides = [1, 1]} : vector<24x32xf32> to vector<2x32xf32>
    %245 = arith.addf %244, %235 : vector<2x32xf32>
    %246 = arith.negf %245 : vector<2x32xf32>
    %247 = math.exp %246 : vector<2x32xf32>
    %cst_176 = arith.constant 1.000000e+00 : f32
    %248 = vector.broadcast %cst_176 : f32 to vector<2x32xf32>
    %249 = arith.addf %248, %247 : vector<2x32xf32>
    %250 = arith.divf %248, %249 : vector<2x32xf32>
    %251 = vector.extract_strided_slice %77 {offsets = [4, 0], sizes = [2, 32], strides = [1, 1]} : vector<24x32xf32> to vector<2x32xf32>
    %252 = vector.broadcast %60 : vector<1x32xf32> to vector<2x32xf32>
    %253 = arith.addf %236, %252 : vector<2x32xf32>
    %254 = arith.mulf %243, %253 : vector<2x32xf32>
    %255 = arith.addf %251, %254 : vector<2x32xf32>
    %256 = math.tanh %255 : vector<2x32xf32>
    %cst_177 = arith.constant 1.000000e+00 : f32
    %257 = vector.broadcast %cst_177 : f32 to vector<2x32xf32>
    %258 = arith.subf %257, %250 : vector<2x32xf32>
    %259 = arith.mulf %258, %256 : vector<2x32xf32>
    %260 = arith.mulf %250, %203 : vector<2x32xf32>
    %261 = arith.addf %259, %260 : vector<2x32xf32>
    %262 = arith.truncf %232 : vector<2x32xf32> to vector<2x32xbf16>
    %cst_178 = arith.constant dense<0.000000e+00> : vector<2x32xf32>
    %263 = tpu.matmul %262, %90, %cst_178 {dimension_numbers = #tpu.dot_dimension_numbers<[1], [0], [0], [1], [0, 0, 1, 1], [], []>} : vector<2x32xbf16>, vector<32x32xbf16>, vector<2x32xf32> -> vector<2x32xf32>
    %cst_179 = arith.constant dense<0.000000e+00> : vector<2x32xf32>
    %264 = tpu.matmul %262, %93, %cst_179 {dimension_numbers = #tpu.dot_dimension_numbers<[1], [0], [0], [1], [0, 0, 1, 1], [], []>} : vector<2x32xbf16>, vector<32x32xbf16>, vector<2x32xf32> -> vector<2x32xf32>
    %cst_180 = arith.constant dense<0.000000e+00> : vector<2x32xf32>
    %265 = tpu.matmul %262, %96, %cst_180 {dimension_numbers = #tpu.dot_dimension_numbers<[1], [0], [0], [1], [0, 0, 1, 1], [], []>} : vector<2x32xbf16>, vector<32x32xbf16>, vector<2x32xf32> -> vector<2x32xf32>
    %266 = vector.extract_strided_slice %105 {offsets = [4, 0], sizes = [2, 32], strides = [1, 1]} : vector<24x32xf32> to vector<2x32xf32>
    %267 = arith.addf %266, %263 : vector<2x32xf32>
    %268 = arith.negf %267 : vector<2x32xf32>
    %269 = math.exp %268 : vector<2x32xf32>
    %cst_181 = arith.constant 1.000000e+00 : f32
    %270 = vector.broadcast %cst_181 : f32 to vector<2x32xf32>
    %271 = arith.addf %270, %269 : vector<2x32xf32>
    %272 = arith.divf %270, %271 : vector<2x32xf32>
    %273 = vector.extract_strided_slice %110 {offsets = [4, 0], sizes = [2, 32], strides = [1, 1]} : vector<24x32xf32> to vector<2x32xf32>
    %274 = arith.addf %273, %264 : vector<2x32xf32>
    %275 = arith.negf %274 : vector<2x32xf32>
    %276 = math.exp %275 : vector<2x32xf32>
    %cst_182 = arith.constant 1.000000e+00 : f32
    %277 = vector.broadcast %cst_182 : f32 to vector<2x32xf32>
    %278 = arith.addf %277, %276 : vector<2x32xf32>
    %279 = arith.divf %277, %278 : vector<2x32xf32>
    %280 = vector.extract_strided_slice %115 {offsets = [4, 0], sizes = [2, 32], strides = [1, 1]} : vector<24x32xf32> to vector<2x32xf32>
    %281 = vector.broadcast %98 : vector<1x32xf32> to vector<2x32xf32>
    %282 = arith.addf %265, %281 : vector<2x32xf32>
    %283 = arith.mulf %272, %282 : vector<2x32xf32>
    %284 = arith.addf %280, %283 : vector<2x32xf32>
    %285 = math.tanh %284 : vector<2x32xf32>
    %cst_183 = arith.constant 1.000000e+00 : f32
    %286 = vector.broadcast %cst_183 : f32 to vector<2x32xf32>
    %287 = arith.subf %286, %279 : vector<2x32xf32>
    %288 = arith.mulf %287, %285 : vector<2x32xf32>
    %289 = arith.mulf %279, %232 : vector<2x32xf32>
    %290 = arith.addf %288, %289 : vector<2x32xf32>
    %291 = arith.truncf %261 : vector<2x32xf32> to vector<2x32xbf16>
    %cst_184 = arith.constant dense<0.000000e+00> : vector<2x32xf32>
    %292 = tpu.matmul %291, %52, %cst_184 {dimension_numbers = #tpu.dot_dimension_numbers<[1], [0], [0], [1], [0, 0, 1, 1], [], []>} : vector<2x32xbf16>, vector<32x32xbf16>, vector<2x32xf32> -> vector<2x32xf32>
    %cst_185 = arith.constant dense<0.000000e+00> : vector<2x32xf32>
    %293 = tpu.matmul %291, %55, %cst_185 {dimension_numbers = #tpu.dot_dimension_numbers<[1], [0], [0], [1], [0, 0, 1, 1], [], []>} : vector<2x32xbf16>, vector<32x32xbf16>, vector<2x32xf32> -> vector<2x32xf32>
    %cst_186 = arith.constant dense<0.000000e+00> : vector<2x32xf32>
    %294 = tpu.matmul %291, %58, %cst_186 {dimension_numbers = #tpu.dot_dimension_numbers<[1], [0], [0], [1], [0, 0, 1, 1], [], []>} : vector<2x32xbf16>, vector<32x32xbf16>, vector<2x32xf32> -> vector<2x32xf32>
    %295 = vector.extract_strided_slice %67 {offsets = [6, 0], sizes = [2, 32], strides = [1, 1]} : vector<24x32xf32> to vector<2x32xf32>
    %296 = arith.addf %295, %292 : vector<2x32xf32>
    %297 = arith.negf %296 : vector<2x32xf32>
    %298 = math.exp %297 : vector<2x32xf32>
    %cst_187 = arith.constant 1.000000e+00 : f32
    %299 = vector.broadcast %cst_187 : f32 to vector<2x32xf32>
    %300 = arith.addf %299, %298 : vector<2x32xf32>
    %301 = arith.divf %299, %300 : vector<2x32xf32>
    %302 = vector.extract_strided_slice %72 {offsets = [6, 0], sizes = [2, 32], strides = [1, 1]} : vector<24x32xf32> to vector<2x32xf32>
    %303 = arith.addf %302, %293 : vector<2x32xf32>
    %304 = arith.negf %303 : vector<2x32xf32>
    %305 = math.exp %304 : vector<2x32xf32>
    %cst_188 = arith.constant 1.000000e+00 : f32
    %306 = vector.broadcast %cst_188 : f32 to vector<2x32xf32>
    %307 = arith.addf %306, %305 : vector<2x32xf32>
    %308 = arith.divf %306, %307 : vector<2x32xf32>
    %309 = vector.extract_strided_slice %77 {offsets = [6, 0], sizes = [2, 32], strides = [1, 1]} : vector<24x32xf32> to vector<2x32xf32>
    %310 = vector.broadcast %60 : vector<1x32xf32> to vector<2x32xf32>
    %311 = arith.addf %294, %310 : vector<2x32xf32>
    %312 = arith.mulf %301, %311 : vector<2x32xf32>
    %313 = arith.addf %309, %312 : vector<2x32xf32>
    %314 = math.tanh %313 : vector<2x32xf32>
    %cst_189 = arith.constant 1.000000e+00 : f32
    %315 = vector.broadcast %cst_189 : f32 to vector<2x32xf32>
    %316 = arith.subf %315, %308 : vector<2x32xf32>
    %317 = arith.mulf %316, %314 : vector<2x32xf32>
    %318 = arith.mulf %308, %261 : vector<2x32xf32>
    %319 = arith.addf %317, %318 : vector<2x32xf32>
    %320 = arith.truncf %290 : vector<2x32xf32> to vector<2x32xbf16>
    %cst_190 = arith.constant dense<0.000000e+00> : vector<2x32xf32>
    %321 = tpu.matmul %320, %90, %cst_190 {dimension_numbers = #tpu.dot_dimension_numbers<[1], [0], [0], [1], [0, 0, 1, 1], [], []>} : vector<2x32xbf16>, vector<32x32xbf16>, vector<2x32xf32> -> vector<2x32xf32>
    %cst_191 = arith.constant dense<0.000000e+00> : vector<2x32xf32>
    %322 = tpu.matmul %320, %93, %cst_191 {dimension_numbers = #tpu.dot_dimension_numbers<[1], [0], [0], [1], [0, 0, 1, 1], [], []>} : vector<2x32xbf16>, vector<32x32xbf16>, vector<2x32xf32> -> vector<2x32xf32>
    %cst_192 = arith.constant dense<0.000000e+00> : vector<2x32xf32>
    %323 = tpu.matmul %320, %96, %cst_192 {dimension_numbers = #tpu.dot_dimension_numbers<[1], [0], [0], [1], [0, 0, 1, 1], [], []>} : vector<2x32xbf16>, vector<32x32xbf16>, vector<2x32xf32> -> vector<2x32xf32>
    %324 = vector.extract_strided_slice %105 {offsets = [6, 0], sizes = [2, 32], strides = [1, 1]} : vector<24x32xf32> to vector<2x32xf32>
    %325 = arith.addf %324, %321 : vector<2x32xf32>
    %326 = arith.negf %325 : vector<2x32xf32>
    %327 = math.exp %326 : vector<2x32xf32>
    %cst_193 = arith.constant 1.000000e+00 : f32
    %328 = vector.broadcast %cst_193 : f32 to vector<2x32xf32>
    %329 = arith.addf %328, %327 : vector<2x32xf32>
    %330 = arith.divf %328, %329 : vector<2x32xf32>
    %331 = vector.extract_strided_slice %110 {offsets = [6, 0], sizes = [2, 32], strides = [1, 1]} : vector<24x32xf32> to vector<2x32xf32>
    %332 = arith.addf %331, %322 : vector<2x32xf32>
    %333 = arith.negf %332 : vector<2x32xf32>
    %334 = math.exp %333 : vector<2x32xf32>
    %cst_194 = arith.constant 1.000000e+00 : f32
    %335 = vector.broadcast %cst_194 : f32 to vector<2x32xf32>
    %336 = arith.addf %335, %334 : vector<2x32xf32>
    %337 = arith.divf %335, %336 : vector<2x32xf32>
    %338 = vector.extract_strided_slice %115 {offsets = [6, 0], sizes = [2, 32], strides = [1, 1]} : vector<24x32xf32> to vector<2x32xf32>
    %339 = vector.broadcast %98 : vector<1x32xf32> to vector<2x32xf32>
    %340 = arith.addf %323, %339 : vector<2x32xf32>
    %341 = arith.mulf %330, %340 : vector<2x32xf32>
    %342 = arith.addf %338, %341 : vector<2x32xf32>
    %343 = math.tanh %342 : vector<2x32xf32>
    %cst_195 = arith.constant 1.000000e+00 : f32
    %344 = vector.broadcast %cst_195 : f32 to vector<2x32xf32>
    %345 = arith.subf %344, %337 : vector<2x32xf32>
    %346 = arith.mulf %345, %343 : vector<2x32xf32>
    %347 = arith.mulf %337, %290 : vector<2x32xf32>
    %348 = arith.addf %346, %347 : vector<2x32xf32>
    %349 = arith.truncf %319 : vector<2x32xf32> to vector<2x32xbf16>
    %cst_196 = arith.constant dense<0.000000e+00> : vector<2x32xf32>
    %350 = tpu.matmul %349, %52, %cst_196 {dimension_numbers = #tpu.dot_dimension_numbers<[1], [0], [0], [1], [0, 0, 1, 1], [], []>} : vector<2x32xbf16>, vector<32x32xbf16>, vector<2x32xf32> -> vector<2x32xf32>
    %cst_197 = arith.constant dense<0.000000e+00> : vector<2x32xf32>
    %351 = tpu.matmul %349, %55, %cst_197 {dimension_numbers = #tpu.dot_dimension_numbers<[1], [0], [0], [1], [0, 0, 1, 1], [], []>} : vector<2x32xbf16>, vector<32x32xbf16>, vector<2x32xf32> -> vector<2x32xf32>
    %cst_198 = arith.constant dense<0.000000e+00> : vector<2x32xf32>
    %352 = tpu.matmul %349, %58, %cst_198 {dimension_numbers = #tpu.dot_dimension_numbers<[1], [0], [0], [1], [0, 0, 1, 1], [], []>} : vector<2x32xbf16>, vector<32x32xbf16>, vector<2x32xf32> -> vector<2x32xf32>
    %353 = vector.extract_strided_slice %67 {offsets = [8, 0], sizes = [2, 32], strides = [1, 1]} : vector<24x32xf32> to vector<2x32xf32>
    %354 = arith.addf %353, %350 : vector<2x32xf32>
    %355 = arith.negf %354 : vector<2x32xf32>
    %356 = math.exp %355 : vector<2x32xf32>
    %cst_199 = arith.constant 1.000000e+00 : f32
    %357 = vector.broadcast %cst_199 : f32 to vector<2x32xf32>
    %358 = arith.addf %357, %356 : vector<2x32xf32>
    %359 = arith.divf %357, %358 : vector<2x32xf32>
    %360 = vector.extract_strided_slice %72 {offsets = [8, 0], sizes = [2, 32], strides = [1, 1]} : vector<24x32xf32> to vector<2x32xf32>
    %361 = arith.addf %360, %351 : vector<2x32xf32>
    %362 = arith.negf %361 : vector<2x32xf32>
    %363 = math.exp %362 : vector<2x32xf32>
    %cst_200 = arith.constant 1.000000e+00 : f32
    %364 = vector.broadcast %cst_200 : f32 to vector<2x32xf32>
    %365 = arith.addf %364, %363 : vector<2x32xf32>
    %366 = arith.divf %364, %365 : vector<2x32xf32>
    %367 = vector.extract_strided_slice %77 {offsets = [8, 0], sizes = [2, 32], strides = [1, 1]} : vector<24x32xf32> to vector<2x32xf32>
    %368 = vector.broadcast %60 : vector<1x32xf32> to vector<2x32xf32>
    %369 = arith.addf %352, %368 : vector<2x32xf32>
    %370 = arith.mulf %359, %369 : vector<2x32xf32>
    %371 = arith.addf %367, %370 : vector<2x32xf32>
    %372 = math.tanh %371 : vector<2x32xf32>
    %cst_201 = arith.constant 1.000000e+00 : f32
    %373 = vector.broadcast %cst_201 : f32 to vector<2x32xf32>
    %374 = arith.subf %373, %366 : vector<2x32xf32>
    %375 = arith.mulf %374, %372 : vector<2x32xf32>
    %376 = arith.mulf %366, %319 : vector<2x32xf32>
    %377 = arith.addf %375, %376 : vector<2x32xf32>
    %378 = arith.truncf %348 : vector<2x32xf32> to vector<2x32xbf16>
    %cst_202 = arith.constant dense<0.000000e+00> : vector<2x32xf32>
    %379 = tpu.matmul %378, %90, %cst_202 {dimension_numbers = #tpu.dot_dimension_numbers<[1], [0], [0], [1], [0, 0, 1, 1], [], []>} : vector<2x32xbf16>, vector<32x32xbf16>, vector<2x32xf32> -> vector<2x32xf32>
    %cst_203 = arith.constant dense<0.000000e+00> : vector<2x32xf32>
    %380 = tpu.matmul %378, %93, %cst_203 {dimension_numbers = #tpu.dot_dimension_numbers<[1], [0], [0], [1], [0, 0, 1, 1], [], []>} : vector<2x32xbf16>, vector<32x32xbf16>, vector<2x32xf32> -> vector<2x32xf32>
    %cst_204 = arith.constant dense<0.000000e+00> : vector<2x32xf32>
    %381 = tpu.matmul %378, %96, %cst_204 {dimension_numbers = #tpu.dot_dimension_numbers<[1], [0], [0], [1], [0, 0, 1, 1], [], []>} : vector<2x32xbf16>, vector<32x32xbf16>, vector<2x32xf32> -> vector<2x32xf32>
    %382 = vector.extract_strided_slice %105 {offsets = [8, 0], sizes = [2, 32], strides = [1, 1]} : vector<24x32xf32> to vector<2x32xf32>
    %383 = arith.addf %382, %379 : vector<2x32xf32>
    %384 = arith.negf %383 : vector<2x32xf32>
    %385 = math.exp %384 : vector<2x32xf32>
    %cst_205 = arith.constant 1.000000e+00 : f32
    %386 = vector.broadcast %cst_205 : f32 to vector<2x32xf32>
    %387 = arith.addf %386, %385 : vector<2x32xf32>
    %388 = arith.divf %386, %387 : vector<2x32xf32>
    %389 = vector.extract_strided_slice %110 {offsets = [8, 0], sizes = [2, 32], strides = [1, 1]} : vector<24x32xf32> to vector<2x32xf32>
    %390 = arith.addf %389, %380 : vector<2x32xf32>
    %391 = arith.negf %390 : vector<2x32xf32>
    %392 = math.exp %391 : vector<2x32xf32>
    %cst_206 = arith.constant 1.000000e+00 : f32
    %393 = vector.broadcast %cst_206 : f32 to vector<2x32xf32>
    %394 = arith.addf %393, %392 : vector<2x32xf32>
    %395 = arith.divf %393, %394 : vector<2x32xf32>
    %396 = vector.extract_strided_slice %115 {offsets = [8, 0], sizes = [2, 32], strides = [1, 1]} : vector<24x32xf32> to vector<2x32xf32>
    %397 = vector.broadcast %98 : vector<1x32xf32> to vector<2x32xf32>
    %398 = arith.addf %381, %397 : vector<2x32xf32>
    %399 = arith.mulf %388, %398 : vector<2x32xf32>
    %400 = arith.addf %396, %399 : vector<2x32xf32>
    %401 = math.tanh %400 : vector<2x32xf32>
    %cst_207 = arith.constant 1.000000e+00 : f32
    %402 = vector.broadcast %cst_207 : f32 to vector<2x32xf32>
    %403 = arith.subf %402, %395 : vector<2x32xf32>
    %404 = arith.mulf %403, %401 : vector<2x32xf32>
    %405 = arith.mulf %395, %348 : vector<2x32xf32>
    %406 = arith.addf %404, %405 : vector<2x32xf32>
    %407 = arith.truncf %377 : vector<2x32xf32> to vector<2x32xbf16>
    %cst_208 = arith.constant dense<0.000000e+00> : vector<2x32xf32>
    %408 = tpu.matmul %407, %52, %cst_208 {dimension_numbers = #tpu.dot_dimension_numbers<[1], [0], [0], [1], [0, 0, 1, 1], [], []>} : vector<2x32xbf16>, vector<32x32xbf16>, vector<2x32xf32> -> vector<2x32xf32>
    %cst_209 = arith.constant dense<0.000000e+00> : vector<2x32xf32>
    %409 = tpu.matmul %407, %55, %cst_209 {dimension_numbers = #tpu.dot_dimension_numbers<[1], [0], [0], [1], [0, 0, 1, 1], [], []>} : vector<2x32xbf16>, vector<32x32xbf16>, vector<2x32xf32> -> vector<2x32xf32>
    %cst_210 = arith.constant dense<0.000000e+00> : vector<2x32xf32>
    %410 = tpu.matmul %407, %58, %cst_210 {dimension_numbers = #tpu.dot_dimension_numbers<[1], [0], [0], [1], [0, 0, 1, 1], [], []>} : vector<2x32xbf16>, vector<32x32xbf16>, vector<2x32xf32> -> vector<2x32xf32>
    %411 = vector.extract_strided_slice %67 {offsets = [10, 0], sizes = [2, 32], strides = [1, 1]} : vector<24x32xf32> to vector<2x32xf32>
    %412 = arith.addf %411, %408 : vector<2x32xf32>
    %413 = arith.negf %412 : vector<2x32xf32>
    %414 = math.exp %413 : vector<2x32xf32>
    %cst_211 = arith.constant 1.000000e+00 : f32
    %415 = vector.broadcast %cst_211 : f32 to vector<2x32xf32>
    %416 = arith.addf %415, %414 : vector<2x32xf32>
    %417 = arith.divf %415, %416 : vector<2x32xf32>
    %418 = vector.extract_strided_slice %72 {offsets = [10, 0], sizes = [2, 32], strides = [1, 1]} : vector<24x32xf32> to vector<2x32xf32>
    %419 = arith.addf %418, %409 : vector<2x32xf32>
    %420 = arith.negf %419 : vector<2x32xf32>
    %421 = math.exp %420 : vector<2x32xf32>
    %cst_212 = arith.constant 1.000000e+00 : f32
    %422 = vector.broadcast %cst_212 : f32 to vector<2x32xf32>
    %423 = arith.addf %422, %421 : vector<2x32xf32>
    %424 = arith.divf %422, %423 : vector<2x32xf32>
    %425 = vector.extract_strided_slice %77 {offsets = [10, 0], sizes = [2, 32], strides = [1, 1]} : vector<24x32xf32> to vector<2x32xf32>
    %426 = vector.broadcast %60 : vector<1x32xf32> to vector<2x32xf32>
    %427 = arith.addf %410, %426 : vector<2x32xf32>
    %428 = arith.mulf %417, %427 : vector<2x32xf32>
    %429 = arith.addf %425, %428 : vector<2x32xf32>
    %430 = math.tanh %429 : vector<2x32xf32>
    %cst_213 = arith.constant 1.000000e+00 : f32
    %431 = vector.broadcast %cst_213 : f32 to vector<2x32xf32>
    %432 = arith.subf %431, %424 : vector<2x32xf32>
    %433 = arith.mulf %432, %430 : vector<2x32xf32>
    %434 = arith.mulf %424, %377 : vector<2x32xf32>
    %435 = arith.addf %433, %434 : vector<2x32xf32>
    %436 = arith.truncf %406 : vector<2x32xf32> to vector<2x32xbf16>
    %cst_214 = arith.constant dense<0.000000e+00> : vector<2x32xf32>
    %437 = tpu.matmul %436, %90, %cst_214 {dimension_numbers = #tpu.dot_dimension_numbers<[1], [0], [0], [1], [0, 0, 1, 1], [], []>} : vector<2x32xbf16>, vector<32x32xbf16>, vector<2x32xf32> -> vector<2x32xf32>
    %cst_215 = arith.constant dense<0.000000e+00> : vector<2x32xf32>
    %438 = tpu.matmul %436, %93, %cst_215 {dimension_numbers = #tpu.dot_dimension_numbers<[1], [0], [0], [1], [0, 0, 1, 1], [], []>} : vector<2x32xbf16>, vector<32x32xbf16>, vector<2x32xf32> -> vector<2x32xf32>
    %cst_216 = arith.constant dense<0.000000e+00> : vector<2x32xf32>
    %439 = tpu.matmul %436, %96, %cst_216 {dimension_numbers = #tpu.dot_dimension_numbers<[1], [0], [0], [1], [0, 0, 1, 1], [], []>} : vector<2x32xbf16>, vector<32x32xbf16>, vector<2x32xf32> -> vector<2x32xf32>
    %440 = vector.extract_strided_slice %105 {offsets = [10, 0], sizes = [2, 32], strides = [1, 1]} : vector<24x32xf32> to vector<2x32xf32>
    %441 = arith.addf %440, %437 : vector<2x32xf32>
    %442 = arith.negf %441 : vector<2x32xf32>
    %443 = math.exp %442 : vector<2x32xf32>
    %cst_217 = arith.constant 1.000000e+00 : f32
    %444 = vector.broadcast %cst_217 : f32 to vector<2x32xf32>
    %445 = arith.addf %444, %443 : vector<2x32xf32>
    %446 = arith.divf %444, %445 : vector<2x32xf32>
    %447 = vector.extract_strided_slice %110 {offsets = [10, 0], sizes = [2, 32], strides = [1, 1]} : vector<24x32xf32> to vector<2x32xf32>
    %448 = arith.addf %447, %438 : vector<2x32xf32>
    %449 = arith.negf %448 : vector<2x32xf32>
    %450 = math.exp %449 : vector<2x32xf32>
    %cst_218 = arith.constant 1.000000e+00 : f32
    %451 = vector.broadcast %cst_218 : f32 to vector<2x32xf32>
    %452 = arith.addf %451, %450 : vector<2x32xf32>
    %453 = arith.divf %451, %452 : vector<2x32xf32>
    %454 = vector.extract_strided_slice %115 {offsets = [10, 0], sizes = [2, 32], strides = [1, 1]} : vector<24x32xf32> to vector<2x32xf32>
    %455 = vector.broadcast %98 : vector<1x32xf32> to vector<2x32xf32>
    %456 = arith.addf %439, %455 : vector<2x32xf32>
    %457 = arith.mulf %446, %456 : vector<2x32xf32>
    %458 = arith.addf %454, %457 : vector<2x32xf32>
    %459 = math.tanh %458 : vector<2x32xf32>
    %cst_219 = arith.constant 1.000000e+00 : f32
    %460 = vector.broadcast %cst_219 : f32 to vector<2x32xf32>
    %461 = arith.subf %460, %453 : vector<2x32xf32>
    %462 = arith.mulf %461, %459 : vector<2x32xf32>
    %463 = arith.mulf %453, %406 : vector<2x32xf32>
    %464 = arith.addf %462, %463 : vector<2x32xf32>
    %465 = arith.truncf %435 : vector<2x32xf32> to vector<2x32xbf16>
    %cst_220 = arith.constant dense<0.000000e+00> : vector<2x32xf32>
    %466 = tpu.matmul %465, %52, %cst_220 {dimension_numbers = #tpu.dot_dimension_numbers<[1], [0], [0], [1], [0, 0, 1, 1], [], []>} : vector<2x32xbf16>, vector<32x32xbf16>, vector<2x32xf32> -> vector<2x32xf32>
    %cst_221 = arith.constant dense<0.000000e+00> : vector<2x32xf32>
    %467 = tpu.matmul %465, %55, %cst_221 {dimension_numbers = #tpu.dot_dimension_numbers<[1], [0], [0], [1], [0, 0, 1, 1], [], []>} : vector<2x32xbf16>, vector<32x32xbf16>, vector<2x32xf32> -> vector<2x32xf32>
    %cst_222 = arith.constant dense<0.000000e+00> : vector<2x32xf32>
    %468 = tpu.matmul %465, %58, %cst_222 {dimension_numbers = #tpu.dot_dimension_numbers<[1], [0], [0], [1], [0, 0, 1, 1], [], []>} : vector<2x32xbf16>, vector<32x32xbf16>, vector<2x32xf32> -> vector<2x32xf32>
    %469 = vector.extract_strided_slice %67 {offsets = [12, 0], sizes = [2, 32], strides = [1, 1]} : vector<24x32xf32> to vector<2x32xf32>
    %470 = arith.addf %469, %466 : vector<2x32xf32>
    %471 = arith.negf %470 : vector<2x32xf32>
    %472 = math.exp %471 : vector<2x32xf32>
    %cst_223 = arith.constant 1.000000e+00 : f32
    %473 = vector.broadcast %cst_223 : f32 to vector<2x32xf32>
    %474 = arith.addf %473, %472 : vector<2x32xf32>
    %475 = arith.divf %473, %474 : vector<2x32xf32>
    %476 = vector.extract_strided_slice %72 {offsets = [12, 0], sizes = [2, 32], strides = [1, 1]} : vector<24x32xf32> to vector<2x32xf32>
    %477 = arith.addf %476, %467 : vector<2x32xf32>
    %478 = arith.negf %477 : vector<2x32xf32>
    %479 = math.exp %478 : vector<2x32xf32>
    %cst_224 = arith.constant 1.000000e+00 : f32
    %480 = vector.broadcast %cst_224 : f32 to vector<2x32xf32>
    %481 = arith.addf %480, %479 : vector<2x32xf32>
    %482 = arith.divf %480, %481 : vector<2x32xf32>
    %483 = vector.extract_strided_slice %77 {offsets = [12, 0], sizes = [2, 32], strides = [1, 1]} : vector<24x32xf32> to vector<2x32xf32>
    %484 = vector.broadcast %60 : vector<1x32xf32> to vector<2x32xf32>
    %485 = arith.addf %468, %484 : vector<2x32xf32>
    %486 = arith.mulf %475, %485 : vector<2x32xf32>
    %487 = arith.addf %483, %486 : vector<2x32xf32>
    %488 = math.tanh %487 : vector<2x32xf32>
    %cst_225 = arith.constant 1.000000e+00 : f32
    %489 = vector.broadcast %cst_225 : f32 to vector<2x32xf32>
    %490 = arith.subf %489, %482 : vector<2x32xf32>
    %491 = arith.mulf %490, %488 : vector<2x32xf32>
    %492 = arith.mulf %482, %435 : vector<2x32xf32>
    %493 = arith.addf %491, %492 : vector<2x32xf32>
    %494 = arith.truncf %464 : vector<2x32xf32> to vector<2x32xbf16>
    %cst_226 = arith.constant dense<0.000000e+00> : vector<2x32xf32>
    %495 = tpu.matmul %494, %90, %cst_226 {dimension_numbers = #tpu.dot_dimension_numbers<[1], [0], [0], [1], [0, 0, 1, 1], [], []>} : vector<2x32xbf16>, vector<32x32xbf16>, vector<2x32xf32> -> vector<2x32xf32>
    %cst_227 = arith.constant dense<0.000000e+00> : vector<2x32xf32>
    %496 = tpu.matmul %494, %93, %cst_227 {dimension_numbers = #tpu.dot_dimension_numbers<[1], [0], [0], [1], [0, 0, 1, 1], [], []>} : vector<2x32xbf16>, vector<32x32xbf16>, vector<2x32xf32> -> vector<2x32xf32>
    %cst_228 = arith.constant dense<0.000000e+00> : vector<2x32xf32>
    %497 = tpu.matmul %494, %96, %cst_228 {dimension_numbers = #tpu.dot_dimension_numbers<[1], [0], [0], [1], [0, 0, 1, 1], [], []>} : vector<2x32xbf16>, vector<32x32xbf16>, vector<2x32xf32> -> vector<2x32xf32>
    %498 = vector.extract_strided_slice %105 {offsets = [12, 0], sizes = [2, 32], strides = [1, 1]} : vector<24x32xf32> to vector<2x32xf32>
    %499 = arith.addf %498, %495 : vector<2x32xf32>
    %500 = arith.negf %499 : vector<2x32xf32>
    %501 = math.exp %500 : vector<2x32xf32>
    %cst_229 = arith.constant 1.000000e+00 : f32
    %502 = vector.broadcast %cst_229 : f32 to vector<2x32xf32>
    %503 = arith.addf %502, %501 : vector<2x32xf32>
    %504 = arith.divf %502, %503 : vector<2x32xf32>
    %505 = vector.extract_strided_slice %110 {offsets = [12, 0], sizes = [2, 32], strides = [1, 1]} : vector<24x32xf32> to vector<2x32xf32>
    %506 = arith.addf %505, %496 : vector<2x32xf32>
    %507 = arith.negf %506 : vector<2x32xf32>
    %508 = math.exp %507 : vector<2x32xf32>
    %cst_230 = arith.constant 1.000000e+00 : f32
    %509 = vector.broadcast %cst_230 : f32 to vector<2x32xf32>
    %510 = arith.addf %509, %508 : vector<2x32xf32>
    %511 = arith.divf %509, %510 : vector<2x32xf32>
    %512 = vector.extract_strided_slice %115 {offsets = [12, 0], sizes = [2, 32], strides = [1, 1]} : vector<24x32xf32> to vector<2x32xf32>
    %513 = vector.broadcast %98 : vector<1x32xf32> to vector<2x32xf32>
    %514 = arith.addf %497, %513 : vector<2x32xf32>
    %515 = arith.mulf %504, %514 : vector<2x32xf32>
    %516 = arith.addf %512, %515 : vector<2x32xf32>
    %517 = math.tanh %516 : vector<2x32xf32>
    %cst_231 = arith.constant 1.000000e+00 : f32
    %518 = vector.broadcast %cst_231 : f32 to vector<2x32xf32>
    %519 = arith.subf %518, %511 : vector<2x32xf32>
    %520 = arith.mulf %519, %517 : vector<2x32xf32>
    %521 = arith.mulf %511, %464 : vector<2x32xf32>
    %522 = arith.addf %520, %521 : vector<2x32xf32>
    %523 = arith.truncf %493 : vector<2x32xf32> to vector<2x32xbf16>
    %cst_232 = arith.constant dense<0.000000e+00> : vector<2x32xf32>
    %524 = tpu.matmul %523, %52, %cst_232 {dimension_numbers = #tpu.dot_dimension_numbers<[1], [0], [0], [1], [0, 0, 1, 1], [], []>} : vector<2x32xbf16>, vector<32x32xbf16>, vector<2x32xf32> -> vector<2x32xf32>
    %cst_233 = arith.constant dense<0.000000e+00> : vector<2x32xf32>
    %525 = tpu.matmul %523, %55, %cst_233 {dimension_numbers = #tpu.dot_dimension_numbers<[1], [0], [0], [1], [0, 0, 1, 1], [], []>} : vector<2x32xbf16>, vector<32x32xbf16>, vector<2x32xf32> -> vector<2x32xf32>
    %cst_234 = arith.constant dense<0.000000e+00> : vector<2x32xf32>
    %526 = tpu.matmul %523, %58, %cst_234 {dimension_numbers = #tpu.dot_dimension_numbers<[1], [0], [0], [1], [0, 0, 1, 1], [], []>} : vector<2x32xbf16>, vector<32x32xbf16>, vector<2x32xf32> -> vector<2x32xf32>
    %527 = vector.extract_strided_slice %67 {offsets = [14, 0], sizes = [2, 32], strides = [1, 1]} : vector<24x32xf32> to vector<2x32xf32>
    %528 = arith.addf %527, %524 : vector<2x32xf32>
    %529 = arith.negf %528 : vector<2x32xf32>
    %530 = math.exp %529 : vector<2x32xf32>
    %cst_235 = arith.constant 1.000000e+00 : f32
    %531 = vector.broadcast %cst_235 : f32 to vector<2x32xf32>
    %532 = arith.addf %531, %530 : vector<2x32xf32>
    %533 = arith.divf %531, %532 : vector<2x32xf32>
    %534 = vector.extract_strided_slice %72 {offsets = [14, 0], sizes = [2, 32], strides = [1, 1]} : vector<24x32xf32> to vector<2x32xf32>
    %535 = arith.addf %534, %525 : vector<2x32xf32>
    %536 = arith.negf %535 : vector<2x32xf32>
    %537 = math.exp %536 : vector<2x32xf32>
    %cst_236 = arith.constant 1.000000e+00 : f32
    %538 = vector.broadcast %cst_236 : f32 to vector<2x32xf32>
    %539 = arith.addf %538, %537 : vector<2x32xf32>
    %540 = arith.divf %538, %539 : vector<2x32xf32>
    %541 = vector.extract_strided_slice %77 {offsets = [14, 0], sizes = [2, 32], strides = [1, 1]} : vector<24x32xf32> to vector<2x32xf32>
    %542 = vector.broadcast %60 : vector<1x32xf32> to vector<2x32xf32>
    %543 = arith.addf %526, %542 : vector<2x32xf32>
    %544 = arith.mulf %533, %543 : vector<2x32xf32>
    %545 = arith.addf %541, %544 : vector<2x32xf32>
    %546 = math.tanh %545 : vector<2x32xf32>
    %cst_237 = arith.constant 1.000000e+00 : f32
    %547 = vector.broadcast %cst_237 : f32 to vector<2x32xf32>
    %548 = arith.subf %547, %540 : vector<2x32xf32>
    %549 = arith.mulf %548, %546 : vector<2x32xf32>
    %550 = arith.mulf %540, %493 : vector<2x32xf32>
    %551 = arith.addf %549, %550 : vector<2x32xf32>
    %552 = arith.truncf %522 : vector<2x32xf32> to vector<2x32xbf16>
    %cst_238 = arith.constant dense<0.000000e+00> : vector<2x32xf32>
    %553 = tpu.matmul %552, %90, %cst_238 {dimension_numbers = #tpu.dot_dimension_numbers<[1], [0], [0], [1], [0, 0, 1, 1], [], []>} : vector<2x32xbf16>, vector<32x32xbf16>, vector<2x32xf32> -> vector<2x32xf32>
    %cst_239 = arith.constant dense<0.000000e+00> : vector<2x32xf32>
    %554 = tpu.matmul %552, %93, %cst_239 {dimension_numbers = #tpu.dot_dimension_numbers<[1], [0], [0], [1], [0, 0, 1, 1], [], []>} : vector<2x32xbf16>, vector<32x32xbf16>, vector<2x32xf32> -> vector<2x32xf32>
    %cst_240 = arith.constant dense<0.000000e+00> : vector<2x32xf32>
    %555 = tpu.matmul %552, %96, %cst_240 {dimension_numbers = #tpu.dot_dimension_numbers<[1], [0], [0], [1], [0, 0, 1, 1], [], []>} : vector<2x32xbf16>, vector<32x32xbf16>, vector<2x32xf32> -> vector<2x32xf32>
    %556 = vector.extract_strided_slice %105 {offsets = [14, 0], sizes = [2, 32], strides = [1, 1]} : vector<24x32xf32> to vector<2x32xf32>
    %557 = arith.addf %556, %553 : vector<2x32xf32>
    %558 = arith.negf %557 : vector<2x32xf32>
    %559 = math.exp %558 : vector<2x32xf32>
    %cst_241 = arith.constant 1.000000e+00 : f32
    %560 = vector.broadcast %cst_241 : f32 to vector<2x32xf32>
    %561 = arith.addf %560, %559 : vector<2x32xf32>
    %562 = arith.divf %560, %561 : vector<2x32xf32>
    %563 = vector.extract_strided_slice %110 {offsets = [14, 0], sizes = [2, 32], strides = [1, 1]} : vector<24x32xf32> to vector<2x32xf32>
    %564 = arith.addf %563, %554 : vector<2x32xf32>
    %565 = arith.negf %564 : vector<2x32xf32>
    %566 = math.exp %565 : vector<2x32xf32>
    %cst_242 = arith.constant 1.000000e+00 : f32
    %567 = vector.broadcast %cst_242 : f32 to vector<2x32xf32>
    %568 = arith.addf %567, %566 : vector<2x32xf32>
    %569 = arith.divf %567, %568 : vector<2x32xf32>
    %570 = vector.extract_strided_slice %115 {offsets = [14, 0], sizes = [2, 32], strides = [1, 1]} : vector<24x32xf32> to vector<2x32xf32>
    %571 = vector.broadcast %98 : vector<1x32xf32> to vector<2x32xf32>
    %572 = arith.addf %555, %571 : vector<2x32xf32>
    %573 = arith.mulf %562, %572 : vector<2x32xf32>
    %574 = arith.addf %570, %573 : vector<2x32xf32>
    %575 = math.tanh %574 : vector<2x32xf32>
    %cst_243 = arith.constant 1.000000e+00 : f32
    %576 = vector.broadcast %cst_243 : f32 to vector<2x32xf32>
    %577 = arith.subf %576, %569 : vector<2x32xf32>
    %578 = arith.mulf %577, %575 : vector<2x32xf32>
    %579 = arith.mulf %569, %522 : vector<2x32xf32>
    %580 = arith.addf %578, %579 : vector<2x32xf32>
    %581 = arith.truncf %551 : vector<2x32xf32> to vector<2x32xbf16>
    %cst_244 = arith.constant dense<0.000000e+00> : vector<2x32xf32>
    %582 = tpu.matmul %581, %52, %cst_244 {dimension_numbers = #tpu.dot_dimension_numbers<[1], [0], [0], [1], [0, 0, 1, 1], [], []>} : vector<2x32xbf16>, vector<32x32xbf16>, vector<2x32xf32> -> vector<2x32xf32>
    %cst_245 = arith.constant dense<0.000000e+00> : vector<2x32xf32>
    %583 = tpu.matmul %581, %55, %cst_245 {dimension_numbers = #tpu.dot_dimension_numbers<[1], [0], [0], [1], [0, 0, 1, 1], [], []>} : vector<2x32xbf16>, vector<32x32xbf16>, vector<2x32xf32> -> vector<2x32xf32>
    %cst_246 = arith.constant dense<0.000000e+00> : vector<2x32xf32>
    %584 = tpu.matmul %581, %58, %cst_246 {dimension_numbers = #tpu.dot_dimension_numbers<[1], [0], [0], [1], [0, 0, 1, 1], [], []>} : vector<2x32xbf16>, vector<32x32xbf16>, vector<2x32xf32> -> vector<2x32xf32>
    %585 = vector.extract_strided_slice %67 {offsets = [16, 0], sizes = [2, 32], strides = [1, 1]} : vector<24x32xf32> to vector<2x32xf32>
    %586 = arith.addf %585, %582 : vector<2x32xf32>
    %587 = arith.negf %586 : vector<2x32xf32>
    %588 = math.exp %587 : vector<2x32xf32>
    %cst_247 = arith.constant 1.000000e+00 : f32
    %589 = vector.broadcast %cst_247 : f32 to vector<2x32xf32>
    %590 = arith.addf %589, %588 : vector<2x32xf32>
    %591 = arith.divf %589, %590 : vector<2x32xf32>
    %592 = vector.extract_strided_slice %72 {offsets = [16, 0], sizes = [2, 32], strides = [1, 1]} : vector<24x32xf32> to vector<2x32xf32>
    %593 = arith.addf %592, %583 : vector<2x32xf32>
    %594 = arith.negf %593 : vector<2x32xf32>
    %595 = math.exp %594 : vector<2x32xf32>
    %cst_248 = arith.constant 1.000000e+00 : f32
    %596 = vector.broadcast %cst_248 : f32 to vector<2x32xf32>
    %597 = arith.addf %596, %595 : vector<2x32xf32>
    %598 = arith.divf %596, %597 : vector<2x32xf32>
    %599 = vector.extract_strided_slice %77 {offsets = [16, 0], sizes = [2, 32], strides = [1, 1]} : vector<24x32xf32> to vector<2x32xf32>
    %600 = vector.broadcast %60 : vector<1x32xf32> to vector<2x32xf32>
    %601 = arith.addf %584, %600 : vector<2x32xf32>
    %602 = arith.mulf %591, %601 : vector<2x32xf32>
    %603 = arith.addf %599, %602 : vector<2x32xf32>
    %604 = math.tanh %603 : vector<2x32xf32>
    %cst_249 = arith.constant 1.000000e+00 : f32
    %605 = vector.broadcast %cst_249 : f32 to vector<2x32xf32>
    %606 = arith.subf %605, %598 : vector<2x32xf32>
    %607 = arith.mulf %606, %604 : vector<2x32xf32>
    %608 = arith.mulf %598, %551 : vector<2x32xf32>
    %609 = arith.addf %607, %608 : vector<2x32xf32>
    %610 = arith.truncf %580 : vector<2x32xf32> to vector<2x32xbf16>
    %cst_250 = arith.constant dense<0.000000e+00> : vector<2x32xf32>
    %611 = tpu.matmul %610, %90, %cst_250 {dimension_numbers = #tpu.dot_dimension_numbers<[1], [0], [0], [1], [0, 0, 1, 1], [], []>} : vector<2x32xbf16>, vector<32x32xbf16>, vector<2x32xf32> -> vector<2x32xf32>
    %cst_251 = arith.constant dense<0.000000e+00> : vector<2x32xf32>
    %612 = tpu.matmul %610, %93, %cst_251 {dimension_numbers = #tpu.dot_dimension_numbers<[1], [0], [0], [1], [0, 0, 1, 1], [], []>} : vector<2x32xbf16>, vector<32x32xbf16>, vector<2x32xf32> -> vector<2x32xf32>
    %cst_252 = arith.constant dense<0.000000e+00> : vector<2x32xf32>
    %613 = tpu.matmul %610, %96, %cst_252 {dimension_numbers = #tpu.dot_dimension_numbers<[1], [0], [0], [1], [0, 0, 1, 1], [], []>} : vector<2x32xbf16>, vector<32x32xbf16>, vector<2x32xf32> -> vector<2x32xf32>
    %614 = vector.extract_strided_slice %105 {offsets = [16, 0], sizes = [2, 32], strides = [1, 1]} : vector<24x32xf32> to vector<2x32xf32>
    %615 = arith.addf %614, %611 : vector<2x32xf32>
    %616 = arith.negf %615 : vector<2x32xf32>
    %617 = math.exp %616 : vector<2x32xf32>
    %cst_253 = arith.constant 1.000000e+00 : f32
    %618 = vector.broadcast %cst_253 : f32 to vector<2x32xf32>
    %619 = arith.addf %618, %617 : vector<2x32xf32>
    %620 = arith.divf %618, %619 : vector<2x32xf32>
    %621 = vector.extract_strided_slice %110 {offsets = [16, 0], sizes = [2, 32], strides = [1, 1]} : vector<24x32xf32> to vector<2x32xf32>
    %622 = arith.addf %621, %612 : vector<2x32xf32>
    %623 = arith.negf %622 : vector<2x32xf32>
    %624 = math.exp %623 : vector<2x32xf32>
    %cst_254 = arith.constant 1.000000e+00 : f32
    %625 = vector.broadcast %cst_254 : f32 to vector<2x32xf32>
    %626 = arith.addf %625, %624 : vector<2x32xf32>
    %627 = arith.divf %625, %626 : vector<2x32xf32>
    %628 = vector.extract_strided_slice %115 {offsets = [16, 0], sizes = [2, 32], strides = [1, 1]} : vector<24x32xf32> to vector<2x32xf32>
    %629 = vector.broadcast %98 : vector<1x32xf32> to vector<2x32xf32>
    %630 = arith.addf %613, %629 : vector<2x32xf32>
    %631 = arith.mulf %620, %630 : vector<2x32xf32>
    %632 = arith.addf %628, %631 : vector<2x32xf32>
    %633 = math.tanh %632 : vector<2x32xf32>
    %cst_255 = arith.constant 1.000000e+00 : f32
    %634 = vector.broadcast %cst_255 : f32 to vector<2x32xf32>
    %635 = arith.subf %634, %627 : vector<2x32xf32>
    %636 = arith.mulf %635, %633 : vector<2x32xf32>
    %637 = arith.mulf %627, %580 : vector<2x32xf32>
    %638 = arith.addf %636, %637 : vector<2x32xf32>
    %639 = arith.truncf %609 : vector<2x32xf32> to vector<2x32xbf16>
    %cst_256 = arith.constant dense<0.000000e+00> : vector<2x32xf32>
    %640 = tpu.matmul %639, %52, %cst_256 {dimension_numbers = #tpu.dot_dimension_numbers<[1], [0], [0], [1], [0, 0, 1, 1], [], []>} : vector<2x32xbf16>, vector<32x32xbf16>, vector<2x32xf32> -> vector<2x32xf32>
    %cst_257 = arith.constant dense<0.000000e+00> : vector<2x32xf32>
    %641 = tpu.matmul %639, %55, %cst_257 {dimension_numbers = #tpu.dot_dimension_numbers<[1], [0], [0], [1], [0, 0, 1, 1], [], []>} : vector<2x32xbf16>, vector<32x32xbf16>, vector<2x32xf32> -> vector<2x32xf32>
    %cst_258 = arith.constant dense<0.000000e+00> : vector<2x32xf32>
    %642 = tpu.matmul %639, %58, %cst_258 {dimension_numbers = #tpu.dot_dimension_numbers<[1], [0], [0], [1], [0, 0, 1, 1], [], []>} : vector<2x32xbf16>, vector<32x32xbf16>, vector<2x32xf32> -> vector<2x32xf32>
    %643 = vector.extract_strided_slice %67 {offsets = [18, 0], sizes = [2, 32], strides = [1, 1]} : vector<24x32xf32> to vector<2x32xf32>
    %644 = arith.addf %643, %640 : vector<2x32xf32>
    %645 = arith.negf %644 : vector<2x32xf32>
    %646 = math.exp %645 : vector<2x32xf32>
    %cst_259 = arith.constant 1.000000e+00 : f32
    %647 = vector.broadcast %cst_259 : f32 to vector<2x32xf32>
    %648 = arith.addf %647, %646 : vector<2x32xf32>
    %649 = arith.divf %647, %648 : vector<2x32xf32>
    %650 = vector.extract_strided_slice %72 {offsets = [18, 0], sizes = [2, 32], strides = [1, 1]} : vector<24x32xf32> to vector<2x32xf32>
    %651 = arith.addf %650, %641 : vector<2x32xf32>
    %652 = arith.negf %651 : vector<2x32xf32>
    %653 = math.exp %652 : vector<2x32xf32>
    %cst_260 = arith.constant 1.000000e+00 : f32
    %654 = vector.broadcast %cst_260 : f32 to vector<2x32xf32>
    %655 = arith.addf %654, %653 : vector<2x32xf32>
    %656 = arith.divf %654, %655 : vector<2x32xf32>
    %657 = vector.extract_strided_slice %77 {offsets = [18, 0], sizes = [2, 32], strides = [1, 1]} : vector<24x32xf32> to vector<2x32xf32>
    %658 = vector.broadcast %60 : vector<1x32xf32> to vector<2x32xf32>
    %659 = arith.addf %642, %658 : vector<2x32xf32>
    %660 = arith.mulf %649, %659 : vector<2x32xf32>
    %661 = arith.addf %657, %660 : vector<2x32xf32>
    %662 = math.tanh %661 : vector<2x32xf32>
    %cst_261 = arith.constant 1.000000e+00 : f32
    %663 = vector.broadcast %cst_261 : f32 to vector<2x32xf32>
    %664 = arith.subf %663, %656 : vector<2x32xf32>
    %665 = arith.mulf %664, %662 : vector<2x32xf32>
    %666 = arith.mulf %656, %609 : vector<2x32xf32>
    %667 = arith.addf %665, %666 : vector<2x32xf32>
    %668 = arith.truncf %638 : vector<2x32xf32> to vector<2x32xbf16>
    %cst_262 = arith.constant dense<0.000000e+00> : vector<2x32xf32>
    %669 = tpu.matmul %668, %90, %cst_262 {dimension_numbers = #tpu.dot_dimension_numbers<[1], [0], [0], [1], [0, 0, 1, 1], [], []>} : vector<2x32xbf16>, vector<32x32xbf16>, vector<2x32xf32> -> vector<2x32xf32>
    %cst_263 = arith.constant dense<0.000000e+00> : vector<2x32xf32>
    %670 = tpu.matmul %668, %93, %cst_263 {dimension_numbers = #tpu.dot_dimension_numbers<[1], [0], [0], [1], [0, 0, 1, 1], [], []>} : vector<2x32xbf16>, vector<32x32xbf16>, vector<2x32xf32> -> vector<2x32xf32>
    %cst_264 = arith.constant dense<0.000000e+00> : vector<2x32xf32>
    %671 = tpu.matmul %668, %96, %cst_264 {dimension_numbers = #tpu.dot_dimension_numbers<[1], [0], [0], [1], [0, 0, 1, 1], [], []>} : vector<2x32xbf16>, vector<32x32xbf16>, vector<2x32xf32> -> vector<2x32xf32>
    %672 = vector.extract_strided_slice %105 {offsets = [18, 0], sizes = [2, 32], strides = [1, 1]} : vector<24x32xf32> to vector<2x32xf32>
    %673 = arith.addf %672, %669 : vector<2x32xf32>
    %674 = arith.negf %673 : vector<2x32xf32>
    %675 = math.exp %674 : vector<2x32xf32>
    %cst_265 = arith.constant 1.000000e+00 : f32
    %676 = vector.broadcast %cst_265 : f32 to vector<2x32xf32>
    %677 = arith.addf %676, %675 : vector<2x32xf32>
    %678 = arith.divf %676, %677 : vector<2x32xf32>
    %679 = vector.extract_strided_slice %110 {offsets = [18, 0], sizes = [2, 32], strides = [1, 1]} : vector<24x32xf32> to vector<2x32xf32>
    %680 = arith.addf %679, %670 : vector<2x32xf32>
    %681 = arith.negf %680 : vector<2x32xf32>
    %682 = math.exp %681 : vector<2x32xf32>
    %cst_266 = arith.constant 1.000000e+00 : f32
    %683 = vector.broadcast %cst_266 : f32 to vector<2x32xf32>
    %684 = arith.addf %683, %682 : vector<2x32xf32>
    %685 = arith.divf %683, %684 : vector<2x32xf32>
    %686 = vector.extract_strided_slice %115 {offsets = [18, 0], sizes = [2, 32], strides = [1, 1]} : vector<24x32xf32> to vector<2x32xf32>
    %687 = vector.broadcast %98 : vector<1x32xf32> to vector<2x32xf32>
    %688 = arith.addf %671, %687 : vector<2x32xf32>
    %689 = arith.mulf %678, %688 : vector<2x32xf32>
    %690 = arith.addf %686, %689 : vector<2x32xf32>
    %691 = math.tanh %690 : vector<2x32xf32>
    %cst_267 = arith.constant 1.000000e+00 : f32
    %692 = vector.broadcast %cst_267 : f32 to vector<2x32xf32>
    %693 = arith.subf %692, %685 : vector<2x32xf32>
    %694 = arith.mulf %693, %691 : vector<2x32xf32>
    %695 = arith.mulf %685, %638 : vector<2x32xf32>
    %696 = arith.addf %694, %695 : vector<2x32xf32>
    %697 = arith.truncf %667 : vector<2x32xf32> to vector<2x32xbf16>
    %cst_268 = arith.constant dense<0.000000e+00> : vector<2x32xf32>
    %698 = tpu.matmul %697, %52, %cst_268 {dimension_numbers = #tpu.dot_dimension_numbers<[1], [0], [0], [1], [0, 0, 1, 1], [], []>} : vector<2x32xbf16>, vector<32x32xbf16>, vector<2x32xf32> -> vector<2x32xf32>
    %cst_269 = arith.constant dense<0.000000e+00> : vector<2x32xf32>
    %699 = tpu.matmul %697, %55, %cst_269 {dimension_numbers = #tpu.dot_dimension_numbers<[1], [0], [0], [1], [0, 0, 1, 1], [], []>} : vector<2x32xbf16>, vector<32x32xbf16>, vector<2x32xf32> -> vector<2x32xf32>
    %cst_270 = arith.constant dense<0.000000e+00> : vector<2x32xf32>
    %700 = tpu.matmul %697, %58, %cst_270 {dimension_numbers = #tpu.dot_dimension_numbers<[1], [0], [0], [1], [0, 0, 1, 1], [], []>} : vector<2x32xbf16>, vector<32x32xbf16>, vector<2x32xf32> -> vector<2x32xf32>
    %701 = vector.extract_strided_slice %67 {offsets = [20, 0], sizes = [2, 32], strides = [1, 1]} : vector<24x32xf32> to vector<2x32xf32>
    %702 = arith.addf %701, %698 : vector<2x32xf32>
    %703 = arith.negf %702 : vector<2x32xf32>
    %704 = math.exp %703 : vector<2x32xf32>
    %cst_271 = arith.constant 1.000000e+00 : f32
    %705 = vector.broadcast %cst_271 : f32 to vector<2x32xf32>
    %706 = arith.addf %705, %704 : vector<2x32xf32>
    %707 = arith.divf %705, %706 : vector<2x32xf32>
    %708 = vector.extract_strided_slice %72 {offsets = [20, 0], sizes = [2, 32], strides = [1, 1]} : vector<24x32xf32> to vector<2x32xf32>
    %709 = arith.addf %708, %699 : vector<2x32xf32>
    %710 = arith.negf %709 : vector<2x32xf32>
    %711 = math.exp %710 : vector<2x32xf32>
    %cst_272 = arith.constant 1.000000e+00 : f32
    %712 = vector.broadcast %cst_272 : f32 to vector<2x32xf32>
    %713 = arith.addf %712, %711 : vector<2x32xf32>
    %714 = arith.divf %712, %713 : vector<2x32xf32>
    %715 = vector.extract_strided_slice %77 {offsets = [20, 0], sizes = [2, 32], strides = [1, 1]} : vector<24x32xf32> to vector<2x32xf32>
    %716 = vector.broadcast %60 : vector<1x32xf32> to vector<2x32xf32>
    %717 = arith.addf %700, %716 : vector<2x32xf32>
    %718 = arith.mulf %707, %717 : vector<2x32xf32>
    %719 = arith.addf %715, %718 : vector<2x32xf32>
    %720 = math.tanh %719 : vector<2x32xf32>
    %cst_273 = arith.constant 1.000000e+00 : f32
    %721 = vector.broadcast %cst_273 : f32 to vector<2x32xf32>
    %722 = arith.subf %721, %714 : vector<2x32xf32>
    %723 = arith.mulf %722, %720 : vector<2x32xf32>
    %724 = arith.mulf %714, %667 : vector<2x32xf32>
    %725 = arith.addf %723, %724 : vector<2x32xf32>
    %726 = arith.truncf %696 : vector<2x32xf32> to vector<2x32xbf16>
    %cst_274 = arith.constant dense<0.000000e+00> : vector<2x32xf32>
    %727 = tpu.matmul %726, %90, %cst_274 {dimension_numbers = #tpu.dot_dimension_numbers<[1], [0], [0], [1], [0, 0, 1, 1], [], []>} : vector<2x32xbf16>, vector<32x32xbf16>, vector<2x32xf32> -> vector<2x32xf32>
    %cst_275 = arith.constant dense<0.000000e+00> : vector<2x32xf32>
    %728 = tpu.matmul %726, %93, %cst_275 {dimension_numbers = #tpu.dot_dimension_numbers<[1], [0], [0], [1], [0, 0, 1, 1], [], []>} : vector<2x32xbf16>, vector<32x32xbf16>, vector<2x32xf32> -> vector<2x32xf32>
    %cst_276 = arith.constant dense<0.000000e+00> : vector<2x32xf32>
    %729 = tpu.matmul %726, %96, %cst_276 {dimension_numbers = #tpu.dot_dimension_numbers<[1], [0], [0], [1], [0, 0, 1, 1], [], []>} : vector<2x32xbf16>, vector<32x32xbf16>, vector<2x32xf32> -> vector<2x32xf32>
    %730 = vector.extract_strided_slice %105 {offsets = [20, 0], sizes = [2, 32], strides = [1, 1]} : vector<24x32xf32> to vector<2x32xf32>
    %731 = arith.addf %730, %727 : vector<2x32xf32>
    %732 = arith.negf %731 : vector<2x32xf32>
    %733 = math.exp %732 : vector<2x32xf32>
    %cst_277 = arith.constant 1.000000e+00 : f32
    %734 = vector.broadcast %cst_277 : f32 to vector<2x32xf32>
    %735 = arith.addf %734, %733 : vector<2x32xf32>
    %736 = arith.divf %734, %735 : vector<2x32xf32>
    %737 = vector.extract_strided_slice %110 {offsets = [20, 0], sizes = [2, 32], strides = [1, 1]} : vector<24x32xf32> to vector<2x32xf32>
    %738 = arith.addf %737, %728 : vector<2x32xf32>
    %739 = arith.negf %738 : vector<2x32xf32>
    %740 = math.exp %739 : vector<2x32xf32>
    %cst_278 = arith.constant 1.000000e+00 : f32
    %741 = vector.broadcast %cst_278 : f32 to vector<2x32xf32>
    %742 = arith.addf %741, %740 : vector<2x32xf32>
    %743 = arith.divf %741, %742 : vector<2x32xf32>
    %744 = vector.extract_strided_slice %115 {offsets = [20, 0], sizes = [2, 32], strides = [1, 1]} : vector<24x32xf32> to vector<2x32xf32>
    %745 = vector.broadcast %98 : vector<1x32xf32> to vector<2x32xf32>
    %746 = arith.addf %729, %745 : vector<2x32xf32>
    %747 = arith.mulf %736, %746 : vector<2x32xf32>
    %748 = arith.addf %744, %747 : vector<2x32xf32>
    %749 = math.tanh %748 : vector<2x32xf32>
    %cst_279 = arith.constant 1.000000e+00 : f32
    %750 = vector.broadcast %cst_279 : f32 to vector<2x32xf32>
    %751 = arith.subf %750, %743 : vector<2x32xf32>
    %752 = arith.mulf %751, %749 : vector<2x32xf32>
    %753 = arith.mulf %743, %696 : vector<2x32xf32>
    %754 = arith.addf %752, %753 : vector<2x32xf32>
    %755 = arith.truncf %725 : vector<2x32xf32> to vector<2x32xbf16>
    %cst_280 = arith.constant dense<0.000000e+00> : vector<2x32xf32>
    %756 = tpu.matmul %755, %52, %cst_280 {dimension_numbers = #tpu.dot_dimension_numbers<[1], [0], [0], [1], [0, 0, 1, 1], [], []>} : vector<2x32xbf16>, vector<32x32xbf16>, vector<2x32xf32> -> vector<2x32xf32>
    %cst_281 = arith.constant dense<0.000000e+00> : vector<2x32xf32>
    %757 = tpu.matmul %755, %55, %cst_281 {dimension_numbers = #tpu.dot_dimension_numbers<[1], [0], [0], [1], [0, 0, 1, 1], [], []>} : vector<2x32xbf16>, vector<32x32xbf16>, vector<2x32xf32> -> vector<2x32xf32>
    %cst_282 = arith.constant dense<0.000000e+00> : vector<2x32xf32>
    %758 = tpu.matmul %755, %58, %cst_282 {dimension_numbers = #tpu.dot_dimension_numbers<[1], [0], [0], [1], [0, 0, 1, 1], [], []>} : vector<2x32xbf16>, vector<32x32xbf16>, vector<2x32xf32> -> vector<2x32xf32>
    %759 = vector.extract_strided_slice %67 {offsets = [22, 0], sizes = [2, 32], strides = [1, 1]} : vector<24x32xf32> to vector<2x32xf32>
    %760 = arith.addf %759, %756 : vector<2x32xf32>
    %761 = arith.negf %760 : vector<2x32xf32>
    %762 = math.exp %761 : vector<2x32xf32>
    %cst_283 = arith.constant 1.000000e+00 : f32
    %763 = vector.broadcast %cst_283 : f32 to vector<2x32xf32>
    %764 = arith.addf %763, %762 : vector<2x32xf32>
    %765 = arith.divf %763, %764 : vector<2x32xf32>
    %766 = vector.extract_strided_slice %72 {offsets = [22, 0], sizes = [2, 32], strides = [1, 1]} : vector<24x32xf32> to vector<2x32xf32>
    %767 = arith.addf %766, %757 : vector<2x32xf32>
    %768 = arith.negf %767 : vector<2x32xf32>
    %769 = math.exp %768 : vector<2x32xf32>
    %cst_284 = arith.constant 1.000000e+00 : f32
    %770 = vector.broadcast %cst_284 : f32 to vector<2x32xf32>
    %771 = arith.addf %770, %769 : vector<2x32xf32>
    %772 = arith.divf %770, %771 : vector<2x32xf32>
    %773 = vector.extract_strided_slice %77 {offsets = [22, 0], sizes = [2, 32], strides = [1, 1]} : vector<24x32xf32> to vector<2x32xf32>
    %774 = vector.broadcast %60 : vector<1x32xf32> to vector<2x32xf32>
    %775 = arith.addf %758, %774 : vector<2x32xf32>
    %776 = arith.mulf %765, %775 : vector<2x32xf32>
    %777 = arith.addf %773, %776 : vector<2x32xf32>
    %778 = math.tanh %777 : vector<2x32xf32>
    %cst_285 = arith.constant 1.000000e+00 : f32
    %779 = vector.broadcast %cst_285 : f32 to vector<2x32xf32>
    %780 = arith.subf %779, %772 : vector<2x32xf32>
    %781 = arith.mulf %780, %778 : vector<2x32xf32>
    %782 = arith.mulf %772, %725 : vector<2x32xf32>
    %783 = arith.addf %781, %782 : vector<2x32xf32>
    %784 = arith.truncf %754 : vector<2x32xf32> to vector<2x32xbf16>
    %cst_286 = arith.constant dense<0.000000e+00> : vector<2x32xf32>
    %785 = tpu.matmul %784, %90, %cst_286 {dimension_numbers = #tpu.dot_dimension_numbers<[1], [0], [0], [1], [0, 0, 1, 1], [], []>} : vector<2x32xbf16>, vector<32x32xbf16>, vector<2x32xf32> -> vector<2x32xf32>
    %cst_287 = arith.constant dense<0.000000e+00> : vector<2x32xf32>
    %786 = tpu.matmul %784, %93, %cst_287 {dimension_numbers = #tpu.dot_dimension_numbers<[1], [0], [0], [1], [0, 0, 1, 1], [], []>} : vector<2x32xbf16>, vector<32x32xbf16>, vector<2x32xf32> -> vector<2x32xf32>
    %cst_288 = arith.constant dense<0.000000e+00> : vector<2x32xf32>
    %787 = tpu.matmul %784, %96, %cst_288 {dimension_numbers = #tpu.dot_dimension_numbers<[1], [0], [0], [1], [0, 0, 1, 1], [], []>} : vector<2x32xbf16>, vector<32x32xbf16>, vector<2x32xf32> -> vector<2x32xf32>
    %788 = vector.extract_strided_slice %105 {offsets = [22, 0], sizes = [2, 32], strides = [1, 1]} : vector<24x32xf32> to vector<2x32xf32>
    %789 = arith.addf %788, %785 : vector<2x32xf32>
    %790 = arith.negf %789 : vector<2x32xf32>
    %791 = math.exp %790 : vector<2x32xf32>
    %cst_289 = arith.constant 1.000000e+00 : f32
    %792 = vector.broadcast %cst_289 : f32 to vector<2x32xf32>
    %793 = arith.addf %792, %791 : vector<2x32xf32>
    %794 = arith.divf %792, %793 : vector<2x32xf32>
    %795 = vector.extract_strided_slice %110 {offsets = [22, 0], sizes = [2, 32], strides = [1, 1]} : vector<24x32xf32> to vector<2x32xf32>
    %796 = arith.addf %795, %786 : vector<2x32xf32>
    %797 = arith.negf %796 : vector<2x32xf32>
    %798 = math.exp %797 : vector<2x32xf32>
    %cst_290 = arith.constant 1.000000e+00 : f32
    %799 = vector.broadcast %cst_290 : f32 to vector<2x32xf32>
    %800 = arith.addf %799, %798 : vector<2x32xf32>
    %801 = arith.divf %799, %800 : vector<2x32xf32>
    %802 = vector.extract_strided_slice %115 {offsets = [22, 0], sizes = [2, 32], strides = [1, 1]} : vector<24x32xf32> to vector<2x32xf32>
    %803 = vector.broadcast %98 : vector<1x32xf32> to vector<2x32xf32>
    %804 = arith.addf %787, %803 : vector<2x32xf32>
    %805 = arith.mulf %794, %804 : vector<2x32xf32>
    %806 = arith.addf %802, %805 : vector<2x32xf32>
    %807 = math.tanh %806 : vector<2x32xf32>
    %cst_291 = arith.constant 1.000000e+00 : f32
    %808 = vector.broadcast %cst_291 : f32 to vector<2x32xf32>
    %809 = arith.subf %808, %801 : vector<2x32xf32>
    %810 = arith.mulf %809, %807 : vector<2x32xf32>
    %811 = arith.mulf %801, %754 : vector<2x32xf32>
    %812 = arith.addf %810, %811 : vector<2x32xf32>
    %c0_292 = arith.constant 0 : index
    %c0_293 = arith.constant 0 : index
    %c0_294 = arith.constant 0 : index
    %c0_295 = arith.constant 0 : index
    %813 = vector.load %arg2[%c0_292, %c0_293, %c0_294, %c0_295] : memref<4x3x32x32xf32, #tpu.memory_space<vmem>>, vector<1x1x32x32xf32>
    %814 = vector.shape_cast %813 : vector<1x1x32x32xf32> to vector<32x32xf32>
    %815 = arith.truncf %814 : vector<32x32xf32> to vector<32x32xbf16>
    %c0_296 = arith.constant 0 : index
    %c1_297 = arith.constant 1 : index
    %c0_298 = arith.constant 0 : index
    %c0_299 = arith.constant 0 : index
    %816 = vector.load %arg2[%c0_296, %c1_297, %c0_298, %c0_299] : memref<4x3x32x32xf32, #tpu.memory_space<vmem>>, vector<1x1x32x32xf32>
    %817 = vector.shape_cast %816 : vector<1x1x32x32xf32> to vector<32x32xf32>
    %818 = arith.truncf %817 : vector<32x32xf32> to vector<32x32xbf16>
    %c0_300 = arith.constant 0 : index
    %c2_301 = arith.constant 2 : index
    %c0_302 = arith.constant 0 : index
    %c0_303 = arith.constant 0 : index
    %819 = vector.load %arg2[%c0_300, %c2_301, %c0_302, %c0_303] : memref<4x3x32x32xf32, #tpu.memory_space<vmem>>, vector<1x1x32x32xf32>
    %820 = vector.shape_cast %819 : vector<1x1x32x32xf32> to vector<32x32xf32>
    %821 = arith.truncf %820 : vector<32x32xf32> to vector<32x32xbf16>
    %c1_304 = arith.constant 1 : index
    %c0_305 = arith.constant 0 : index
    %c0_306 = arith.constant 0 : index
    %c0_307 = arith.constant 0 : index
    %822 = vector.load %arg3[%c1_304, %c0_305, %c0_306, %c0_307] : memref<6x3x32x32xf32, #tpu.memory_space<vmem>>, vector<1x1x32x32xf32>
    %823 = vector.shape_cast %822 : vector<1x1x32x32xf32> to vector<32x32xf32>
    %824 = arith.truncf %823 : vector<32x32xf32> to vector<32x32xbf16>
    %c1_308 = arith.constant 1 : index
    %c1_309 = arith.constant 1 : index
    %c0_310 = arith.constant 0 : index
    %c0_311 = arith.constant 0 : index
    %825 = vector.load %arg3[%c1_308, %c1_309, %c0_310, %c0_311] : memref<6x3x32x32xf32, #tpu.memory_space<vmem>>, vector<1x1x32x32xf32>
    %826 = vector.shape_cast %825 : vector<1x1x32x32xf32> to vector<32x32xf32>
    %827 = arith.truncf %826 : vector<32x32xf32> to vector<32x32xbf16>
    %c1_312 = arith.constant 1 : index
    %c2_313 = arith.constant 2 : index
    %c0_314 = arith.constant 0 : index
    %c0_315 = arith.constant 0 : index
    %828 = vector.load %arg3[%c1_312, %c2_313, %c0_314, %c0_315] : memref<6x3x32x32xf32, #tpu.memory_space<vmem>>, vector<1x1x32x32xf32>
    %829 = vector.shape_cast %828 : vector<1x1x32x32xf32> to vector<32x32xf32>
    %830 = arith.truncf %829 : vector<32x32xf32> to vector<32x32xbf16>
    %c1_316 = arith.constant 1 : index
    %c0_317 = arith.constant 0 : index
    %c0_318 = arith.constant 0 : index
    %831 = vector.load %arg5[%c1_316, %c0_317, %c0_318] : memref<6x1x32xf32, #tpu.memory_space<vmem>>, vector<1x1x32xf32>
    %832 = vector.shape_cast %831 : vector<1x1x32xf32> to vector<1x32xf32>
    %833 = tpu.concatenate %145, %203 in 0 : vector<2x32xf32>, vector<2x32xf32> -> vector<4x32xf32>
    %834 = tpu.concatenate %261, %319 in 0 : vector<2x32xf32>, vector<2x32xf32> -> vector<4x32xf32>
    %835 = tpu.concatenate %377, %435 in 0 : vector<2x32xf32>, vector<2x32xf32> -> vector<4x32xf32>
    %836 = tpu.concatenate %493, %551 in 0 : vector<2x32xf32>, vector<2x32xf32> -> vector<4x32xf32>
    %837 = tpu.concatenate %609, %667 in 0 : vector<2x32xf32>, vector<2x32xf32> -> vector<4x32xf32>
    %838 = tpu.concatenate %725, %783 in 0 : vector<2x32xf32>, vector<2x32xf32> -> vector<4x32xf32>
    %839 = tpu.concatenate %833, %834, %835, %836, %837, %838 in 0 : vector<4x32xf32>, vector<4x32xf32>, vector<4x32xf32>, vector<4x32xf32>, vector<4x32xf32>, vector<4x32xf32> -> vector<24x32xf32>
    %840 = arith.truncf %839 : vector<24x32xf32> to vector<24x32xbf16>
    %cst_319 = arith.constant dense<0.000000e+00> : vector<24x32xf32>
    %841 = tpu.matmul %840, %815, %cst_319 {dimension_numbers = #tpu.dot_dimension_numbers<[1], [0], [0], [1], [0, 0, 1, 1], [], []>} : vector<24x32xbf16>, vector<32x32xbf16>, vector<24x32xf32> -> vector<24x32xf32>
    %c3_320 = arith.constant 3 : index
    %c0_321 = arith.constant 0 : index
    %c0_322 = arith.constant 0 : index
    %842 = vector.load %arg4[%c3_320, %c0_321, %c0_322] : memref<18x1x32xf32, #tpu.memory_space<vmem>>, vector<1x1x32xf32>
    %843 = vector.shape_cast %842 : vector<1x1x32xf32> to vector<1x32xf32>
    %844 = vector.broadcast %843 : vector<1x32xf32> to vector<24x32xf32>
    %845 = arith.addf %841, %844 : vector<24x32xf32>
    %cst_323 = arith.constant dense<0.000000e+00> : vector<24x32xf32>
    %846 = tpu.matmul %840, %818, %cst_323 {dimension_numbers = #tpu.dot_dimension_numbers<[1], [0], [0], [1], [0, 0, 1, 1], [], []>} : vector<24x32xbf16>, vector<32x32xbf16>, vector<24x32xf32> -> vector<24x32xf32>
    %c4_324 = arith.constant 4 : index
    %c0_325 = arith.constant 0 : index
    %c0_326 = arith.constant 0 : index
    %847 = vector.load %arg4[%c4_324, %c0_325, %c0_326] : memref<18x1x32xf32, #tpu.memory_space<vmem>>, vector<1x1x32xf32>
    %848 = vector.shape_cast %847 : vector<1x1x32xf32> to vector<1x32xf32>
    %849 = vector.broadcast %848 : vector<1x32xf32> to vector<24x32xf32>
    %850 = arith.addf %846, %849 : vector<24x32xf32>
    %cst_327 = arith.constant dense<0.000000e+00> : vector<24x32xf32>
    %851 = tpu.matmul %840, %821, %cst_327 {dimension_numbers = #tpu.dot_dimension_numbers<[1], [0], [0], [1], [0, 0, 1, 1], [], []>} : vector<24x32xbf16>, vector<32x32xbf16>, vector<24x32xf32> -> vector<24x32xf32>
    %c5_328 = arith.constant 5 : index
    %c0_329 = arith.constant 0 : index
    %c0_330 = arith.constant 0 : index
    %852 = vector.load %arg4[%c5_328, %c0_329, %c0_330] : memref<18x1x32xf32, #tpu.memory_space<vmem>>, vector<1x1x32xf32>
    %853 = vector.shape_cast %852 : vector<1x1x32xf32> to vector<1x32xf32>
    %854 = vector.broadcast %853 : vector<1x32xf32> to vector<24x32xf32>
    %855 = arith.addf %851, %854 : vector<24x32xf32>
    %cst_331 = arith.constant 0.000000e+00 : f32
    %856 = vector.broadcast %cst_331 : f32 to vector<4x32xf32>
    %c2_332 = arith.constant 2 : index
    %c0_333 = arith.constant 0 : index
    %c0_334 = arith.constant 0 : index
    %c0_335 = arith.constant 0 : index
    %857 = vector.load %arg2[%c2_332, %c0_333, %c0_334, %c0_335] : memref<4x3x32x32xf32, #tpu.memory_space<vmem>>, vector<1x1x32x32xf32>
    %858 = vector.shape_cast %857 : vector<1x1x32x32xf32> to vector<32x32xf32>
    %859 = arith.truncf %858 : vector<32x32xf32> to vector<32x32xbf16>
    %c2_336 = arith.constant 2 : index
    %c1_337 = arith.constant 1 : index
    %c0_338 = arith.constant 0 : index
    %c0_339 = arith.constant 0 : index
    %860 = vector.load %arg2[%c2_336, %c1_337, %c0_338, %c0_339] : memref<4x3x32x32xf32, #tpu.memory_space<vmem>>, vector<1x1x32x32xf32>
    %861 = vector.shape_cast %860 : vector<1x1x32x32xf32> to vector<32x32xf32>
    %862 = arith.truncf %861 : vector<32x32xf32> to vector<32x32xbf16>
    %c2_340 = arith.constant 2 : index
    %c2_341 = arith.constant 2 : index
    %c0_342 = arith.constant 0 : index
    %c0_343 = arith.constant 0 : index
    %863 = vector.load %arg2[%c2_340, %c2_341, %c0_342, %c0_343] : memref<4x3x32x32xf32, #tpu.memory_space<vmem>>, vector<1x1x32x32xf32>
    %864 = vector.shape_cast %863 : vector<1x1x32x32xf32> to vector<32x32xf32>
    %865 = arith.truncf %864 : vector<32x32xf32> to vector<32x32xbf16>
    %c4_344 = arith.constant 4 : index
    %c0_345 = arith.constant 0 : index
    %c0_346 = arith.constant 0 : index
    %c0_347 = arith.constant 0 : index
    %866 = vector.load %arg3[%c4_344, %c0_345, %c0_346, %c0_347] : memref<6x3x32x32xf32, #tpu.memory_space<vmem>>, vector<1x1x32x32xf32>
    %867 = vector.shape_cast %866 : vector<1x1x32x32xf32> to vector<32x32xf32>
    %868 = arith.truncf %867 : vector<32x32xf32> to vector<32x32xbf16>
    %c4_348 = arith.constant 4 : index
    %c1_349 = arith.constant 1 : index
    %c0_350 = arith.constant 0 : index
    %c0_351 = arith.constant 0 : index
    %869 = vector.load %arg3[%c4_348, %c1_349, %c0_350, %c0_351] : memref<6x3x32x32xf32, #tpu.memory_space<vmem>>, vector<1x1x32x32xf32>
    %870 = vector.shape_cast %869 : vector<1x1x32x32xf32> to vector<32x32xf32>
    %871 = arith.truncf %870 : vector<32x32xf32> to vector<32x32xbf16>
    %c4_352 = arith.constant 4 : index
    %c2_353 = arith.constant 2 : index
    %c0_354 = arith.constant 0 : index
    %c0_355 = arith.constant 0 : index
    %872 = vector.load %arg3[%c4_352, %c2_353, %c0_354, %c0_355] : memref<6x3x32x32xf32, #tpu.memory_space<vmem>>, vector<1x1x32x32xf32>
    %873 = vector.shape_cast %872 : vector<1x1x32x32xf32> to vector<32x32xf32>
    %874 = arith.truncf %873 : vector<32x32xf32> to vector<32x32xbf16>
    %c4_356 = arith.constant 4 : index
    %c0_357 = arith.constant 0 : index
    %c0_358 = arith.constant 0 : index
    %875 = vector.load %arg5[%c4_356, %c0_357, %c0_358] : memref<6x1x32xf32, #tpu.memory_space<vmem>>, vector<1x1x32xf32>
    %876 = vector.shape_cast %875 : vector<1x1x32xf32> to vector<1x32xf32>
    %877 = tpu.concatenate %174, %232 in 0 : vector<2x32xf32>, vector<2x32xf32> -> vector<4x32xf32>
    %878 = tpu.concatenate %290, %348 in 0 : vector<2x32xf32>, vector<2x32xf32> -> vector<4x32xf32>
    %879 = tpu.concatenate %406, %464 in 0 : vector<2x32xf32>, vector<2x32xf32> -> vector<4x32xf32>
    %880 = tpu.concatenate %522, %580 in 0 : vector<2x32xf32>, vector<2x32xf32> -> vector<4x32xf32>
    %881 = tpu.concatenate %638, %696 in 0 : vector<2x32xf32>, vector<2x32xf32> -> vector<4x32xf32>
    %882 = tpu.concatenate %754, %812 in 0 : vector<2x32xf32>, vector<2x32xf32> -> vector<4x32xf32>
    %883 = tpu.concatenate %877, %878, %879, %880, %881, %882 in 0 : vector<4x32xf32>, vector<4x32xf32>, vector<4x32xf32>, vector<4x32xf32>, vector<4x32xf32>, vector<4x32xf32> -> vector<24x32xf32>
    %884 = arith.truncf %883 : vector<24x32xf32> to vector<24x32xbf16>
    %cst_359 = arith.constant dense<0.000000e+00> : vector<24x32xf32>
    %885 = tpu.matmul %884, %859, %cst_359 {dimension_numbers = #tpu.dot_dimension_numbers<[1], [0], [0], [1], [0, 0, 1, 1], [], []>} : vector<24x32xbf16>, vector<32x32xbf16>, vector<24x32xf32> -> vector<24x32xf32>
    %c12 = arith.constant 12 : index
    %c0_360 = arith.constant 0 : index
    %c0_361 = arith.constant 0 : index
    %886 = vector.load %arg4[%c12, %c0_360, %c0_361] : memref<18x1x32xf32, #tpu.memory_space<vmem>>, vector<1x1x32xf32>
    %887 = vector.shape_cast %886 : vector<1x1x32xf32> to vector<1x32xf32>
    %888 = vector.broadcast %887 : vector<1x32xf32> to vector<24x32xf32>
    %889 = arith.addf %885, %888 : vector<24x32xf32>
    %cst_362 = arith.constant dense<0.000000e+00> : vector<24x32xf32>
    %890 = tpu.matmul %884, %862, %cst_362 {dimension_numbers = #tpu.dot_dimension_numbers<[1], [0], [0], [1], [0, 0, 1, 1], [], []>} : vector<24x32xbf16>, vector<32x32xbf16>, vector<24x32xf32> -> vector<24x32xf32>
    %c13 = arith.constant 13 : index
    %c0_363 = arith.constant 0 : index
    %c0_364 = arith.constant 0 : index
    %891 = vector.load %arg4[%c13, %c0_363, %c0_364] : memref<18x1x32xf32, #tpu.memory_space<vmem>>, vector<1x1x32xf32>
    %892 = vector.shape_cast %891 : vector<1x1x32xf32> to vector<1x32xf32>
    %893 = vector.broadcast %892 : vector<1x32xf32> to vector<24x32xf32>
    %894 = arith.addf %890, %893 : vector<24x32xf32>
    %cst_365 = arith.constant dense<0.000000e+00> : vector<24x32xf32>
    %895 = tpu.matmul %884, %865, %cst_365 {dimension_numbers = #tpu.dot_dimension_numbers<[1], [0], [0], [1], [0, 0, 1, 1], [], []>} : vector<24x32xbf16>, vector<32x32xbf16>, vector<24x32xf32> -> vector<24x32xf32>
    %c14 = arith.constant 14 : index
    %c0_366 = arith.constant 0 : index
    %c0_367 = arith.constant 0 : index
    %896 = vector.load %arg4[%c14, %c0_366, %c0_367] : memref<18x1x32xf32, #tpu.memory_space<vmem>>, vector<1x1x32xf32>
    %897 = vector.shape_cast %896 : vector<1x1x32xf32> to vector<1x32xf32>
    %898 = vector.broadcast %897 : vector<1x32xf32> to vector<24x32xf32>
    %899 = arith.addf %895, %898 : vector<24x32xf32>
    %cst_368 = arith.constant 0.000000e+00 : f32
    %900 = vector.broadcast %cst_368 : f32 to vector<4x32xf32>
    %901 = arith.truncf %856 : vector<4x32xf32> to vector<4x32xbf16>
    %cst_369 = arith.constant dense<0.000000e+00> : vector<4x32xf32>
    %902 = tpu.matmul %901, %824, %cst_369 {dimension_numbers = #tpu.dot_dimension_numbers<[1], [0], [0], [1], [0, 0, 1, 1], [], []>} : vector<4x32xbf16>, vector<32x32xbf16>, vector<4x32xf32> -> vector<4x32xf32>
    %cst_370 = arith.constant dense<0.000000e+00> : vector<4x32xf32>
    %903 = tpu.matmul %901, %827, %cst_370 {dimension_numbers = #tpu.dot_dimension_numbers<[1], [0], [0], [1], [0, 0, 1, 1], [], []>} : vector<4x32xbf16>, vector<32x32xbf16>, vector<4x32xf32> -> vector<4x32xf32>
    %cst_371 = arith.constant dense<0.000000e+00> : vector<4x32xf32>
    %904 = tpu.matmul %901, %830, %cst_371 {dimension_numbers = #tpu.dot_dimension_numbers<[1], [0], [0], [1], [0, 0, 1, 1], [], []>} : vector<4x32xbf16>, vector<32x32xbf16>, vector<4x32xf32> -> vector<4x32xf32>
    %905 = vector.extract_strided_slice %845 {offsets = [0, 0], sizes = [4, 32], strides = [1, 1]} : vector<24x32xf32> to vector<4x32xf32>
    %906 = arith.addf %905, %902 : vector<4x32xf32>
    %907 = arith.negf %906 : vector<4x32xf32>
    %908 = math.exp %907 : vector<4x32xf32>
    %cst_372 = arith.constant 1.000000e+00 : f32
    %909 = vector.broadcast %cst_372 : f32 to vector<4x32xf32>
    %910 = arith.addf %909, %908 : vector<4x32xf32>
    %911 = arith.divf %909, %910 : vector<4x32xf32>
    %912 = vector.extract_strided_slice %850 {offsets = [0, 0], sizes = [4, 32], strides = [1, 1]} : vector<24x32xf32> to vector<4x32xf32>
    %913 = arith.addf %912, %903 : vector<4x32xf32>
    %914 = arith.negf %913 : vector<4x32xf32>
    %915 = math.exp %914 : vector<4x32xf32>
    %cst_373 = arith.constant 1.000000e+00 : f32
    %916 = vector.broadcast %cst_373 : f32 to vector<4x32xf32>
    %917 = arith.addf %916, %915 : vector<4x32xf32>
    %918 = arith.divf %916, %917 : vector<4x32xf32>
    %919 = vector.extract_strided_slice %855 {offsets = [0, 0], sizes = [4, 32], strides = [1, 1]} : vector<24x32xf32> to vector<4x32xf32>
    %920 = vector.broadcast %832 : vector<1x32xf32> to vector<4x32xf32>
    %921 = arith.addf %904, %920 : vector<4x32xf32>
    %922 = arith.mulf %911, %921 : vector<4x32xf32>
    %923 = arith.addf %919, %922 : vector<4x32xf32>
    %924 = math.tanh %923 : vector<4x32xf32>
    %cst_374 = arith.constant 1.000000e+00 : f32
    %925 = vector.broadcast %cst_374 : f32 to vector<4x32xf32>
    %926 = arith.subf %925, %918 : vector<4x32xf32>
    %927 = arith.mulf %926, %924 : vector<4x32xf32>
    %928 = arith.mulf %918, %856 : vector<4x32xf32>
    %929 = arith.addf %927, %928 : vector<4x32xf32>
    %930 = arith.truncf %900 : vector<4x32xf32> to vector<4x32xbf16>
    %cst_375 = arith.constant dense<0.000000e+00> : vector<4x32xf32>
    %931 = tpu.matmul %930, %868, %cst_375 {dimension_numbers = #tpu.dot_dimension_numbers<[1], [0], [0], [1], [0, 0, 1, 1], [], []>} : vector<4x32xbf16>, vector<32x32xbf16>, vector<4x32xf32> -> vector<4x32xf32>
    %cst_376 = arith.constant dense<0.000000e+00> : vector<4x32xf32>
    %932 = tpu.matmul %930, %871, %cst_376 {dimension_numbers = #tpu.dot_dimension_numbers<[1], [0], [0], [1], [0, 0, 1, 1], [], []>} : vector<4x32xbf16>, vector<32x32xbf16>, vector<4x32xf32> -> vector<4x32xf32>
    %cst_377 = arith.constant dense<0.000000e+00> : vector<4x32xf32>
    %933 = tpu.matmul %930, %874, %cst_377 {dimension_numbers = #tpu.dot_dimension_numbers<[1], [0], [0], [1], [0, 0, 1, 1], [], []>} : vector<4x32xbf16>, vector<32x32xbf16>, vector<4x32xf32> -> vector<4x32xf32>
    %934 = vector.extract_strided_slice %889 {offsets = [0, 0], sizes = [4, 32], strides = [1, 1]} : vector<24x32xf32> to vector<4x32xf32>
    %935 = arith.addf %934, %931 : vector<4x32xf32>
    %936 = arith.negf %935 : vector<4x32xf32>
    %937 = math.exp %936 : vector<4x32xf32>
    %cst_378 = arith.constant 1.000000e+00 : f32
    %938 = vector.broadcast %cst_378 : f32 to vector<4x32xf32>
    %939 = arith.addf %938, %937 : vector<4x32xf32>
    %940 = arith.divf %938, %939 : vector<4x32xf32>
    %941 = vector.extract_strided_slice %894 {offsets = [0, 0], sizes = [4, 32], strides = [1, 1]} : vector<24x32xf32> to vector<4x32xf32>
    %942 = arith.addf %941, %932 : vector<4x32xf32>
    %943 = arith.negf %942 : vector<4x32xf32>
    %944 = math.exp %943 : vector<4x32xf32>
    %cst_379 = arith.constant 1.000000e+00 : f32
    %945 = vector.broadcast %cst_379 : f32 to vector<4x32xf32>
    %946 = arith.addf %945, %944 : vector<4x32xf32>
    %947 = arith.divf %945, %946 : vector<4x32xf32>
    %948 = vector.extract_strided_slice %899 {offsets = [0, 0], sizes = [4, 32], strides = [1, 1]} : vector<24x32xf32> to vector<4x32xf32>
    %949 = vector.broadcast %876 : vector<1x32xf32> to vector<4x32xf32>
    %950 = arith.addf %933, %949 : vector<4x32xf32>
    %951 = arith.mulf %940, %950 : vector<4x32xf32>
    %952 = arith.addf %948, %951 : vector<4x32xf32>
    %953 = math.tanh %952 : vector<4x32xf32>
    %cst_380 = arith.constant 1.000000e+00 : f32
    %954 = vector.broadcast %cst_380 : f32 to vector<4x32xf32>
    %955 = arith.subf %954, %947 : vector<4x32xf32>
    %956 = arith.mulf %955, %953 : vector<4x32xf32>
    %957 = arith.mulf %947, %900 : vector<4x32xf32>
    %958 = arith.addf %956, %957 : vector<4x32xf32>
    %959 = arith.truncf %929 : vector<4x32xf32> to vector<4x32xbf16>
    %cst_381 = arith.constant dense<0.000000e+00> : vector<4x32xf32>
    %960 = tpu.matmul %959, %824, %cst_381 {dimension_numbers = #tpu.dot_dimension_numbers<[1], [0], [0], [1], [0, 0, 1, 1], [], []>} : vector<4x32xbf16>, vector<32x32xbf16>, vector<4x32xf32> -> vector<4x32xf32>
    %cst_382 = arith.constant dense<0.000000e+00> : vector<4x32xf32>
    %961 = tpu.matmul %959, %827, %cst_382 {dimension_numbers = #tpu.dot_dimension_numbers<[1], [0], [0], [1], [0, 0, 1, 1], [], []>} : vector<4x32xbf16>, vector<32x32xbf16>, vector<4x32xf32> -> vector<4x32xf32>
    %cst_383 = arith.constant dense<0.000000e+00> : vector<4x32xf32>
    %962 = tpu.matmul %959, %830, %cst_383 {dimension_numbers = #tpu.dot_dimension_numbers<[1], [0], [0], [1], [0, 0, 1, 1], [], []>} : vector<4x32xbf16>, vector<32x32xbf16>, vector<4x32xf32> -> vector<4x32xf32>
    %963 = vector.extract_strided_slice %845 {offsets = [4, 0], sizes = [4, 32], strides = [1, 1]} : vector<24x32xf32> to vector<4x32xf32>
    %964 = arith.addf %963, %960 : vector<4x32xf32>
    %965 = arith.negf %964 : vector<4x32xf32>
    %966 = math.exp %965 : vector<4x32xf32>
    %cst_384 = arith.constant 1.000000e+00 : f32
    %967 = vector.broadcast %cst_384 : f32 to vector<4x32xf32>
    %968 = arith.addf %967, %966 : vector<4x32xf32>
    %969 = arith.divf %967, %968 : vector<4x32xf32>
    %970 = vector.extract_strided_slice %850 {offsets = [4, 0], sizes = [4, 32], strides = [1, 1]} : vector<24x32xf32> to vector<4x32xf32>
    %971 = arith.addf %970, %961 : vector<4x32xf32>
    %972 = arith.negf %971 : vector<4x32xf32>
    %973 = math.exp %972 : vector<4x32xf32>
    %cst_385 = arith.constant 1.000000e+00 : f32
    %974 = vector.broadcast %cst_385 : f32 to vector<4x32xf32>
    %975 = arith.addf %974, %973 : vector<4x32xf32>
    %976 = arith.divf %974, %975 : vector<4x32xf32>
    %977 = vector.extract_strided_slice %855 {offsets = [4, 0], sizes = [4, 32], strides = [1, 1]} : vector<24x32xf32> to vector<4x32xf32>
    %978 = vector.broadcast %832 : vector<1x32xf32> to vector<4x32xf32>
    %979 = arith.addf %962, %978 : vector<4x32xf32>
    %980 = arith.mulf %969, %979 : vector<4x32xf32>
    %981 = arith.addf %977, %980 : vector<4x32xf32>
    %982 = math.tanh %981 : vector<4x32xf32>
    %cst_386 = arith.constant 1.000000e+00 : f32
    %983 = vector.broadcast %cst_386 : f32 to vector<4x32xf32>
    %984 = arith.subf %983, %976 : vector<4x32xf32>
    %985 = arith.mulf %984, %982 : vector<4x32xf32>
    %986 = arith.mulf %976, %929 : vector<4x32xf32>
    %987 = arith.addf %985, %986 : vector<4x32xf32>
    %988 = arith.truncf %958 : vector<4x32xf32> to vector<4x32xbf16>
    %cst_387 = arith.constant dense<0.000000e+00> : vector<4x32xf32>
    %989 = tpu.matmul %988, %868, %cst_387 {dimension_numbers = #tpu.dot_dimension_numbers<[1], [0], [0], [1], [0, 0, 1, 1], [], []>} : vector<4x32xbf16>, vector<32x32xbf16>, vector<4x32xf32> -> vector<4x32xf32>
    %cst_388 = arith.constant dense<0.000000e+00> : vector<4x32xf32>
    %990 = tpu.matmul %988, %871, %cst_388 {dimension_numbers = #tpu.dot_dimension_numbers<[1], [0], [0], [1], [0, 0, 1, 1], [], []>} : vector<4x32xbf16>, vector<32x32xbf16>, vector<4x32xf32> -> vector<4x32xf32>
    %cst_389 = arith.constant dense<0.000000e+00> : vector<4x32xf32>
    %991 = tpu.matmul %988, %874, %cst_389 {dimension_numbers = #tpu.dot_dimension_numbers<[1], [0], [0], [1], [0, 0, 1, 1], [], []>} : vector<4x32xbf16>, vector<32x32xbf16>, vector<4x32xf32> -> vector<4x32xf32>
    %992 = vector.extract_strided_slice %889 {offsets = [4, 0], sizes = [4, 32], strides = [1, 1]} : vector<24x32xf32> to vector<4x32xf32>
    %993 = arith.addf %992, %989 : vector<4x32xf32>
    %994 = arith.negf %993 : vector<4x32xf32>
    %995 = math.exp %994 : vector<4x32xf32>
    %cst_390 = arith.constant 1.000000e+00 : f32
    %996 = vector.broadcast %cst_390 : f32 to vector<4x32xf32>
    %997 = arith.addf %996, %995 : vector<4x32xf32>
    %998 = arith.divf %996, %997 : vector<4x32xf32>
    %999 = vector.extract_strided_slice %894 {offsets = [4, 0], sizes = [4, 32], strides = [1, 1]} : vector<24x32xf32> to vector<4x32xf32>
    %1000 = arith.addf %999, %990 : vector<4x32xf32>
    %1001 = arith.negf %1000 : vector<4x32xf32>
    %1002 = math.exp %1001 : vector<4x32xf32>
    %cst_391 = arith.constant 1.000000e+00 : f32
    %1003 = vector.broadcast %cst_391 : f32 to vector<4x32xf32>
    %1004 = arith.addf %1003, %1002 : vector<4x32xf32>
    %1005 = arith.divf %1003, %1004 : vector<4x32xf32>
    %1006 = vector.extract_strided_slice %899 {offsets = [4, 0], sizes = [4, 32], strides = [1, 1]} : vector<24x32xf32> to vector<4x32xf32>
    %1007 = vector.broadcast %876 : vector<1x32xf32> to vector<4x32xf32>
    %1008 = arith.addf %991, %1007 : vector<4x32xf32>
    %1009 = arith.mulf %998, %1008 : vector<4x32xf32>
    %1010 = arith.addf %1006, %1009 : vector<4x32xf32>
    %1011 = math.tanh %1010 : vector<4x32xf32>
    %cst_392 = arith.constant 1.000000e+00 : f32
    %1012 = vector.broadcast %cst_392 : f32 to vector<4x32xf32>
    %1013 = arith.subf %1012, %1005 : vector<4x32xf32>
    %1014 = arith.mulf %1013, %1011 : vector<4x32xf32>
    %1015 = arith.mulf %1005, %958 : vector<4x32xf32>
    %1016 = arith.addf %1014, %1015 : vector<4x32xf32>
    %1017 = arith.truncf %987 : vector<4x32xf32> to vector<4x32xbf16>
    %cst_393 = arith.constant dense<0.000000e+00> : vector<4x32xf32>
    %1018 = tpu.matmul %1017, %824, %cst_393 {dimension_numbers = #tpu.dot_dimension_numbers<[1], [0], [0], [1], [0, 0, 1, 1], [], []>} : vector<4x32xbf16>, vector<32x32xbf16>, vector<4x32xf32> -> vector<4x32xf32>
    %cst_394 = arith.constant dense<0.000000e+00> : vector<4x32xf32>
    %1019 = tpu.matmul %1017, %827, %cst_394 {dimension_numbers = #tpu.dot_dimension_numbers<[1], [0], [0], [1], [0, 0, 1, 1], [], []>} : vector<4x32xbf16>, vector<32x32xbf16>, vector<4x32xf32> -> vector<4x32xf32>
    %cst_395 = arith.constant dense<0.000000e+00> : vector<4x32xf32>
    %1020 = tpu.matmul %1017, %830, %cst_395 {dimension_numbers = #tpu.dot_dimension_numbers<[1], [0], [0], [1], [0, 0, 1, 1], [], []>} : vector<4x32xbf16>, vector<32x32xbf16>, vector<4x32xf32> -> vector<4x32xf32>
    %1021 = vector.extract_strided_slice %845 {offsets = [8, 0], sizes = [4, 32], strides = [1, 1]} : vector<24x32xf32> to vector<4x32xf32>
    %1022 = arith.addf %1021, %1018 : vector<4x32xf32>
    %1023 = arith.negf %1022 : vector<4x32xf32>
    %1024 = math.exp %1023 : vector<4x32xf32>
    %cst_396 = arith.constant 1.000000e+00 : f32
    %1025 = vector.broadcast %cst_396 : f32 to vector<4x32xf32>
    %1026 = arith.addf %1025, %1024 : vector<4x32xf32>
    %1027 = arith.divf %1025, %1026 : vector<4x32xf32>
    %1028 = vector.extract_strided_slice %850 {offsets = [8, 0], sizes = [4, 32], strides = [1, 1]} : vector<24x32xf32> to vector<4x32xf32>
    %1029 = arith.addf %1028, %1019 : vector<4x32xf32>
    %1030 = arith.negf %1029 : vector<4x32xf32>
    %1031 = math.exp %1030 : vector<4x32xf32>
    %cst_397 = arith.constant 1.000000e+00 : f32
    %1032 = vector.broadcast %cst_397 : f32 to vector<4x32xf32>
    %1033 = arith.addf %1032, %1031 : vector<4x32xf32>
    %1034 = arith.divf %1032, %1033 : vector<4x32xf32>
    %1035 = vector.extract_strided_slice %855 {offsets = [8, 0], sizes = [4, 32], strides = [1, 1]} : vector<24x32xf32> to vector<4x32xf32>
    %1036 = vector.broadcast %832 : vector<1x32xf32> to vector<4x32xf32>
    %1037 = arith.addf %1020, %1036 : vector<4x32xf32>
    %1038 = arith.mulf %1027, %1037 : vector<4x32xf32>
    %1039 = arith.addf %1035, %1038 : vector<4x32xf32>
    %1040 = math.tanh %1039 : vector<4x32xf32>
    %cst_398 = arith.constant 1.000000e+00 : f32
    %1041 = vector.broadcast %cst_398 : f32 to vector<4x32xf32>
    %1042 = arith.subf %1041, %1034 : vector<4x32xf32>
    %1043 = arith.mulf %1042, %1040 : vector<4x32xf32>
    %1044 = arith.mulf %1034, %987 : vector<4x32xf32>
    %1045 = arith.addf %1043, %1044 : vector<4x32xf32>
    %1046 = arith.truncf %1016 : vector<4x32xf32> to vector<4x32xbf16>
    %cst_399 = arith.constant dense<0.000000e+00> : vector<4x32xf32>
    %1047 = tpu.matmul %1046, %868, %cst_399 {dimension_numbers = #tpu.dot_dimension_numbers<[1], [0], [0], [1], [0, 0, 1, 1], [], []>} : vector<4x32xbf16>, vector<32x32xbf16>, vector<4x32xf32> -> vector<4x32xf32>
    %cst_400 = arith.constant dense<0.000000e+00> : vector<4x32xf32>
    %1048 = tpu.matmul %1046, %871, %cst_400 {dimension_numbers = #tpu.dot_dimension_numbers<[1], [0], [0], [1], [0, 0, 1, 1], [], []>} : vector<4x32xbf16>, vector<32x32xbf16>, vector<4x32xf32> -> vector<4x32xf32>
    %cst_401 = arith.constant dense<0.000000e+00> : vector<4x32xf32>
    %1049 = tpu.matmul %1046, %874, %cst_401 {dimension_numbers = #tpu.dot_dimension_numbers<[1], [0], [0], [1], [0, 0, 1, 1], [], []>} : vector<4x32xbf16>, vector<32x32xbf16>, vector<4x32xf32> -> vector<4x32xf32>
    %1050 = vector.extract_strided_slice %889 {offsets = [8, 0], sizes = [4, 32], strides = [1, 1]} : vector<24x32xf32> to vector<4x32xf32>
    %1051 = arith.addf %1050, %1047 : vector<4x32xf32>
    %1052 = arith.negf %1051 : vector<4x32xf32>
    %1053 = math.exp %1052 : vector<4x32xf32>
    %cst_402 = arith.constant 1.000000e+00 : f32
    %1054 = vector.broadcast %cst_402 : f32 to vector<4x32xf32>
    %1055 = arith.addf %1054, %1053 : vector<4x32xf32>
    %1056 = arith.divf %1054, %1055 : vector<4x32xf32>
    %1057 = vector.extract_strided_slice %894 {offsets = [8, 0], sizes = [4, 32], strides = [1, 1]} : vector<24x32xf32> to vector<4x32xf32>
    %1058 = arith.addf %1057, %1048 : vector<4x32xf32>
    %1059 = arith.negf %1058 : vector<4x32xf32>
    %1060 = math.exp %1059 : vector<4x32xf32>
    %cst_403 = arith.constant 1.000000e+00 : f32
    %1061 = vector.broadcast %cst_403 : f32 to vector<4x32xf32>
    %1062 = arith.addf %1061, %1060 : vector<4x32xf32>
    %1063 = arith.divf %1061, %1062 : vector<4x32xf32>
    %1064 = vector.extract_strided_slice %899 {offsets = [8, 0], sizes = [4, 32], strides = [1, 1]} : vector<24x32xf32> to vector<4x32xf32>
    %1065 = vector.broadcast %876 : vector<1x32xf32> to vector<4x32xf32>
    %1066 = arith.addf %1049, %1065 : vector<4x32xf32>
    %1067 = arith.mulf %1056, %1066 : vector<4x32xf32>
    %1068 = arith.addf %1064, %1067 : vector<4x32xf32>
    %1069 = math.tanh %1068 : vector<4x32xf32>
    %cst_404 = arith.constant 1.000000e+00 : f32
    %1070 = vector.broadcast %cst_404 : f32 to vector<4x32xf32>
    %1071 = arith.subf %1070, %1063 : vector<4x32xf32>
    %1072 = arith.mulf %1071, %1069 : vector<4x32xf32>
    %1073 = arith.mulf %1063, %1016 : vector<4x32xf32>
    %1074 = arith.addf %1072, %1073 : vector<4x32xf32>
    %1075 = arith.truncf %1045 : vector<4x32xf32> to vector<4x32xbf16>
    %cst_405 = arith.constant dense<0.000000e+00> : vector<4x32xf32>
    %1076 = tpu.matmul %1075, %824, %cst_405 {dimension_numbers = #tpu.dot_dimension_numbers<[1], [0], [0], [1], [0, 0, 1, 1], [], []>} : vector<4x32xbf16>, vector<32x32xbf16>, vector<4x32xf32> -> vector<4x32xf32>
    %cst_406 = arith.constant dense<0.000000e+00> : vector<4x32xf32>
    %1077 = tpu.matmul %1075, %827, %cst_406 {dimension_numbers = #tpu.dot_dimension_numbers<[1], [0], [0], [1], [0, 0, 1, 1], [], []>} : vector<4x32xbf16>, vector<32x32xbf16>, vector<4x32xf32> -> vector<4x32xf32>
    %cst_407 = arith.constant dense<0.000000e+00> : vector<4x32xf32>
    %1078 = tpu.matmul %1075, %830, %cst_407 {dimension_numbers = #tpu.dot_dimension_numbers<[1], [0], [0], [1], [0, 0, 1, 1], [], []>} : vector<4x32xbf16>, vector<32x32xbf16>, vector<4x32xf32> -> vector<4x32xf32>
    %1079 = vector.extract_strided_slice %845 {offsets = [12, 0], sizes = [4, 32], strides = [1, 1]} : vector<24x32xf32> to vector<4x32xf32>
    %1080 = arith.addf %1079, %1076 : vector<4x32xf32>
    %1081 = arith.negf %1080 : vector<4x32xf32>
    %1082 = math.exp %1081 : vector<4x32xf32>
    %cst_408 = arith.constant 1.000000e+00 : f32
    %1083 = vector.broadcast %cst_408 : f32 to vector<4x32xf32>
    %1084 = arith.addf %1083, %1082 : vector<4x32xf32>
    %1085 = arith.divf %1083, %1084 : vector<4x32xf32>
    %1086 = vector.extract_strided_slice %850 {offsets = [12, 0], sizes = [4, 32], strides = [1, 1]} : vector<24x32xf32> to vector<4x32xf32>
    %1087 = arith.addf %1086, %1077 : vector<4x32xf32>
    %1088 = arith.negf %1087 : vector<4x32xf32>
    %1089 = math.exp %1088 : vector<4x32xf32>
    %cst_409 = arith.constant 1.000000e+00 : f32
    %1090 = vector.broadcast %cst_409 : f32 to vector<4x32xf32>
    %1091 = arith.addf %1090, %1089 : vector<4x32xf32>
    %1092 = arith.divf %1090, %1091 : vector<4x32xf32>
    %1093 = vector.extract_strided_slice %855 {offsets = [12, 0], sizes = [4, 32], strides = [1, 1]} : vector<24x32xf32> to vector<4x32xf32>
    %1094 = vector.broadcast %832 : vector<1x32xf32> to vector<4x32xf32>
    %1095 = arith.addf %1078, %1094 : vector<4x32xf32>
    %1096 = arith.mulf %1085, %1095 : vector<4x32xf32>
    %1097 = arith.addf %1093, %1096 : vector<4x32xf32>
    %1098 = math.tanh %1097 : vector<4x32xf32>
    %cst_410 = arith.constant 1.000000e+00 : f32
    %1099 = vector.broadcast %cst_410 : f32 to vector<4x32xf32>
    %1100 = arith.subf %1099, %1092 : vector<4x32xf32>
    %1101 = arith.mulf %1100, %1098 : vector<4x32xf32>
    %1102 = arith.mulf %1092, %1045 : vector<4x32xf32>
    %1103 = arith.addf %1101, %1102 : vector<4x32xf32>
    %1104 = arith.truncf %1074 : vector<4x32xf32> to vector<4x32xbf16>
    %cst_411 = arith.constant dense<0.000000e+00> : vector<4x32xf32>
    %1105 = tpu.matmul %1104, %868, %cst_411 {dimension_numbers = #tpu.dot_dimension_numbers<[1], [0], [0], [1], [0, 0, 1, 1], [], []>} : vector<4x32xbf16>, vector<32x32xbf16>, vector<4x32xf32> -> vector<4x32xf32>
    %cst_412 = arith.constant dense<0.000000e+00> : vector<4x32xf32>
    %1106 = tpu.matmul %1104, %871, %cst_412 {dimension_numbers = #tpu.dot_dimension_numbers<[1], [0], [0], [1], [0, 0, 1, 1], [], []>} : vector<4x32xbf16>, vector<32x32xbf16>, vector<4x32xf32> -> vector<4x32xf32>
    %cst_413 = arith.constant dense<0.000000e+00> : vector<4x32xf32>
    %1107 = tpu.matmul %1104, %874, %cst_413 {dimension_numbers = #tpu.dot_dimension_numbers<[1], [0], [0], [1], [0, 0, 1, 1], [], []>} : vector<4x32xbf16>, vector<32x32xbf16>, vector<4x32xf32> -> vector<4x32xf32>
    %1108 = vector.extract_strided_slice %889 {offsets = [12, 0], sizes = [4, 32], strides = [1, 1]} : vector<24x32xf32> to vector<4x32xf32>
    %1109 = arith.addf %1108, %1105 : vector<4x32xf32>
    %1110 = arith.negf %1109 : vector<4x32xf32>
    %1111 = math.exp %1110 : vector<4x32xf32>
    %cst_414 = arith.constant 1.000000e+00 : f32
    %1112 = vector.broadcast %cst_414 : f32 to vector<4x32xf32>
    %1113 = arith.addf %1112, %1111 : vector<4x32xf32>
    %1114 = arith.divf %1112, %1113 : vector<4x32xf32>
    %1115 = vector.extract_strided_slice %894 {offsets = [12, 0], sizes = [4, 32], strides = [1, 1]} : vector<24x32xf32> to vector<4x32xf32>
    %1116 = arith.addf %1115, %1106 : vector<4x32xf32>
    %1117 = arith.negf %1116 : vector<4x32xf32>
    %1118 = math.exp %1117 : vector<4x32xf32>
    %cst_415 = arith.constant 1.000000e+00 : f32
    %1119 = vector.broadcast %cst_415 : f32 to vector<4x32xf32>
    %1120 = arith.addf %1119, %1118 : vector<4x32xf32>
    %1121 = arith.divf %1119, %1120 : vector<4x32xf32>
    %1122 = vector.extract_strided_slice %899 {offsets = [12, 0], sizes = [4, 32], strides = [1, 1]} : vector<24x32xf32> to vector<4x32xf32>
    %1123 = vector.broadcast %876 : vector<1x32xf32> to vector<4x32xf32>
    %1124 = arith.addf %1107, %1123 : vector<4x32xf32>
    %1125 = arith.mulf %1114, %1124 : vector<4x32xf32>
    %1126 = arith.addf %1122, %1125 : vector<4x32xf32>
    %1127 = math.tanh %1126 : vector<4x32xf32>
    %cst_416 = arith.constant 1.000000e+00 : f32
    %1128 = vector.broadcast %cst_416 : f32 to vector<4x32xf32>
    %1129 = arith.subf %1128, %1121 : vector<4x32xf32>
    %1130 = arith.mulf %1129, %1127 : vector<4x32xf32>
    %1131 = arith.mulf %1121, %1074 : vector<4x32xf32>
    %1132 = arith.addf %1130, %1131 : vector<4x32xf32>
    %1133 = arith.truncf %1103 : vector<4x32xf32> to vector<4x32xbf16>
    %cst_417 = arith.constant dense<0.000000e+00> : vector<4x32xf32>
    %1134 = tpu.matmul %1133, %824, %cst_417 {dimension_numbers = #tpu.dot_dimension_numbers<[1], [0], [0], [1], [0, 0, 1, 1], [], []>} : vector<4x32xbf16>, vector<32x32xbf16>, vector<4x32xf32> -> vector<4x32xf32>
    %cst_418 = arith.constant dense<0.000000e+00> : vector<4x32xf32>
    %1135 = tpu.matmul %1133, %827, %cst_418 {dimension_numbers = #tpu.dot_dimension_numbers<[1], [0], [0], [1], [0, 0, 1, 1], [], []>} : vector<4x32xbf16>, vector<32x32xbf16>, vector<4x32xf32> -> vector<4x32xf32>
    %cst_419 = arith.constant dense<0.000000e+00> : vector<4x32xf32>
    %1136 = tpu.matmul %1133, %830, %cst_419 {dimension_numbers = #tpu.dot_dimension_numbers<[1], [0], [0], [1], [0, 0, 1, 1], [], []>} : vector<4x32xbf16>, vector<32x32xbf16>, vector<4x32xf32> -> vector<4x32xf32>
    %1137 = vector.extract_strided_slice %845 {offsets = [16, 0], sizes = [4, 32], strides = [1, 1]} : vector<24x32xf32> to vector<4x32xf32>
    %1138 = arith.addf %1137, %1134 : vector<4x32xf32>
    %1139 = arith.negf %1138 : vector<4x32xf32>
    %1140 = math.exp %1139 : vector<4x32xf32>
    %cst_420 = arith.constant 1.000000e+00 : f32
    %1141 = vector.broadcast %cst_420 : f32 to vector<4x32xf32>
    %1142 = arith.addf %1141, %1140 : vector<4x32xf32>
    %1143 = arith.divf %1141, %1142 : vector<4x32xf32>
    %1144 = vector.extract_strided_slice %850 {offsets = [16, 0], sizes = [4, 32], strides = [1, 1]} : vector<24x32xf32> to vector<4x32xf32>
    %1145 = arith.addf %1144, %1135 : vector<4x32xf32>
    %1146 = arith.negf %1145 : vector<4x32xf32>
    %1147 = math.exp %1146 : vector<4x32xf32>
    %cst_421 = arith.constant 1.000000e+00 : f32
    %1148 = vector.broadcast %cst_421 : f32 to vector<4x32xf32>
    %1149 = arith.addf %1148, %1147 : vector<4x32xf32>
    %1150 = arith.divf %1148, %1149 : vector<4x32xf32>
    %1151 = vector.extract_strided_slice %855 {offsets = [16, 0], sizes = [4, 32], strides = [1, 1]} : vector<24x32xf32> to vector<4x32xf32>
    %1152 = vector.broadcast %832 : vector<1x32xf32> to vector<4x32xf32>
    %1153 = arith.addf %1136, %1152 : vector<4x32xf32>
    %1154 = arith.mulf %1143, %1153 : vector<4x32xf32>
    %1155 = arith.addf %1151, %1154 : vector<4x32xf32>
    %1156 = math.tanh %1155 : vector<4x32xf32>
    %cst_422 = arith.constant 1.000000e+00 : f32
    %1157 = vector.broadcast %cst_422 : f32 to vector<4x32xf32>
    %1158 = arith.subf %1157, %1150 : vector<4x32xf32>
    %1159 = arith.mulf %1158, %1156 : vector<4x32xf32>
    %1160 = arith.mulf %1150, %1103 : vector<4x32xf32>
    %1161 = arith.addf %1159, %1160 : vector<4x32xf32>
    %1162 = arith.truncf %1132 : vector<4x32xf32> to vector<4x32xbf16>
    %cst_423 = arith.constant dense<0.000000e+00> : vector<4x32xf32>
    %1163 = tpu.matmul %1162, %868, %cst_423 {dimension_numbers = #tpu.dot_dimension_numbers<[1], [0], [0], [1], [0, 0, 1, 1], [], []>} : vector<4x32xbf16>, vector<32x32xbf16>, vector<4x32xf32> -> vector<4x32xf32>
    %cst_424 = arith.constant dense<0.000000e+00> : vector<4x32xf32>
    %1164 = tpu.matmul %1162, %871, %cst_424 {dimension_numbers = #tpu.dot_dimension_numbers<[1], [0], [0], [1], [0, 0, 1, 1], [], []>} : vector<4x32xbf16>, vector<32x32xbf16>, vector<4x32xf32> -> vector<4x32xf32>
    %cst_425 = arith.constant dense<0.000000e+00> : vector<4x32xf32>
    %1165 = tpu.matmul %1162, %874, %cst_425 {dimension_numbers = #tpu.dot_dimension_numbers<[1], [0], [0], [1], [0, 0, 1, 1], [], []>} : vector<4x32xbf16>, vector<32x32xbf16>, vector<4x32xf32> -> vector<4x32xf32>
    %1166 = vector.extract_strided_slice %889 {offsets = [16, 0], sizes = [4, 32], strides = [1, 1]} : vector<24x32xf32> to vector<4x32xf32>
    %1167 = arith.addf %1166, %1163 : vector<4x32xf32>
    %1168 = arith.negf %1167 : vector<4x32xf32>
    %1169 = math.exp %1168 : vector<4x32xf32>
    %cst_426 = arith.constant 1.000000e+00 : f32
    %1170 = vector.broadcast %cst_426 : f32 to vector<4x32xf32>
    %1171 = arith.addf %1170, %1169 : vector<4x32xf32>
    %1172 = arith.divf %1170, %1171 : vector<4x32xf32>
    %1173 = vector.extract_strided_slice %894 {offsets = [16, 0], sizes = [4, 32], strides = [1, 1]} : vector<24x32xf32> to vector<4x32xf32>
    %1174 = arith.addf %1173, %1164 : vector<4x32xf32>
    %1175 = arith.negf %1174 : vector<4x32xf32>
    %1176 = math.exp %1175 : vector<4x32xf32>
    %cst_427 = arith.constant 1.000000e+00 : f32
    %1177 = vector.broadcast %cst_427 : f32 to vector<4x32xf32>
    %1178 = arith.addf %1177, %1176 : vector<4x32xf32>
    %1179 = arith.divf %1177, %1178 : vector<4x32xf32>
    %1180 = vector.extract_strided_slice %899 {offsets = [16, 0], sizes = [4, 32], strides = [1, 1]} : vector<24x32xf32> to vector<4x32xf32>
    %1181 = vector.broadcast %876 : vector<1x32xf32> to vector<4x32xf32>
    %1182 = arith.addf %1165, %1181 : vector<4x32xf32>
    %1183 = arith.mulf %1172, %1182 : vector<4x32xf32>
    %1184 = arith.addf %1180, %1183 : vector<4x32xf32>
    %1185 = math.tanh %1184 : vector<4x32xf32>
    %cst_428 = arith.constant 1.000000e+00 : f32
    %1186 = vector.broadcast %cst_428 : f32 to vector<4x32xf32>
    %1187 = arith.subf %1186, %1179 : vector<4x32xf32>
    %1188 = arith.mulf %1187, %1185 : vector<4x32xf32>
    %1189 = arith.mulf %1179, %1132 : vector<4x32xf32>
    %1190 = arith.addf %1188, %1189 : vector<4x32xf32>
    %1191 = arith.truncf %1161 : vector<4x32xf32> to vector<4x32xbf16>
    %cst_429 = arith.constant dense<0.000000e+00> : vector<4x32xf32>
    %1192 = tpu.matmul %1191, %824, %cst_429 {dimension_numbers = #tpu.dot_dimension_numbers<[1], [0], [0], [1], [0, 0, 1, 1], [], []>} : vector<4x32xbf16>, vector<32x32xbf16>, vector<4x32xf32> -> vector<4x32xf32>
    %cst_430 = arith.constant dense<0.000000e+00> : vector<4x32xf32>
    %1193 = tpu.matmul %1191, %827, %cst_430 {dimension_numbers = #tpu.dot_dimension_numbers<[1], [0], [0], [1], [0, 0, 1, 1], [], []>} : vector<4x32xbf16>, vector<32x32xbf16>, vector<4x32xf32> -> vector<4x32xf32>
    %cst_431 = arith.constant dense<0.000000e+00> : vector<4x32xf32>
    %1194 = tpu.matmul %1191, %830, %cst_431 {dimension_numbers = #tpu.dot_dimension_numbers<[1], [0], [0], [1], [0, 0, 1, 1], [], []>} : vector<4x32xbf16>, vector<32x32xbf16>, vector<4x32xf32> -> vector<4x32xf32>
    %1195 = vector.extract_strided_slice %845 {offsets = [20, 0], sizes = [4, 32], strides = [1, 1]} : vector<24x32xf32> to vector<4x32xf32>
    %1196 = arith.addf %1195, %1192 : vector<4x32xf32>
    %1197 = arith.negf %1196 : vector<4x32xf32>
    %1198 = math.exp %1197 : vector<4x32xf32>
    %cst_432 = arith.constant 1.000000e+00 : f32
    %1199 = vector.broadcast %cst_432 : f32 to vector<4x32xf32>
    %1200 = arith.addf %1199, %1198 : vector<4x32xf32>
    %1201 = arith.divf %1199, %1200 : vector<4x32xf32>
    %1202 = vector.extract_strided_slice %850 {offsets = [20, 0], sizes = [4, 32], strides = [1, 1]} : vector<24x32xf32> to vector<4x32xf32>
    %1203 = arith.addf %1202, %1193 : vector<4x32xf32>
    %1204 = arith.negf %1203 : vector<4x32xf32>
    %1205 = math.exp %1204 : vector<4x32xf32>
    %cst_433 = arith.constant 1.000000e+00 : f32
    %1206 = vector.broadcast %cst_433 : f32 to vector<4x32xf32>
    %1207 = arith.addf %1206, %1205 : vector<4x32xf32>
    %1208 = arith.divf %1206, %1207 : vector<4x32xf32>
    %1209 = vector.extract_strided_slice %855 {offsets = [20, 0], sizes = [4, 32], strides = [1, 1]} : vector<24x32xf32> to vector<4x32xf32>
    %1210 = vector.broadcast %832 : vector<1x32xf32> to vector<4x32xf32>
    %1211 = arith.addf %1194, %1210 : vector<4x32xf32>
    %1212 = arith.mulf %1201, %1211 : vector<4x32xf32>
    %1213 = arith.addf %1209, %1212 : vector<4x32xf32>
    %1214 = math.tanh %1213 : vector<4x32xf32>
    %cst_434 = arith.constant 1.000000e+00 : f32
    %1215 = vector.broadcast %cst_434 : f32 to vector<4x32xf32>
    %1216 = arith.subf %1215, %1208 : vector<4x32xf32>
    %1217 = arith.mulf %1216, %1214 : vector<4x32xf32>
    %1218 = arith.mulf %1208, %1161 : vector<4x32xf32>
    %1219 = arith.addf %1217, %1218 : vector<4x32xf32>
    %1220 = arith.truncf %1190 : vector<4x32xf32> to vector<4x32xbf16>
    %cst_435 = arith.constant dense<0.000000e+00> : vector<4x32xf32>
    %1221 = tpu.matmul %1220, %868, %cst_435 {dimension_numbers = #tpu.dot_dimension_numbers<[1], [0], [0], [1], [0, 0, 1, 1], [], []>} : vector<4x32xbf16>, vector<32x32xbf16>, vector<4x32xf32> -> vector<4x32xf32>
    %cst_436 = arith.constant dense<0.000000e+00> : vector<4x32xf32>
    %1222 = tpu.matmul %1220, %871, %cst_436 {dimension_numbers = #tpu.dot_dimension_numbers<[1], [0], [0], [1], [0, 0, 1, 1], [], []>} : vector<4x32xbf16>, vector<32x32xbf16>, vector<4x32xf32> -> vector<4x32xf32>
    %cst_437 = arith.constant dense<0.000000e+00> : vector<4x32xf32>
    %1223 = tpu.matmul %1220, %874, %cst_437 {dimension_numbers = #tpu.dot_dimension_numbers<[1], [0], [0], [1], [0, 0, 1, 1], [], []>} : vector<4x32xbf16>, vector<32x32xbf16>, vector<4x32xf32> -> vector<4x32xf32>
    %1224 = vector.extract_strided_slice %889 {offsets = [20, 0], sizes = [4, 32], strides = [1, 1]} : vector<24x32xf32> to vector<4x32xf32>
    %1225 = arith.addf %1224, %1221 : vector<4x32xf32>
    %1226 = arith.negf %1225 : vector<4x32xf32>
    %1227 = math.exp %1226 : vector<4x32xf32>
    %cst_438 = arith.constant 1.000000e+00 : f32
    %1228 = vector.broadcast %cst_438 : f32 to vector<4x32xf32>
    %1229 = arith.addf %1228, %1227 : vector<4x32xf32>
    %1230 = arith.divf %1228, %1229 : vector<4x32xf32>
    %1231 = vector.extract_strided_slice %894 {offsets = [20, 0], sizes = [4, 32], strides = [1, 1]} : vector<24x32xf32> to vector<4x32xf32>
    %1232 = arith.addf %1231, %1222 : vector<4x32xf32>
    %1233 = arith.negf %1232 : vector<4x32xf32>
    %1234 = math.exp %1233 : vector<4x32xf32>
    %cst_439 = arith.constant 1.000000e+00 : f32
    %1235 = vector.broadcast %cst_439 : f32 to vector<4x32xf32>
    %1236 = arith.addf %1235, %1234 : vector<4x32xf32>
    %1237 = arith.divf %1235, %1236 : vector<4x32xf32>
    %1238 = vector.extract_strided_slice %899 {offsets = [20, 0], sizes = [4, 32], strides = [1, 1]} : vector<24x32xf32> to vector<4x32xf32>
    %1239 = vector.broadcast %876 : vector<1x32xf32> to vector<4x32xf32>
    %1240 = arith.addf %1223, %1239 : vector<4x32xf32>
    %1241 = arith.mulf %1230, %1240 : vector<4x32xf32>
    %1242 = arith.addf %1238, %1241 : vector<4x32xf32>
    %1243 = math.tanh %1242 : vector<4x32xf32>
    %cst_440 = arith.constant 1.000000e+00 : f32
    %1244 = vector.broadcast %cst_440 : f32 to vector<4x32xf32>
    %1245 = arith.subf %1244, %1237 : vector<4x32xf32>
    %1246 = arith.mulf %1245, %1243 : vector<4x32xf32>
    %1247 = arith.mulf %1237, %1190 : vector<4x32xf32>
    %1248 = arith.addf %1246, %1247 : vector<4x32xf32>
    %1249 = vector.extract_strided_slice %929 {offsets = [0, 0], sizes = [2, 32], strides = [1, 1]} : vector<4x32xf32> to vector<2x32xf32>
    %1250 = vector.extract_strided_slice %929 {offsets = [2, 0], sizes = [2, 32], strides = [1, 1]} : vector<4x32xf32> to vector<2x32xf32>
    %1251 = vector.extract_strided_slice %987 {offsets = [0, 0], sizes = [2, 32], strides = [1, 1]} : vector<4x32xf32> to vector<2x32xf32>
    %1252 = vector.extract_strided_slice %987 {offsets = [2, 0], sizes = [2, 32], strides = [1, 1]} : vector<4x32xf32> to vector<2x32xf32>
    %1253 = vector.extract_strided_slice %1045 {offsets = [0, 0], sizes = [2, 32], strides = [1, 1]} : vector<4x32xf32> to vector<2x32xf32>
    %1254 = vector.extract_strided_slice %1045 {offsets = [2, 0], sizes = [2, 32], strides = [1, 1]} : vector<4x32xf32> to vector<2x32xf32>
    %1255 = vector.extract_strided_slice %1103 {offsets = [0, 0], sizes = [2, 32], strides = [1, 1]} : vector<4x32xf32> to vector<2x32xf32>
    %1256 = vector.extract_strided_slice %1103 {offsets = [2, 0], sizes = [2, 32], strides = [1, 1]} : vector<4x32xf32> to vector<2x32xf32>
    %1257 = vector.extract_strided_slice %1161 {offsets = [0, 0], sizes = [2, 32], strides = [1, 1]} : vector<4x32xf32> to vector<2x32xf32>
    %1258 = vector.extract_strided_slice %1161 {offsets = [2, 0], sizes = [2, 32], strides = [1, 1]} : vector<4x32xf32> to vector<2x32xf32>
    %1259 = vector.extract_strided_slice %1219 {offsets = [0, 0], sizes = [2, 32], strides = [1, 1]} : vector<4x32xf32> to vector<2x32xf32>
    %1260 = vector.extract_strided_slice %1219 {offsets = [2, 0], sizes = [2, 32], strides = [1, 1]} : vector<4x32xf32> to vector<2x32xf32>
    %1261 = vector.extract_strided_slice %958 {offsets = [0, 0], sizes = [2, 32], strides = [1, 1]} : vector<4x32xf32> to vector<2x32xf32>
    %1262 = vector.extract_strided_slice %958 {offsets = [2, 0], sizes = [2, 32], strides = [1, 1]} : vector<4x32xf32> to vector<2x32xf32>
    %1263 = vector.extract_strided_slice %1016 {offsets = [0, 0], sizes = [2, 32], strides = [1, 1]} : vector<4x32xf32> to vector<2x32xf32>
    %1264 = vector.extract_strided_slice %1016 {offsets = [2, 0], sizes = [2, 32], strides = [1, 1]} : vector<4x32xf32> to vector<2x32xf32>
    %1265 = vector.extract_strided_slice %1074 {offsets = [0, 0], sizes = [2, 32], strides = [1, 1]} : vector<4x32xf32> to vector<2x32xf32>
    %1266 = vector.extract_strided_slice %1074 {offsets = [2, 0], sizes = [2, 32], strides = [1, 1]} : vector<4x32xf32> to vector<2x32xf32>
    %1267 = vector.extract_strided_slice %1132 {offsets = [0, 0], sizes = [2, 32], strides = [1, 1]} : vector<4x32xf32> to vector<2x32xf32>
    %1268 = vector.extract_strided_slice %1132 {offsets = [2, 0], sizes = [2, 32], strides = [1, 1]} : vector<4x32xf32> to vector<2x32xf32>
    %1269 = vector.extract_strided_slice %1190 {offsets = [0, 0], sizes = [2, 32], strides = [1, 1]} : vector<4x32xf32> to vector<2x32xf32>
    %1270 = vector.extract_strided_slice %1190 {offsets = [2, 0], sizes = [2, 32], strides = [1, 1]} : vector<4x32xf32> to vector<2x32xf32>
    %1271 = vector.extract_strided_slice %1248 {offsets = [0, 0], sizes = [2, 32], strides = [1, 1]} : vector<4x32xf32> to vector<2x32xf32>
    %1272 = vector.extract_strided_slice %1248 {offsets = [2, 0], sizes = [2, 32], strides = [1, 1]} : vector<4x32xf32> to vector<2x32xf32>
    %c1_441 = arith.constant 1 : index
    %c0_442 = arith.constant 0 : index
    %c0_443 = arith.constant 0 : index
    %c0_444 = arith.constant 0 : index
    %1273 = vector.load %arg2[%c1_441, %c0_442, %c0_443, %c0_444] : memref<4x3x32x32xf32, #tpu.memory_space<vmem>>, vector<1x1x32x32xf32>
    %1274 = vector.shape_cast %1273 : vector<1x1x32x32xf32> to vector<32x32xf32>
    %1275 = arith.truncf %1274 : vector<32x32xf32> to vector<32x32xbf16>
    %c1_445 = arith.constant 1 : index
    %c1_446 = arith.constant 1 : index
    %c0_447 = arith.constant 0 : index
    %c0_448 = arith.constant 0 : index
    %1276 = vector.load %arg2[%c1_445, %c1_446, %c0_447, %c0_448] : memref<4x3x32x32xf32, #tpu.memory_space<vmem>>, vector<1x1x32x32xf32>
    %1277 = vector.shape_cast %1276 : vector<1x1x32x32xf32> to vector<32x32xf32>
    %1278 = arith.truncf %1277 : vector<32x32xf32> to vector<32x32xbf16>
    %c1_449 = arith.constant 1 : index
    %c2_450 = arith.constant 2 : index
    %c0_451 = arith.constant 0 : index
    %c0_452 = arith.constant 0 : index
    %1279 = vector.load %arg2[%c1_449, %c2_450, %c0_451, %c0_452] : memref<4x3x32x32xf32, #tpu.memory_space<vmem>>, vector<1x1x32x32xf32>
    %1280 = vector.shape_cast %1279 : vector<1x1x32x32xf32> to vector<32x32xf32>
    %1281 = arith.truncf %1280 : vector<32x32xf32> to vector<32x32xbf16>
    %c2_453 = arith.constant 2 : index
    %c0_454 = arith.constant 0 : index
    %c0_455 = arith.constant 0 : index
    %c0_456 = arith.constant 0 : index
    %1282 = vector.load %arg3[%c2_453, %c0_454, %c0_455, %c0_456] : memref<6x3x32x32xf32, #tpu.memory_space<vmem>>, vector<1x1x32x32xf32>
    %1283 = vector.shape_cast %1282 : vector<1x1x32x32xf32> to vector<32x32xf32>
    %1284 = arith.truncf %1283 : vector<32x32xf32> to vector<32x32xbf16>
    %c2_457 = arith.constant 2 : index
    %c1_458 = arith.constant 1 : index
    %c0_459 = arith.constant 0 : index
    %c0_460 = arith.constant 0 : index
    %1285 = vector.load %arg3[%c2_457, %c1_458, %c0_459, %c0_460] : memref<6x3x32x32xf32, #tpu.memory_space<vmem>>, vector<1x1x32x32xf32>
    %1286 = vector.shape_cast %1285 : vector<1x1x32x32xf32> to vector<32x32xf32>
    %1287 = arith.truncf %1286 : vector<32x32xf32> to vector<32x32xbf16>
    %c2_461 = arith.constant 2 : index
    %c2_462 = arith.constant 2 : index
    %c0_463 = arith.constant 0 : index
    %c0_464 = arith.constant 0 : index
    %1288 = vector.load %arg3[%c2_461, %c2_462, %c0_463, %c0_464] : memref<6x3x32x32xf32, #tpu.memory_space<vmem>>, vector<1x1x32x32xf32>
    %1289 = vector.shape_cast %1288 : vector<1x1x32x32xf32> to vector<32x32xf32>
    %1290 = arith.truncf %1289 : vector<32x32xf32> to vector<32x32xbf16>
    %c2_465 = arith.constant 2 : index
    %c0_466 = arith.constant 0 : index
    %c0_467 = arith.constant 0 : index
    %1291 = vector.load %arg5[%c2_465, %c0_466, %c0_467] : memref<6x1x32xf32, #tpu.memory_space<vmem>>, vector<1x1x32xf32>
    %1292 = vector.shape_cast %1291 : vector<1x1x32xf32> to vector<1x32xf32>
    %1293 = tpu.concatenate %1249, %1250, %1251, %1252 in 0 : vector<2x32xf32>, vector<2x32xf32>, vector<2x32xf32>, vector<2x32xf32> -> vector<8x32xf32>
    %1294 = tpu.concatenate %1253, %1254, %1255, %1256 in 0 : vector<2x32xf32>, vector<2x32xf32>, vector<2x32xf32>, vector<2x32xf32> -> vector<8x32xf32>
    %1295 = tpu.concatenate %1257, %1258, %1259, %1260 in 0 : vector<2x32xf32>, vector<2x32xf32>, vector<2x32xf32>, vector<2x32xf32> -> vector<8x32xf32>
    %1296 = tpu.concatenate %1293, %1294, %1295 in 0 : vector<8x32xf32>, vector<8x32xf32>, vector<8x32xf32> -> vector<24x32xf32>
    %1297 = arith.truncf %1296 : vector<24x32xf32> to vector<24x32xbf16>
    %cst_468 = arith.constant dense<0.000000e+00> : vector<24x32xf32>
    %1298 = tpu.matmul %1297, %1275, %cst_468 {dimension_numbers = #tpu.dot_dimension_numbers<[1], [0], [0], [1], [0, 0, 1, 1], [], []>} : vector<24x32xbf16>, vector<32x32xbf16>, vector<24x32xf32> -> vector<24x32xf32>
    %c6_469 = arith.constant 6 : index
    %c0_470 = arith.constant 0 : index
    %c0_471 = arith.constant 0 : index
    %1299 = vector.load %arg4[%c6_469, %c0_470, %c0_471] : memref<18x1x32xf32, #tpu.memory_space<vmem>>, vector<1x1x32xf32>
    %1300 = vector.shape_cast %1299 : vector<1x1x32xf32> to vector<1x32xf32>
    %1301 = vector.broadcast %1300 : vector<1x32xf32> to vector<24x32xf32>
    %1302 = arith.addf %1298, %1301 : vector<24x32xf32>
    %cst_472 = arith.constant dense<0.000000e+00> : vector<24x32xf32>
    %1303 = tpu.matmul %1297, %1278, %cst_472 {dimension_numbers = #tpu.dot_dimension_numbers<[1], [0], [0], [1], [0, 0, 1, 1], [], []>} : vector<24x32xbf16>, vector<32x32xbf16>, vector<24x32xf32> -> vector<24x32xf32>
    %c7_473 = arith.constant 7 : index
    %c0_474 = arith.constant 0 : index
    %c0_475 = arith.constant 0 : index
    %1304 = vector.load %arg4[%c7_473, %c0_474, %c0_475] : memref<18x1x32xf32, #tpu.memory_space<vmem>>, vector<1x1x32xf32>
    %1305 = vector.shape_cast %1304 : vector<1x1x32xf32> to vector<1x32xf32>
    %1306 = vector.broadcast %1305 : vector<1x32xf32> to vector<24x32xf32>
    %1307 = arith.addf %1303, %1306 : vector<24x32xf32>
    %cst_476 = arith.constant dense<0.000000e+00> : vector<24x32xf32>
    %1308 = tpu.matmul %1297, %1281, %cst_476 {dimension_numbers = #tpu.dot_dimension_numbers<[1], [0], [0], [1], [0, 0, 1, 1], [], []>} : vector<24x32xbf16>, vector<32x32xbf16>, vector<24x32xf32> -> vector<24x32xf32>
    %c8_477 = arith.constant 8 : index
    %c0_478 = arith.constant 0 : index
    %c0_479 = arith.constant 0 : index
    %1309 = vector.load %arg4[%c8_477, %c0_478, %c0_479] : memref<18x1x32xf32, #tpu.memory_space<vmem>>, vector<1x1x32xf32>
    %1310 = vector.shape_cast %1309 : vector<1x1x32xf32> to vector<1x32xf32>
    %1311 = vector.broadcast %1310 : vector<1x32xf32> to vector<24x32xf32>
    %1312 = arith.addf %1308, %1311 : vector<24x32xf32>
    %cst_480 = arith.constant 0.000000e+00 : f32
    %1313 = vector.broadcast %cst_480 : f32 to vector<8x32xf32>
    %c3_481 = arith.constant 3 : index
    %c0_482 = arith.constant 0 : index
    %c0_483 = arith.constant 0 : index
    %c0_484 = arith.constant 0 : index
    %1314 = vector.load %arg2[%c3_481, %c0_482, %c0_483, %c0_484] : memref<4x3x32x32xf32, #tpu.memory_space<vmem>>, vector<1x1x32x32xf32>
    %1315 = vector.shape_cast %1314 : vector<1x1x32x32xf32> to vector<32x32xf32>
    %1316 = arith.truncf %1315 : vector<32x32xf32> to vector<32x32xbf16>
    %c3_485 = arith.constant 3 : index
    %c1_486 = arith.constant 1 : index
    %c0_487 = arith.constant 0 : index
    %c0_488 = arith.constant 0 : index
    %1317 = vector.load %arg2[%c3_485, %c1_486, %c0_487, %c0_488] : memref<4x3x32x32xf32, #tpu.memory_space<vmem>>, vector<1x1x32x32xf32>
    %1318 = vector.shape_cast %1317 : vector<1x1x32x32xf32> to vector<32x32xf32>
    %1319 = arith.truncf %1318 : vector<32x32xf32> to vector<32x32xbf16>
    %c3_489 = arith.constant 3 : index
    %c2_490 = arith.constant 2 : index
    %c0_491 = arith.constant 0 : index
    %c0_492 = arith.constant 0 : index
    %1320 = vector.load %arg2[%c3_489, %c2_490, %c0_491, %c0_492] : memref<4x3x32x32xf32, #tpu.memory_space<vmem>>, vector<1x1x32x32xf32>
    %1321 = vector.shape_cast %1320 : vector<1x1x32x32xf32> to vector<32x32xf32>
    %1322 = arith.truncf %1321 : vector<32x32xf32> to vector<32x32xbf16>
    %c5_493 = arith.constant 5 : index
    %c0_494 = arith.constant 0 : index
    %c0_495 = arith.constant 0 : index
    %c0_496 = arith.constant 0 : index
    %1323 = vector.load %arg3[%c5_493, %c0_494, %c0_495, %c0_496] : memref<6x3x32x32xf32, #tpu.memory_space<vmem>>, vector<1x1x32x32xf32>
    %1324 = vector.shape_cast %1323 : vector<1x1x32x32xf32> to vector<32x32xf32>
    %1325 = arith.truncf %1324 : vector<32x32xf32> to vector<32x32xbf16>
    %c5_497 = arith.constant 5 : index
    %c1_498 = arith.constant 1 : index
    %c0_499 = arith.constant 0 : index
    %c0_500 = arith.constant 0 : index
    %1326 = vector.load %arg3[%c5_497, %c1_498, %c0_499, %c0_500] : memref<6x3x32x32xf32, #tpu.memory_space<vmem>>, vector<1x1x32x32xf32>
    %1327 = vector.shape_cast %1326 : vector<1x1x32x32xf32> to vector<32x32xf32>
    %1328 = arith.truncf %1327 : vector<32x32xf32> to vector<32x32xbf16>
    %c5_501 = arith.constant 5 : index
    %c2_502 = arith.constant 2 : index
    %c0_503 = arith.constant 0 : index
    %c0_504 = arith.constant 0 : index
    %1329 = vector.load %arg3[%c5_501, %c2_502, %c0_503, %c0_504] : memref<6x3x32x32xf32, #tpu.memory_space<vmem>>, vector<1x1x32x32xf32>
    %1330 = vector.shape_cast %1329 : vector<1x1x32x32xf32> to vector<32x32xf32>
    %1331 = arith.truncf %1330 : vector<32x32xf32> to vector<32x32xbf16>
    %c5_505 = arith.constant 5 : index
    %c0_506 = arith.constant 0 : index
    %c0_507 = arith.constant 0 : index
    %1332 = vector.load %arg5[%c5_505, %c0_506, %c0_507] : memref<6x1x32xf32, #tpu.memory_space<vmem>>, vector<1x1x32xf32>
    %1333 = vector.shape_cast %1332 : vector<1x1x32xf32> to vector<1x32xf32>
    %1334 = tpu.concatenate %1261, %1262, %1263, %1264 in 0 : vector<2x32xf32>, vector<2x32xf32>, vector<2x32xf32>, vector<2x32xf32> -> vector<8x32xf32>
    %1335 = tpu.concatenate %1265, %1266, %1267, %1268 in 0 : vector<2x32xf32>, vector<2x32xf32>, vector<2x32xf32>, vector<2x32xf32> -> vector<8x32xf32>
    %1336 = tpu.concatenate %1269, %1270, %1271, %1272 in 0 : vector<2x32xf32>, vector<2x32xf32>, vector<2x32xf32>, vector<2x32xf32> -> vector<8x32xf32>
    %1337 = tpu.concatenate %1334, %1335, %1336 in 0 : vector<8x32xf32>, vector<8x32xf32>, vector<8x32xf32> -> vector<24x32xf32>
    %1338 = arith.truncf %1337 : vector<24x32xf32> to vector<24x32xbf16>
    %cst_508 = arith.constant dense<0.000000e+00> : vector<24x32xf32>
    %1339 = tpu.matmul %1338, %1316, %cst_508 {dimension_numbers = #tpu.dot_dimension_numbers<[1], [0], [0], [1], [0, 0, 1, 1], [], []>} : vector<24x32xbf16>, vector<32x32xbf16>, vector<24x32xf32> -> vector<24x32xf32>
    %c15 = arith.constant 15 : index
    %c0_509 = arith.constant 0 : index
    %c0_510 = arith.constant 0 : index
    %1340 = vector.load %arg4[%c15, %c0_509, %c0_510] : memref<18x1x32xf32, #tpu.memory_space<vmem>>, vector<1x1x32xf32>
    %1341 = vector.shape_cast %1340 : vector<1x1x32xf32> to vector<1x32xf32>
    %1342 = vector.broadcast %1341 : vector<1x32xf32> to vector<24x32xf32>
    %1343 = arith.addf %1339, %1342 : vector<24x32xf32>
    %cst_511 = arith.constant dense<0.000000e+00> : vector<24x32xf32>
    %1344 = tpu.matmul %1338, %1319, %cst_511 {dimension_numbers = #tpu.dot_dimension_numbers<[1], [0], [0], [1], [0, 0, 1, 1], [], []>} : vector<24x32xbf16>, vector<32x32xbf16>, vector<24x32xf32> -> vector<24x32xf32>
    %c16 = arith.constant 16 : index
    %c0_512 = arith.constant 0 : index
    %c0_513 = arith.constant 0 : index
    %1345 = vector.load %arg4[%c16, %c0_512, %c0_513] : memref<18x1x32xf32, #tpu.memory_space<vmem>>, vector<1x1x32xf32>
    %1346 = vector.shape_cast %1345 : vector<1x1x32xf32> to vector<1x32xf32>
    %1347 = vector.broadcast %1346 : vector<1x32xf32> to vector<24x32xf32>
    %1348 = arith.addf %1344, %1347 : vector<24x32xf32>
    %cst_514 = arith.constant dense<0.000000e+00> : vector<24x32xf32>
    %1349 = tpu.matmul %1338, %1322, %cst_514 {dimension_numbers = #tpu.dot_dimension_numbers<[1], [0], [0], [1], [0, 0, 1, 1], [], []>} : vector<24x32xbf16>, vector<32x32xbf16>, vector<24x32xf32> -> vector<24x32xf32>
    %c17 = arith.constant 17 : index
    %c0_515 = arith.constant 0 : index
    %c0_516 = arith.constant 0 : index
    %1350 = vector.load %arg4[%c17, %c0_515, %c0_516] : memref<18x1x32xf32, #tpu.memory_space<vmem>>, vector<1x1x32xf32>
    %1351 = vector.shape_cast %1350 : vector<1x1x32xf32> to vector<1x32xf32>
    %1352 = vector.broadcast %1351 : vector<1x32xf32> to vector<24x32xf32>
    %1353 = arith.addf %1349, %1352 : vector<24x32xf32>
    %cst_517 = arith.constant 0.000000e+00 : f32
    %1354 = vector.broadcast %cst_517 : f32 to vector<8x32xf32>
    %1355 = arith.truncf %1313 : vector<8x32xf32> to vector<8x32xbf16>
    %cst_518 = arith.constant dense<0.000000e+00> : vector<8x32xf32>
    %1356 = tpu.matmul %1355, %1284, %cst_518 {dimension_numbers = #tpu.dot_dimension_numbers<[1], [0], [0], [1], [0, 0, 1, 1], [], []>} : vector<8x32xbf16>, vector<32x32xbf16>, vector<8x32xf32> -> vector<8x32xf32>
    %cst_519 = arith.constant dense<0.000000e+00> : vector<8x32xf32>
    %1357 = tpu.matmul %1355, %1287, %cst_519 {dimension_numbers = #tpu.dot_dimension_numbers<[1], [0], [0], [1], [0, 0, 1, 1], [], []>} : vector<8x32xbf16>, vector<32x32xbf16>, vector<8x32xf32> -> vector<8x32xf32>
    %cst_520 = arith.constant dense<0.000000e+00> : vector<8x32xf32>
    %1358 = tpu.matmul %1355, %1290, %cst_520 {dimension_numbers = #tpu.dot_dimension_numbers<[1], [0], [0], [1], [0, 0, 1, 1], [], []>} : vector<8x32xbf16>, vector<32x32xbf16>, vector<8x32xf32> -> vector<8x32xf32>
    %1359 = vector.extract_strided_slice %1302 {offsets = [0, 0], sizes = [8, 32], strides = [1, 1]} : vector<24x32xf32> to vector<8x32xf32>
    %1360 = arith.addf %1359, %1356 : vector<8x32xf32>
    %1361 = arith.negf %1360 : vector<8x32xf32>
    %1362 = math.exp %1361 : vector<8x32xf32>
    %cst_521 = arith.constant 1.000000e+00 : f32
    %1363 = vector.broadcast %cst_521 : f32 to vector<8x32xf32>
    %1364 = arith.addf %1363, %1362 : vector<8x32xf32>
    %1365 = arith.divf %1363, %1364 : vector<8x32xf32>
    %1366 = vector.extract_strided_slice %1307 {offsets = [0, 0], sizes = [8, 32], strides = [1, 1]} : vector<24x32xf32> to vector<8x32xf32>
    %1367 = arith.addf %1366, %1357 : vector<8x32xf32>
    %1368 = arith.negf %1367 : vector<8x32xf32>
    %1369 = math.exp %1368 : vector<8x32xf32>
    %cst_522 = arith.constant 1.000000e+00 : f32
    %1370 = vector.broadcast %cst_522 : f32 to vector<8x32xf32>
    %1371 = arith.addf %1370, %1369 : vector<8x32xf32>
    %1372 = arith.divf %1370, %1371 : vector<8x32xf32>
    %1373 = vector.extract_strided_slice %1312 {offsets = [0, 0], sizes = [8, 32], strides = [1, 1]} : vector<24x32xf32> to vector<8x32xf32>
    %1374 = vector.broadcast %1292 : vector<1x32xf32> to vector<8x32xf32>
    %1375 = arith.addf %1358, %1374 : vector<8x32xf32>
    %1376 = arith.mulf %1365, %1375 : vector<8x32xf32>
    %1377 = arith.addf %1373, %1376 : vector<8x32xf32>
    %1378 = math.tanh %1377 : vector<8x32xf32>
    %cst_523 = arith.constant 1.000000e+00 : f32
    %1379 = vector.broadcast %cst_523 : f32 to vector<8x32xf32>
    %1380 = arith.subf %1379, %1372 : vector<8x32xf32>
    %1381 = arith.mulf %1380, %1378 : vector<8x32xf32>
    %1382 = arith.mulf %1372, %1313 : vector<8x32xf32>
    %1383 = arith.addf %1381, %1382 : vector<8x32xf32>
    %1384 = arith.truncf %1354 : vector<8x32xf32> to vector<8x32xbf16>
    %cst_524 = arith.constant dense<0.000000e+00> : vector<8x32xf32>
    %1385 = tpu.matmul %1384, %1325, %cst_524 {dimension_numbers = #tpu.dot_dimension_numbers<[1], [0], [0], [1], [0, 0, 1, 1], [], []>} : vector<8x32xbf16>, vector<32x32xbf16>, vector<8x32xf32> -> vector<8x32xf32>
    %cst_525 = arith.constant dense<0.000000e+00> : vector<8x32xf32>
    %1386 = tpu.matmul %1384, %1328, %cst_525 {dimension_numbers = #tpu.dot_dimension_numbers<[1], [0], [0], [1], [0, 0, 1, 1], [], []>} : vector<8x32xbf16>, vector<32x32xbf16>, vector<8x32xf32> -> vector<8x32xf32>
    %cst_526 = arith.constant dense<0.000000e+00> : vector<8x32xf32>
    %1387 = tpu.matmul %1384, %1331, %cst_526 {dimension_numbers = #tpu.dot_dimension_numbers<[1], [0], [0], [1], [0, 0, 1, 1], [], []>} : vector<8x32xbf16>, vector<32x32xbf16>, vector<8x32xf32> -> vector<8x32xf32>
    %1388 = vector.extract_strided_slice %1343 {offsets = [0, 0], sizes = [8, 32], strides = [1, 1]} : vector<24x32xf32> to vector<8x32xf32>
    %1389 = arith.addf %1388, %1385 : vector<8x32xf32>
    %1390 = arith.negf %1389 : vector<8x32xf32>
    %1391 = math.exp %1390 : vector<8x32xf32>
    %cst_527 = arith.constant 1.000000e+00 : f32
    %1392 = vector.broadcast %cst_527 : f32 to vector<8x32xf32>
    %1393 = arith.addf %1392, %1391 : vector<8x32xf32>
    %1394 = arith.divf %1392, %1393 : vector<8x32xf32>
    %1395 = vector.extract_strided_slice %1348 {offsets = [0, 0], sizes = [8, 32], strides = [1, 1]} : vector<24x32xf32> to vector<8x32xf32>
    %1396 = arith.addf %1395, %1386 : vector<8x32xf32>
    %1397 = arith.negf %1396 : vector<8x32xf32>
    %1398 = math.exp %1397 : vector<8x32xf32>
    %cst_528 = arith.constant 1.000000e+00 : f32
    %1399 = vector.broadcast %cst_528 : f32 to vector<8x32xf32>
    %1400 = arith.addf %1399, %1398 : vector<8x32xf32>
    %1401 = arith.divf %1399, %1400 : vector<8x32xf32>
    %1402 = vector.extract_strided_slice %1353 {offsets = [0, 0], sizes = [8, 32], strides = [1, 1]} : vector<24x32xf32> to vector<8x32xf32>
    %1403 = vector.broadcast %1333 : vector<1x32xf32> to vector<8x32xf32>
    %1404 = arith.addf %1387, %1403 : vector<8x32xf32>
    %1405 = arith.mulf %1394, %1404 : vector<8x32xf32>
    %1406 = arith.addf %1402, %1405 : vector<8x32xf32>
    %1407 = math.tanh %1406 : vector<8x32xf32>
    %cst_529 = arith.constant 1.000000e+00 : f32
    %1408 = vector.broadcast %cst_529 : f32 to vector<8x32xf32>
    %1409 = arith.subf %1408, %1401 : vector<8x32xf32>
    %1410 = arith.mulf %1409, %1407 : vector<8x32xf32>
    %1411 = arith.mulf %1401, %1354 : vector<8x32xf32>
    %1412 = arith.addf %1410, %1411 : vector<8x32xf32>
    %1413 = arith.truncf %1383 : vector<8x32xf32> to vector<8x32xbf16>
    %cst_530 = arith.constant dense<0.000000e+00> : vector<8x32xf32>
    %1414 = tpu.matmul %1413, %1284, %cst_530 {dimension_numbers = #tpu.dot_dimension_numbers<[1], [0], [0], [1], [0, 0, 1, 1], [], []>} : vector<8x32xbf16>, vector<32x32xbf16>, vector<8x32xf32> -> vector<8x32xf32>
    %cst_531 = arith.constant dense<0.000000e+00> : vector<8x32xf32>
    %1415 = tpu.matmul %1413, %1287, %cst_531 {dimension_numbers = #tpu.dot_dimension_numbers<[1], [0], [0], [1], [0, 0, 1, 1], [], []>} : vector<8x32xbf16>, vector<32x32xbf16>, vector<8x32xf32> -> vector<8x32xf32>
    %cst_532 = arith.constant dense<0.000000e+00> : vector<8x32xf32>
    %1416 = tpu.matmul %1413, %1290, %cst_532 {dimension_numbers = #tpu.dot_dimension_numbers<[1], [0], [0], [1], [0, 0, 1, 1], [], []>} : vector<8x32xbf16>, vector<32x32xbf16>, vector<8x32xf32> -> vector<8x32xf32>
    %1417 = vector.extract_strided_slice %1302 {offsets = [8, 0], sizes = [8, 32], strides = [1, 1]} : vector<24x32xf32> to vector<8x32xf32>
    %1418 = arith.addf %1417, %1414 : vector<8x32xf32>
    %1419 = arith.negf %1418 : vector<8x32xf32>
    %1420 = math.exp %1419 : vector<8x32xf32>
    %cst_533 = arith.constant 1.000000e+00 : f32
    %1421 = vector.broadcast %cst_533 : f32 to vector<8x32xf32>
    %1422 = arith.addf %1421, %1420 : vector<8x32xf32>
    %1423 = arith.divf %1421, %1422 : vector<8x32xf32>
    %1424 = vector.extract_strided_slice %1307 {offsets = [8, 0], sizes = [8, 32], strides = [1, 1]} : vector<24x32xf32> to vector<8x32xf32>
    %1425 = arith.addf %1424, %1415 : vector<8x32xf32>
    %1426 = arith.negf %1425 : vector<8x32xf32>
    %1427 = math.exp %1426 : vector<8x32xf32>
    %cst_534 = arith.constant 1.000000e+00 : f32
    %1428 = vector.broadcast %cst_534 : f32 to vector<8x32xf32>
    %1429 = arith.addf %1428, %1427 : vector<8x32xf32>
    %1430 = arith.divf %1428, %1429 : vector<8x32xf32>
    %1431 = vector.extract_strided_slice %1312 {offsets = [8, 0], sizes = [8, 32], strides = [1, 1]} : vector<24x32xf32> to vector<8x32xf32>
    %1432 = vector.broadcast %1292 : vector<1x32xf32> to vector<8x32xf32>
    %1433 = arith.addf %1416, %1432 : vector<8x32xf32>
    %1434 = arith.mulf %1423, %1433 : vector<8x32xf32>
    %1435 = arith.addf %1431, %1434 : vector<8x32xf32>
    %1436 = math.tanh %1435 : vector<8x32xf32>
    %cst_535 = arith.constant 1.000000e+00 : f32
    %1437 = vector.broadcast %cst_535 : f32 to vector<8x32xf32>
    %1438 = arith.subf %1437, %1430 : vector<8x32xf32>
    %1439 = arith.mulf %1438, %1436 : vector<8x32xf32>
    %1440 = arith.mulf %1430, %1383 : vector<8x32xf32>
    %1441 = arith.addf %1439, %1440 : vector<8x32xf32>
    %1442 = arith.truncf %1412 : vector<8x32xf32> to vector<8x32xbf16>
    %cst_536 = arith.constant dense<0.000000e+00> : vector<8x32xf32>
    %1443 = tpu.matmul %1442, %1325, %cst_536 {dimension_numbers = #tpu.dot_dimension_numbers<[1], [0], [0], [1], [0, 0, 1, 1], [], []>} : vector<8x32xbf16>, vector<32x32xbf16>, vector<8x32xf32> -> vector<8x32xf32>
    %cst_537 = arith.constant dense<0.000000e+00> : vector<8x32xf32>
    %1444 = tpu.matmul %1442, %1328, %cst_537 {dimension_numbers = #tpu.dot_dimension_numbers<[1], [0], [0], [1], [0, 0, 1, 1], [], []>} : vector<8x32xbf16>, vector<32x32xbf16>, vector<8x32xf32> -> vector<8x32xf32>
    %cst_538 = arith.constant dense<0.000000e+00> : vector<8x32xf32>
    %1445 = tpu.matmul %1442, %1331, %cst_538 {dimension_numbers = #tpu.dot_dimension_numbers<[1], [0], [0], [1], [0, 0, 1, 1], [], []>} : vector<8x32xbf16>, vector<32x32xbf16>, vector<8x32xf32> -> vector<8x32xf32>
    %1446 = vector.extract_strided_slice %1343 {offsets = [8, 0], sizes = [8, 32], strides = [1, 1]} : vector<24x32xf32> to vector<8x32xf32>
    %1447 = arith.addf %1446, %1443 : vector<8x32xf32>
    %1448 = arith.negf %1447 : vector<8x32xf32>
    %1449 = math.exp %1448 : vector<8x32xf32>
    %cst_539 = arith.constant 1.000000e+00 : f32
    %1450 = vector.broadcast %cst_539 : f32 to vector<8x32xf32>
    %1451 = arith.addf %1450, %1449 : vector<8x32xf32>
    %1452 = arith.divf %1450, %1451 : vector<8x32xf32>
    %1453 = vector.extract_strided_slice %1348 {offsets = [8, 0], sizes = [8, 32], strides = [1, 1]} : vector<24x32xf32> to vector<8x32xf32>
    %1454 = arith.addf %1453, %1444 : vector<8x32xf32>
    %1455 = arith.negf %1454 : vector<8x32xf32>
    %1456 = math.exp %1455 : vector<8x32xf32>
    %cst_540 = arith.constant 1.000000e+00 : f32
    %1457 = vector.broadcast %cst_540 : f32 to vector<8x32xf32>
    %1458 = arith.addf %1457, %1456 : vector<8x32xf32>
    %1459 = arith.divf %1457, %1458 : vector<8x32xf32>
    %1460 = vector.extract_strided_slice %1353 {offsets = [8, 0], sizes = [8, 32], strides = [1, 1]} : vector<24x32xf32> to vector<8x32xf32>
    %1461 = vector.broadcast %1333 : vector<1x32xf32> to vector<8x32xf32>
    %1462 = arith.addf %1445, %1461 : vector<8x32xf32>
    %1463 = arith.mulf %1452, %1462 : vector<8x32xf32>
    %1464 = arith.addf %1460, %1463 : vector<8x32xf32>
    %1465 = math.tanh %1464 : vector<8x32xf32>
    %cst_541 = arith.constant 1.000000e+00 : f32
    %1466 = vector.broadcast %cst_541 : f32 to vector<8x32xf32>
    %1467 = arith.subf %1466, %1459 : vector<8x32xf32>
    %1468 = arith.mulf %1467, %1465 : vector<8x32xf32>
    %1469 = arith.mulf %1459, %1412 : vector<8x32xf32>
    %1470 = arith.addf %1468, %1469 : vector<8x32xf32>
    %1471 = arith.truncf %1441 : vector<8x32xf32> to vector<8x32xbf16>
    %cst_542 = arith.constant dense<0.000000e+00> : vector<8x32xf32>
    %1472 = tpu.matmul %1471, %1284, %cst_542 {dimension_numbers = #tpu.dot_dimension_numbers<[1], [0], [0], [1], [0, 0, 1, 1], [], []>} : vector<8x32xbf16>, vector<32x32xbf16>, vector<8x32xf32> -> vector<8x32xf32>
    %cst_543 = arith.constant dense<0.000000e+00> : vector<8x32xf32>
    %1473 = tpu.matmul %1471, %1287, %cst_543 {dimension_numbers = #tpu.dot_dimension_numbers<[1], [0], [0], [1], [0, 0, 1, 1], [], []>} : vector<8x32xbf16>, vector<32x32xbf16>, vector<8x32xf32> -> vector<8x32xf32>
    %cst_544 = arith.constant dense<0.000000e+00> : vector<8x32xf32>
    %1474 = tpu.matmul %1471, %1290, %cst_544 {dimension_numbers = #tpu.dot_dimension_numbers<[1], [0], [0], [1], [0, 0, 1, 1], [], []>} : vector<8x32xbf16>, vector<32x32xbf16>, vector<8x32xf32> -> vector<8x32xf32>
    %1475 = vector.extract_strided_slice %1302 {offsets = [16, 0], sizes = [8, 32], strides = [1, 1]} : vector<24x32xf32> to vector<8x32xf32>
    %1476 = arith.addf %1475, %1472 : vector<8x32xf32>
    %1477 = arith.negf %1476 : vector<8x32xf32>
    %1478 = math.exp %1477 : vector<8x32xf32>
    %cst_545 = arith.constant 1.000000e+00 : f32
    %1479 = vector.broadcast %cst_545 : f32 to vector<8x32xf32>
    %1480 = arith.addf %1479, %1478 : vector<8x32xf32>
    %1481 = arith.divf %1479, %1480 : vector<8x32xf32>
    %1482 = vector.extract_strided_slice %1307 {offsets = [16, 0], sizes = [8, 32], strides = [1, 1]} : vector<24x32xf32> to vector<8x32xf32>
    %1483 = arith.addf %1482, %1473 : vector<8x32xf32>
    %1484 = arith.negf %1483 : vector<8x32xf32>
    %1485 = math.exp %1484 : vector<8x32xf32>
    %cst_546 = arith.constant 1.000000e+00 : f32
    %1486 = vector.broadcast %cst_546 : f32 to vector<8x32xf32>
    %1487 = arith.addf %1486, %1485 : vector<8x32xf32>
    %1488 = arith.divf %1486, %1487 : vector<8x32xf32>
    %1489 = vector.extract_strided_slice %1312 {offsets = [16, 0], sizes = [8, 32], strides = [1, 1]} : vector<24x32xf32> to vector<8x32xf32>
    %1490 = vector.broadcast %1292 : vector<1x32xf32> to vector<8x32xf32>
    %1491 = arith.addf %1474, %1490 : vector<8x32xf32>
    %1492 = arith.mulf %1481, %1491 : vector<8x32xf32>
    %1493 = arith.addf %1489, %1492 : vector<8x32xf32>
    %1494 = math.tanh %1493 : vector<8x32xf32>
    %cst_547 = arith.constant 1.000000e+00 : f32
    %1495 = vector.broadcast %cst_547 : f32 to vector<8x32xf32>
    %1496 = arith.subf %1495, %1488 : vector<8x32xf32>
    %1497 = arith.mulf %1496, %1494 : vector<8x32xf32>
    %1498 = arith.mulf %1488, %1441 : vector<8x32xf32>
    %1499 = arith.addf %1497, %1498 : vector<8x32xf32>
    %1500 = arith.truncf %1470 : vector<8x32xf32> to vector<8x32xbf16>
    %cst_548 = arith.constant dense<0.000000e+00> : vector<8x32xf32>
    %1501 = tpu.matmul %1500, %1325, %cst_548 {dimension_numbers = #tpu.dot_dimension_numbers<[1], [0], [0], [1], [0, 0, 1, 1], [], []>} : vector<8x32xbf16>, vector<32x32xbf16>, vector<8x32xf32> -> vector<8x32xf32>
    %cst_549 = arith.constant dense<0.000000e+00> : vector<8x32xf32>
    %1502 = tpu.matmul %1500, %1328, %cst_549 {dimension_numbers = #tpu.dot_dimension_numbers<[1], [0], [0], [1], [0, 0, 1, 1], [], []>} : vector<8x32xbf16>, vector<32x32xbf16>, vector<8x32xf32> -> vector<8x32xf32>
    %cst_550 = arith.constant dense<0.000000e+00> : vector<8x32xf32>
    %1503 = tpu.matmul %1500, %1331, %cst_550 {dimension_numbers = #tpu.dot_dimension_numbers<[1], [0], [0], [1], [0, 0, 1, 1], [], []>} : vector<8x32xbf16>, vector<32x32xbf16>, vector<8x32xf32> -> vector<8x32xf32>
    %1504 = vector.extract_strided_slice %1343 {offsets = [16, 0], sizes = [8, 32], strides = [1, 1]} : vector<24x32xf32> to vector<8x32xf32>
    %1505 = arith.addf %1504, %1501 : vector<8x32xf32>
    %1506 = arith.negf %1505 : vector<8x32xf32>
    %1507 = math.exp %1506 : vector<8x32xf32>
    %cst_551 = arith.constant 1.000000e+00 : f32
    %1508 = vector.broadcast %cst_551 : f32 to vector<8x32xf32>
    %1509 = arith.addf %1508, %1507 : vector<8x32xf32>
    %1510 = arith.divf %1508, %1509 : vector<8x32xf32>
    %1511 = vector.extract_strided_slice %1348 {offsets = [16, 0], sizes = [8, 32], strides = [1, 1]} : vector<24x32xf32> to vector<8x32xf32>
    %1512 = arith.addf %1511, %1502 : vector<8x32xf32>
    %1513 = arith.negf %1512 : vector<8x32xf32>
    %1514 = math.exp %1513 : vector<8x32xf32>
    %cst_552 = arith.constant 1.000000e+00 : f32
    %1515 = vector.broadcast %cst_552 : f32 to vector<8x32xf32>
    %1516 = arith.addf %1515, %1514 : vector<8x32xf32>
    %1517 = arith.divf %1515, %1516 : vector<8x32xf32>
    %1518 = vector.extract_strided_slice %1353 {offsets = [16, 0], sizes = [8, 32], strides = [1, 1]} : vector<24x32xf32> to vector<8x32xf32>
    %1519 = vector.broadcast %1333 : vector<1x32xf32> to vector<8x32xf32>
    %1520 = arith.addf %1503, %1519 : vector<8x32xf32>
    %1521 = arith.mulf %1510, %1520 : vector<8x32xf32>
    %1522 = arith.addf %1518, %1521 : vector<8x32xf32>
    %1523 = math.tanh %1522 : vector<8x32xf32>
    %cst_553 = arith.constant 1.000000e+00 : f32
    %1524 = vector.broadcast %cst_553 : f32 to vector<8x32xf32>
    %1525 = arith.subf %1524, %1517 : vector<8x32xf32>
    %1526 = arith.mulf %1525, %1523 : vector<8x32xf32>
    %1527 = arith.mulf %1517, %1470 : vector<8x32xf32>
    %1528 = arith.addf %1526, %1527 : vector<8x32xf32>
    %1529 = vector.extract_strided_slice %1383 {offsets = [0, 0], sizes = [2, 32], strides = [1, 1]} : vector<8x32xf32> to vector<2x32xf32>
    %1530 = vector.extract_strided_slice %1383 {offsets = [2, 0], sizes = [2, 32], strides = [1, 1]} : vector<8x32xf32> to vector<2x32xf32>
    %1531 = vector.extract_strided_slice %1383 {offsets = [4, 0], sizes = [2, 32], strides = [1, 1]} : vector<8x32xf32> to vector<2x32xf32>
    %1532 = vector.extract_strided_slice %1383 {offsets = [6, 0], sizes = [2, 32], strides = [1, 1]} : vector<8x32xf32> to vector<2x32xf32>
    %1533 = vector.extract_strided_slice %1441 {offsets = [0, 0], sizes = [2, 32], strides = [1, 1]} : vector<8x32xf32> to vector<2x32xf32>
    %1534 = vector.extract_strided_slice %1441 {offsets = [2, 0], sizes = [2, 32], strides = [1, 1]} : vector<8x32xf32> to vector<2x32xf32>
    %1535 = vector.extract_strided_slice %1441 {offsets = [4, 0], sizes = [2, 32], strides = [1, 1]} : vector<8x32xf32> to vector<2x32xf32>
    %1536 = vector.extract_strided_slice %1441 {offsets = [6, 0], sizes = [2, 32], strides = [1, 1]} : vector<8x32xf32> to vector<2x32xf32>
    %1537 = vector.extract_strided_slice %1499 {offsets = [0, 0], sizes = [2, 32], strides = [1, 1]} : vector<8x32xf32> to vector<2x32xf32>
    %1538 = vector.extract_strided_slice %1499 {offsets = [2, 0], sizes = [2, 32], strides = [1, 1]} : vector<8x32xf32> to vector<2x32xf32>
    %1539 = vector.extract_strided_slice %1412 {offsets = [0, 0], sizes = [2, 32], strides = [1, 1]} : vector<8x32xf32> to vector<2x32xf32>
    %1540 = vector.extract_strided_slice %1412 {offsets = [2, 0], sizes = [2, 32], strides = [1, 1]} : vector<8x32xf32> to vector<2x32xf32>
    %1541 = vector.extract_strided_slice %1412 {offsets = [4, 0], sizes = [2, 32], strides = [1, 1]} : vector<8x32xf32> to vector<2x32xf32>
    %1542 = vector.extract_strided_slice %1412 {offsets = [6, 0], sizes = [2, 32], strides = [1, 1]} : vector<8x32xf32> to vector<2x32xf32>
    %1543 = vector.extract_strided_slice %1470 {offsets = [0, 0], sizes = [2, 32], strides = [1, 1]} : vector<8x32xf32> to vector<2x32xf32>
    %1544 = vector.extract_strided_slice %1470 {offsets = [2, 0], sizes = [2, 32], strides = [1, 1]} : vector<8x32xf32> to vector<2x32xf32>
    %1545 = vector.extract_strided_slice %1470 {offsets = [4, 0], sizes = [2, 32], strides = [1, 1]} : vector<8x32xf32> to vector<2x32xf32>
    %1546 = vector.extract_strided_slice %1470 {offsets = [6, 0], sizes = [2, 32], strides = [1, 1]} : vector<8x32xf32> to vector<2x32xf32>
    %1547 = vector.extract_strided_slice %1528 {offsets = [0, 0], sizes = [2, 32], strides = [1, 1]} : vector<8x32xf32> to vector<2x32xf32>
    %1548 = vector.extract_strided_slice %1528 {offsets = [2, 0], sizes = [2, 32], strides = [1, 1]} : vector<8x32xf32> to vector<2x32xf32>
    %1549 = tpu.concatenate %1529, %1539 in 1 : vector<2x32xf32>, vector<2x32xf32> -> vector<2x64xf32>
    %c0_554 = arith.constant 0 : index
    %c0_555 = arith.constant 0 : index
    %c0_556 = arith.constant 0 : index
    %1550 = vector.load %arg6[%c0_554, %c0_555, %c0_556] : memref<10x2x64xf32, #tpu.memory_space<vmem>>, vector<1x2x64xf32>
    %1551 = vector.shape_cast %1550 : vector<1x2x64xf32> to vector<2x64xf32>
    %1552 = vector.shape_cast %1549 : vector<2x64xf32> to vector<1x2x64xf32>
    tpu.vector_store %arg6[%c0_554, %c0_555, %c0_556], %1552 {strides = array<i32>} : memref<10x2x64xf32, #tpu.memory_space<vmem>>, vector<1x2x64xf32>,
    %1553 = tpu.concatenate %1530, %1540 in 1 : vector<2x32xf32>, vector<2x32xf32> -> vector<2x64xf32>
    %c1_557 = arith.constant 1 : index
    %c0_558 = arith.constant 0 : index
    %c0_559 = arith.constant 0 : index
    %1554 = vector.load %arg6[%c1_557, %c0_558, %c0_559] : memref<10x2x64xf32, #tpu.memory_space<vmem>>, vector<1x2x64xf32>
    %1555 = vector.shape_cast %1554 : vector<1x2x64xf32> to vector<2x64xf32>
    %1556 = vector.shape_cast %1553 : vector<2x64xf32> to vector<1x2x64xf32>
    tpu.vector_store %arg6[%c1_557, %c0_558, %c0_559], %1556 {strides = array<i32>} : memref<10x2x64xf32, #tpu.memory_space<vmem>>, vector<1x2x64xf32>,
    %1557 = tpu.concatenate %1531, %1541 in 1 : vector<2x32xf32>, vector<2x32xf32> -> vector<2x64xf32>
    %c2_560 = arith.constant 2 : index
    %c0_561 = arith.constant 0 : index
    %c0_562 = arith.constant 0 : index
    %1558 = vector.load %arg6[%c2_560, %c0_561, %c0_562] : memref<10x2x64xf32, #tpu.memory_space<vmem>>, vector<1x2x64xf32>
    %1559 = vector.shape_cast %1558 : vector<1x2x64xf32> to vector<2x64xf32>
    %1560 = vector.shape_cast %1557 : vector<2x64xf32> to vector<1x2x64xf32>
    tpu.vector_store %arg6[%c2_560, %c0_561, %c0_562], %1560 {strides = array<i32>} : memref<10x2x64xf32, #tpu.memory_space<vmem>>, vector<1x2x64xf32>,
    %1561 = tpu.concatenate %1532, %1542 in 1 : vector<2x32xf32>, vector<2x32xf32> -> vector<2x64xf32>
    %c3_563 = arith.constant 3 : index
    %c0_564 = arith.constant 0 : index
    %c0_565 = arith.constant 0 : index
    %1562 = vector.load %arg6[%c3_563, %c0_564, %c0_565] : memref<10x2x64xf32, #tpu.memory_space<vmem>>, vector<1x2x64xf32>
    %1563 = vector.shape_cast %1562 : vector<1x2x64xf32> to vector<2x64xf32>
    %1564 = vector.shape_cast %1561 : vector<2x64xf32> to vector<1x2x64xf32>
    tpu.vector_store %arg6[%c3_563, %c0_564, %c0_565], %1564 {strides = array<i32>} : memref<10x2x64xf32, #tpu.memory_space<vmem>>, vector<1x2x64xf32>,
    %1565 = tpu.concatenate %1533, %1543 in 1 : vector<2x32xf32>, vector<2x32xf32> -> vector<2x64xf32>
    %c4_566 = arith.constant 4 : index
    %c0_567 = arith.constant 0 : index
    %c0_568 = arith.constant 0 : index
    %1566 = vector.load %arg6[%c4_566, %c0_567, %c0_568] : memref<10x2x64xf32, #tpu.memory_space<vmem>>, vector<1x2x64xf32>
    %1567 = vector.shape_cast %1566 : vector<1x2x64xf32> to vector<2x64xf32>
    %1568 = vector.shape_cast %1565 : vector<2x64xf32> to vector<1x2x64xf32>
    tpu.vector_store %arg6[%c4_566, %c0_567, %c0_568], %1568 {strides = array<i32>} : memref<10x2x64xf32, #tpu.memory_space<vmem>>, vector<1x2x64xf32>,
    %1569 = tpu.concatenate %1534, %1544 in 1 : vector<2x32xf32>, vector<2x32xf32> -> vector<2x64xf32>
    %c5_569 = arith.constant 5 : index
    %c0_570 = arith.constant 0 : index
    %c0_571 = arith.constant 0 : index
    %1570 = vector.load %arg6[%c5_569, %c0_570, %c0_571] : memref<10x2x64xf32, #tpu.memory_space<vmem>>, vector<1x2x64xf32>
    %1571 = vector.shape_cast %1570 : vector<1x2x64xf32> to vector<2x64xf32>
    %1572 = vector.shape_cast %1569 : vector<2x64xf32> to vector<1x2x64xf32>
    tpu.vector_store %arg6[%c5_569, %c0_570, %c0_571], %1572 {strides = array<i32>} : memref<10x2x64xf32, #tpu.memory_space<vmem>>, vector<1x2x64xf32>,
    %1573 = tpu.concatenate %1535, %1545 in 1 : vector<2x32xf32>, vector<2x32xf32> -> vector<2x64xf32>
    %c6_572 = arith.constant 6 : index
    %c0_573 = arith.constant 0 : index
    %c0_574 = arith.constant 0 : index
    %1574 = vector.load %arg6[%c6_572, %c0_573, %c0_574] : memref<10x2x64xf32, #tpu.memory_space<vmem>>, vector<1x2x64xf32>
    %1575 = vector.shape_cast %1574 : vector<1x2x64xf32> to vector<2x64xf32>
    %1576 = vector.shape_cast %1573 : vector<2x64xf32> to vector<1x2x64xf32>
    tpu.vector_store %arg6[%c6_572, %c0_573, %c0_574], %1576 {strides = array<i32>} : memref<10x2x64xf32, #tpu.memory_space<vmem>>, vector<1x2x64xf32>,
    %1577 = tpu.concatenate %1536, %1546 in 1 : vector<2x32xf32>, vector<2x32xf32> -> vector<2x64xf32>
    %c7_575 = arith.constant 7 : index
    %c0_576 = arith.constant 0 : index
    %c0_577 = arith.constant 0 : index
    %1578 = vector.load %arg6[%c7_575, %c0_576, %c0_577] : memref<10x2x64xf32, #tpu.memory_space<vmem>>, vector<1x2x64xf32>
    %1579 = vector.shape_cast %1578 : vector<1x2x64xf32> to vector<2x64xf32>
    %1580 = vector.shape_cast %1577 : vector<2x64xf32> to vector<1x2x64xf32>
    tpu.vector_store %arg6[%c7_575, %c0_576, %c0_577], %1580 {strides = array<i32>} : memref<10x2x64xf32, #tpu.memory_space<vmem>>, vector<1x2x64xf32>,
    %1581 = tpu.concatenate %1537, %1547 in 1 : vector<2x32xf32>, vector<2x32xf32> -> vector<2x64xf32>
    %c8_578 = arith.constant 8 : index
    %c0_579 = arith.constant 0 : index
    %c0_580 = arith.constant 0 : index
    %1582 = vector.load %arg6[%c8_578, %c0_579, %c0_580] : memref<10x2x64xf32, #tpu.memory_space<vmem>>, vector<1x2x64xf32>
    %1583 = vector.shape_cast %1582 : vector<1x2x64xf32> to vector<2x64xf32>
    %1584 = vector.shape_cast %1581 : vector<2x64xf32> to vector<1x2x64xf32>
    tpu.vector_store %arg6[%c8_578, %c0_579, %c0_580], %1584 {strides = array<i32>} : memref<10x2x64xf32, #tpu.memory_space<vmem>>, vector<1x2x64xf32>,
    %1585 = tpu.concatenate %1538, %1548 in 1 : vector<2x32xf32>, vector<2x32xf32> -> vector<2x64xf32>
    %c9_581 = arith.constant 9 : index
    %c0_582 = arith.constant 0 : index
    %c0_583 = arith.constant 0 : index
    %1586 = vector.load %arg6[%c9_581, %c0_582, %c0_583] : memref<10x2x64xf32, #tpu.memory_space<vmem>>, vector<1x2x64xf32>
    %1587 = vector.shape_cast %1586 : vector<1x2x64xf32> to vector<2x64xf32>
    %1588 = vector.shape_cast %1585 : vector<2x64xf32> to vector<1x2x64xf32>
    tpu.vector_store %arg6[%c9_581, %c0_582, %c0_583], %1588 {strides = array<i32>} : memref<10x2x64xf32, #tpu.memory_space<vmem>>, vector<1x2x64xf32>,
    return
  }
}

</mosaic_0001>

<bundles_post_ra>
// kernel: bi_drnn_forward.1
= control target key start
LH: loop header
LB: loop body
LE: loop exit
PB: predicated region body
PF: predicated region fallthrough
CT: control target
= control target key end

     0   :  { %11 = vsyncpa [#allocation3], 0  ;;  %s12397_s0 = inlined_call_operand.vmem [shape: f32[2,10,2,8], index: 0, kind: input, shape index: {}]   ;;  %s12398_s1 = inlined_call_operand.vmem [shape: f32[2,3,8,32], index: 1, kind: input, shape index: {}]   ;;  %s12399_s2 = inlined_call_operand.hbm [shape: f32[4,3,32,32], index: 2, kind: input, shape index: {}]   ;;  %s12400_s3 = inlined_call_operand.hbm [shape: f32[6,3,32,32], index: 3, kind: input, shape index: {}]   ;;  %s12401_s4 = inlined_call_operand.vmem [shape: f32[18,1,32], index: 4, kind: input, shape index: {}]   ;;  %s12402_s5 = inlined_call_operand.vmem [shape: f32[6,1,32], index: 5, kind: input, shape index: {}]   ;;  %s12403_s6 = inlined_call_operand.hbm [shape: f32[10,2,64], index: 6, kind: output, shape index: {}]  }
   0x1   :  { %12 = vsyncpa [#allocation6], 0 }
   0x2   :  { %13 = vsyncpa [#allocation4], 0  ;;  %s10449_s21 = smov [#allocation2]  }
   0x3   :  { %s23_s22 = sshll.u32 %s10449_s21, 4  ;;  %s24_s22 = int_to_ptr.vmem [resolvable:$true] %s23_s22 }
   0x4   :  { %s10391_s23 = scalar_lea.vmem %s24_s22, 6144  ;;  %p10396_p1 = scmp.lt.s32.totalorder %s24_s22, %s24_s22 }
   0x5   :  { %p10392_p0 = scmp.ne.s32.totalorder %s24_s22, %s10391_s23  ;;  %p10397_p2 = scmp.lt.s32.totalorder %s10391_s23, %s10391_s23 }
   0x7   :  { %p10398_p3 = por %p10397_p2, %p10396_p1 }
   0x9   :  { %p10399_p4 = pnand %p10398_p3, %p10392_p0 }
   0xb   :  { %10402 = shalt.err (!%p10399_p4)
}
   0xc   :  { %s10450_s24 = smov 128   ;;  %s10451_s25 = smov 8  }
   0xd   :  { %29 = dma.hbm_to_vmem [thread:$0]  %s12399_s2, 6144, %s24_s22, [#allocation3], %s10450_s24, %s10450_s24, %s10451_s25  }
   0xe   :  { %s10452_s28 = smov [#allocation5]  }
   0xf   :  { %s35_s29 = sshll.u32 %s10452_s28, 4  ;;  %s36_s29 = int_to_ptr.vmem [resolvable:$true] %s35_s29 }
  0x10   :  { %s10411_s30 = scalar_lea.vmem %s36_s29, 9216  ;;  %p10416_p6 = scmp.lt.s32.totalorder %s36_s29, %s36_s29 }
  0x11   :  { %p10412_p5 = scmp.ne.s32.totalorder %s36_s29, %s10411_s30  ;;  %p10417_p7 = scmp.lt.s32.totalorder %s10411_s30, %s10411_s30 }
  0x13   :  { %p10418_p8 = por %p10417_p7, %p10416_p6 }
  0x15   :  { %p10419_p9 = pnand %p10418_p8, %p10412_p5 }
  0x17   :  { %10422 = shalt.err (!%p10419_p9)
}
  0x18   :  { %41 = dma.hbm_to_vmem [thread:$0]  %s12400_s3, 9216, %s36_s29, [#allocation6], %s10450_s24, %s10450_s24, %s10451_s25  }
  0x19   :  { %10443 = dma.done.wait [#allocation3], 6144  }
  0x1a   :  { %10444 = vsyncadd [#allocation3], 4294961152 }
  0x1b   :  { %10445 = dma.done.wait [#allocation6], 9216  }
  0x1c   :  { %10446 = vsyncadd [#allocation6], 4294958080  ;;  %vm144_vm0 = vcmask 1043456   ;;  %v92_v0 = vld [vmem:[%s12398_s1] sm:$0xff]  ;;  %v8072_v1 = vld [vmem:[%s12398_s1 + $0x8] sm:$0xff]  ;;  %vm142_vm1 = vcmask 1041408  }
  0x1d   :  { %v53_v2 = vld [vmem:[%s12397_s0] sm:$0x3]  ;;  %vm146_vm2 = vcmask 1045504   ;;  %v93_v3 = vpack.c.bf16 %v92_v0, %v92_v0  ;;  %v96_v4 = vpack.c.bf16 %v8072_v1, %v8072_v1  ;;  %v8053_v5 = vld [vmem:[%s12397_s0 + $0x2] sm:$0x3]  ;;  %v8073_v20 = vld [vmem:[%s12398_s1 + $0x10] sm:$0xff] }
  0x1e   :  { %v8054_v6 = vld [vmem:[%s12397_s0 + $0x4] sm:$0x3]  ;;  %v8055_v7 = vld [vmem:[%s12397_s0 + $0x6] sm:$0x3]  ;;  %v8056_v8 = vld [vmem:[%s12397_s0 + $0x8] sm:$0x3]  ;;  %v99_v23 = vpack.c.bf16 %v8073_v20, %v8073_v20 }
  0x1f   :  { %v8057_v9 = vld [vmem:[%s12397_s0 + $0xa] sm:$0x3]  ;;  %v8058_v10 = vld [vmem:[%s12397_s0 + $0xc] sm:$0x3]  ;;  %9935 = vmatprep.subr.msk.bf16.mxu0 %vm144_vm0, %v93_v3  ;;  %9936 = vmatprep.subr.msk.bf16.mxu1 %vm144_vm0, %v96_v4  ;;  %v171_v11 = vsel %vm144_vm0, %v93_v3, 0  ;;  %v230_v12 = vsel %vm144_vm0, %v96_v4, 0 }
  0x20   :  { %v8059_v13 = vld [vmem:[%s12397_s0 + $0xe] sm:$0x3]  ;;  %v122_v14 = vrot.slane %v8053_v5, 6  ;;  %v125_v15 = vrot.slane %v8054_v6, 4  ;;  %8796 = vmatpush3.bf16.msra.mxu0 %v171_v11  ;;  %8802 = vmatpush3.bf16.msra.mxu1 %v230_v12  ;;  %v128_v16 = vrot.slane %v8055_v7, 2  ;;  %v131_v17 = vrot.slane %v8057_v9, 6 }
  0x21   :  { %v134_v18 = vrot.slane %v8058_v10, 4  ;;  %v137_v19 = vrot.slane %v8059_v13, 2  ;;  %v8085_v21 = vld [vmem:[%s12398_s1 + $0x18] sm:$0xff]  ;;  %v8060_v25 = vld [vmem:[%s12397_s0 + $0x10] sm:$0x3]  ;;  %vm163_vm3 = vcmask 64512   ;;  %9937 = vmatprep.subr.msk.bf16.mxu0 %vm144_vm0, %v99_v23 }
  0x22   :  { %v143_v22 = vsel %vm142_vm1, %v53_v2, %v122_v14  ;;  %v341_v24 = vpack.c.bf16 %v8085_v21, %v8085_v21  ;;  %v8061_v26 = vld [vmem:[%s12397_s0 + $0x12] sm:$0x3]  ;;  %v148_v28 = vsel %vm142_vm1, %v8056_v8, %v131_v17  ;;  %v8062_v30 = vld [vmem:[%s12397_s0 + $0x14] sm:$0x3]  ;;  %v8063_v31 = vld [vmem:[%s12397_s0 + $0x16] sm:$0x3] }
  0x23   :  { %v145_v27 = vsel %vm144_vm0, %v143_v22, %v125_v15  ;;  %v140_v29 = vrot.slane %v8061_v26, 6  ;;  %v8064_v32 = vld [vmem:[%s12397_s0 + $0x18] sm:$0x3]  ;;  %v149_v34 = vsel %vm144_vm0, %v148_v28, %v134_v18  ;;  %v289_v35 = vsel %vm144_vm0, %v99_v23, 0  ;;  %v8065_v37 = vld [vmem:[%s12397_s0 + $0x1a] sm:$0x3] }
  0x24   :  { %v147_v33 = vsel %vm146_vm2, %v145_v27, %v128_v16  ;;  %9938 = vmatprep.subr.msk.bf16.mxu1 %vm144_vm0, %v341_v24  ;;  %v418_v36 = vsel %vm144_vm0, %v341_v24, 0  ;;  %v8086_v38 = vld [vmem:[%s12398_s1 + $0x20] sm:$0xff]  ;;  %v150_v39 = vsel %vm146_vm2, %v149_v34, %v137_v19  ;;  %v8067_v41 = vld [vmem:[%s12397_s0 + $0x1e] sm:$0x3]  ;;  %v8066_v46 = vld [vmem:[%s12397_s0 + $0x1c] sm:$0x3] }
  0x25   :  { %v151_v40 = vsel %vm142_vm1, %v8060_v25, %v140_v29  ;;  %v8068_v42 = vld [vmem:[%s12397_s0 + $0x20] sm:$0x3]  ;;  %v8069_v43 = vld [vmem:[%s12397_s0 + $0x22] sm:$0x3]  ;;  %v154_v44 = vpack.c.bf16 %v150_v39, %v147_v33  ;;  %v372_v47 = vrot.slane %v8063_v31, 6  ;;  %v375_v48 = vrot.slane %v8064_v32, 4 }
  0x26   :  { %v152_v45 = vsel %vm144_vm0, %v151_v40, 0.0  ;;  %v8087_v49 = vld [vmem:[%s12398_s1 + $0x28] sm:$0xff]  ;;  %v378_v51 = vrot.slane %v8065_v37, 2  ;;  %v381_v52 = vrot.slane %v8067_v41, 6  ;;  %v384_v53 = vrot.slane %v8068_v42, 4  ;;  %v102_v10 = vld [vmem:[#allocation5 + $0x10] sm:$0xff] }
  0x27   :  { %v153_v50 = vsel %vm146_vm2, %v152_v45, 0.0  ;;  %v8071_v54 = vld [vmem:[%s12397_s0 + $0x26] sm:$0x3]  ;;  %8797 = vmatprep.mubr.msk.bf16.mxu0 %vm163_vm3, %v154_v44  ;;  %8803 = vmatprep.mubr.msk.bf16.mxu1 %vm163_vm3, %v154_v44  ;;  %v387_v56 = vrot.slane %v8069_v43, 2  ;;  %v392_v57 = vsel %vm142_vm1, %v8062_v30, %v372_v47  ;;  %v344_v58 = vpack.c.bf16 %v8086_v38, %v8086_v38  ;;  %v8070_v59 = vld [vmem:[%s12397_s0 + $0x24] sm:$0x3] }
  0x28   :  { %v155_v55 = vpack.c.bf16 %v153_v50, %v153_v50  ;;  %v393_v60 = vsel %vm144_vm0, %v392_v57, %v375_v48  ;;  %v395_v61 = vsel %vm142_vm1, %v8066_v46, %v381_v52  ;;  %v347_v62 = vpack.c.bf16 %v8087_v49, %v8087_v49  ;;  %v103_v11 = vld [vmem:[#allocation5 + $0x18] sm:$0xff]  ;;  %v109_v12 = vld [vmem:[#allocation5 + $0x30] sm:$0xff]  ;;  %v100_v17 = vld [vmem:[#allocation5] sm:$0xff]  ;;  %s10457_s20 = smov [#allocation7]  }
  0x29   :  { %v390_v63 = vrot.slane %v8071_v54, 6  ;;  %v394_v0 = vsel %vm146_vm2, %v393_v60, %v378_v51  ;;  %v396_v1 = vsel %vm144_vm0, %v395_v61, %v384_v53  ;;  %v477_v8 = vsel %vm144_vm0, %v344_v58, 0  ;;  %v110_v13 = vld [vmem:[#allocation5 + $0x38] sm:$0xff]  ;;  %v101_v18 = vld [vmem:[#allocation5 + $0x8] sm:$0xff]  ;;  %v107_v19 = vld [vmem:[#allocation5 + $0x20] sm:$0xff]  ;;  %s8040_s21 = sshll.u32 %s10457_s20, 4  ;;  %s8041_s21 = int_to_ptr.vmem [resolvable:$true] %s8040_s21 }
  0x2a   :  { %8798 = vmatmul.mubr.msk.bf16.vlgmr.msra.gmra.mxu0 %vm163_vm3, %v155_v55  ;;  %8804 = vmatmul.mubr.msk.bf16.vlgmr.msra.gmra.mxu1 %vm163_vm3, %v155_v55  ;;  %v397_v2 = vsel %vm146_vm2, %v396_v1, %v387_v56  ;;  %v536_v9 = vsel %vm144_vm0, %v347_v62, 0  ;;  %v10453_v14 = vmov 0.0   ;;  %v10620_v15 = vpack.c.bf16 %v103_v11, %v102_v10  ;;  %v108_v20 = vld [vmem:[#allocation5 + $0x28] sm:$0xff]  ;;  %v351_v23 = vld [vmem:[#allocation5 + $0x130] sm:$0xff]  ;;  %v352_v24 = vld [vmem:[#allocation5 + $0x138] sm:$0xff]  ;;  %s10423_s22 = scalar_lea.vmem %s8041_s21, 320  ;;  %p10428_p11 = scmp.lt.s32.totalorder %s8041_s21, %s8041_s21 }
  0x2b   :  { %8808 = vmatpush3.bf16.msra.mxu0 %v289_v35  ;;  %8814 = vmatpush3.bf16.msra.mxu1 %v418_v36  ;;  %v398_v3 = vsel %vm142_vm1, %v8070_v59, %v390_v63  ;;  %v401_v4 = vpack.c.bf16 %v397_v2, %v394_v0  ;;  %v10622_v16 = vpack.c.bf16 %v110_v13, %v109_v12  ;;  %v116_v25 = vld [vmem:[#allocation5 + $0x50] sm:$0xff]  ;;  %v117_v26 = vld [vmem:[#allocation5 + $0x58] sm:$0xff]  ;;  %vm10454_vm4 = vmmov 0   ;;  %v349_v29 = vld [vmem:[#allocation5 + $0x120] sm:$0xff]  ;;  %p10424_p10 = scmp.ne.s32.totalorder %s8041_s21, %s10423_s22  ;;  %p10429_p12 = scmp.lt.s32.totalorder %s10423_s22, %s10423_s22 }
  0x2c   :  { %8809 = vmatprep.mubr.msk.bf16.mxu0 %vm163_vm3, %v154_v44  ;;  %9939 = vmatprep.subr.msk.bf16.mxu0 %vm144_vm0, %v344_v58  ;;  %v399_v5 = vsel %vm144_vm0, %v398_v3, 0.0  ;;  %v10628_v21 = vpack.c.bf16 %v101_v18, %v100_v17  ;;  %v10630_v22 = vpack.c.bf16 %v108_v20, %v107_v19  ;;  %v10640_v27 = vpack.c.bf16 %v352_v24, %v351_v23  ;;  %v350_v30 = vld [vmem:[#allocation5 + $0x128] sm:$0xff]  ;;  %v114_v31 = vld [vmem:[#allocation5 + $0x40] sm:$0xff]  ;;  %v358_v36 = vld [vmem:[#allocation5 + $0x150] sm:$0xff] }
  0x2d   :  { %9940 = vmatprep.subr.msk.bf16.mxu1 %vm144_vm0, %v347_v62  ;;  %v400_v6 = vsel %vm146_vm2, %v399_v5, 0.0  ;;  %8815 = vmatprep.mubr.msk.bf16.mxu1 %vm163_vm3, %v401_v4  ;;  %v10642_v28 = vpack.c.bf16 %v117_v26, %v116_v25  ;;  %v115_v32 = vld [vmem:[#allocation5 + $0x48] sm:$0xff]  ;;  %v10455_v33 = vmov 0   ;;  %v10650_v34 = vpack.c.bf16 %v350_v30, %v349_v29  ;;  %v359_v37 = vld [vmem:[#allocation5 + $0x158] sm:$0xff]  ;;  %v365_v38 = vld [vmem:[#allocation5 + $0x170] sm:$0xff]  ;;  %p10430_p13 = por %p10429_p12, %p10428_p11 }
  0x2e   :  { %v402_v7 = vpack.c.bf16 %v400_v6, %v400_v6  ;;  %v10652_v35 = vpack.c.bf16 %v115_v32, %v114_v31  ;;  %v366_v39 = vld [vmem:[#allocation5 + $0x178] sm:$0xff]  ;;  %v10662_v40 = vpack.c.bf16 %v359_v37, %v358_v36  ;;  %v356_v41 = vld [vmem:[#allocation5 + $0x140] sm:$0xff]  ;;  %v357_v42 = vld [vmem:[#allocation5 + $0x148] sm:$0xff]  ;;  %vm586_vm5 = vcmask 261120  }
  0x2f   :  { %v10666_v43 = vpack.c.bf16 %v366_v39, %v365_v38  ;;  %v363_v44 = vld [vmem:[#allocation5 + $0x160] sm:$0xff]  ;;  %v364_v45 = vld [vmem:[#allocation5 + $0x168] sm:$0xff]  ;;  %v10671_v46 = vpack.c.bf16 %v357_v42, %v356_v41  ;;  %vm8002_vm6 = vcmask 517120   ;;  %vm8005_vm7 = vcmask 519170   ;;  %p10431_p0 = pnand %p10430_p13, %p10424_p10 }
  0x30   :  { %v10677_v47 = vpack.c.bf16 %v364_v45, %v363_v44  ;;  %v8074_v48 = vld [vmem:[%s12401_s4] ss:$0 sm:$0xff]  ;;  %v8078_v49 = vld [vmem:[%s12401_s4 + $0x1] ss:$0 sm:$0xff]  ;;  %v10717_v60 = vld [vmem:[%s12401_s4 + $0x2] ss:$0 sm:$0xff] }
  0x31   :  { %v8090_v61 = vld [vmem:[%s12401_s4 + $0x9] ss:$0 sm:$0xff]  ;;  %vm8008_vm8 = vcmask 521220   ;;  %vm8011_vm9 = vcmask 523270  }
  0x32   :  { %8810 = vmatmul.mubr.msk.bf16.vlgmr.msra.gmra.mxu0 %vm163_vm3, %v155_v55  ;;  %8816 = vmatmul.mubr.msk.bf16.vlgmr.msra.gmra.mxu1 %vm163_vm3, %v402_v7 }
  0x33   :  { %8820 = vmatpush3.bf16.msra.mxu0 %v477_v8  ;;  %8826 = vmatpush3.bf16.msra.mxu1 %v536_v9  ;;  %v8094_v8 = vld [vmem:[%s12401_s4 + $0xa] ss:$0 sm:$0xff]  ;;  %v10739_v9 = vld [vmem:[%s12401_s4 + $0xb] ss:$0 sm:$0xff] }
  0x34   :  { %8821 = vmatprep.mubr.msk.bf16.mxu0 %vm163_vm3, %v401_v4  ;;  %8827 = vmatprep.mubr.msk.bf16.mxu1 %vm163_vm3, %v401_v4 }
  0x35   :  { %8831 = vmatprep.subr.bf16.mxu0 %v10453_v14  ;;  %8839 = vmatprep.subr.bf16.mxu1 %v10453_v14 }
  0x3a   :  { %8822 = vmatmul.mubr.msk.bf16.vlgmr.msra.gmra.mxu0 %vm163_vm3, %v402_v7  ;;  %8828 = vmatmul.mubr.msk.bf16.vlgmr.msra.gmra.mxu1 %vm163_vm3, %v402_v7 }
  0x3b   :  { %8832 = vmatpush3.bf16.msra.mxu0 %v10620_v15  ;;  %8840 = vmatpush3.bf16.msra.mxu1 %v10622_v16 }
  0x3c   :  { %8833 = vmatprep.subr.bf16.mxu0 %v10453_v14  ;;  %8841 = vmatprep.subr.bf16.mxu1 %v10453_v14 }
  0x3d   :  { %8835 = vmatprep.mubr.msk.bf16.mxu0 %vm10454_vm4, %v10453_v14  ;;  %8843 = vmatprep.mubr.msk.bf16.mxu1 %vm10454_vm4, %v10453_v14 }
  0x3f   :  { %8834 = vmatpush3.bf16.msra.mxu0 %v10628_v21  ;;  %8842 = vmatpush3.bf16.msra.mxu1 %v10630_v22 }
  0x40   :  { %8855 = vmatprep.subr.bf16.mxu1 %v10453_v14  ;;  %8847 = vmatprep.subr.bf16.mxu0 %v10453_v14 }
  0x42   :  { %8836 = vmatmul.mubr.bf16.vlgmr.msra.gmra.mxu0 %v10455_v33  ;;  %8844 = vmatmul.mubr.bf16.vlgmr.msra.gmra.mxu1 %v10455_v33 }
  0x43   :  { %8856 = vmatpush3.bf16.msra.mxu1 %v10640_v27  ;;  %8848 = vmatpush3.bf16.msra.mxu0 %v10642_v28 }
  0x44   :  { %8857 = vmatprep.subr.bf16.mxu1 %v10453_v14  ;;  %8849 = vmatprep.subr.bf16.mxu0 %v10453_v14 }
  0x45   :  { %8851 = vmatprep.mubr.msk.bf16.mxu0 %vm10454_vm4, %v10453_v14  ;;  %8859 = vmatprep.mubr.msk.bf16.mxu1 %vm10454_vm4, %v10453_v14 }
  0x47   :  { %8858 = vmatpush3.bf16.msra.mxu1 %v10650_v34  ;;  %8850 = vmatpush3.bf16.msra.mxu0 %v10652_v35 }
  0x48   :  { %8863 = vmatprep.subr.bf16.mxu0 %v10453_v14  ;;  %8871 = vmatprep.subr.bf16.mxu1 %v10453_v14 }
  0x4a   :  { %8852 = vmatmul.mubr.bf16.vlgmr.msra.gmra.mxu0 %v10455_v33  ;;  %8860 = vmatmul.mubr.bf16.vlgmr.msra.gmra.mxu1 %v10455_v33 }
  0x4b   :  { %8864 = vmatpush3.bf16.msra.mxu0 %v10662_v40  ;;  %8867 = vmatprep.mubr.msk.bf16.mxu0 %vm10454_vm4, %v10453_v14 }
  0x4c   :  { %8865 = vmatprep.subr.bf16.mxu0 %v10453_v14  ;;  %8872 = vmatpush3.bf16.msra.mxu1 %v10666_v43 }
  0x4d   :  { %8873 = vmatprep.subr.bf16.mxu1 %v10453_v14  ;;  %8875 = vmatprep.mubr.msk.bf16.mxu1 %vm10454_vm4, %v10453_v14 }
  0x4f   :  { %8866 = vmatpush3.bf16.msra.mxu0 %v10671_v46 }
  0x50   :  { %8874 = vmatpush3.bf16.msra.mxu1 %v10677_v47  ;;  %8879 = vmatprep.subr.bf16.mxu0 %v10453_v14 }
  0x51   :  { %8887 = vmatprep.subr.bf16.mxu1 %v10453_v14 }
  0x52   :  { %8868 = vmatmul.mubr.bf16.vlgmr.msra.gmra.mxu0 %v10455_v33 }
  0x53   :  { %8876 = vmatmul.mubr.bf16.vlgmr.msra.gmra.mxu1 %v10455_v33  ;;  %8880 = vmatpush3.bf16.msra.mxu0 %v10620_v15 }
  0x54   :  { %8888 = vmatpush3.bf16.msra.mxu1 %v10622_v16  ;;  %8881 = vmatprep.subr.bf16.mxu0 %v10453_v14 }
  0x55   :  { %8889 = vmatprep.subr.bf16.mxu1 %v10453_v14  ;;  %8883 = vmatprep.mubr.msk.bf16.mxu0 %vm10454_vm4, %v10453_v14 }
  0x56   :  { %8891 = vmatprep.mubr.msk.bf16.mxu1 %vm10454_vm4, %v10453_v14 }
  0x57   :  { %8882 = vmatpush3.bf16.msra.mxu0 %v10628_v21 }
  0x58   :  { %8890 = vmatpush3.bf16.msra.mxu1 %v10630_v22  ;;  %8895 = vmatprep.subr.bf16.mxu0 %v10453_v14 }
  0x59   :  { %8903 = vmatprep.subr.bf16.mxu1 %v10453_v14 }
  0xea   :  { %v8799_v50 = vpop.f32.mrf.mxu0  ;;  %v8805_v51 = vpop.f32.mrf.mxu1 }
  0xeb   :  { %v10706_v52 = vadd.f32 %v8799_v50, %v8074_v48  ;;  %v10708_v53 = vadd.f32 %v8805_v51, %v8078_v49 }
  0xec   :  { %v207_v54 = vpop.f32.mrf.mxu0  ;;  %v266_v55 = vpop.f32.mrf.mxu1 }
  0xed   :  { %v10752_v25 = vadd.f32 %v8074_v48, %v207_v54  ;;  %v10755_v39 = vadd.f32 %v8078_v49, %v266_v55 }
  0xee   :  { %v8800_v56 = vpop.f32.mrf.mxu0  ;;  %v8806_v57 = vpop.f32.mrf.mxu1 }
  0xf0   :  { %v10710_v58 = vpop.f32.mrf.mxu0  ;;  %v10712_v59 = vpop.f32.mrf.mxu1 }
  0xf2   :  { %v8811_v62 = vpop.f32.mrf.mxu0  ;;  %v8817_v63 = vpop.f32.mrf.mxu1 }
  0xf3   :  { %v10723_v0 = vadd.f32 %v8811_v62, %v10717_v60  ;;  %v10725_v1 = vadd.f32 %v8817_v63, %v8090_v61 }
  0xf4   :  { %v10727_v2 = vpop.f32.mrf.mxu0  ;;  %v454_v3 = vpop.f32.mrf.mxu1 }
  0xf5   :  { %v10757_v44 = vadd.f32 %v8090_v61, %v454_v3 }
  0xf6   :  { %v8812_v4 = vpop.f32.mrf.mxu0  ;;  %v8818_v5 = vpop.f32.mrf.mxu1 }
  0xf8   :  { %v10729_v6 = vpop.f32.mrf.mxu0  ;;  %v10731_v7 = vpop.f32.mrf.mxu1 }
  0xfa   :  { %v8823_v10 = vpop.f32.mrf.mxu0  ;;  %v8829_v11 = vpop.f32.mrf.mxu1 }
  0xfb   :  { %v10741_v12 = vadd.f32 %v8823_v10, %v8094_v8  ;;  %v10744_v13 = vadd.f32 %v8829_v11, %v10739_v9 }
  0xfc   :  { %v513_v17 = vpop.f32.mrf.mxu0  ;;  %v10746_v18 = vpop.f32.mrf.mxu1 }
  0xfd   :  { %v10761_v5 = vadd.f32 %v8094_v8, %v513_v17  ;;  %v10767_v17 = vld [vmem:[%s12402_s5] ss:$0 sm:$0xff] }
  0xfe   :  { %v8824_v19 = vpop.f32.mrf.mxu0  ;;  %v8830_v20 = vpop.f32.mrf.mxu1 }
 0x100   :  { %v10748_v23 = vpop.f32.mrf.mxu0  ;;  %v10750_v24 = vpop.f32.mrf.mxu1 }
 0x102   :  { %v624_v26 = vpop.f32.mrf.mxu0  ;;  %v664_v29 = vpop.f32.mrf.mxu1 }
 0x103   :  { %v670_v30 = vadd.f32 %v624_v26, %v10752_v25  ;;  %v677_v45 = vadd.f32 %v664_v29, %v10755_v39 }
 0x104   :  { %v8837_v31 = vpop.f32.mrf.mxu0  ;;  %v8845_v32 = vpop.f32.mrf.mxu1 }
 0x105   :  { %v8101_v36 = vmul.f32 -1.442695, %v670_v30  ;;  %v8102_v57 = vmul.f32 -1.442695, %v677_v45 }
 0x106   :  { %v627_v37 = vpop.f32.mrf.mxu0  ;;  %v667_v38 = vpop.f32.mrf.mxu1 }
 0x107   :  { %9951 = vpow2.f32 %v8101_v36 }
 0x108   :  { %v8838_v41 = vpop.f32.mrf.mxu0  ;;  %v8846_v42 = vpop.f32.mrf.mxu1 }
 0x10a   :  { %v724_v48 = vpop.f32.mrf.mxu0  ;;  %v771_v50 = vpop.f32.mrf.mxu1 }
 0x10b   :  { %v817_v51 = vadd.f32 %v771_v50, %v10757_v44  ;;  %v725_v42 = vadd.f32 %v10767_v17, %v724_v48  ;;  %v10772_v50 = vadd.f32 %v10717_v60, %v10727_v2 }
 0x10c   :  { %v8853_v54 = vpop.f32.mrf.mxu0  ;;  %v8861_v56 = vpop.f32.mrf.mxu1 }
 0x10d   :  { %v8104_v62 = vmul.f32 -1.442695, %v817_v51  ;;  %v10777_v56 = vld [vmem:[%s12402_s5 + $0x3] ss:$0 sm:$0xff] }
 0x10e   :  { %v727_v63 = vpop.f32.mrf.mxu0  ;;  %v774_v4 = vpop.f32.mrf.mxu1 }
 0x10f   :  { %9953 = vpow2.f32 %v8104_v62  ;;  %v10783_v4 = vadd.f32 %v10739_v9, %v10746_v18 }
 0x110   :  { %v8854_v49 = vpop.f32.mrf.mxu0  ;;  %v8862_v55 = vpop.f32.mrf.mxu1  ;;  %9955 = vpow2.f32 %v8102_v57 }
 0x112   :  { %v811_v61 = vpop.f32.mrf.mxu0 }
 0x113   :  { %v824_v3 = vadd.f32 %v811_v61, %v10761_v5  ;;  %v871_v10 = vpop.f32.mrf.mxu1 }
 0x114   :  { %v9952_v11 = vpop.eup %9951  ;;  %v8869_v19 = vpop.f32.mrf.mxu0  ;;  %v872_v63 = vadd.f32 %v10777_v56, %v871_v10 }
 0x115   :  { %v674_v20 = vadd.f32 1.0, %v9952_v11  ;;  %v8105_v26 = vmul.f32 -1.442695, %v824_v3  ;;  %v8877_v29 = vpop.f32.mrf.mxu1 }
 0x116   :  { %v814_v30 = vpop.f32.mrf.mxu0 }
 0x117   :  { %9957 = vrcp.f32 %v674_v20  ;;  %v874_v31 = vpop.f32.mrf.mxu1 }
 0x118   :  { %v8870_v32 = vpop.f32.mrf.mxu0  ;;  %9959 = vpow2.f32 %v8105_v26 }
 0x119   :  { %v8878_v36 = vpop.f32.mrf.mxu1 }
 0x11c   :  { %v9954_v37 = vpop.eup %9953 }
 0x11d   :  { %v821_v38 = vadd.f32 1.0, %v9954_v37  ;;  %v9956_v8 = vpop.eup %9955 }
 0x11e   :  { %v681_v41 = vadd.f32 1.0, %v9956_v8 }
 0x11f   :  { %9961 = vrcp.f32 %v821_v38 }
 0x120   :  { %9963 = vrcp.f32 %v681_v41 }
 0x124   :  { %v9958_v45 = vpop.eup %9957 }
 0x125   :  { %v730_v51 = vmul.f32 %v9958_v45, %v725_v42  ;;  %v9960_v54 = vpop.eup %9959 }
 0x126   :  { %v828_v62 = vadd.f32 1.0, %v9960_v54 }
 0x127   :  { %v731_v57 = vadd.f32 %v730_v51, %v10772_v50 }
 0x129   :  { %9965 = vtanh.f32 %v731_v57 }
 0x12a   :  { %9967 = vrcp.f32 %v828_v62 }
 0x12c   :  { %v9962_v48 = vpop.eup %9961 }
 0x12d   :  { %v877_v60 = vmul.f32 %v9962_v48, %v872_v63  ;;  %v9964_v49 = vpop.eup %9963 }
 0x12e   :  { %v733_v55 = vsub.f32 1.0, %v9964_v49  ;;  %v735_v11 = vmul.f32 0.0, %v9964_v49 }
 0x12f   :  { %v878_v2 = vadd.f32 %v877_v60, %v10783_v4 }
 0x131   :  { %9969 = vtanh.f32 %v878_v2 }
 0x136   :  { %v9966_v61 = vpop.eup %9965 }
 0x137   :  { %v734_v3 = vmul.f32 %v9966_v61, %v733_v55  ;;  %v9968_v20 = vpop.eup %9967 }
 0x138   :  { %v880_v26 = vsub.f32 1.0, %v9968_v20  ;;  %v882_v29 = vmul.f32 0.0, %v9968_v20 }
 0x139   :  { %v10786_v19 = vadd.f32 %v735_v11, %v734_v3 }
 0x13b   :  { %v884_v10 = vpack.c.bf16 %v10786_v19, %v10786_v19 }
 0x13d   :  { %8884 = vmatmul.mubr.msk.bf16.vlgmr.msra.gmra.mxu0 %vm586_vm5, %v884_v10  ;;  %8892 = vmatmul.mubr.msk.bf16.vlgmr.msra.gmra.mxu1 %vm586_vm5, %v884_v10 }
 0x13e   :  { %v9970_v9 = vpop.eup %9969  ;;  %8904 = vmatpush3.bf16.msra.mxu1 %v10640_v27  ;;  %8896 = vmatpush3.bf16.msra.mxu0 %v10642_v28 }
 0x13f   :  { %8905 = vmatprep.subr.bf16.mxu1 %v10453_v14  ;;  %8897 = vmatprep.subr.bf16.mxu0 %v10453_v14  ;;  %v881_v18 = vmul.f32 %v9970_v9, %v880_v26 }
 0x140   :  { %8899 = vmatprep.mubr.msk.bf16.mxu0 %vm10454_vm4, %v10453_v14  ;;  %8907 = vmatprep.mubr.msk.bf16.mxu1 %vm10454_vm4, %v10453_v14 }
 0x141   :  { %v10800_v30 = vadd.f32 %v882_v29, %v881_v18 }
 0x142   :  { %8906 = vmatpush3.bf16.msra.mxu1 %v10650_v34  ;;  %8898 = vmatpush3.bf16.msra.mxu0 %v10652_v35 }
 0x143   :  { %v1041_v31 = vpack.c.bf16 %v10800_v30, %v10800_v30  ;;  %8911 = vmatprep.subr.bf16.mxu0 %v10453_v14  ;;  %8919 = vmatprep.subr.bf16.mxu1 %v10453_v14 }
 0x145   :  { %8900 = vmatmul.mubr.msk.bf16.vlgmr.msra.gmra.mxu0 %vm586_vm5, %v884_v10  ;;  %8908 = vmatmul.mubr.msk.bf16.vlgmr.msra.gmra.mxu1 %vm586_vm5, %v1041_v31 }
 0x146   :  { %8912 = vmatpush3.bf16.msra.mxu0 %v10662_v40  ;;  %8920 = vmatpush3.bf16.msra.mxu1 %v10666_v43 }
 0x147   :  { %8913 = vmatprep.subr.bf16.mxu0 %v10453_v14  ;;  %8921 = vmatprep.subr.bf16.mxu1 %v10453_v14 }
 0x148   :  { %8915 = vmatprep.mubr.msk.bf16.mxu0 %vm10454_vm4, %v10453_v14  ;;  %8923 = vmatprep.mubr.msk.bf16.mxu1 %vm10454_vm4, %v10453_v14 }
 0x14a   :  { %8914 = vmatpush3.bf16.msra.mxu0 %v10671_v46  ;;  %8922 = vmatpush3.bf16.msra.mxu1 %v10677_v47 }
 0x14b   :  { %8927 = vmatprep.subr.bf16.mxu0 %v10453_v14  ;;  %8935 = vmatprep.subr.bf16.mxu1 %v10453_v14 }
 0x14d   :  { %8916 = vmatmul.mubr.msk.bf16.vlgmr.msra.gmra.mxu0 %vm586_vm5, %v1041_v31  ;;  %8924 = vmatmul.mubr.msk.bf16.vlgmr.msra.gmra.mxu1 %vm586_vm5, %v1041_v31 }
 0x14e   :  { %8928 = vmatpush3.bf16.msra.mxu0 %v10620_v15  ;;  %8936 = vmatpush3.bf16.msra.mxu1 %v10622_v16 }
 0x14f   :  { %8929 = vmatprep.subr.bf16.mxu0 %v10453_v14  ;;  %8937 = vmatprep.subr.bf16.mxu1 %v10453_v14 }
 0x150   :  { %8931 = vmatprep.mubr.msk.bf16.mxu0 %vm10454_vm4, %v10453_v14  ;;  %8939 = vmatprep.mubr.msk.bf16.mxu1 %vm10454_vm4, %v10453_v14 }
 0x152   :  { %8930 = vmatpush3.bf16.msra.mxu0 %v10628_v21  ;;  %8938 = vmatpush3.bf16.msra.mxu1 %v10630_v22 }
 0x153   :  { %8951 = vmatprep.subr.bf16.mxu1 %v10453_v14  ;;  %8943 = vmatprep.subr.bf16.mxu0 %v10453_v14 }
 0x1fd   :  { %v922_v32 = vpop.f32.mrf.mxu0  ;;  %v962_v36 = vpop.f32.mrf.mxu1 }
 0x1fe   :  { %v969_v37 = vrot.slane %v922_v32, 6  ;;  %v979_v54 = vrot.slane %v962_v36, 6 }
 0x1ff   :  { %v8885_v38 = vpop.f32.mrf.mxu0  ;;  %v8893_v8 = vpop.f32.mrf.mxu1 }
 0x200   :  { %v971_v41 = vadd.f32 %v969_v37, %v10752_v25  ;;  %v981_v60 = vadd.f32 %v979_v54, %v10755_v39 }
 0x201   :  { %v925_v42 = vpop.f32.mrf.mxu0  ;;  %v965_v45 = vpop.f32.mrf.mxu1 }
 0x202   :  { %v8109_v51 = vmul.f32 -1.442695, %v971_v41  ;;  %v8110_v20 = vmul.f32 -1.442695, %v981_v60 }
 0x203   :  { %v8886_v57 = vpop.f32.mrf.mxu0  ;;  %v8894_v62 = vpop.f32.mrf.mxu1 }
 0x204   :  { %9971 = vpow2.f32 %v8109_v51 }
 0x205   :  { %v1022_v63 = vpop.f32.mrf.mxu0  ;;  %v1079_v48 = vpop.f32.mrf.mxu1 }
 0x206   :  { %v1126_v2 = vrot.slane %v1079_v48, 6  ;;  %v1023_v60 = vadd.f32 %v10767_v17, %v1022_v63 }
 0x207   :  { %v8901_v49 = vpop.f32.mrf.mxu0  ;;  %v8909_v55 = vpop.f32.mrf.mxu1 }
 0x208   :  { %v1128_v61 = vadd.f32 %v1126_v2, %v10757_v44  ;;  %v1029_v49 = vrot.slane %v1023_v60, 6 }
 0x209   :  { %v1025_v3 = vpop.f32.mrf.mxu0  ;;  %v1082_v11 = vpop.f32.mrf.mxu1 }
 0x20a   :  { %v8114_v10 = vmul.f32 -1.442695, %v1128_v61 }
 0x20b   :  { %v8902_v26 = vpop.f32.mrf.mxu0  ;;  %v8910_v9 = vpop.f32.mrf.mxu1 }
 0x20c   :  { %9973 = vpow2.f32 %v8114_v10 }
 0x20d   :  { %v1119_v18 = vpop.f32.mrf.mxu0  ;;  %v1179_v29 = vpop.f32.mrf.mxu1  ;;  %9975 = vpow2.f32 %v8110_v20 }
 0x20e   :  { %v1136_v31 = vrot.slane %v1119_v18, 6  ;;  %v1180_v20 = vadd.f32 %v10777_v56, %v1179_v29 }
 0x20f   :  { %v8917_v32 = vpop.f32.mrf.mxu0  ;;  %v8925_v36 = vpop.f32.mrf.mxu1 }
 0x210   :  { %v1138_v37 = vadd.f32 %v1136_v31, %v10761_v5  ;;  %v1186_v26 = vrot.slane %v1180_v20, 6  ;;  %v1037_v36 = vrot.slane %v10786_v19, 6 }
 0x211   :  { %v9972_v38 = vpop.eup %9971  ;;  %v1122_v8 = vpop.f32.mrf.mxu0 }
 0x212   :  { %v1182_v41 = vpop.f32.mrf.mxu1  ;;  %v975_v42 = vadd.f32 1.0, %v9972_v38  ;;  %v8115_v45 = vmul.f32 -1.442695, %v1138_v37 }
 0x213   :  { %v8918_v51 = vpop.f32.mrf.mxu0 }
 0x214   :  { %v8926_v54 = vpop.f32.mrf.mxu1  ;;  %9977 = vrcp.f32 %v975_v42 }
 0x215   :  { %9979 = vpow2.f32 %v8115_v45  ;;  %v1194_v54 = vrot.slane %v10800_v30, 6 }
 0x219   :  { %v9974_v57 = vpop.eup %9973 }
 0x21a   :  { %v1132_v62 = vadd.f32 1.0, %v9974_v57  ;;  %v9976_v48 = vpop.eup %9975 }
 0x21b   :  { %v985_v2 = vadd.f32 1.0, %v9976_v48 }
 0x21c   :  { %9981 = vrcp.f32 %v1132_v62 }
 0x21d   :  { %9983 = vrcp.f32 %v985_v2 }
 0x221   :  { %v9978_v55 = vpop.eup %9977 }
 0x222   :  { %v1031_v61 = vmul.f32 %v9978_v55, %v1029_v49  ;;  %v9980_v3 = vpop.eup %9979 }
 0x223   :  { %v1142_v10 = vadd.f32 1.0, %v9980_v3 }
 0x224   :  { %v1032_v11 = vadd.f32 %v1031_v61, %v10772_v50 }
 0x226   :  { %9985 = vtanh.f32 %v1032_v11 }
 0x227   :  { %9987 = vrcp.f32 %v1142_v10 }
 0x229   :  { %v9982_v9 = vpop.eup %9981 }
 0x22a   :  { %v1188_v18 = vmul.f32 %v9982_v9, %v1186_v26  ;;  %v9984_v63 = vpop.eup %9983 }
 0x22b   :  { %v1034_v32 = vsub.f32 1.0, %v9984_v63  ;;  %v1039_v8 = vmul.f32 %v9984_v63, %v1037_v36 }
 0x22c   :  { %v1189_v31 = vadd.f32 %v1188_v18, %v10783_v4 }
 0x22e   :  { %9989 = vtanh.f32 %v1189_v31 }
 0x233   :  { %v9986_v37 = vpop.eup %9985 }
 0x234   :  { %v1035_v38 = vmul.f32 %v9986_v37, %v1034_v32  ;;  %v9988_v42 = vpop.eup %9987 }
 0x235   :  { %v1191_v51 = vsub.f32 1.0, %v9988_v42  ;;  %v1196_v48 = vmul.f32 %v9988_v42, %v1194_v54 }
 0x236   :  { %v10845_v41 = vadd.f32 %v1039_v8, %v1035_v38 }
 0x238   :  { %v1198_v29 = vpack.c.bf16 %v10845_v41, %v10845_v41 }
 0x23a   :  { %v1200_v45 = vrot.slane %v1198_v29, 1 }
 0x23b   :  { %v9990_v57 = vpop.eup %9989 }
 0x23c   :  { %8932 = vmatmul.mubr.msk.bf16.vlgmr.msra.gmra.mxu0 %vm586_vm5, %v1200_v45  ;;  %8940 = vmatmul.mubr.msk.bf16.vlgmr.msra.gmra.mxu1 %vm586_vm5, %v1200_v45  ;;  %v1192_v62 = vmul.f32 %v9990_v57, %v1191_v51 }
 0x23d   :  { %8952 = vmatpush3.bf16.msra.mxu1 %v10640_v27  ;;  %8944 = vmatpush3.bf16.msra.mxu0 %v10642_v28 }
 0x23e   :  { %8953 = vmatprep.subr.bf16.mxu1 %v10453_v14  ;;  %8945 = vmatprep.subr.bf16.mxu0 %v10453_v14  ;;  %v10856_v60 = vadd.f32 %v1196_v48, %v1192_v62 }
 0x23f   :  { %8947 = vmatprep.mubr.msk.bf16.mxu0 %vm10454_vm4, %v10453_v14  ;;  %8955 = vmatprep.mubr.msk.bf16.mxu1 %vm10454_vm4, %v10453_v14 }
 0x240   :  { %v1357_v2 = vpack.c.bf16 %v10856_v60, %v10856_v60 }
 0x241   :  { %8954 = vmatpush3.bf16.msra.mxu1 %v10650_v34  ;;  %8946 = vmatpush3.bf16.msra.mxu0 %v10652_v35 }
 0x242   :  { %v1359_v49 = vrot.slane %v1357_v2, 1  ;;  %8959 = vmatprep.subr.bf16.mxu0 %v10453_v14  ;;  %8967 = vmatprep.subr.bf16.mxu1 %v10453_v14 }
 0x244   :  { %8948 = vmatmul.mubr.msk.bf16.vlgmr.msra.gmra.mxu0 %vm586_vm5, %v1200_v45  ;;  %8956 = vmatmul.mubr.msk.bf16.vlgmr.msra.gmra.mxu1 %vm586_vm5, %v1359_v49 }
 0x245   :  { %8960 = vmatpush3.bf16.msra.mxu0 %v10662_v40  ;;  %8968 = vmatpush3.bf16.msra.mxu1 %v10666_v43 }
 0x246   :  { %8961 = vmatprep.subr.bf16.mxu0 %v10453_v14  ;;  %8969 = vmatprep.subr.bf16.mxu1 %v10453_v14 }
 0x247   :  { %8963 = vmatprep.mubr.msk.bf16.mxu0 %vm10454_vm4, %v10453_v14  ;;  %8971 = vmatprep.mubr.msk.bf16.mxu1 %vm10454_vm4, %v10453_v14 }
 0x249   :  { %8962 = vmatpush3.bf16.msra.mxu0 %v10671_v46  ;;  %8970 = vmatpush3.bf16.msra.mxu1 %v10677_v47 }
 0x24a   :  { %8975 = vmatprep.subr.bf16.mxu0 %v10453_v14  ;;  %8983 = vmatprep.subr.bf16.mxu1 %v10453_v14 }
 0x24c   :  { %8964 = vmatmul.mubr.msk.bf16.vlgmr.msra.gmra.mxu0 %vm586_vm5, %v1359_v49  ;;  %8972 = vmatmul.mubr.msk.bf16.vlgmr.msra.gmra.mxu1 %vm586_vm5, %v1359_v49 }
 0x24d   :  { %8976 = vmatpush3.bf16.msra.mxu0 %v10620_v15  ;;  %8984 = vmatpush3.bf16.msra.mxu1 %v10622_v16 }
 0x24e   :  { %8977 = vmatprep.subr.bf16.mxu0 %v10453_v14  ;;  %8985 = vmatprep.subr.bf16.mxu1 %v10453_v14 }
 0x24f   :  { %8979 = vmatprep.mubr.msk.bf16.mxu0 %vm10454_vm4, %v10453_v14  ;;  %8987 = vmatprep.mubr.msk.bf16.mxu1 %vm10454_vm4, %v10453_v14 }
 0x251   :  { %8978 = vmatpush3.bf16.msra.mxu0 %v10628_v21  ;;  %8986 = vmatpush3.bf16.msra.mxu1 %v10630_v22 }
 0x252   :  { %8999 = vmatprep.subr.bf16.mxu1 %v10453_v14  ;;  %8991 = vmatprep.subr.bf16.mxu0 %v10453_v14 }
 0x2fc   :  { %v1238_v55 = vpop.f32.mrf.mxu0  ;;  %v1278_v61 = vpop.f32.mrf.mxu1 }
 0x2fd   :  { %v1285_v3 = vrot.slane %v1238_v55, 4  ;;  %v1295_v31 = vrot.slane %v1278_v61, 4 }
 0x2fe   :  { %v8933_v11 = vpop.f32.mrf.mxu0  ;;  %v8941_v20 = vpop.f32.mrf.mxu1 }
 0x2ff   :  { %v1287_v10 = vadd.f32 %v1285_v3, %v10752_v25  ;;  %v1297_v38 = vadd.f32 %v1295_v31, %v10755_v39 }
 0x300   :  { %v1241_v26 = vpop.f32.mrf.mxu0  ;;  %v1281_v9 = vpop.f32.mrf.mxu1 }
 0x301   :  { %v8119_v18 = vmul.f32 -1.442695, %v1287_v10  ;;  %v8120_v57 = vmul.f32 -1.442695, %v1297_v38 }
 0x302   :  { %v8934_v63 = vpop.f32.mrf.mxu0  ;;  %v8942_v32 = vpop.f32.mrf.mxu1 }
 0x303   :  { %9991 = vpow2.f32 %v8119_v18 }
 0x304   :  { %v1338_v36 = vpop.f32.mrf.mxu0  ;;  %v1397_v37 = vpop.f32.mrf.mxu1 }
 0x305   :  { %v1444_v8 = vrot.slane %v1397_v37, 4 }
 0x306   :  { %v8949_v42 = vpop.f32.mrf.mxu0  ;;  %v8957_v29 = vpop.f32.mrf.mxu1 }
 0x307   :  { %v1446_v45 = vadd.f32 %v1444_v8, %v10757_v44  ;;  %v1339_v42 = vadd.f32 %v10767_v17, %v1338_v36 }
 0x308   :  { %v1341_v51 = vpop.f32.mrf.mxu0  ;;  %v1400_v54 = vpop.f32.mrf.mxu1 }
 0x309   :  { %v8124_v62 = vmul.f32 -1.442695, %v1446_v45  ;;  %v1345_v45 = vrot.slane %v1339_v42, 4 }
 0x30a   :  { %v8950_v48 = vpop.f32.mrf.mxu0  ;;  %v8958_v2 = vpop.f32.mrf.mxu1 }
 0x30b   :  { %9993 = vpow2.f32 %v8124_v62 }
 0x30c   :  { %v1437_v49 = vpop.f32.mrf.mxu0  ;;  %v1497_v55 = vpop.f32.mrf.mxu1  ;;  %9995 = vpow2.f32 %v8120_v57 }
 0x30d   :  { %v1454_v61 = vrot.slane %v1437_v49, 4  ;;  %v1498_v48 = vadd.f32 %v10777_v56, %v1497_v55 }
 0x30e   :  { %v8965_v3 = vpop.f32.mrf.mxu0  ;;  %v8973_v11 = vpop.f32.mrf.mxu1 }
 0x30f   :  { %v1456_v20 = vadd.f32 %v1454_v61, %v10761_v5  ;;  %v1504_v49 = vrot.slane %v1498_v48, 4 }
 0x310   :  { %v9992_v10 = vpop.eup %9991  ;;  %v1440_v26 = vpop.f32.mrf.mxu0 }
 0x311   :  { %v1500_v9 = vpop.f32.mrf.mxu1  ;;  %v1291_v18 = vadd.f32 1.0, %v9992_v10  ;;  %v8125_v31 = vmul.f32 -1.442695, %v1456_v20  ;;  %v1353_v10 = vrot.slane %v10845_v41, 6 }
 0x312   :  { %v8966_v63 = vpop.f32.mrf.mxu0 }
 0x313   :  { %v8974_v32 = vpop.f32.mrf.mxu1  ;;  %9997 = vrcp.f32 %v1291_v18 }
 0x314   :  { %9999 = vpow2.f32 %v8125_v31 }
 0x318   :  { %v9994_v37 = vpop.eup %9993 }
 0x319   :  { %v1450_v38 = vadd.f32 1.0, %v9994_v37  ;;  %v9996_v8 = vpop.eup %9995 }
 0x31a   :  { %v1301_v29 = vadd.f32 1.0, %v9996_v8 }
 0x31b   :  { %10001 = vrcp.f32 %v1450_v38  ;;  %v1512_v38 = vrot.slane %v10856_v60, 6 }
 0x31c   :  { %10003 = vrcp.f32 %v1301_v29 }
 0x320   :  { %v9998_v51 = vpop.eup %9997 }
 0x321   :  { %v1347_v54 = vmul.f32 %v9998_v51, %v1345_v45  ;;  %v10000_v57 = vpop.eup %9999 }
 0x322   :  { %v1460_v2 = vadd.f32 1.0, %v10000_v57 }
 0x323   :  { %v1348_v62 = vadd.f32 %v1347_v54, %v10772_v50 }
 0x325   :  { %10005 = vtanh.f32 %v1348_v62 }
 0x326   :  { %10007 = vrcp.f32 %v1460_v2 }
 0x328   :  { %v10002_v61 = vpop.eup %10001 }
 0x329   :  { %v1506_v3 = vmul.f32 %v10002_v61, %v1504_v49  ;;  %v10004_v36 = vpop.eup %10003 }
 0x32a   :  { %v1350_v20 = vsub.f32 1.0, %v10004_v36  ;;  %v1355_v18 = vmul.f32 %v10004_v36, %v1353_v10 }
 0x32b   :  { %v1507_v11 = vadd.f32 %v1506_v3, %v10783_v4 }
 0x32d   :  { %10009 = vtanh.f32 %v1507_v11 }
 0x332   :  { %v10006_v26 = vpop.eup %10005 }
 0x333   :  { %v1351_v9 = vmul.f32 %v10006_v26, %v1350_v20  ;;  %v10008_v63 = vpop.eup %10007 }
 0x334   :  { %v1509_v37 = vsub.f32 1.0, %v10008_v63  ;;  %v1514_v29 = vmul.f32 %v10008_v63, %v1512_v38 }
 0x335   :  { %v10905_v31 = vadd.f32 %v1355_v18, %v1351_v9 }
 0x337   :  { %v1516_v55 = vpack.c.bf16 %v10905_v31, %v10905_v31 }
 0x339   :  { %v1518_v32 = vrot.slane %v1516_v55, 2 }
 0x33a   :  { %v10010_v8 = vpop.eup %10009 }
 0x33b   :  { %8980 = vmatmul.mubr.msk.bf16.vlgmr.msra.gmra.mxu0 %vm586_vm5, %v1518_v32  ;;  %8988 = vmatmul.mubr.msk.bf16.vlgmr.msra.gmra.mxu1 %vm586_vm5, %v1518_v32  ;;  %v1510_v42 = vmul.f32 %v10010_v8, %v1509_v37 }
 0x33c   :  { %9000 = vmatpush3.bf16.msra.mxu1 %v10640_v27  ;;  %8992 = vmatpush3.bf16.msra.mxu0 %v10642_v28 }
 0x33d   :  { %9001 = vmatprep.subr.bf16.mxu1 %v10453_v14  ;;  %8993 = vmatprep.subr.bf16.mxu0 %v10453_v14  ;;  %v10916_v45 = vadd.f32 %v1514_v29, %v1510_v42 }
 0x33e   :  { %8995 = vmatprep.mubr.msk.bf16.mxu0 %vm10454_vm4, %v10453_v14  ;;  %9003 = vmatprep.mubr.msk.bf16.mxu1 %vm10454_vm4, %v10453_v14 }
 0x33f   :  { %v1675_v51 = vpack.c.bf16 %v10916_v45, %v10916_v45 }
 0x340   :  { %9002 = vmatpush3.bf16.msra.mxu1 %v10650_v34  ;;  %8994 = vmatpush3.bf16.msra.mxu0 %v10652_v35 }
 0x341   :  { %v1677_v54 = vrot.slane %v1675_v51, 2  ;;  %9007 = vmatprep.subr.bf16.mxu0 %v10453_v14  ;;  %9015 = vmatprep.subr.bf16.mxu1 %v10453_v14 }
 0x343   :  { %8996 = vmatmul.mubr.msk.bf16.vlgmr.msra.gmra.mxu0 %vm586_vm5, %v1518_v32  ;;  %9004 = vmatmul.mubr.msk.bf16.vlgmr.msra.gmra.mxu1 %vm586_vm5, %v1677_v54 }
 0x344   :  { %9008 = vmatpush3.bf16.msra.mxu0 %v10662_v40  ;;  %9016 = vmatpush3.bf16.msra.mxu1 %v10666_v43 }
 0x345   :  { %9009 = vmatprep.subr.bf16.mxu0 %v10453_v14  ;;  %9017 = vmatprep.subr.bf16.mxu1 %v10453_v14 }
 0x346   :  { %9011 = vmatprep.mubr.msk.bf16.mxu0 %vm10454_vm4, %v10453_v14  ;;  %9019 = vmatprep.mubr.msk.bf16.mxu1 %vm10454_vm4, %v10453_v14 }
 0x348   :  { %9010 = vmatpush3.bf16.msra.mxu0 %v10671_v46  ;;  %9018 = vmatpush3.bf16.msra.mxu1 %v10677_v47 }
 0x349   :  { %9023 = vmatprep.subr.bf16.mxu0 %v10453_v14  ;;  %9031 = vmatprep.subr.bf16.mxu1 %v10453_v14 }
 0x34b   :  { %9012 = vmatmul.mubr.msk.bf16.vlgmr.msra.gmra.mxu0 %vm586_vm5, %v1677_v54  ;;  %9020 = vmatmul.mubr.msk.bf16.vlgmr.msra.gmra.mxu1 %vm586_vm5, %v1677_v54 }
 0x34c   :  { %9024 = vmatpush3.bf16.msra.mxu0 %v10620_v15  ;;  %9032 = vmatpush3.bf16.msra.mxu1 %v10622_v16 }
 0x34d   :  { %9025 = vmatprep.subr.bf16.mxu0 %v10453_v14  ;;  %9033 = vmatprep.subr.bf16.mxu1 %v10453_v14 }
 0x34e   :  { %9027 = vmatprep.mubr.msk.bf16.mxu0 %vm10454_vm4, %v10453_v14  ;;  %9035 = vmatprep.mubr.msk.bf16.mxu1 %vm10454_vm4, %v10453_v14 }
 0x350   :  { %9026 = vmatpush3.bf16.msra.mxu0 %v10628_v21  ;;  %9034 = vmatpush3.bf16.msra.mxu1 %v10630_v22 }
 0x351   :  { %9047 = vmatprep.subr.bf16.mxu1 %v10453_v14  ;;  %9039 = vmatprep.subr.bf16.mxu0 %v10453_v14 }
 0x3fb   :  { %v1556_v57 = vpop.f32.mrf.mxu0  ;;  %v1596_v62 = vpop.f32.mrf.mxu1 }
 0x3fc   :  { %v1603_v48 = vrot.slane %v1556_v57, 2  ;;  %v1613_v20 = vrot.slane %v1596_v62, 2 }
 0x3fd   :  { %v8981_v2 = vpop.f32.mrf.mxu0  ;;  %v8989_v49 = vpop.f32.mrf.mxu1 }
 0x3fe   :  { %v1605_v61 = vadd.f32 %v1603_v48, %v10752_v25  ;;  %v1615_v63 = vadd.f32 %v1613_v20, %v10755_v39 }
 0x3ff   :  { %v1559_v3 = vpop.f32.mrf.mxu0  ;;  %v1599_v11 = vpop.f32.mrf.mxu1 }
 0x400   :  { %v8129_v36 = vmul.f32 -1.442695, %v1605_v61  ;;  %v8130_v29 = vmul.f32 -1.442695, %v1615_v63 }
 0x401   :  { %v8982_v10 = vpop.f32.mrf.mxu0  ;;  %v8990_v26 = vpop.f32.mrf.mxu1 }
 0x402   :  { %10011 = vpow2.f32 %v8129_v36 }
 0x403   :  { %v1656_v9 = vpop.f32.mrf.mxu0  ;;  %v1715_v18 = vpop.f32.mrf.mxu1 }
 0x404   :  { %v1762_v55 = vrot.slane %v1715_v18, 2 }
 0x405   :  { %v8997_v32 = vpop.f32.mrf.mxu0  ;;  %v9005_v37 = vpop.f32.mrf.mxu1 }
 0x406   :  { %v1764_v38 = vadd.f32 %v1762_v55, %v10757_v44  ;;  %v1657_v55 = vadd.f32 %v10767_v17, %v1656_v9 }
 0x407   :  { %v1659_v8 = vpop.f32.mrf.mxu0  ;;  %v1718_v42 = vpop.f32.mrf.mxu1 }
 0x408   :  { %v8134_v25 = vmul.f32 -1.442695, %v1764_v38  ;;  %v1663_v37 = vrot.slane %v1657_v55, 2 }
 0x409   :  { %v8998_v51 = vpop.f32.mrf.mxu0  ;;  %v9006_v54 = vpop.f32.mrf.mxu1 }
 0x40a   :  { %10013 = vpow2.f32 %v8134_v25 }
 0x40b   :  { %v1755_v57 = vpop.f32.mrf.mxu0  ;;  %v1815_v62 = vpop.f32.mrf.mxu1  ;;  %10015 = vpow2.f32 %v8130_v29 }
 0x40c   :  { %v1772_v48 = vrot.slane %v1755_v57, 2  ;;  %v1816_v29 = vadd.f32 %v10777_v56, %v1815_v62 }
 0x40d   :  { %v9013_v2 = vpop.f32.mrf.mxu0  ;;  %v9021_v49 = vpop.f32.mrf.mxu1 }
 0x40e   :  { %v1774_v39 = vadd.f32 %v1772_v48, %v10761_v5  ;;  %v1822_v51 = vrot.slane %v1816_v29, 2  ;;  %v1671_v49 = vrot.slane %v10905_v31, 6 }
 0x40f   :  { %v10012_v61 = vpop.eup %10011  ;;  %v1758_v3 = vpop.f32.mrf.mxu0 }
 0x410   :  { %v1818_v11 = vpop.f32.mrf.mxu1  ;;  %v1609_v36 = vadd.f32 1.0, %v10012_v61  ;;  %v8135_v44 = vmul.f32 -1.442695, %v1774_v39 }
 0x411   :  { %v9014_v20 = vpop.f32.mrf.mxu0 }
 0x412   :  { %v9022_v10 = vpop.f32.mrf.mxu1  ;;  %10017 = vrcp.f32 %v1609_v36  ;;  %v4378_v36 = vrot.slane %v10905_v31, 4  ;;  %v4377_v31 = vsel %vm142_vm1, %v10786_v19, %v10845_v41  ;;  %v4629_v41 = vrot.slane %v10916_v45, 4 }
 0x413   :  { %10019 = vpow2.f32 %v8135_v44  ;;  %v1830_v10 = vrot.slane %v10916_v45, 6  ;;  %v4628_v45 = vsel %vm142_vm1, %v10800_v30, %v10856_v60  ;;  %v10371_v30 = vld [vmem:[%s12401_s4] ss:$0 sm:$0xff] }
 0x414   :  { %v11038_v60 = vadd.f32 %v10371_v30, %v10710_v58 }
 0x417   :  { %v10014_v26 = vpop.eup %10013 }
 0x418   :  { %v1768_v18 = vadd.f32 1.0, %v10014_v26  ;;  %v10016_v63 = vpop.eup %10015 }
 0x419   :  { %v1619_v32 = vadd.f32 1.0, %v10016_v63 }
 0x41a   :  { %10021 = vrcp.f32 %v1768_v18 }
 0x41b   :  { %10023 = vrcp.f32 %v1619_v32 }
 0x41f   :  { %v10018_v38 = vpop.eup %10017 }
 0x420   :  { %v1665_v5 = vmul.f32 %v10018_v38, %v1663_v37  ;;  %v10020_v8 = vpop.eup %10019 }
 0x421   :  { %v1778_v25 = vadd.f32 1.0, %v10020_v8 }
 0x422   :  { %v1666_v42 = vadd.f32 %v1665_v5, %v10772_v50 }
 0x424   :  { %10025 = vtanh.f32 %v1666_v42 }
 0x425   :  { %10027 = vrcp.f32 %v1778_v25 }
 0x427   :  { %v10022_v54 = vpop.eup %10021 }
 0x428   :  { %v1824_v57 = vmul.f32 %v10022_v54, %v1822_v51  ;;  %v10024_v9 = vpop.eup %10023 }
 0x429   :  { %v1668_v2 = vsub.f32 1.0, %v10024_v9  ;;  %v1673_v3 = vmul.f32 %v10024_v9, %v1671_v49 }
 0x42a   :  { %v1825_v48 = vadd.f32 %v1824_v57, %v10783_v4 }
 0x42c   :  { %10029 = vtanh.f32 %v1825_v48 }
 0x431   :  { %v10026_v39 = vpop.eup %10025 }
 0x432   :  { %v1669_v61 = vmul.f32 %v10026_v39, %v1668_v2  ;;  %v10028_v50 = vpop.eup %10027 }
 0x433   :  { %v1827_v4 = vsub.f32 1.0, %v10028_v50  ;;  %v1832_v32 = vmul.f32 %v10028_v50, %v1830_v10 }
 0x434   :  { %v10965_v11 = vadd.f32 %v1673_v3, %v1669_v61  ;;  %v10372_v61 = vld [vmem:[%s12401_s4 + $0x1] ss:$0 sm:$0xff] }
 0x435   :  { %v11045_v3 = vadd.f32 %v10372_v61, %v10712_v59 }
 0x436   :  { %v1834_v62 = vpack.c.bf16 %v10965_v11, %v10965_v11  ;;  %v4380_v44 = vrot.slane %v10965_v11, 4 }
 0x438   :  { %v1836_v20 = vrot.slane %v1834_v62, 3  ;;  %v4382_v26 = vsel %vm142_vm1, %v4378_v36, %v4380_v44  ;;  %v10373_v62 = vld [vmem:[%s12401_s4 + $0x9] ss:$0 sm:$0xff] }
 0x439   :  { %v10030_v18 = vpop.eup %10029  ;;  %v4397_v63 = vrot.slane %v4382_v26, 4  ;;  %v11051_v36 = vadd.f32 %v10373_v62, %v10731_v7  ;;  %v10374_v7 = vld [vmem:[%s12401_s4 + $0xa] ss:$0 sm:$0xff]  ;;  %v10375_v62 = vld [vmem:[%s12401_s4 + $0x2] ss:$0 sm:$0xff] }
 0x43a   :  { %9028 = vmatmul.mubr.msk.bf16.vlgmr.msra.gmra.mxu0 %vm586_vm5, %v1836_v20  ;;  %9036 = vmatmul.mubr.msk.bf16.vlgmr.msra.gmra.mxu1 %vm586_vm5, %v1836_v20  ;;  %v1828_v55 = vmul.f32 %v10030_v18, %v1827_v4 }
 0x43b   :  { %9048 = vmatpush3.bf16.msra.mxu1 %v10640_v27  ;;  %9040 = vmatpush3.bf16.msra.mxu0 %v10642_v28  ;;  %v10981_v37 = vsel %vm144_vm0, %v4377_v31, %v4397_v63 }
 0x43c   :  { %9049 = vmatprep.subr.bf16.mxu1 %v10453_v14  ;;  %9041 = vmatprep.subr.bf16.mxu0 %v10453_v14  ;;  %v10985_v38 = vadd.f32 %v1832_v32, %v1828_v55 }
 0x43d   :  { %9043 = vmatprep.mubr.msk.bf16.mxu0 %vm10454_vm4, %v10453_v14  ;;  %9051 = vmatprep.mubr.msk.bf16.mxu1 %vm10454_vm4, %v10453_v14 }
 0x43e   :  { %v1984_v19 = vpack.c.bf16 %v10985_v38, %v10985_v38  ;;  %v4631_v5 = vrot.slane %v10985_v38, 4 }
 0x43f   :  { %9050 = vmatpush3.bf16.msra.mxu1 %v10650_v34  ;;  %9042 = vmatpush3.bf16.msra.mxu0 %v10652_v35 }
 0x440   :  { %v1986_v8 = vrot.slane %v1984_v19, 3  ;;  %9055 = vmatprep.subr.bf16.mxu0 %v10453_v14  ;;  %9063 = vmatprep.subr.bf16.mxu1 %v10453_v14  ;;  %v4633_v42 = vsel %vm142_vm1, %v4629_v41, %v4631_v5  ;;  %v11059_v41 = vadd.f32 %v10374_v7, %v10748_v23 }
 0x441   :  { %v4648_v29 = vrot.slane %v4633_v42, 4 }
 0x442   :  { %9044 = vmatmul.mubr.msk.bf16.vlgmr.msra.gmra.mxu0 %vm586_vm5, %v1836_v20  ;;  %9052 = vmatmul.mubr.msk.bf16.vlgmr.msra.gmra.mxu1 %vm586_vm5, %v1986_v8 }
 0x443   :  { %9056 = vmatpush3.bf16.msra.mxu0 %v10662_v40  ;;  %9064 = vmatpush3.bf16.msra.mxu1 %v10666_v43  ;;  %v11008_v25 = vsel %vm144_vm0, %v4628_v45, %v4648_v29 }
 0x444   :  { %9057 = vmatprep.subr.bf16.mxu0 %v10453_v14  ;;  %9065 = vmatprep.subr.bf16.mxu1 %v10453_v14 }
 0x445   :  { %9059 = vmatprep.mubr.msk.bf16.mxu0 %vm10454_vm4, %v10453_v14  ;;  %9067 = vmatprep.mubr.msk.bf16.mxu1 %vm10454_vm4, %v10453_v14 }
 0x447   :  { %9058 = vmatpush3.bf16.msra.mxu0 %v10671_v46  ;;  %9066 = vmatpush3.bf16.msra.mxu1 %v10677_v47 }
 0x448   :  { %9071 = vmatprep.subr.bf16.mxu0 %v10453_v14  ;;  %9079 = vmatprep.subr.bf16.mxu1 %v10453_v14 }
 0x44a   :  { %9060 = vmatmul.mubr.msk.bf16.vlgmr.msra.gmra.mxu0 %vm586_vm5, %v1986_v8  ;;  %9068 = vmatmul.mubr.msk.bf16.vlgmr.msra.gmra.mxu1 %vm586_vm5, %v1986_v8 }
 0x44b   :  { %9072 = vmatpush3.bf16.msra.mxu0 %v10620_v15  ;;  %9080 = vmatpush3.bf16.msra.mxu1 %v10622_v16 }
 0x44c   :  { %9073 = vmatprep.subr.bf16.mxu0 %v10453_v14  ;;  %9081 = vmatprep.subr.bf16.mxu1 %v10453_v14 }
 0x44d   :  { %9075 = vmatprep.mubr.msk.bf16.mxu0 %vm10454_vm4, %v10453_v14  ;;  %9083 = vmatprep.mubr.msk.bf16.mxu1 %vm10454_vm4, %v10453_v14 }
 0x44f   :  { %9074 = vmatpush3.bf16.msra.mxu0 %v10628_v21  ;;  %9082 = vmatpush3.bf16.msra.mxu1 %v10630_v22 }
 0x450   :  { %9095 = vmatprep.subr.bf16.mxu1 %v10453_v14  ;;  %9087 = vmatprep.subr.bf16.mxu0 %v10453_v14 }
 0x4fa   :  { %v1874_v51 = vpop.f32.mrf.mxu0  ;;  %v1914_v54 = vpop.f32.mrf.mxu1 }
 0x4fb   :  { %v1920_v57 = vadd.f32 %v1874_v51, %v11038_v60  ;;  %v1927_v44 = vadd.f32 %v1914_v54, %v11045_v3 }
 0x4fc   :  { %v9029_v48 = vpop.f32.mrf.mxu0  ;;  %v9037_v9 = vpop.f32.mrf.mxu1 }
 0x4fd   :  { %v8139_v2 = vmul.f32 -1.442695, %v1920_v57  ;;  %v8140_v59 = vmul.f32 -1.442695, %v1927_v44  ;;  %v11067_v44 = vadd.f32 %v10375_v62, %v10729_v6 }
 0x4fe   :  { %v1877_v49 = vpop.f32.mrf.mxu0  ;;  %v1917_v39 = vpop.f32.mrf.mxu1 }
 0x4ff   :  { %10031 = vpow2.f32 %v8139_v2 }
 0x500   :  { %v9030_v50 = vpop.f32.mrf.mxu0  ;;  %v9038_v58 = vpop.f32.mrf.mxu1 }
 0x502   :  { %v1968_v20 = vpop.f32.mrf.mxu0  ;;  %v2024_v4 = vpop.f32.mrf.mxu1 }
 0x503   :  { %v2070_v10 = vadd.f32 %v2024_v4, %v11051_v36  ;;  %v1969_v50 = vadd.f32 %v10767_v17, %v1968_v20  ;;  %v10376_v17 = vld [vmem:[%s12401_s4 + $0xb] ss:$0 sm:$0xff] }
 0x504   :  { %v9045_v26 = vpop.f32.mrf.mxu0  ;;  %v9053_v18 = vpop.f32.mrf.mxu1  ;;  %v11075_v20 = vadd.f32 %v10376_v17, %v10750_v24 }
 0x505   :  { %v8144_v63 = vmul.f32 -1.442695, %v2070_v10 }
 0x506   :  { %v1971_v55 = vpop.f32.mrf.mxu0  ;;  %v2027_v32 = vpop.f32.mrf.mxu1 }
 0x507   :  { %10033 = vpow2.f32 %v8144_v63 }
 0x508   :  { %v9046_v31 = vpop.f32.mrf.mxu0  ;;  %v9054_v19 = vpop.f32.mrf.mxu1  ;;  %10035 = vpow2.f32 %v8140_v59 }
 0x509   :  { %v1980_v19 = vrot.slane %v10965_v11, 6 }
 0x50a   :  { %v2064_v5 = vpop.f32.mrf.mxu0  ;;  %v2118_v8 = vpop.f32.mrf.mxu1 }
 0x50b   :  { %v2077_v42 = vadd.f32 %v2064_v5, %v11059_v41  ;;  %v2119_v59 = vadd.f32 %v10777_v56, %v2118_v8 }
 0x50c   :  { %v10032_v29 = vpop.eup %10031  ;;  %v9061_v45 = vpop.f32.mrf.mxu0 }
 0x50d   :  { %v9069_v30 = vpop.f32.mrf.mxu1  ;;  %v1924_v51 = vadd.f32 1.0, %v10032_v29  ;;  %v8145_v54 = vmul.f32 -1.442695, %v2077_v42  ;;  %v2130_v45 = vrot.slane %v10985_v38, 6 }
 0x50e   :  { %v2067_v57 = vpop.f32.mrf.mxu0 }
 0x50f   :  { %v2121_v48 = vpop.f32.mrf.mxu1  ;;  %10037 = vrcp.f32 %v1924_v51 }
 0x510   :  { %v9062_v9 = vpop.f32.mrf.mxu0  ;;  %10039 = vpow2.f32 %v8145_v54 }
 0x511   :  { %v9070_v2 = vpop.f32.mrf.mxu1 }
 0x514   :  { %v10034_v49 = vpop.eup %10033 }
 0x515   :  { %v2074_v39 = vadd.f32 1.0, %v10034_v49  ;;  %v10036_v23 = vpop.eup %10035 }
 0x516   :  { %v1931_v61 = vadd.f32 1.0, %v10036_v23 }
 0x517   :  { %10041 = vrcp.f32 %v2074_v39 }
 0x518   :  { %10043 = vrcp.f32 %v1931_v61 }
 0x51c   :  { %v10038_v58 = vpop.eup %10037 }
 0x51d   :  { %v1974_v4 = vmul.f32 %v10038_v58, %v1969_v50  ;;  %v10040_v10 = vpop.eup %10039 }
 0x51e   :  { %v2081_v18 = vadd.f32 1.0, %v10040_v10 }
 0x51f   :  { %v1975_v26 = vadd.f32 %v1974_v4, %v11067_v44 }
 0x521   :  { %10045 = vtanh.f32 %v1975_v26 }
 0x522   :  { %10047 = vrcp.f32 %v2081_v18 }
 0x524   :  { %v10042_v63 = vpop.eup %10041 }
 0x525   :  { %v2124_v6 = vmul.f32 %v10042_v63, %v2119_v59  ;;  %v10044_v32 = vpop.eup %10043 }
 0x526   :  { %v1977_v31 = vsub.f32 1.0, %v10044_v32  ;;  %v1982_v56 = vmul.f32 %v10044_v32, %v1980_v19 }
 0x527   :  { %v2125_v55 = vadd.f32 %v2124_v6, %v11075_v20 }
 0x529   :  { %10049 = vtanh.f32 %v2125_v55 }
 0x52e   :  { %v10046_v7 = vpop.eup %10045 }
 0x52f   :  { %v1978_v5 = vmul.f32 %v10046_v7, %v1977_v31  ;;  %v10048_v42 = vpop.eup %10047 }
 0x530   :  { %v2127_v24 = vsub.f32 1.0, %v10048_v42  ;;  %v2132_v51 = vmul.f32 %v10048_v42, %v2130_v45 }
 0x531   :  { %v11079_v8 = vadd.f32 %v1982_v56, %v1978_v5 }
 0x533   :  { %v2134_v29 = vpack.c.bf16 %v11079_v8, %v11079_v8 }
 0x535   :  { %9076 = vmatmul.mubr.msk.bf16.vlgmr.msra.gmra.mxu0 %vm586_vm5, %v2134_v29  ;;  %9084 = vmatmul.mubr.msk.bf16.vlgmr.msra.gmra.mxu1 %vm586_vm5, %v2134_v29 }
 0x536   :  { %v10050_v30 = vpop.eup %10049  ;;  %9096 = vmatpush3.bf16.msra.mxu1 %v10640_v27  ;;  %9088 = vmatpush3.bf16.msra.mxu0 %v10642_v28 }
 0x537   :  { %9097 = vmatprep.subr.bf16.mxu1 %v10453_v14  ;;  %9089 = vmatprep.subr.bf16.mxu0 %v10453_v14  ;;  %v2128_v11 = vmul.f32 %v10050_v30, %v2127_v24 }
 0x538   :  { %9091 = vmatprep.mubr.msk.bf16.mxu0 %vm10454_vm4, %v10453_v14  ;;  %9099 = vmatprep.mubr.msk.bf16.mxu1 %vm10454_vm4, %v10453_v14 }
 0x539   :  { %v11094_v54 = vadd.f32 %v2132_v51, %v2128_v11 }
 0x53a   :  { %9098 = vmatpush3.bf16.msra.mxu1 %v10650_v34  ;;  %9090 = vmatpush3.bf16.msra.mxu0 %v10652_v35 }
 0x53b   :  { %v2291_v38 = vpack.c.bf16 %v11094_v54, %v11094_v54  ;;  %9103 = vmatprep.subr.bf16.mxu0 %v10453_v14  ;;  %9111 = vmatprep.subr.bf16.mxu1 %v10453_v14 }
 0x53d   :  { %9092 = vmatmul.mubr.msk.bf16.vlgmr.msra.gmra.mxu0 %vm586_vm5, %v2134_v29  ;;  %9100 = vmatmul.mubr.msk.bf16.vlgmr.msra.gmra.mxu1 %vm586_vm5, %v2291_v38 }
 0x53e   :  { %9104 = vmatpush3.bf16.msra.mxu0 %v10662_v40  ;;  %9112 = vmatpush3.bf16.msra.mxu1 %v10666_v43 }
 0x53f   :  { %9105 = vmatprep.subr.bf16.mxu0 %v10453_v14  ;;  %9113 = vmatprep.subr.bf16.mxu1 %v10453_v14 }
 0x540   :  { %9107 = vmatprep.mubr.msk.bf16.mxu0 %vm10454_vm4, %v10453_v14  ;;  %9115 = vmatprep.mubr.msk.bf16.mxu1 %vm10454_vm4, %v10453_v14 }
 0x542   :  { %9106 = vmatpush3.bf16.msra.mxu0 %v10671_v46  ;;  %9114 = vmatpush3.bf16.msra.mxu1 %v10677_v47 }
 0x543   :  { %9119 = vmatprep.subr.bf16.mxu0 %v10453_v14  ;;  %9127 = vmatprep.subr.bf16.mxu1 %v10453_v14 }
 0x545   :  { %9108 = vmatmul.mubr.msk.bf16.vlgmr.msra.gmra.mxu0 %vm586_vm5, %v2291_v38  ;;  %9116 = vmatmul.mubr.msk.bf16.vlgmr.msra.gmra.mxu1 %vm586_vm5, %v2291_v38 }
 0x546   :  { %9120 = vmatpush3.bf16.msra.mxu0 %v10620_v15  ;;  %9128 = vmatpush3.bf16.msra.mxu1 %v10622_v16 }
 0x547   :  { %9121 = vmatprep.subr.bf16.mxu0 %v10453_v14  ;;  %9129 = vmatprep.subr.bf16.mxu1 %v10453_v14 }
 0x548   :  { %9123 = vmatprep.mubr.msk.bf16.mxu0 %vm10454_vm4, %v10453_v14  ;;  %9131 = vmatprep.mubr.msk.bf16.mxu1 %vm10454_vm4, %v10453_v14 }
 0x54a   :  { %9122 = vmatpush3.bf16.msra.mxu0 %v10628_v21  ;;  %9130 = vmatpush3.bf16.msra.mxu1 %v10630_v22 }
 0x54b   :  { %9143 = vmatprep.subr.bf16.mxu1 %v10453_v14  ;;  %9135 = vmatprep.subr.bf16.mxu0 %v10453_v14 }
 0x5f5   :  { %v2172_v57 = vpop.f32.mrf.mxu0  ;;  %v2212_v48 = vpop.f32.mrf.mxu1 }
 0x5f6   :  { %v2219_v9 = vrot.slane %v2172_v57, 6  ;;  %v2229_v58 = vrot.slane %v2212_v48, 6 }
 0x5f7   :  { %v9077_v2 = vpop.f32.mrf.mxu0  ;;  %v9085_v49 = vpop.f32.mrf.mxu1 }
 0x5f8   :  { %v2221_v39 = vadd.f32 %v2219_v9, %v11038_v60  ;;  %v2231_v18 = vadd.f32 %v2229_v58, %v11045_v3 }
 0x5f9   :  { %v2175_v23 = vpop.f32.mrf.mxu0  ;;  %v2215_v61 = vpop.f32.mrf.mxu1 }
 0x5fa   :  { %v8149_v50 = vmul.f32 -1.442695, %v2221_v39  ;;  %v8150_v31 = vmul.f32 -1.442695, %v2231_v18  ;;  %v11137_v61 = vld [vmem:[%s12402_s5] ss:$0 sm:$0xff] }
 0x5fb   :  { %v9078_v62 = vpop.f32.mrf.mxu0  ;;  %v9086_v4 = vpop.f32.mrf.mxu1 }
 0x5fc   :  { %10051 = vpow2.f32 %v8149_v50 }
 0x5fd   :  { %v2272_v10 = vpop.f32.mrf.mxu0  ;;  %v2329_v26 = vpop.f32.mrf.mxu1 }
 0x5fe   :  { %v2376_v59 = vrot.slane %v2329_v26, 6  ;;  %v2273_v50 = vadd.f32 %v11137_v61, %v2272_v10 }
 0x5ff   :  { %v9093_v63 = vpop.f32.mrf.mxu0  ;;  %v9101_v17 = vpop.f32.mrf.mxu1 }
 0x600   :  { %v2378_v6 = vadd.f32 %v2376_v59, %v11051_v36  ;;  %v2279_v62 = vrot.slane %v2273_v50, 6  ;;  %v11144_v63 = vld [vmem:[%s12402_s5 + $0x3] ss:$0 sm:$0xff] }
 0x601   :  { %v2275_v55 = vpop.f32.mrf.mxu0  ;;  %v2332_v32 = vpop.f32.mrf.mxu1 }
 0x602   :  { %v8154_v19 = vmul.f32 -1.442695, %v2378_v6 }
 0x603   :  { %v9094_v7 = vpop.f32.mrf.mxu0  ;;  %v9102_v5 = vpop.f32.mrf.mxu1 }
 0x604   :  { %10053 = vpow2.f32 %v8154_v19  ;;  %v2287_v5 = vrot.slane %v11079_v8, 6 }
 0x605   :  { %v2369_v56 = vpop.f32.mrf.mxu0  ;;  %v2429_v42 = vpop.f32.mrf.mxu1  ;;  %10055 = vpow2.f32 %v8150_v31 }
 0x606   :  { %v2386_v29 = vrot.slane %v2369_v56, 6  ;;  %v2430_v17 = vadd.f32 %v11144_v63, %v2429_v42 }
 0x607   :  { %v9109_v24 = vpop.f32.mrf.mxu0  ;;  %v9117_v45 = vpop.f32.mrf.mxu1 }
 0x608   :  { %v2388_v30 = vadd.f32 %v2386_v29, %v11059_v41  ;;  %v2436_v55 = vrot.slane %v2430_v17, 6 }
 0x609   :  { %v10052_v11 = vpop.eup %10051  ;;  %v2372_v51 = vpop.f32.mrf.mxu0 }
 0x60a   :  { %v2432_v38 = vpop.f32.mrf.mxu1  ;;  %v2225_v57 = vadd.f32 1.0, %v10052_v11  ;;  %v8155_v48 = vmul.f32 -1.442695, %v2388_v30 }
 0x60b   :  { %v9110_v9 = vpop.f32.mrf.mxu0  ;;  %v2444_v38 = vrot.slane %v11094_v54, 6 }
 0x60c   :  { %v9118_v2 = vpop.f32.mrf.mxu1  ;;  %10057 = vrcp.f32 %v2225_v57 }
 0x60d   :  { %10059 = vpow2.f32 %v8155_v48 }
 0x611   :  { %v10054_v49 = vpop.eup %10053 }
 0x612   :  { %v2382_v39 = vadd.f32 1.0, %v10054_v49  ;;  %v10056_v23 = vpop.eup %10055 }
 0x613   :  { %v2235_v58 = vadd.f32 1.0, %v10056_v23 }
 0x614   :  { %10061 = vrcp.f32 %v2382_v39 }
 0x615   :  { %10063 = vrcp.f32 %v2235_v58 }
 0x619   :  { %v10058_v4 = vpop.eup %10057 }
 0x61a   :  { %v2281_v26 = vmul.f32 %v10058_v4, %v2279_v62  ;;  %v10060_v18 = vpop.eup %10059 }
 0x61b   :  { %v2392_v6 = vadd.f32 1.0, %v10060_v18 }
 0x61c   :  { %v2282_v59 = vadd.f32 %v2281_v26, %v11067_v44 }
 0x61e   :  { %10065 = vtanh.f32 %v2282_v59 }
 0x61f   :  { %10067 = vrcp.f32 %v2392_v6 }
 0x621   :  { %v10062_v10 = vpop.eup %10061 }
 0x622   :  { %v2438_v32 = vmul.f32 %v10062_v10, %v2436_v55  ;;  %v10064_v19 = vpop.eup %10063 }
 0x623   :  { %v2284_v7 = vsub.f32 1.0, %v10064_v19  ;;  %v2289_v24 = vmul.f32 %v10064_v19, %v2287_v5 }
 0x624   :  { %v2439_v31 = vadd.f32 %v2438_v32, %v11075_v20 }
 0x626   :  { %10069 = vtanh.f32 %v2439_v31 }
 0x62b   :  { %v10066_v56 = vpop.eup %10065 }
 0x62c   :  { %v2285_v29 = vmul.f32 %v10066_v56, %v2284_v7  ;;  %v10068_v30 = vpop.eup %10067 }
 0x62d   :  { %v2441_v51 = vsub.f32 1.0, %v10068_v30  ;;  %v2446_v9 = vmul.f32 %v10068_v30, %v2444_v38 }
 0x62e   :  { %v11149_v45 = vadd.f32 %v2289_v24, %v2285_v29 }
 0x630   :  { %v2448_v42 = vpack.c.bf16 %v11149_v45, %v11149_v45 }
 0x632   :  { %v2450_v11 = vrot.slane %v2448_v42, 1 }
 0x633   :  { %v10070_v57 = vpop.eup %10069 }
 0x634   :  { %9124 = vmatmul.mubr.msk.bf16.vlgmr.msra.gmra.mxu0 %vm586_vm5, %v2450_v11  ;;  %9132 = vmatmul.mubr.msk.bf16.vlgmr.msra.gmra.mxu1 %vm586_vm5, %v2450_v11  ;;  %v2442_v48 = vmul.f32 %v10070_v57, %v2441_v51 }
 0x635   :  { %9144 = vmatpush3.bf16.msra.mxu1 %v10640_v27  ;;  %9136 = vmatpush3.bf16.msra.mxu0 %v10642_v28 }
 0x636   :  { %9145 = vmatprep.subr.bf16.mxu1 %v10453_v14  ;;  %9137 = vmatprep.subr.bf16.mxu0 %v10453_v14  ;;  %v11160_v2 = vadd.f32 %v2446_v9, %v2442_v48 }
 0x637   :  { %9139 = vmatprep.mubr.msk.bf16.mxu0 %vm10454_vm4, %v10453_v14  ;;  %9147 = vmatprep.mubr.msk.bf16.mxu1 %vm10454_vm4, %v10453_v14 }
 0x638   :  { %v2607_v49 = vpack.c.bf16 %v11160_v2, %v11160_v2 }
 0x639   :  { %9146 = vmatpush3.bf16.msra.mxu1 %v10650_v34  ;;  %9138 = vmatpush3.bf16.msra.mxu0 %v10652_v35 }
 0x63a   :  { %v2609_v39 = vrot.slane %v2607_v49, 1  ;;  %9151 = vmatprep.subr.bf16.mxu0 %v10453_v14  ;;  %9159 = vmatprep.subr.bf16.mxu1 %v10453_v14 }
 0x63c   :  { %9140 = vmatmul.mubr.msk.bf16.vlgmr.msra.gmra.mxu0 %vm586_vm5, %v2450_v11  ;;  %9148 = vmatmul.mubr.msk.bf16.vlgmr.msra.gmra.mxu1 %vm586_vm5, %v2609_v39 }
 0x63d   :  { %9152 = vmatpush3.bf16.msra.mxu0 %v10662_v40  ;;  %9160 = vmatpush3.bf16.msra.mxu1 %v10666_v43 }
 0x63e   :  { %9153 = vmatprep.subr.bf16.mxu0 %v10453_v14  ;;  %9161 = vmatprep.subr.bf16.mxu1 %v10453_v14 }
 0x63f   :  { %9155 = vmatprep.mubr.msk.bf16.mxu0 %vm10454_vm4, %v10453_v14  ;;  %9163 = vmatprep.mubr.msk.bf16.mxu1 %vm10454_vm4, %v10453_v14 }
 0x641   :  { %9154 = vmatpush3.bf16.msra.mxu0 %v10671_v46  ;;  %9162 = vmatpush3.bf16.msra.mxu1 %v10677_v47 }
 0x642   :  { %9167 = vmatprep.subr.bf16.mxu0 %v10453_v14  ;;  %9175 = vmatprep.subr.bf16.mxu1 %v10453_v14 }
 0x644   :  { %9156 = vmatmul.mubr.msk.bf16.vlgmr.msra.gmra.mxu0 %vm586_vm5, %v2609_v39  ;;  %9164 = vmatmul.mubr.msk.bf16.vlgmr.msra.gmra.mxu1 %vm586_vm5, %v2609_v39 }
 0x645   :  { %9168 = vmatpush3.bf16.msra.mxu0 %v10620_v15  ;;  %9176 = vmatpush3.bf16.msra.mxu1 %v10622_v16 }
 0x646   :  { %9169 = vmatprep.subr.bf16.mxu0 %v10453_v14  ;;  %9177 = vmatprep.subr.bf16.mxu1 %v10453_v14 }
 0x647   :  { %9171 = vmatprep.mubr.msk.bf16.mxu0 %vm10454_vm4, %v10453_v14  ;;  %9179 = vmatprep.mubr.msk.bf16.mxu1 %vm10454_vm4, %v10453_v14 }
 0x649   :  { %9170 = vmatpush3.bf16.msra.mxu0 %v10628_v21  ;;  %9178 = vmatpush3.bf16.msra.mxu1 %v10630_v22 }
 0x64a   :  { %9191 = vmatprep.subr.bf16.mxu1 %v10453_v14  ;;  %9183 = vmatprep.subr.bf16.mxu0 %v10453_v14 }
 0x6f4   :  { %v2488_v23 = vpop.f32.mrf.mxu0  ;;  %v2528_v50 = vpop.f32.mrf.mxu1 }
 0x6f5   :  { %v2535_v58 = vrot.slane %v2488_v23, 4  ;;  %v2545_v6 = vrot.slane %v2528_v50, 4 }
 0x6f6   :  { %v9125_v62 = vpop.f32.mrf.mxu0  ;;  %v9133_v4 = vpop.f32.mrf.mxu1 }
 0x6f7   :  { %v2537_v26 = vadd.f32 %v2535_v58, %v11038_v60  ;;  %v2547_v19 = vadd.f32 %v2545_v6, %v11045_v3 }
 0x6f8   :  { %v2491_v18 = vpop.f32.mrf.mxu0  ;;  %v2531_v59 = vpop.f32.mrf.mxu1 }
 0x6f9   :  { %v8159_v17 = vmul.f32 -1.442695, %v2537_v26  ;;  %v8160_v42 = vmul.f32 -1.442695, %v2547_v19 }
 0x6fa   :  { %v9126_v55 = vpop.f32.mrf.mxu0  ;;  %v9134_v10 = vpop.f32.mrf.mxu1 }
 0x6fb   :  { %10071 = vpow2.f32 %v8159_v17 }
 0x6fc   :  { %v2588_v32 = vpop.f32.mrf.mxu0  ;;  %v2647_v31 = vpop.f32.mrf.mxu1 }
 0x6fd   :  { %v2694_v7 = vrot.slane %v2647_v31, 4  ;;  %v2589_v10 = vadd.f32 %v11137_v61, %v2588_v32 }
 0x6fe   :  { %v9141_v5 = vpop.f32.mrf.mxu0  ;;  %v9149_v56 = vpop.f32.mrf.mxu1 }
 0x6ff   :  { %v2696_v29 = vadd.f32 %v2694_v7, %v11051_v36  ;;  %v2595_v19 = vrot.slane %v2589_v10, 4 }
 0x700   :  { %v2591_v24 = vpop.f32.mrf.mxu0  ;;  %v2650_v30 = vpop.f32.mrf.mxu1 }
 0x701   :  { %v8164_v11 = vmul.f32 -1.442695, %v2696_v29 }
 0x702   :  { %v9142_v51 = vpop.f32.mrf.mxu0  ;;  %v9150_v38 = vpop.f32.mrf.mxu1 }
 0x703   :  { %10073 = vpow2.f32 %v8164_v11 }
 0x704   :  { %v2687_v57 = vpop.f32.mrf.mxu0  ;;  %v2747_v48 = vpop.f32.mrf.mxu1  ;;  %10075 = vpow2.f32 %v8160_v42 }
 0x705   :  { %v2704_v9 = vrot.slane %v2687_v57, 4  ;;  %v2748_v24 = vadd.f32 %v11144_v63, %v2747_v48 }
 0x706   :  { %v9157_v49 = vpop.f32.mrf.mxu0  ;;  %v9165_v39 = vpop.f32.mrf.mxu1 }
 0x707   :  { %v2706_v23 = vadd.f32 %v2704_v9, %v11059_v41  ;;  %v2754_v42 = vrot.slane %v2748_v24, 4  ;;  %v2603_v9 = vrot.slane %v11149_v45, 6 }
 0x708   :  { %v10072_v50 = vpop.eup %10071  ;;  %v2690_v58 = vpop.f32.mrf.mxu0 }
 0x709   :  { %v2750_v62 = vpop.f32.mrf.mxu1  ;;  %v2541_v4 = vadd.f32 1.0, %v10072_v50  ;;  %v8165_v26 = vmul.f32 -1.442695, %v2706_v23 }
 0x70a   :  { %v9158_v18 = vpop.f32.mrf.mxu0 }
 0x70b   :  { %v9166_v59 = vpop.f32.mrf.mxu1  ;;  %10077 = vrcp.f32 %v2541_v4 }
 0x70c   :  { %10079 = vpow2.f32 %v8165_v26  ;;  %v2762_v26 = vrot.slane %v11160_v2, 6 }
 0x710   :  { %v10074_v17 = vpop.eup %10073 }
 0x711   :  { %v2700_v6 = vadd.f32 1.0, %v10074_v17  ;;  %v10076_v55 = vpop.eup %10075 }
 0x712   :  { %v2551_v31 = vadd.f32 1.0, %v10076_v55 }
 0x713   :  { %10081 = vrcp.f32 %v2700_v6 }
 0x714   :  { %10083 = vrcp.f32 %v2551_v31 }
 0x718   :  { %v10078_v7 = vpop.eup %10077 }
 0x719   :  { %v2597_v5 = vmul.f32 %v10078_v7, %v2595_v19  ;;  %v10080_v56 = vpop.eup %10079 }
 0x71a   :  { %v2710_v30 = vadd.f32 1.0, %v10080_v56 }
 0x71b   :  { %v2598_v29 = vadd.f32 %v2597_v5, %v11067_v44 }
 0x71d   :  { %10085 = vtanh.f32 %v2598_v29 }
 0x71e   :  { %10087 = vrcp.f32 %v2710_v30 }
 0x720   :  { %v10082_v11 = vpop.eup %10081 }
 0x721   :  { %v2756_v51 = vmul.f32 %v10082_v11, %v2754_v42  ;;  %v10084_v32 = vpop.eup %10083 }
 0x722   :  { %v2600_v57 = vsub.f32 1.0, %v10084_v32  ;;  %v2605_v23 = vmul.f32 %v10084_v32, %v2603_v9 }
 0x723   :  { %v2757_v38 = vadd.f32 %v2756_v51, %v11075_v20 }
 0x725   :  { %10089 = vtanh.f32 %v2757_v38 }
 0x72a   :  { %v10086_v49 = vpop.eup %10085 }
 0x72b   :  { %v2601_v39 = vmul.f32 %v10086_v49, %v2600_v57  ;;  %v10088_v58 = vpop.eup %10087 }
 0x72c   :  { %v2759_v4 = vsub.f32 1.0, %v10088_v58  ;;  %v2764_v17 = vmul.f32 %v10088_v58, %v2762_v26 }
 0x72d   :  { %v11209_v50 = vadd.f32 %v2605_v23, %v2601_v39 }
 0x72f   :  { %v2766_v48 = vpack.c.bf16 %v11209_v50, %v11209_v50 }
 0x731   :  { %v2768_v62 = vrot.slane %v2766_v48, 2 }
 0x732   :  { %v10090_v18 = vpop.eup %10089 }
 0x733   :  { %9172 = vmatmul.mubr.msk.bf16.vlgmr.msra.gmra.mxu0 %vm586_vm5, %v2768_v62  ;;  %9180 = vmatmul.mubr.msk.bf16.vlgmr.msra.gmra.mxu1 %vm586_vm5, %v2768_v62  ;;  %v2760_v59 = vmul.f32 %v10090_v18, %v2759_v4 }
 0x734   :  { %9192 = vmatpush3.bf16.msra.mxu1 %v10640_v27  ;;  %9184 = vmatpush3.bf16.msra.mxu0 %v10642_v28 }
 0x735   :  { %9193 = vmatprep.subr.bf16.mxu1 %v10453_v14  ;;  %9185 = vmatprep.subr.bf16.mxu0 %v10453_v14  ;;  %v11220_v6 = vadd.f32 %v2764_v17, %v2760_v59 }
 0x736   :  { %9187 = vmatprep.mubr.msk.bf16.mxu0 %vm10454_vm4, %v10453_v14  ;;  %9195 = vmatprep.mubr.msk.bf16.mxu1 %vm10454_vm4, %v10453_v14 }
 0x737   :  { %v2925_v55 = vpack.c.bf16 %v11220_v6, %v11220_v6 }
 0x738   :  { %9194 = vmatpush3.bf16.msra.mxu1 %v10650_v34  ;;  %9186 = vmatpush3.bf16.msra.mxu0 %v10652_v35 }
 0x739   :  { %v2927_v10 = vrot.slane %v2925_v55, 2  ;;  %9199 = vmatprep.subr.bf16.mxu0 %v10453_v14  ;;  %9207 = vmatprep.subr.bf16.mxu1 %v10453_v14 }
 0x73b   :  { %9188 = vmatmul.mubr.msk.bf16.vlgmr.msra.gmra.mxu0 %vm586_vm5, %v2768_v62  ;;  %9196 = vmatmul.mubr.msk.bf16.vlgmr.msra.gmra.mxu1 %vm586_vm5, %v2927_v10 }
 0x73c   :  { %9200 = vmatpush3.bf16.msra.mxu0 %v10662_v40  ;;  %9208 = vmatpush3.bf16.msra.mxu1 %v10666_v43 }
 0x73d   :  { %9201 = vmatprep.subr.bf16.mxu0 %v10453_v14  ;;  %9209 = vmatprep.subr.bf16.mxu1 %v10453_v14 }
 0x73e   :  { %9203 = vmatprep.mubr.msk.bf16.mxu0 %vm10454_vm4, %v10453_v14  ;;  %9211 = vmatprep.mubr.msk.bf16.mxu1 %vm10454_vm4, %v10453_v14 }
 0x740   :  { %9202 = vmatpush3.bf16.msra.mxu0 %v10671_v46  ;;  %9210 = vmatpush3.bf16.msra.mxu1 %v10677_v47 }
 0x741   :  { %9215 = vmatprep.subr.bf16.mxu0 %v10453_v14  ;;  %9223 = vmatprep.subr.bf16.mxu1 %v10453_v14 }
 0x743   :  { %9204 = vmatmul.mubr.msk.bf16.vlgmr.msra.gmra.mxu0 %vm586_vm5, %v2927_v10  ;;  %9212 = vmatmul.mubr.msk.bf16.vlgmr.msra.gmra.mxu1 %vm586_vm5, %v2927_v10 }
 0x744   :  { %9216 = vmatpush3.bf16.msra.mxu0 %v10620_v15  ;;  %9224 = vmatpush3.bf16.msra.mxu1 %v10622_v16 }
 0x745   :  { %9217 = vmatprep.subr.bf16.mxu0 %v10453_v14  ;;  %9225 = vmatprep.subr.bf16.mxu1 %v10453_v14 }
 0x746   :  { %9219 = vmatprep.mubr.msk.bf16.mxu0 %vm10454_vm4, %v10453_v14  ;;  %9227 = vmatprep.mubr.msk.bf16.mxu1 %vm10454_vm4, %v10453_v14 }
 0x748   :  { %9218 = vmatpush3.bf16.msra.mxu0 %v10628_v21  ;;  %9226 = vmatpush3.bf16.msra.mxu1 %v10630_v22 }
 0x749   :  { %9239 = vmatprep.subr.bf16.mxu1 %v10453_v14  ;;  %9231 = vmatprep.subr.bf16.mxu0 %v10453_v14 }
 0x7f3   :  { %v2806_v31 = vpop.f32.mrf.mxu0  ;;  %v2846_v19 = vpop.f32.mrf.mxu1 }
 0x7f4   :  { %v2853_v7 = vrot.slane %v2806_v31, 2  ;;  %v2863_v11 = vrot.slane %v2846_v19, 2 }
 0x7f5   :  { %v9173_v5 = vpop.f32.mrf.mxu0  ;;  %v9181_v56 = vpop.f32.mrf.mxu1 }
 0x7f6   :  { %v2855_v29 = vadd.f32 %v2853_v7, %v11038_v60  ;;  %v2865_v9 = vadd.f32 %v2863_v11, %v11045_v3 }
 0x7f7   :  { %v2809_v24 = vpop.f32.mrf.mxu0  ;;  %v2849_v30 = vpop.f32.mrf.mxu1 }
 0x7f8   :  { %v8169_v42 = vmul.f32 -1.442695, %v2855_v29  ;;  %v8170_v4 = vmul.f32 -1.442695, %v2865_v9 }
 0x7f9   :  { %v9174_v51 = vpop.f32.mrf.mxu0  ;;  %v9182_v38 = vpop.f32.mrf.mxu1 }
 0x7fa   :  { %10091 = vpow2.f32 %v8169_v42 }
 0x7fb   :  { %v2906_v32 = vpop.f32.mrf.mxu0  ;;  %v2965_v57 = vpop.f32.mrf.mxu1 }
 0x7fc   :  { %v3012_v49 = vrot.slane %v2965_v57, 2  ;;  %v2907_v51 = vadd.f32 %v11137_v61, %v2906_v32 }
 0x7fd   :  { %v9189_v39 = vpop.f32.mrf.mxu0  ;;  %v9197_v23 = vpop.f32.mrf.mxu1 }
 0x7fe   :  { %v3014_v58 = vadd.f32 %v3012_v49, %v11051_v36  ;;  %v2913_v57 = vrot.slane %v2907_v51, 2 }
 0x7ff   :  { %v2909_v48 = vpop.f32.mrf.mxu0  ;;  %v2968_v62 = vpop.f32.mrf.mxu1 }
 0x800   :  { %v8174_v60 = vmul.f32 -1.442695, %v3014_v58 }
 0x801   :  { %v9190_v26 = vpop.f32.mrf.mxu0  ;;  %v9198_v18 = vpop.f32.mrf.mxu1 }
 0x802   :  { %10093 = vpow2.f32 %v8174_v60  ;;  %v2921_v18 = vrot.slane %v11209_v50, 6 }
 0x803   :  { %v3005_v59 = vpop.f32.mrf.mxu0  ;;  %v3065_v17 = vpop.f32.mrf.mxu1  ;;  %10095 = vpow2.f32 %v8170_v4 }
 0x804   :  { %v3022_v55 = vrot.slane %v3005_v59, 2  ;;  %v3066_v23 = vadd.f32 %v11144_v63, %v3065_v17 }
 0x805   :  { %v9205_v10 = vpop.f32.mrf.mxu0  ;;  %v9213_v31 = vpop.f32.mrf.mxu1 }
 0x806   :  { %v3024_v3 = vadd.f32 %v3022_v55, %v11059_v41  ;;  %v3072_v48 = vrot.slane %v3066_v23, 2 }
 0x807   :  { %v10092_v19 = vpop.eup %10091  ;;  %v3008_v7 = vpop.f32.mrf.mxu0 }
 0x808   :  { %v3068_v5 = vpop.f32.mrf.mxu1  ;;  %v2859_v56 = vadd.f32 1.0, %v10092_v19  ;;  %v8175_v36 = vmul.f32 -1.442695, %v3024_v3  ;;  %v4384_v3 = vrot.slane %v11209_v50, 4  ;;  %v4383_v50 = vsel %vm142_vm1, %v11079_v8, %v11149_v45 }
 0x809   :  { %v9206_v29 = vpop.f32.mrf.mxu0  ;;  %v4635_v45 = vrot.slane %v11220_v6, 4 }
 0x80a   :  { %v9214_v24 = vpop.f32.mrf.mxu1  ;;  %10097 = vrcp.f32 %v2859_v56 }
 0x80b   :  { %10099 = vpow2.f32 %v8175_v36 }
 0x80f   :  { %v10094_v30 = vpop.eup %10093 }
 0x810   :  { %v3018_v42 = vadd.f32 1.0, %v10094_v30  ;;  %v10096_v11 = vpop.eup %10095 }
 0x811   :  { %v2869_v38 = vadd.f32 1.0, %v10096_v11 }
 0x812   :  { %10101 = vrcp.f32 %v3018_v42 }
 0x813   :  { %10103 = vrcp.f32 %v2869_v38 }
 0x817   :  { %v10098_v9 = vpop.eup %10097 }
 0x818   :  { %v2915_v41 = vmul.f32 %v10098_v9, %v2913_v57  ;;  %v10100_v49 = vpop.eup %10099 }
 0x819   :  { %v3028_v58 = vadd.f32 1.0, %v10100_v49 }
 0x81a   :  { %v2916_v39 = vadd.f32 %v2915_v41, %v11067_v44 }
 0x81c   :  { %10105 = vtanh.f32 %v2916_v39 }
 0x81d   :  { %10107 = vrcp.f32 %v3028_v58 }
 0x81f   :  { %v10102_v62 = vpop.eup %10101 }
 0x820   :  { %v3074_v4 = vmul.f32 %v10102_v62, %v3072_v48  ;;  %v10104_v32 = vpop.eup %10103 }
 0x821   :  { %v2918_v26 = vsub.f32 1.0, %v10104_v32  ;;  %v2923_v10 = vmul.f32 %v10104_v32, %v2921_v18 }
 0x822   :  { %v3075_v60 = vadd.f32 %v3074_v4, %v11075_v20  ;;  %v3080_v20 = vrot.slane %v11220_v6, 6  ;;  %v4634_v6 = vsel %vm142_vm1, %v11094_v54, %v11160_v2 }
 0x824   :  { %10109 = vtanh.f32 %v3075_v60 }
 0x829   :  { %v10106_v59 = vpop.eup %10105 }
 0x82a   :  { %v2919_v55 = vmul.f32 %v10106_v59, %v2918_v26  ;;  %v10108_v44 = vpop.eup %10107 }
 0x82b   :  { %v3077_v7 = vsub.f32 1.0, %v10108_v44  ;;  %v3082_v24 = vmul.f32 %v10108_v44, %v3080_v20 }
 0x82c   :  { %v11269_v31 = vadd.f32 %v2923_v10, %v2919_v55 }
 0x82e   :  { %v3084_v17 = vpack.c.bf16 %v11269_v31, %v11269_v31  ;;  %v4386_v19 = vrot.slane %v11269_v31, 4 }
 0x830   :  { %v3086_v5 = vrot.slane %v3084_v17, 3  ;;  %v4388_v56 = vsel %vm142_vm1, %v4384_v3, %v4386_v19 }
 0x831   :  { %v10110_v36 = vpop.eup %10109  ;;  %v4400_v29 = vrot.slane %v4388_v56, 4 }
 0x832   :  { %v3078_v30 = vmul.f32 %v10110_v36, %v3077_v7  ;;  %9220 = vmatmul.mubr.msk.bf16.vlgmr.msra.gmra.mxu0 %vm586_vm5, %v3086_v5  ;;  %9228 = vmatmul.mubr.msk.bf16.vlgmr.msra.gmra.mxu1 %vm586_vm5, %v3086_v5 }
 0x833   :  { %9240 = vmatpush3.bf16.msra.mxu1 %v10640_v27  ;;  %9232 = vmatpush3.bf16.msra.mxu0 %v10642_v28  ;;  %v4406_v42 = vsel %vm144_vm0, %v4383_v50, %v4400_v29 }
 0x834   :  { %v11285_v11 = vadd.f32 %v3082_v24, %v3078_v30  ;;  %9241 = vmatprep.subr.bf16.mxu1 %v10453_v14  ;;  %9233 = vmatprep.subr.bf16.mxu0 %v10453_v14  ;;  %v11290_v51 = vpack.c.bf16 %v4406_v42, %v10981_v37 }
 0x835   :  { %9235 = vmatprep.mubr.msk.bf16.mxu0 %vm10454_vm4, %v10453_v14  ;;  %9243 = vmatprep.mubr.msk.bf16.mxu1 %vm10454_vm4, %v10453_v14 }
 0x836   :  { %v3234_v8 = vpack.c.bf16 %v11285_v11, %v11285_v11  ;;  %v4637_v38 = vrot.slane %v11285_v11, 4 }
 0x837   :  { %9242 = vmatpush3.bf16.msra.mxu1 %v10650_v34  ;;  %9234 = vmatpush3.bf16.msra.mxu0 %v10652_v35 }
 0x838   :  { %v3236_v57 = vrot.slane %v3234_v8, 3  ;;  %9247 = vmatprep.subr.bf16.mxu0 %v10453_v14  ;;  %9255 = vmatprep.subr.bf16.mxu1 %v10453_v14  ;;  %v4639_v37 = vsel %vm142_vm1, %v4635_v45, %v4637_v38 }
 0x839   :  { %v4651_v9 = vrot.slane %v4639_v37, 4 }
 0x83a   :  { %9236 = vmatmul.mubr.msk.bf16.vlgmr.msra.gmra.mxu0 %vm586_vm5, %v3086_v5  ;;  %9244 = vmatmul.mubr.msk.bf16.vlgmr.msra.gmra.mxu1 %vm586_vm5, %v3236_v57 }
 0x83b   :  { %9248 = vmatpush3.bf16.msra.mxu0 %v10662_v40  ;;  %9256 = vmatpush3.bf16.msra.mxu1 %v10666_v43  ;;  %v4657_v41 = vsel %vm144_vm0, %v4634_v6, %v4651_v9 }
 0x83c   :  { %9249 = vmatprep.subr.bf16.mxu0 %v10453_v14  ;;  %9257 = vmatprep.subr.bf16.mxu1 %v10453_v14  ;;  %v11316_v49 = vpack.c.bf16 %v4657_v41, %v11008_v25 }
 0x83d   :  { %9251 = vmatprep.mubr.msk.bf16.mxu0 %vm10454_vm4, %v10453_v14  ;;  %9259 = vmatprep.mubr.msk.bf16.mxu1 %vm10454_vm4, %v10453_v14 }
 0x83f   :  { %9250 = vmatpush3.bf16.msra.mxu0 %v10671_v46  ;;  %9258 = vmatpush3.bf16.msra.mxu1 %v10677_v47 }
 0x840   :  { %9263 = vmatprep.subr.bf16.mxu0 %v10453_v14  ;;  %9271 = vmatprep.subr.bf16.mxu1 %v10453_v14 }
 0x842   :  { %9252 = vmatmul.mubr.msk.bf16.vlgmr.msra.gmra.mxu0 %vm586_vm5, %v3236_v57  ;;  %9260 = vmatmul.mubr.msk.bf16.vlgmr.msra.gmra.mxu1 %vm586_vm5, %v3236_v57 }
 0x843   :  { %9264 = vmatpush3.bf16.msra.mxu0 %v10620_v15  ;;  %9272 = vmatpush3.bf16.msra.mxu1 %v10622_v16 }
 0x844   :  { %9265 = vmatprep.subr.bf16.mxu0 %v10453_v14  ;;  %9273 = vmatprep.subr.bf16.mxu1 %v10453_v14 }
 0x845   :  { %9267 = vmatprep.mubr.msk.bf16.mxu0 %vm10454_vm4, %v10453_v14  ;;  %9275 = vmatprep.mubr.msk.bf16.mxu1 %vm10454_vm4, %v10453_v14 }
 0x847   :  { %9266 = vmatpush3.bf16.msra.mxu0 %v10628_v21  ;;  %9274 = vmatpush3.bf16.msra.mxu1 %v10630_v22 }
 0x848   :  { %9287 = vmatprep.subr.bf16.mxu1 %v10453_v14  ;;  %9279 = vmatprep.subr.bf16.mxu0 %v10453_v14 }
 0x8f2   :  { %v3124_v25 = vpop.f32.mrf.mxu0  ;;  %v3164_v54 = vpop.f32.mrf.mxu1 }
 0x8f3   :  { %v3170_v2 = vadd.f32 %v3124_v25, %v10706_v52  ;;  %v3177_v32 = vadd.f32 %v3164_v54, %v10708_v53 }
 0x8f4   :  { %v9221_v39 = vpop.f32.mrf.mxu0  ;;  %v9229_v23 = vpop.f32.mrf.mxu1 }
 0x8f5   :  { %v8179_v58 = vmul.f32 -1.442695, %v3170_v2  ;;  %v8180_v44 = vmul.f32 -1.442695, %v3177_v32 }
 0x8f6   :  { %v3127_v48 = vpop.f32.mrf.mxu0  ;;  %v3167_v62 = vpop.f32.mrf.mxu1 }
 0x8f7   :  { %10111 = vpow2.f32 %v8179_v58 }
 0x8f8   :  { %v9222_v4 = vpop.f32.mrf.mxu0  ;;  %v9230_v60 = vpop.f32.mrf.mxu1 }
 0x8fa   :  { %v3218_v26 = vpop.f32.mrf.mxu0  ;;  %v3274_v18 = vpop.f32.mrf.mxu1 }
 0x8fb   :  { %v3320_v59 = vadd.f32 %v3274_v18, %v10725_v1  ;;  %v3219_v25 = vadd.f32 %v11137_v61, %v3218_v26  ;;  %v3230_v26 = vrot.slane %v11269_v31, 6 }
 0x8fc   :  { %v9237_v55 = vpop.f32.mrf.mxu0  ;;  %v9245_v10 = vpop.f32.mrf.mxu1 }
 0x8fd   :  { %v8184_v17 = vmul.f32 -1.442695, %v3320_v59 }
 0x8fe   :  { %v3221_v3 = vpop.f32.mrf.mxu0  ;;  %v3277_v19 = vpop.f32.mrf.mxu1 }
 0x8ff   :  { %10113 = vpow2.f32 %v8184_v17 }
 0x900   :  { %v9238_v20 = vpop.f32.mrf.mxu0  ;;  %v9246_v7 = vpop.f32.mrf.mxu1  ;;  %10115 = vpow2.f32 %v8180_v44 }
 0x901   :  { %v3380_v20 = vrot.slane %v11285_v11, 6 }
 0x902   :  { %v3314_v5 = vpop.f32.mrf.mxu0  ;;  %v3368_v56 = vpop.f32.mrf.mxu1 }
 0x903   :  { %v3327_v36 = vadd.f32 %v3314_v5, %v10741_v12  ;;  %v3369_v48 = vadd.f32 %v11144_v63, %v3368_v56 }
 0x904   :  { %v10112_v29 = vpop.eup %10111  ;;  %v9253_v24 = vpop.f32.mrf.mxu0 }
 0x905   :  { %v9261_v30 = vpop.f32.mrf.mxu1  ;;  %v3174_v50 = vadd.f32 1.0, %v10112_v29  ;;  %v8185_v42 = vmul.f32 -1.442695, %v3327_v36 }
 0x906   :  { %v3317_v8 = vpop.f32.mrf.mxu0 }
 0x907   :  { %v3371_v45 = vpop.f32.mrf.mxu1  ;;  %10117 = vrcp.f32 %v3174_v50 }
 0x908   :  { %v9254_v38 = vpop.f32.mrf.mxu0  ;;  %10119 = vpow2.f32 %v8185_v42 }
 0x909   :  { %v9262_v57 = vpop.f32.mrf.mxu1 }
 0x90c   :  { %v10114_v37 = vpop.eup %10113 }
 0x90d   :  { %v3324_v9 = vadd.f32 1.0, %v10114_v37  ;;  %v10116_v6 = vpop.eup %10115 }
 0x90e   :  { %v3181_v41 = vadd.f32 1.0, %v10116_v6 }
 0x90f   :  { %10121 = vrcp.f32 %v3324_v9 }
 0x910   :  { %10123 = vrcp.f32 %v3181_v41 }
 0x914   :  { %v10118_v54 = vpop.eup %10117 }
 0x915   :  { %v3224_v2 = vmul.f32 %v10118_v54, %v3219_v25  ;;  %v10120_v39 = vpop.eup %10119 }
 0x916   :  { %v3331_v58 = vadd.f32 1.0, %v10120_v39 }
 0x917   :  { %v3225_v23 = vadd.f32 %v3224_v2, %v10723_v0 }
 0x919   :  { %10125 = vtanh.f32 %v3225_v23 }
 0x91a   :  { %10127 = vrcp.f32 %v3331_v58 }
 0x91c   :  { %v10122_v62 = vpop.eup %10121 }
 0x91d   :  { %v3374_v4 = vmul.f32 %v10122_v62, %v3369_v48  ;;  %v10124_v32 = vpop.eup %10123 }
 0x91e   :  { %v3227_v18 = vsub.f32 1.0, %v10124_v32  ;;  %v3232_v55 = vmul.f32 %v10124_v32, %v3230_v26 }
 0x91f   :  { %v3375_v60 = vadd.f32 %v3374_v4, %v10744_v13 }
 0x921   :  { %10129 = vtanh.f32 %v3375_v60 }
 0x926   :  { %v10126_v59 = vpop.eup %10125 }
 0x927   :  { %v3228_v10 = vmul.f32 %v10126_v59, %v3227_v18  ;;  %v10128_v17 = vpop.eup %10127 }
 0x928   :  { %v3377_v19 = vsub.f32 1.0, %v10128_v17  ;;  %v3382_v31 = vmul.f32 %v10128_v17, %v3380_v20 }
 0x929   :  { %v11349_v44 = vadd.f32 %v3232_v55, %v3228_v10 }
 0x92b   :  { %v3384_v3 = vpack.c.bf16 %v11349_v44, %v11349_v44 }
 0x92d   :  { %9268 = vmatmul.mubr.msk.bf16.vlgmr.msra.gmra.mxu0 %vm586_vm5, %v3384_v3  ;;  %9276 = vmatmul.mubr.msk.bf16.vlgmr.msra.gmra.mxu1 %vm586_vm5, %v3384_v3 }
 0x92e   :  { %v10130_v7 = vpop.eup %10129  ;;  %9288 = vmatpush3.bf16.msra.mxu1 %v10640_v27  ;;  %9280 = vmatpush3.bf16.msra.mxu0 %v10642_v28 }
 0x92f   :  { %v3378_v5 = vmul.f32 %v10130_v7, %v3377_v19  ;;  %9289 = vmatprep.subr.bf16.mxu1 %v10453_v14  ;;  %9281 = vmatprep.subr.bf16.mxu0 %v10453_v14 }
 0x930   :  { %9283 = vmatprep.mubr.msk.bf16.mxu0 %vm10454_vm4, %v10453_v14  ;;  %9291 = vmatprep.mubr.msk.bf16.mxu1 %vm10454_vm4, %v10453_v14 }
 0x931   :  { %v11364_v11 = vadd.f32 %v3382_v31, %v3378_v5 }
 0x932   :  { %9290 = vmatpush3.bf16.msra.mxu1 %v10650_v34  ;;  %9282 = vmatpush3.bf16.msra.mxu0 %v10652_v35 }
 0x933   :  { %v3541_v56 = vpack.c.bf16 %v11364_v11, %v11364_v11  ;;  %9295 = vmatprep.subr.bf16.mxu0 %v10453_v14  ;;  %9303 = vmatprep.subr.bf16.mxu1 %v10453_v14 }
 0x935   :  { %9284 = vmatmul.mubr.msk.bf16.vlgmr.msra.gmra.mxu0 %vm586_vm5, %v3384_v3  ;;  %9292 = vmatmul.mubr.msk.bf16.vlgmr.msra.gmra.mxu1 %vm586_vm5, %v3541_v56 }
 0x936   :  { %9296 = vmatpush3.bf16.msra.mxu0 %v10662_v40  ;;  %9304 = vmatpush3.bf16.msra.mxu1 %v10666_v43 }
 0x937   :  { %9297 = vmatprep.subr.bf16.mxu0 %v10453_v14  ;;  %9305 = vmatprep.subr.bf16.mxu1 %v10453_v14 }
 0x938   :  { %9299 = vmatprep.mubr.msk.bf16.mxu0 %vm10454_vm4, %v10453_v14  ;;  %9307 = vmatprep.mubr.msk.bf16.mxu1 %vm10454_vm4, %v10453_v14 }
 0x93a   :  { %9298 = vmatpush3.bf16.msra.mxu0 %v10671_v46  ;;  %9306 = vmatpush3.bf16.msra.mxu1 %v10677_v47 }
 0x93b   :  { %9311 = vmatprep.subr.bf16.mxu0 %v10453_v14  ;;  %9319 = vmatprep.subr.bf16.mxu1 %v10453_v14 }
 0x93d   :  { %9300 = vmatmul.mubr.msk.bf16.vlgmr.msra.gmra.mxu0 %vm586_vm5, %v3541_v56  ;;  %9308 = vmatmul.mubr.msk.bf16.vlgmr.msra.gmra.mxu1 %vm586_vm5, %v3541_v56 }
 0x93e   :  { %9312 = vmatpush3.bf16.msra.mxu0 %v10620_v15  ;;  %9320 = vmatpush3.bf16.msra.mxu1 %v10622_v16 }
 0x93f   :  { %9313 = vmatprep.subr.bf16.mxu0 %v10453_v14  ;;  %9321 = vmatprep.subr.bf16.mxu1 %v10453_v14 }
 0x940   :  { %9315 = vmatprep.mubr.msk.bf16.mxu0 %vm10454_vm4, %v10453_v14  ;;  %9323 = vmatprep.mubr.msk.bf16.mxu1 %vm10454_vm4, %v10453_v14 }
 0x942   :  { %9314 = vmatpush3.bf16.msra.mxu0 %v10628_v21  ;;  %9322 = vmatpush3.bf16.msra.mxu1 %v10630_v22 }
 0x943   :  { %9335 = vmatprep.subr.bf16.mxu1 %v10453_v14  ;;  %9327 = vmatprep.subr.bf16.mxu0 %v10453_v14 }
 0x9ed   :  { %v3422_v36 = vpop.f32.mrf.mxu0  ;;  %v3462_v29 = vpop.f32.mrf.mxu1 }
 0x9ee   :  { %v3469_v24 = vrot.slane %v3422_v36, 6  ;;  %v3479_v57 = vrot.slane %v3462_v29, 6 }
 0x9ef   :  { %v9269_v30 = vpop.f32.mrf.mxu0  ;;  %v9277_v50 = vpop.f32.mrf.mxu1 }
 0x9f0   :  { %v3471_v42 = vadd.f32 %v3469_v24, %v10706_v52  ;;  %v3481_v25 = vadd.f32 %v3479_v57, %v10708_v53 }
 0x9f1   :  { %v3425_v8 = vpop.f32.mrf.mxu0  ;;  %v3465_v45 = vpop.f32.mrf.mxu1 }
 0x9f2   :  { %v8189_v38 = vmul.f32 -1.442695, %v3471_v42  ;;  %v8190_v62 = vmul.f32 -1.442695, %v3481_v25 }
 0x9f3   :  { %v9270_v37 = vpop.f32.mrf.mxu0  ;;  %v9278_v9 = vpop.f32.mrf.mxu1 }
 0x9f4   :  { %10131 = vpow2.f32 %v8189_v38 }
 0x9f5   :  { %v3522_v6 = vpop.f32.mrf.mxu0  ;;  %v3579_v41 = vpop.f32.mrf.mxu1 }
 0x9f6   :  { %v3626_v54 = vrot.slane %v3579_v41, 6  ;;  %v3523_v30 = vadd.f32 %v11137_v61, %v3522_v6  ;;  %v3537_v6 = vrot.slane %v11349_v44, 6 }
 0x9f7   :  { %v9285_v2 = vpop.f32.mrf.mxu0  ;;  %v9293_v39 = vpop.f32.mrf.mxu1 }
 0x9f8   :  { %v3628_v23 = vadd.f32 %v3626_v54, %v10725_v1  ;;  %v3529_v42 = vrot.slane %v3523_v30, 6 }
 0x9f9   :  { %v3525_v58 = vpop.f32.mrf.mxu0  ;;  %v3582_v48 = vpop.f32.mrf.mxu1 }
 0x9fa   :  { %v8194_v4 = vmul.f32 -1.442695, %v3628_v23 }
 0x9fb   :  { %v9286_v60 = vpop.f32.mrf.mxu0  ;;  %v9294_v32 = vpop.f32.mrf.mxu1 }
 0x9fc   :  { %10133 = vpow2.f32 %v8194_v4  ;;  %v3694_v60 = vrot.slane %v11364_v11, 6 }
 0x9fd   :  { %v3619_v18 = vpop.f32.mrf.mxu0  ;;  %v3679_v26 = vpop.f32.mrf.mxu1  ;;  %10135 = vpow2.f32 %v8190_v62 }
 0x9fe   :  { %v3636_v59 = vrot.slane %v3619_v18, 6  ;;  %v3680_v37 = vadd.f32 %v11144_v63, %v3679_v26 }
 0x9ff   :  { %v9301_v55 = vpop.f32.mrf.mxu0  ;;  %v9309_v10 = vpop.f32.mrf.mxu1 }
 0xa00   :  { %v3638_v17 = vadd.f32 %v3636_v59, %v10741_v12  ;;  %v3686_v41 = vrot.slane %v3680_v37, 6 }
 0xa01   :  { %v10132_v3 = vpop.eup %10131  ;;  %v3622_v19 = vpop.f32.mrf.mxu0 }
 0xa02   :  { %v3682_v20 = vpop.f32.mrf.mxu1  ;;  %v3475_v7 = vadd.f32 1.0, %v10132_v3  ;;  %v8195_v31 = vmul.f32 -1.442695, %v3638_v17 }
 0xa03   :  { %v9302_v5 = vpop.f32.mrf.mxu0 }
 0xa04   :  { %v9310_v56 = vpop.f32.mrf.mxu1  ;;  %10137 = vrcp.f32 %v3475_v7 }
 0xa05   :  { %10139 = vpow2.f32 %v8195_v31 }
 0xa09   :  { %v10134_v36 = vpop.eup %10133 }
 0xa0a   :  { %v3632_v29 = vadd.f32 1.0, %v10134_v36  ;;  %v10136_v24 = vpop.eup %10135 }
 0xa0b   :  { %v3485_v50 = vadd.f32 1.0, %v10136_v24 }
 0xa0c   :  { %10141 = vrcp.f32 %v3632_v29 }
 0xa0d   :  { %10143 = vrcp.f32 %v3485_v50 }
 0xa11   :  { %v10138_v8 = vpop.eup %10137 }
 0xa12   :  { %v3531_v45 = vmul.f32 %v10138_v8, %v3529_v42  ;;  %v10140_v38 = vpop.eup %10139 }
 0xa13   :  { %v3642_v9 = vadd.f32 1.0, %v10140_v38 }
 0xa14   :  { %v3532_v57 = vadd.f32 %v3531_v45, %v10723_v0 }
 0xa16   :  { %10145 = vtanh.f32 %v3532_v57 }
 0xa17   :  { %10147 = vrcp.f32 %v3642_v9 }
 0xa19   :  { %v10142_v25 = vpop.eup %10141 }
 0xa1a   :  { %v3688_v54 = vmul.f32 %v10142_v25, %v3686_v41  ;;  %v10144_v61 = vpop.eup %10143 }
 0xa1b   :  { %v3534_v39 = vsub.f32 1.0, %v10144_v61  ;;  %v3539_v58 = vmul.f32 %v10144_v61, %v3537_v6 }
 0xa1c   :  { %v3689_v2 = vadd.f32 %v3688_v54, %v10744_v13 }
 0xa1e   :  { %10149 = vtanh.f32 %v3689_v2 }
 0xa23   :  { %v10146_v23 = vpop.eup %10145 }
 0xa24   :  { %v3535_v48 = vmul.f32 %v10146_v23, %v3534_v39  ;;  %v10148_v4 = vpop.eup %10147 }
 0xa25   :  { %v3691_v32 = vsub.f32 1.0, %v10148_v4  ;;  %v3696_v59 = vmul.f32 %v10148_v4, %v3694_v60 }
 0xa26   :  { %v11409_v62 = vadd.f32 %v3539_v58, %v3535_v48 }
 0xa28   :  { %v3698_v63 = vpack.c.bf16 %v11409_v62, %v11409_v62 }
 0xa2a   :  { %v3700_v18 = vrot.slane %v3698_v63, 1 }
 0xa2b   :  { %v10150_v26 = vpop.eup %10149 }
 0xa2c   :  { %v3692_v55 = vmul.f32 %v10150_v26, %v3691_v32  ;;  %9316 = vmatmul.mubr.msk.bf16.vlgmr.msra.gmra.mxu0 %vm586_vm5, %v3700_v18  ;;  %9324 = vmatmul.mubr.msk.bf16.vlgmr.msra.gmra.mxu1 %vm586_vm5, %v3700_v18 }
 0xa2d   :  { %9336 = vmatpush3.bf16.msra.mxu1 %v10640_v27  ;;  %9328 = vmatpush3.bf16.msra.mxu0 %v10642_v28 }
 0xa2e   :  { %v11418_v10 = vadd.f32 %v3696_v59, %v3692_v55  ;;  %9337 = vmatprep.subr.bf16.mxu1 %v10453_v14  ;;  %9329 = vmatprep.subr.bf16.mxu0 %v10453_v14 }
 0xa2f   :  { %9331 = vmatprep.mubr.msk.bf16.mxu0 %vm10454_vm4, %v10453_v14  ;;  %9339 = vmatprep.mubr.msk.bf16.mxu1 %vm10454_vm4, %v10453_v14 }
 0xa30   :  { %v3857_v17 = vpack.c.bf16 %v11418_v10, %v11418_v10 }
 0xa31   :  { %9338 = vmatpush3.bf16.msra.mxu1 %v10650_v34  ;;  %9330 = vmatpush3.bf16.msra.mxu0 %v10652_v35 }
 0xa32   :  { %v3859_v3 = vrot.slane %v3857_v17, 1  ;;  %9343 = vmatprep.subr.bf16.mxu0 %v10453_v14  ;;  %9351 = vmatprep.subr.bf16.mxu1 %v10453_v14 }
 0xa34   :  { %9332 = vmatmul.mubr.msk.bf16.vlgmr.msra.gmra.mxu0 %vm586_vm5, %v3700_v18  ;;  %9340 = vmatmul.mubr.msk.bf16.vlgmr.msra.gmra.mxu1 %vm586_vm5, %v3859_v3 }
 0xa35   :  { %9344 = vmatpush3.bf16.msra.mxu0 %v10662_v40  ;;  %9352 = vmatpush3.bf16.msra.mxu1 %v10666_v43 }
 0xa36   :  { %9345 = vmatprep.subr.bf16.mxu0 %v10453_v14  ;;  %9353 = vmatprep.subr.bf16.mxu1 %v10453_v14 }
 0xa37   :  { %9347 = vmatprep.mubr.msk.bf16.mxu0 %vm10454_vm4, %v10453_v14  ;;  %9355 = vmatprep.mubr.msk.bf16.mxu1 %vm10454_vm4, %v10453_v14 }
 0xa39   :  { %9346 = vmatpush3.bf16.msra.mxu0 %v10671_v46  ;;  %9354 = vmatpush3.bf16.msra.mxu1 %v10677_v47 }
 0xa3a   :  { %9359 = vmatprep.subr.bf16.mxu0 %v10453_v14  ;;  %9367 = vmatprep.subr.bf16.mxu1 %v10453_v14 }
 0xa3c   :  { %9348 = vmatmul.mubr.msk.bf16.vlgmr.msra.gmra.mxu0 %vm586_vm5, %v3859_v3  ;;  %9356 = vmatmul.mubr.msk.bf16.vlgmr.msra.gmra.mxu1 %vm586_vm5, %v3859_v3  ;;  %v11467_v3 = vld [vmem:[%s12402_s5] ss:$0 sm:$0xff] }
 0xa3d   :  { %9360 = vmatpush3.bf16.msra.mxu0 %v10620_v15  ;;  %9368 = vmatpush3.bf16.msra.mxu1 %v10622_v16 }
 0xa3e   :  { %9361 = vmatprep.subr.bf16.mxu0 %v10453_v14  ;;  %9369 = vmatprep.subr.bf16.mxu1 %v10453_v14 }
 0xa3f   :  { %9363 = vmatprep.mubr.msk.bf16.mxu0 %vm10454_vm4, %v10453_v14  ;;  %9371 = vmatprep.mubr.msk.bf16.mxu1 %vm10454_vm4, %v10453_v14 }
 0xa41   :  { %9362 = vmatpush3.bf16.msra.mxu0 %v10628_v21  ;;  %9370 = vmatpush3.bf16.msra.mxu1 %v10630_v22 }
 0xa42   :  { %9383 = vmatprep.subr.bf16.mxu1 %v10453_v14  ;;  %9375 = vmatprep.subr.bf16.mxu0 %v10453_v14 }
 0xaec   :  { %v3738_v15 = vpop.f32.mrf.mxu0  ;;  %v3778_v16 = vpop.f32.mrf.mxu1 }
 0xaed   :  { %v3785_v19 = vrot.slane %v3738_v15, 4  ;;  %v3795_v29 = vrot.slane %v3778_v16, 4 }
 0xaee   :  { %v9317_v20 = vpop.f32.mrf.mxu0  ;;  %v9325_v7 = vpop.f32.mrf.mxu1 }
 0xaef   :  { %v3787_v31 = vadd.f32 %v3785_v19, %v10706_v52  ;;  %v3797_v50 = vadd.f32 %v3795_v29, %v10708_v53 }
 0xaf0   :  { %v3741_v5 = vpop.f32.mrf.mxu0  ;;  %v3781_v56 = vpop.f32.mrf.mxu1 }
 0xaf1   :  { %v8199_v36 = vmul.f32 -1.442695, %v3787_v31  ;;  %v8200_v9 = vmul.f32 -1.442695, %v3797_v50  ;;  %v11474_v56 = vld [vmem:[%s12402_s5 + $0x3] ss:$0 sm:$0xff] }
 0xaf2   :  { %v9318_v24 = vpop.f32.mrf.mxu0  ;;  %v9326_v30 = vpop.f32.mrf.mxu1 }
 0xaf3   :  { %10151 = vpow2.f32 %v8199_v36 }
 0xaf4   :  { %v3838_v21 = vpop.f32.mrf.mxu0  ;;  %v3897_v22 = vpop.f32.mrf.mxu1 }
 0xaf5   :  { %v3944_v42 = vrot.slane %v3897_v22, 4  ;;  %v3839_v15 = vadd.f32 %v11467_v3, %v3838_v21 }
 0xaf6   :  { %v9333_v8 = vpop.f32.mrf.mxu0  ;;  %v9341_v45 = vpop.f32.mrf.mxu1 }
 0xaf7   :  { %v3946_v38 = vadd.f32 %v3944_v42, %v10725_v1  ;;  %v3845_v19 = vrot.slane %v3839_v15, 4  ;;  %v3853_v42 = vrot.slane %v11409_v62, 6 }
 0xaf8   :  { %v3841_v57 = vpop.f32.mrf.mxu0  ;;  %v3900_v37 = vpop.f32.mrf.mxu1 }
 0xaf9   :  { %v8204_v41 = vmul.f32 -1.442695, %v3946_v38 }
 0xafa   :  { %v9334_v25 = vpop.f32.mrf.mxu0  ;;  %v9342_v54 = vpop.f32.mrf.mxu1 }
 0xafb   :  { %10153 = vpow2.f32 %v8204_v41  ;;  %v4012_v25 = vrot.slane %v11418_v10, 6 }
 0xafc   :  { %v3937_v2 = vpop.f32.mrf.mxu0  ;;  %v3997_v61 = vpop.f32.mrf.mxu1  ;;  %10155 = vpow2.f32 %v8200_v9 }
 0xafd   :  { %v3954_v6 = vrot.slane %v3937_v2, 4  ;;  %v3998_v36 = vadd.f32 %v11474_v56, %v3997_v61 }
 0xafe   :  { %v9349_v39 = vpop.f32.mrf.mxu0  ;;  %v9357_v23 = vpop.f32.mrf.mxu1 }
 0xaff   :  { %v3956_v58 = vadd.f32 %v3954_v6, %v10741_v12  ;;  %v4004_v24 = vrot.slane %v3998_v36, 4 }
 0xb00   :  { %v10152_v48 = vpop.eup %10151  ;;  %v3940_v4 = vpop.f32.mrf.mxu0 }
 0xb01   :  { %v4000_v63 = vpop.f32.mrf.mxu1  ;;  %v3791_v60 = vadd.f32 1.0, %v10152_v48  ;;  %v8205_v32 = vmul.f32 -1.442695, %v3956_v58  ;;  %v4341_v4 = vld [vmem:[#allocation2 + $0x20] sm:$0xff] }
 0xb02   :  { %v9350_v18 = vpop.f32.mrf.mxu0 }
 0xb03   :  { %v9358_v26 = vpop.f32.mrf.mxu1  ;;  %10157 = vrcp.f32 %v3791_v60  ;;  %v4342_v60 = vld [vmem:[#allocation2 + $0x28] sm:$0xff]  ;;  %v4350_v18 = vld [vmem:[#allocation2 + $0x50] sm:$0xff] }
 0xb04   :  { %10159 = vpow2.f32 %v8205_v32  ;;  %v4345_v32 = vpack.c.bf16 %v4342_v60, %v4341_v4  ;;  %v4351_v26 = vld [vmem:[#allocation2 + $0x58] sm:$0xff] }
 0xb08   :  { %v10154_v59 = vpop.eup %10153 }
 0xb09   :  { %v3950_v55 = vadd.f32 1.0, %v10154_v59  ;;  %v10156_v17 = vpop.eup %10155  ;;  %v4587_v59 = vld [vmem:[#allocation2 + $0xd0] sm:$0xff] }
 0xb0a   :  { %v3801_v16 = vadd.f32 1.0, %v10156_v17  ;;  %v4588_v17 = vld [vmem:[#allocation2 + $0xd8] sm:$0xff] }
 0xb0b   :  { %10161 = vrcp.f32 %v3950_v55  ;;  %v11520_v55 = vpack.c.bf16 %v4351_v26, %v4350_v18  ;;  %v11522_v15 = vpack.c.bf16 %v4588_v17, %v4587_v59 }
 0xb0c   :  { %10163 = vrcp.f32 %v3801_v16 }
 0xb10   :  { %v10158_v20 = vpop.eup %10157 }
 0xb11   :  { %v3847_v7 = vmul.f32 %v10158_v20, %v3845_v19  ;;  %v10160_v31 = vpop.eup %10159 }
 0xb12   :  { %v3960_v29 = vadd.f32 1.0, %v10160_v31 }
 0xb13   :  { %v3848_v5 = vadd.f32 %v3847_v7, %v10723_v0 }
 0xb15   :  { %10165 = vtanh.f32 %v3848_v5 }
 0xb16   :  { %10167 = vrcp.f32 %v3960_v29 }
 0xb18   :  { %v10162_v30 = vpop.eup %10161 }
 0xb19   :  { %v4006_v21 = vmul.f32 %v10162_v30, %v4004_v24  ;;  %v10164_v50 = vpop.eup %10163 }
 0xb1a   :  { %v3850_v8 = vsub.f32 1.0, %v10164_v50  ;;  %v3855_v38 = vmul.f32 %v10164_v50, %v3853_v42 }
 0xb1b   :  { %v4007_v22 = vadd.f32 %v4006_v21, %v10744_v13 }
 0xb1d   :  { %10169 = vtanh.f32 %v4007_v22 }
 0xb22   :  { %v10166_v45 = vpop.eup %10165 }
 0xb23   :  { %v3851_v57 = vmul.f32 %v10166_v45, %v3850_v8  ;;  %v10168_v9 = vpop.eup %10167 }
 0xb24   :  { %v4009_v54 = vsub.f32 1.0, %v10168_v9  ;;  %v4014_v6 = vmul.f32 %v10168_v9, %v4012_v25 }
 0xb25   :  { %v11479_v37 = vadd.f32 %v3855_v38, %v3851_v57 }
 0xb27   :  { %v4016_v41 = vpack.c.bf16 %v11479_v37, %v11479_v37 }
 0xb29   :  { %v4018_v2 = vrot.slane %v4016_v41, 2 }
 0xb2a   :  { %v10170_v61 = vpop.eup %10169 }
 0xb2b   :  { %v4010_v39 = vmul.f32 %v10170_v61, %v4009_v54  ;;  %9364 = vmatmul.mubr.msk.bf16.vlgmr.msra.gmra.mxu0 %vm586_vm5, %v4018_v2  ;;  %9372 = vmatmul.mubr.msk.bf16.vlgmr.msra.gmra.mxu1 %vm586_vm5, %v4018_v2 }
 0xb2c   :  { %9384 = vmatpush3.bf16.msra.mxu1 %v10640_v27  ;;  %9376 = vmatpush3.bf16.msra.mxu0 %v10642_v28  ;;  %v4336_v28 = vld [vmem:[#allocation2 + $0x10] sm:$0xff] }
 0xb2d   :  { %v11488_v23 = vadd.f32 %v4014_v6, %v4010_v39  ;;  %9385 = vmatprep.subr.bf16.mxu1 %v10453_v14  ;;  %9377 = vmatprep.subr.bf16.mxu0 %v10453_v14 }
 0xb2e   :  { %9379 = vmatprep.mubr.msk.bf16.mxu0 %vm10454_vm4, %v10453_v14  ;;  %9387 = vmatprep.mubr.msk.bf16.mxu1 %vm10454_vm4, %v10453_v14 }
 0xb2f   :  { %v4175_v58 = vpack.c.bf16 %v11488_v23, %v11488_v23 }
 0xb30   :  { %9386 = vmatpush3.bf16.msra.mxu1 %v10650_v34  ;;  %9378 = vmatpush3.bf16.msra.mxu0 %v10652_v35  ;;  %v4337_v34 = vld [vmem:[#allocation2 + $0x18] sm:$0xff]  ;;  %v4343_v35 = vld [vmem:[#allocation2 + $0x30] sm:$0xff] }
 0xb31   :  { %v4177_v27 = vrot.slane %v4175_v58, 2  ;;  %9391 = vmatprep.subr.bf16.mxu0 %v10453_v14  ;;  %9399 = vmatprep.subr.bf16.mxu1 %v10453_v14 }
 0xb33   :  { %9380 = vmatmul.mubr.msk.bf16.vlgmr.msra.gmra.mxu0 %vm586_vm5, %v4018_v2  ;;  %9388 = vmatmul.mubr.msk.bf16.vlgmr.msra.gmra.mxu1 %vm586_vm5, %v4177_v27 }
 0xb34   :  { %9392 = vmatpush3.bf16.msra.mxu0 %v10662_v40  ;;  %9400 = vmatpush3.bf16.msra.mxu1 %v10666_v43  ;;  %v4339_v40 = vpack.c.bf16 %v4337_v34, %v4336_v28  ;;  %v4344_v43 = vld [vmem:[#allocation2 + $0x38] sm:$0xff] }
 0xb35   :  { %9393 = vmatprep.subr.bf16.mxu0 %v10453_v14  ;;  %9401 = vmatprep.subr.bf16.mxu1 %v10453_v14  ;;  %v4346_v48 = vpack.c.bf16 %v4344_v43, %v4343_v35 }
 0xb36   :  { %9395 = vmatprep.mubr.msk.bf16.mxu0 %vm10454_vm4, %v10453_v14  ;;  %9403 = vmatprep.mubr.msk.bf16.mxu1 %vm10454_vm4, %v10453_v14 }
 0xb38   :  { %9394 = vmatpush3.bf16.msra.mxu0 %v10671_v46  ;;  %9402 = vmatpush3.bf16.msra.mxu1 %v10677_v47  ;;  %v4334_v46 = vld [vmem:[#allocation2] sm:$0xff]  ;;  %v4335_v47 = vld [vmem:[#allocation2 + $0x8] sm:$0xff] }
 0xb39   :  { %9407 = vmatprep.subr.bf16.mxu0 %v4339_v40  ;;  %9415 = vmatprep.subr.bf16.mxu1 %v4346_v48  ;;  %v4338_v63 = vpack.c.bf16 %v4335_v47, %v4334_v46 }
 0xb3b   :  { %9396 = vmatmul.mubr.msk.bf16.vlgmr.msra.gmra.mxu0 %vm586_vm5, %v4177_v27  ;;  %9404 = vmatmul.mubr.msk.bf16.vlgmr.msra.gmra.mxu1 %vm586_vm5, %v4177_v27 }
 0xb3c   :  { %9411 = vmatprep.mubr.msk.bf16.mxu0 %vm586_vm5, %v11290_v51  ;;  %9419 = vmatprep.mubr.msk.bf16.mxu1 %vm586_vm5, %v11290_v51 }
 0xb3d   :  { %9408 = vmatpush3.bf16.msra.mxu0 %v4339_v40  ;;  %9416 = vmatpush3.bf16.msra.mxu1 %v4346_v48 }
 0xb3e   :  { %9409 = vmatprep.subr.bf16.mxu0 %v4338_v63  ;;  %9417 = vmatprep.subr.bf16.mxu1 %v4345_v32 }
 0xb41   :  { %9410 = vmatpush3.bf16.msra.mxu0 %v4338_v63  ;;  %9418 = vmatpush3.bf16.msra.mxu1 %v4345_v32 }
 0xb42   :  { %9423 = vmatprep.subr.bf16.mxu0 %v11520_v55  ;;  %9431 = vmatprep.subr.bf16.mxu1 %v11522_v15 }
 0xbeb   :  { %v4056_v16 = vpop.f32.mrf.mxu0  ;;  %v4096_v19 = vpop.f32.mrf.mxu1 }
 0xbec   :  { %v4103_v20 = vrot.slane %v4056_v16, 2  ;;  %v4113_v30 = vrot.slane %v4096_v19, 2 }
 0xbed   :  { %v9365_v7 = vpop.f32.mrf.mxu0  ;;  %v9373_v31 = vpop.f32.mrf.mxu1 }
 0xbee   :  { %v4105_v5 = vadd.f32 %v4103_v20, %v10706_v52  ;;  %v4115_v8 = vadd.f32 %v4113_v30, %v10708_v53 }
 0xbef   :  { %v4059_v36 = vpop.f32.mrf.mxu0  ;;  %v4099_v29 = vpop.f32.mrf.mxu1 }
 0xbf0   :  { %v8209_v24 = vmul.f32 -1.442695, %v4105_v5  ;;  %v8210_v54 = vmul.f32 -1.442695, %v4115_v8  ;;  %v4171_v36 = vrot.slane %v11479_v37, 6 }
 0xbf1   :  { %v9366_v21 = vpop.f32.mrf.mxu0  ;;  %v9374_v22 = vpop.f32.mrf.mxu1 }
 0xbf2   :  { %10171 = vpow2.f32 %v8209_v24 }
 0xbf3   :  { %v4156_v50 = vpop.f32.mrf.mxu0  ;;  %v4215_v42 = vpop.f32.mrf.mxu1 }
 0xbf4   :  { %v4262_v45 = vrot.slane %v4215_v42, 2  ;;  %v4157_v60 = vadd.f32 %v11467_v3, %v4156_v50  ;;  %v4330_v42 = vrot.slane %v11488_v23, 6 }
 0xbf5   :  { %v9381_v38 = vpop.f32.mrf.mxu0  ;;  %v9389_v57 = vpop.f32.mrf.mxu1 }
 0xbf6   :  { %v4264_v9 = vadd.f32 %v4262_v45, %v10725_v1  ;;  %v4163_v18 = vrot.slane %v4157_v60, 2  ;;  %v4348_v57 = vld [vmem:[#allocation2 + $0x40] sm:$0xff]  ;;  %v4357_v60 = vld [vmem:[#allocation5 + $0x70] sm:$0xff] }
 0xbf7   :  { %v4159_v41 = vpop.f32.mrf.mxu0  ;;  %v4218_v25 = vpop.f32.mrf.mxu1 }
 0xbf8   :  { %v8214_v52 = vmul.f32 -1.442695, %v4264_v9  ;;  %v4389_v25 = vsel %vm142_vm1, %v11349_v44, %v11409_v62 }
 0xbf9   :  { %v9382_v2 = vpop.f32.mrf.mxu0  ;;  %v9390_v61 = vpop.f32.mrf.mxu1 }
 0xbfa   :  { %10173 = vpow2.f32 %v8214_v52  ;;  %v4585_v52 = vld [vmem:[#allocation2 + $0xc0] sm:$0xff]  ;;  %v4586_v2 = vld [vmem:[#allocation2 + $0xc8] sm:$0xff] }
 0xbfb   :  { %v4255_v6 = vpop.f32.mrf.mxu0  ;;  %v4315_v39 = vpop.f32.mrf.mxu1  ;;  %10175 = vpow2.f32 %v8210_v54  ;;  %v4349_v54 = vld [vmem:[#allocation2 + $0x48] sm:$0xff] }
 0xbfc   :  { %v4272_v58 = vrot.slane %v4255_v6, 2  ;;  %v4316_v16 = vadd.f32 %v11474_v56, %v4315_v39  ;;  %v4390_v56 = vrot.slane %v11479_v37, 4  ;;  %v4594_v39 = vld [vmem:[#allocation2 + $0xf0] sm:$0xff] }
 0xbfd   :  { %v9397_v27 = vpop.f32.mrf.mxu0  ;;  %v9405_v28 = vpop.f32.mrf.mxu1 }
 0xbfe   :  { %v4274_v53 = vadd.f32 %v4272_v58, %v10741_v12  ;;  %v4322_v20 = vrot.slane %v4316_v16, 2  ;;  %v4352_v58 = vpack.c.bf16 %v4349_v54, %v4348_v57  ;;  %v4589_v27 = vpack.c.bf16 %v4586_v2, %v4585_v52  ;;  %v4595_v28 = vld [vmem:[#allocation2 + $0xf8] sm:$0xff]  ;;  %v4363_v16 = vld [vmem:[#allocation5 + $0x88] sm:$0xff]  ;;  %v11647_v52 = vld [vmem:[%s12401_s4 + $0x3] ss:$0 sm:$0xff] }
 0xbff   :  { %v10172_v34 = vpop.eup %10171  ;;  %v4258_v35 = vpop.f32.mrf.mxu0  ;;  %v4597_v44 = vpack.c.bf16 %v4595_v28, %v4594_v39  ;;  %v11652_v2 = vld [vmem:[%s12401_s4 + $0x4] ss:$0 sm:$0xff] }
 0xc00   :  { %v4318_v40 = vpop.f32.mrf.mxu1  ;;  %v4109_v43 = vadd.f32 1.0, %v10172_v34  ;;  %v8215_v1 = vmul.f32 -1.442695, %v4274_v53  ;;  %v4601_v53 = vld [vmem:[#allocation2 + $0x110] sm:$0xff]  ;;  %v4602_v34 = vld [vmem:[#allocation2 + $0x118] sm:$0xff]  ;;  %v4641_v35 = vrot.slane %v11488_v23, 4 }
 0xc01   :  { %v9398_v48 = vpop.f32.mrf.mxu0  ;;  %v4604_v62 = vpack.c.bf16 %v4602_v34, %v4601_v53 }
 0xc02   :  { %v9406_v46 = vpop.f32.mrf.mxu1  ;;  %10177 = vrcp.f32 %v4109_v43  ;;  %v4593_v48 = vld [vmem:[#allocation2 + $0xe8] sm:$0xff] }
 0xc03   :  { %10179 = vpow2.f32 %v8215_v1  ;;  %v4592_v1 = vld [vmem:[#allocation2 + $0xe0] sm:$0xff]  ;;  %v4600_v46 = vld [vmem:[#allocation2 + $0x108] sm:$0xff] }
 0xc07   :  { %v10174_v47 = vpop.eup %10173 }
 0xc08   :  { %v4268_v4 = vadd.f32 1.0, %v10174_v47  ;;  %v10176_v63 = vpop.eup %10175 }
 0xc09   :  { %v4119_v32 = vadd.f32 1.0, %v10176_v63 }
 0xc0a   :  { %10181 = vrcp.f32 %v4268_v4  ;;  %v4596_v4 = vpack.c.bf16 %v4593_v48, %v4592_v1 }
 0xc0b   :  { %10183 = vrcp.f32 %v4119_v32  ;;  %v4365_v32 = vld [vmem:[#allocation5 + $0x98] sm:$0xff] }
 0xc0f   :  { %v10178_v26 = vpop.eup %10177 }
 0xc10   :  { %v4165_v12 = vmul.f32 %v10178_v26, %v4163_v18  ;;  %v10180_v59 = vpop.eup %10179 }
 0xc11   :  { %v4278_v19 = vadd.f32 1.0, %v10180_v59  ;;  %v4356_v59 = vld [vmem:[#allocation5 + $0x68] sm:$0xff] }
 0xc12   :  { %v4166_v17 = vadd.f32 %v4165_v12, %v10723_v0  ;;  %v4355_v12 = vld [vmem:[#allocation5 + $0x60] sm:$0xff] }
 0xc14   :  { %10185 = vtanh.f32 %v4166_v17  ;;  %v4362_v17 = vld [vmem:[#allocation5 + $0x80] sm:$0xff] }
 0xc15   :  { %10187 = vrcp.f32 %v4278_v19  ;;  %v11574_v19 = vpack.c.bf16 %v4363_v16, %v4362_v17 }
 0xc17   :  { %v10182_v7 = vpop.eup %10181 }
 0xc18   :  { %v4324_v31 = vmul.f32 %v10182_v7, %v4322_v20  ;;  %v10184_v3 = vpop.eup %10183  ;;  %v4608_v20 = vld [vmem:[#allocation5 + $0x190] sm:$0xff]  ;;  %v4609_v7 = vld [vmem:[#allocation5 + $0x198] sm:$0xff] }
 0xc19   :  { %v4168_v29 = vsub.f32 1.0, %v10184_v3  ;;  %v4173_v30 = vmul.f32 %v10184_v3, %v4171_v36  ;;  %v11584_v3 = vpack.c.bf16 %v4609_v7, %v4608_v20 }
 0xc1a   :  { %v4325_v5 = vadd.f32 %v4324_v31, %v10744_v13  ;;  %v4371_v31 = vld [vmem:[#allocation5 + $0xb0] sm:$0xff] }
 0xc1c   :  { %10189 = vtanh.f32 %v4325_v5  ;;  %v4372_v5 = vld [vmem:[#allocation5 + $0xb8] sm:$0xff] }
 0xc1d   :  { %v11586_v36 = vpack.c.bf16 %v4372_v5, %v4371_v31 }
 0xc21   :  { %v10186_v24 = vpop.eup %10185 }
 0xc22   :  { %v4169_v21 = vmul.f32 %v10186_v24, %v4168_v29  ;;  %v10188_v0 = vpop.eup %10187  ;;  %v4606_v29 = vld [vmem:[#allocation5 + $0x180] sm:$0xff]  ;;  %v4607_v24 = vld [vmem:[#allocation5 + $0x188] sm:$0xff] }
 0xc23   :  { %v4327_v8 = vsub.f32 1.0, %v10188_v0  ;;  %v4332_v9 = vmul.f32 %v10188_v0, %v4330_v42  ;;  %v4622_v42 = vld [vmem:[#allocation5 + $0x1d0] sm:$0xff] }
 0xc24   :  { %v4174_v22 = vadd.f32 %v4173_v30, %v4169_v21  ;;  %v4369_v30 = vld [vmem:[#allocation5 + $0xa0] sm:$0xff]  ;;  %v4370_v21 = vld [vmem:[#allocation5 + $0xa8] sm:$0xff] }
 0xc25   :  { %v11596_v0 = vpack.c.bf16 %v4370_v21, %v4369_v30 }
 0xc26   :  { %v4393_v50 = vrot.slane %v4174_v22, 4  ;;  %v11594_v22 = vpack.c.bf16 %v4607_v24, %v4606_v29 }
 0xc28   :  { %v4395_v45 = vsel %vm142_vm1, %v4390_v56, %v4393_v50  ;;  %v4615_v56 = vld [vmem:[#allocation5 + $0x1b0] sm:$0xff]  ;;  %v4616_v50 = vld [vmem:[#allocation5 + $0x1b8] sm:$0xff] }
 0xc29   :  { %v10190_v38 = vpop.eup %10189  ;;  %v4403_v13 = vrot.slane %v4395_v45, 4  ;;  %v11606_v45 = vpack.c.bf16 %v4616_v50, %v4615_v56 }
 0xc2a   :  { %v4328_v41 = vmul.f32 %v10190_v38, %v4327_v8  ;;  %v4623_v8 = vld [vmem:[#allocation5 + $0x1d8] sm:$0xff]  ;;  %v4613_v38 = vld [vmem:[#allocation5 + $0x1a0] sm:$0xff] }
 0xc2b   :  { %v4407_v37 = vsel %vm144_vm0, %v4389_v25, %v4403_v13  ;;  %v4614_v13 = vld [vmem:[#allocation5 + $0x1a8] sm:$0xff]  ;;  %v11610_v57 = vpack.c.bf16 %v4623_v8, %v4622_v42 }
 0xc2c   :  { %v4333_v61 = vadd.f32 %v4332_v9, %v4328_v41  ;;  %v4409_v6 = vpack.c.bf16 %v4407_v37, %v4407_v37  ;;  %v4620_v9 = vld [vmem:[#allocation5 + $0x1c0] sm:$0xff]  ;;  %v4621_v41 = vld [vmem:[#allocation5 + $0x1c8] sm:$0xff]  ;;  %v11615_v25 = vpack.c.bf16 %v4614_v13, %v4613_v38 }
 0xc2d   :  { %v11621_v54 = vpack.c.bf16 %v4621_v41, %v4620_v9 }
 0xc2e   :  { %v4644_v40 = vrot.slane %v4333_v61, 4  ;;  %9412 = vmatmul.mubr.msk.bf16.vlgmr.msra.gmra.mxu0 %vm586_vm5, %v4409_v6  ;;  %9420 = vmatmul.mubr.msk.bf16.vlgmr.msra.gmra.mxu1 %vm586_vm5, %v4409_v6 }
 0xc2f   :  { %9424 = vmatpush3.bf16.msra.mxu0 %v11520_v55  ;;  %9432 = vmatpush3.bf16.msra.mxu1 %v11522_v15  ;;  %v4640_v55 = vsel %vm142_vm1, %v11364_v11, %v11418_v10  ;;  %v4599_v15 = vld [vmem:[#allocation2 + $0x100] sm:$0xff]  ;;  %v4358_v11 = vld [vmem:[#allocation5 + $0x78] sm:$0xff]  ;;  %v4364_v10 = vld [vmem:[#allocation5 + $0x90] sm:$0xff] }
 0xc30   :  { %9427 = vmatprep.mubr.msk.bf16.mxu0 %vm586_vm5, %v11290_v51  ;;  %9435 = vmatprep.mubr.msk.bf16.mxu1 %vm586_vm5, %v11316_v49  ;;  %v4646_v43 = vsel %vm142_vm1, %v4641_v35, %v4644_v40  ;;  %v4603_v63 = vpack.c.bf16 %v4600_v46, %v4599_v15  ;;  %v11562_v18 = vpack.c.bf16 %v4358_v11, %v4357_v60  ;;  %v11667_v40 = vld [vmem:[%s12401_s4 + $0x5] ss:$0 sm:$0xff] }
 0xc31   :  { %9425 = vmatprep.subr.bf16.mxu0 %v4352_v58  ;;  %9433 = vmatprep.subr.bf16.mxu1 %v4589_v27  ;;  %v4654_v23 = vrot.slane %v4646_v43, 4  ;;  %v11564_v26 = vpack.c.bf16 %v4365_v32, %v4364_v10 }
 0xc33   :  { %9426 = vmatpush3.bf16.msra.mxu0 %v4352_v58  ;;  %9434 = vmatpush3.bf16.msra.mxu1 %v4589_v27  ;;  %v4658_v51 = vsel %vm144_vm0, %v4640_v55, %v4654_v23 }
 0xc34   :  { %9439 = vmatprep.subr.bf16.mxu0 %v4597_v44  ;;  %9447 = vmatprep.subr.bf16.mxu1 %v4604_v62  ;;  %v4660_v47 = vpack.c.bf16 %v4658_v51, %v4658_v51 }
 0xc36   :  { %9428 = vmatmul.mubr.msk.bf16.vlgmr.msra.gmra.mxu0 %vm586_vm5, %v4409_v6  ;;  %9436 = vmatmul.mubr.msk.bf16.vlgmr.msra.gmra.mxu1 %vm586_vm5, %v4660_v47 }
 0xc37   :  { %9440 = vmatpush3.bf16.msra.mxu0 %v4597_v44  ;;  %9448 = vmatpush3.bf16.msra.mxu1 %v4604_v62  ;;  %v11672_v44 = vld [vmem:[%s12401_s4 + $0xc] ss:$0 sm:$0xff] }
 0xc38   :  { %9443 = vmatprep.mubr.msk.bf16.mxu0 %vm586_vm5, %v11316_v49  ;;  %9451 = vmatprep.mubr.msk.bf16.mxu1 %vm586_vm5, %v11316_v49  ;;  %v11572_v49 = vpack.c.bf16 %v4356_v59, %v4355_v12 }
 0xc39   :  { %9441 = vmatprep.subr.bf16.mxu0 %v4596_v4  ;;  %9449 = vmatprep.subr.bf16.mxu1 %v4603_v63 }
 0xc3b   :  { %9442 = vmatpush3.bf16.msra.mxu0 %v4596_v4  ;;  %9450 = vmatpush3.bf16.msra.mxu1 %v4603_v63  ;;  %v11689_v4 = vld [vmem:[%s12401_s4 + $0xd] ss:$0 sm:$0xff]  ;;  %v11694_v63 = vld [vmem:[%s12401_s4 + $0xe] ss:$0 sm:$0xff] }
 0xc3c   :  { %9455 = vmatprep.subr.bf16.mxu0 %v10453_v14  ;;  %9463 = vmatprep.subr.bf16.mxu1 %v10453_v14 }
 0xc3e   :  { %9444 = vmatmul.mubr.msk.bf16.vlgmr.msra.gmra.mxu0 %vm586_vm5, %v4660_v47  ;;  %9452 = vmatmul.mubr.msk.bf16.vlgmr.msra.gmra.mxu1 %vm586_vm5, %v4660_v47 }
 0xc3f   :  { %9456 = vmatpush3.bf16.msra.mxu0 %v11562_v18  ;;  %9464 = vmatpush3.bf16.msra.mxu1 %v11564_v26 }
 0xc40   :  { %9457 = vmatprep.subr.bf16.mxu0 %v10453_v14  ;;  %9465 = vmatprep.subr.bf16.mxu1 %v10453_v14 }
 0xc41   :  { %9459 = vmatprep.mubr.msk.bf16.mxu0 %vm10454_vm4, %v10453_v14  ;;  %9467 = vmatprep.mubr.msk.bf16.mxu1 %vm10454_vm4, %v10453_v14 }
 0xc43   :  { %9458 = vmatpush3.bf16.msra.mxu0 %v11572_v49  ;;  %9466 = vmatpush3.bf16.msra.mxu1 %v11574_v19 }
 0xc44   :  { %9479 = vmatprep.subr.bf16.mxu1 %v10453_v14  ;;  %9471 = vmatprep.subr.bf16.mxu0 %v10453_v14 }
 0xc46   :  { %9460 = vmatmul.mubr.bf16.vlgmr.msra.gmra.mxu0 %v10455_v33  ;;  %9468 = vmatmul.mubr.bf16.vlgmr.msra.gmra.mxu1 %v10455_v33 }
 0xc47   :  { %9480 = vmatpush3.bf16.msra.mxu1 %v11584_v3  ;;  %9472 = vmatpush3.bf16.msra.mxu0 %v11586_v36 }
 0xc48   :  { %9481 = vmatprep.subr.bf16.mxu1 %v10453_v14  ;;  %9473 = vmatprep.subr.bf16.mxu0 %v10453_v14 }
 0xc49   :  { %9475 = vmatprep.mubr.msk.bf16.mxu0 %vm10454_vm4, %v10453_v14  ;;  %9483 = vmatprep.mubr.msk.bf16.mxu1 %vm10454_vm4, %v10453_v14 }
 0xc4b   :  { %9482 = vmatpush3.bf16.msra.mxu1 %v11594_v22  ;;  %9474 = vmatpush3.bf16.msra.mxu0 %v11596_v0 }
 0xc4c   :  { %9487 = vmatprep.subr.bf16.mxu0 %v10453_v14  ;;  %9495 = vmatprep.subr.bf16.mxu1 %v10453_v14 }
 0xc4e   :  { %9476 = vmatmul.mubr.bf16.vlgmr.msra.gmra.mxu0 %v10455_v33  ;;  %9484 = vmatmul.mubr.bf16.vlgmr.msra.gmra.mxu1 %v10455_v33 }
 0xc4f   :  { %9488 = vmatpush3.bf16.msra.mxu0 %v11606_v45  ;;  %9491 = vmatprep.mubr.msk.bf16.mxu0 %vm10454_vm4, %v10453_v14 }
 0xc50   :  { %9489 = vmatprep.subr.bf16.mxu0 %v10453_v14  ;;  %9496 = vmatpush3.bf16.msra.mxu1 %v11610_v57 }
 0xc51   :  { %9497 = vmatprep.subr.bf16.mxu1 %v10453_v14  ;;  %9499 = vmatprep.mubr.msk.bf16.mxu1 %vm10454_vm4, %v10453_v14 }
 0xc53   :  { %9490 = vmatpush3.bf16.msra.mxu0 %v11615_v25 }
 0xc54   :  { %9498 = vmatpush3.bf16.msra.mxu1 %v11621_v54  ;;  %9503 = vmatprep.subr.bf16.mxu0 %v10453_v14 }
 0xc55   :  { %9511 = vmatprep.subr.bf16.mxu1 %v10453_v14 }
 0xc56   :  { %9492 = vmatmul.mubr.bf16.vlgmr.msra.gmra.mxu0 %v10455_v33 }
 0xc57   :  { %9500 = vmatmul.mubr.bf16.vlgmr.msra.gmra.mxu1 %v10455_v33  ;;  %9504 = vmatpush3.bf16.msra.mxu0 %v11562_v18 }
 0xc58   :  { %9512 = vmatpush3.bf16.msra.mxu1 %v11564_v26  ;;  %9505 = vmatprep.subr.bf16.mxu0 %v10453_v14 }
 0xc59   :  { %9513 = vmatprep.subr.bf16.mxu1 %v10453_v14  ;;  %9507 = vmatprep.mubr.msk.bf16.mxu0 %vm10454_vm4, %v10453_v14 }
 0xc5a   :  { %9515 = vmatprep.mubr.msk.bf16.mxu1 %vm10454_vm4, %v10453_v14 }
 0xc5b   :  { %9506 = vmatpush3.bf16.msra.mxu0 %v11572_v49 }
 0xc5c   :  { %9514 = vmatpush3.bf16.msra.mxu1 %v11574_v19  ;;  %9519 = vmatprep.subr.bf16.mxu0 %v10453_v14 }
 0xc5d   :  { %9527 = vmatprep.subr.bf16.mxu1 %v10453_v14 }
 0xcee   :  { %v9413_v37 = vpop.f32.mrf.mxu0  ;;  %v9421_v61 = vpop.f32.mrf.mxu1 }
 0xcef   :  { %v11655_v6 = vadd.f32 %v9413_v37, %v11647_v52  ;;  %v11658_v39 = vadd.f32 %v9421_v61, %v11652_v2 }
 0xcf0   :  { %v4458_v58 = vpop.f32.mrf.mxu0  ;;  %v4514_v27 = vpop.f32.mrf.mxu1 }
 0xcf1   :  { %v11709_v31 = vadd.f32 %v11647_v52, %v4458_v58  ;;  %v11713_v8 = vadd.f32 %v11652_v2, %v4514_v27 }
 0xcf2   :  { %v9414_v28 = vpop.f32.mrf.mxu0  ;;  %v9422_v53 = vpop.f32.mrf.mxu1 }
 0xcf4   :  { %v11660_v34 = vpop.f32.mrf.mxu0  ;;  %v11662_v35 = vpop.f32.mrf.mxu1 }
 0xcf6   :  { %v9429_v62 = vpop.f32.mrf.mxu0  ;;  %v9437_v43 = vpop.f32.mrf.mxu1 }
 0xcf7   :  { %v11675_v23 = vadd.f32 %v9429_v62, %v11667_v40  ;;  %v11678_v1 = vadd.f32 %v9437_v43, %v11672_v44 }
 0xcf8   :  { %v11680_v55 = vpop.f32.mrf.mxu0  ;;  %v4709_v48 = vpop.f32.mrf.mxu1 }
 0xcf9   :  { %v11716_v9 = vadd.f32 %v11672_v44, %v4709_v48 }
 0xcfa   :  { %v9430_v15 = vpop.f32.mrf.mxu0  ;;  %v9438_v46 = vpop.f32.mrf.mxu1 }
 0xcfc   :  { %v11682_v51 = vpop.f32.mrf.mxu0  ;;  %v11684_v47 = vpop.f32.mrf.mxu1 }
 0xcfe   :  { %v9445_v60 = vpop.f32.mrf.mxu0  ;;  %v9453_v11 = vpop.f32.mrf.mxu1 }
 0xcff   :  { %v11697_v10 = vadd.f32 %v9445_v60, %v11689_v4  ;;  %v11700_v32 = vadd.f32 %v9453_v11, %v11694_v63 }
 0xd00   :  { %v4765_v12 = vpop.f32.mrf.mxu0  ;;  %v11702_v59 = vpop.f32.mrf.mxu1 }
 0xd01   :  { %v11721_v11 = vadd.f32 %v11689_v4, %v4765_v12 }
 0xd02   :  { %v9446_v17 = vpop.f32.mrf.mxu0  ;;  %v9454_v16 = vpop.f32.mrf.mxu1 }
 0xd04   :  { %v11704_v20 = vpop.f32.mrf.mxu0  ;;  %v11706_v7 = vpop.f32.mrf.mxu1 }
 0xd06   :  { %v4869_v5 = vpop.f32.mrf.mxu0  ;;  %v4909_v29 = vpop.f32.mrf.mxu1 }
 0xd07   :  { %v4915_v24 = vadd.f32 %v4869_v5, %v11709_v31  ;;  %v4922_v41 = vadd.f32 %v4909_v29, %v11713_v8 }
 0xd08   :  { %v9461_v30 = vpop.f32.mrf.mxu0  ;;  %v9469_v21 = vpop.f32.mrf.mxu1 }
 0xd09   :  { %v8243_v56 = vmul.f32 -1.442695, %v4915_v24  ;;  %v8244_v62 = vmul.f32 -1.442695, %v4922_v41 }
 0xd0a   :  { %v4872_v50 = vpop.f32.mrf.mxu0  ;;  %v4912_v42 = vpop.f32.mrf.mxu1 }
 0xd0b   :  { %10191 = vpow2.f32 %v8243_v56 }
 0xd0c   :  { %v9462_v38 = vpop.f32.mrf.mxu0  ;;  %v9470_v13 = vpop.f32.mrf.mxu1 }
 0xd0e   :  { %v4969_v37 = vpop.f32.mrf.mxu0  ;;  %v5016_v61 = vpop.f32.mrf.mxu1 }
 0xd0f   :  { %v5062_v58 = vadd.f32 %v5016_v61, %v11716_v9  ;;  %v11727_v61 = vld [vmem:[%s12402_s5 + $0x1] ss:$0 sm:$0xff] }
 0xd10   :  { %v9477_v28 = vpop.f32.mrf.mxu0  ;;  %v9485_v53 = vpop.f32.mrf.mxu1 }
 0xd11   :  { %v8246_v43 = vmul.f32 -1.442695, %v5062_v58  ;;  %v4970_v28 = vadd.f32 %v11727_v61, %v4969_v37 }
 0xd12   :  { %v4972_v15 = vpop.f32.mrf.mxu0  ;;  %v5019_v46 = vpop.f32.mrf.mxu1 }
 0xd13   :  { %10193 = vpow2.f32 %v8246_v43  ;;  %v11737_v46 = vld [vmem:[%s12402_s5 + $0x4] ss:$0 sm:$0xff] }
 0xd14   :  { %v9478_v27 = vpop.f32.mrf.mxu0  ;;  %v9486_v60 = vpop.f32.mrf.mxu1  ;;  %10195 = vpow2.f32 %v8244_v62  ;;  %v11732_v62 = vadd.f32 %v11667_v40, %v11680_v55 }
 0xd16   :  { %v5056_v48 = vpop.f32.mrf.mxu0 }
 0xd17   :  { %v5069_v17 = vadd.f32 %v5056_v48, %v11721_v11  ;;  %v5116_v16 = vpop.f32.mrf.mxu1 }
 0xd18   :  { %v10192_v5 = vpop.eup %10191  ;;  %v9493_v29 = vpop.f32.mrf.mxu0  ;;  %v5117_v48 = vadd.f32 %v11737_v46, %v5116_v16 }
 0xd19   :  { %v4919_v24 = vadd.f32 1.0, %v10192_v5  ;;  %v8247_v30 = vmul.f32 -1.442695, %v5069_v17  ;;  %v9501_v21 = vpop.f32.mrf.mxu1  ;;  %v11743_v17 = vadd.f32 %v11694_v63, %v11702_v59 }
 0xd1a   :  { %v5059_v56 = vpop.f32.mrf.mxu0 }
 0xd1b   :  { %10197 = vrcp.f32 %v4919_v24  ;;  %v5119_v50 = vpop.f32.mrf.mxu1 }
 0xd1c   :  { %v9494_v42 = vpop.f32.mrf.mxu0  ;;  %10199 = vpow2.f32 %v8247_v30 }
 0xd1d   :  { %v9502_v38 = vpop.f32.mrf.mxu1 }
 0xd20   :  { %v10194_v13 = vpop.eup %10193 }
 0xd21   :  { %v5066_v41 = vadd.f32 1.0, %v10194_v13  ;;  %v10196_v12 = vpop.eup %10195 }
 0xd22   :  { %v4926_v58 = vadd.f32 1.0, %v10196_v12 }
 0xd23   :  { %10201 = vrcp.f32 %v5066_v41 }
 0xd24   :  { %10203 = vrcp.f32 %v4926_v58 }
 0xd28   :  { %v10198_v53 = vpop.eup %10197 }
 0xd29   :  { %v4975_v43 = vmul.f32 %v10198_v53, %v4970_v28  ;;  %v10200_v15 = vpop.eup %10199 }
 0xd2a   :  { %v5073_v60 = vadd.f32 1.0, %v10200_v15 }
 0xd2b   :  { %v4976_v27 = vadd.f32 %v4975_v43, %v11732_v62 }
 0xd2d   :  { %10205 = vtanh.f32 %v4976_v27 }
 0xd2e   :  { %10207 = vrcp.f32 %v5073_v60 }
 0xd30   :  { %v10202_v37 = vpop.eup %10201 }
 0xd31   :  { %v5122_v55 = vmul.f32 %v10202_v37, %v5117_v48  ;;  %v10204_v29 = vpop.eup %10203 }
 0xd32   :  { %v4978_v24 = vsub.f32 1.0, %v10204_v29  ;;  %v4980_v21 = vmul.f32 0.0, %v10204_v29 }
 0xd33   :  { %v5123_v5 = vadd.f32 %v5122_v55, %v11743_v17 }
 0xd35   :  { %10209 = vtanh.f32 %v5123_v5 }
 0xd3a   :  { %v10206_v30 = vpop.eup %10205 }
 0xd3b   :  { %v4979_v56 = vmul.f32 %v10206_v30, %v4978_v24  ;;  %v10208_v42 = vpop.eup %10207 }
 0xd3c   :  { %v5125_v38 = vsub.f32 1.0, %v10208_v42  ;;  %v5127_v13 = vmul.f32 0.0, %v10208_v42 }
 0xd3d   :  { %v11746_v50 = vadd.f32 %v4980_v21, %v4979_v56 }
 0xd3f   :  { %v5129_v16 = vpack.c.bf16 %v11746_v50, %v11746_v50 }
 0xd41   :  { %9508 = vmatmul.mubr.msk.bf16.vlgmr.msra.gmra.mxu0 %vm586_vm5, %v5129_v16  ;;  %9516 = vmatmul.mubr.msk.bf16.vlgmr.msra.gmra.mxu1 %vm586_vm5, %v5129_v16 }
 0xd42   :  { %v10210_v59 = vpop.eup %10209  ;;  %9528 = vmatpush3.bf16.msra.mxu1 %v11584_v3  ;;  %9520 = vmatpush3.bf16.msra.mxu0 %v11586_v36 }
 0xd43   :  { %v5126_v41 = vmul.f32 %v10210_v59, %v5125_v38  ;;  %9529 = vmatprep.subr.bf16.mxu1 %v10453_v14  ;;  %9521 = vmatprep.subr.bf16.mxu0 %v10453_v14 }
 0xd44   :  { %9523 = vmatprep.mubr.msk.bf16.mxu0 %vm10454_vm4, %v10453_v14  ;;  %9531 = vmatprep.mubr.msk.bf16.mxu1 %vm10454_vm4, %v10453_v14 }
 0xd45   :  { %v11760_v12 = vadd.f32 %v5127_v13, %v5126_v41 }
 0xd46   :  { %9530 = vmatpush3.bf16.msra.mxu1 %v11594_v22  ;;  %9522 = vmatpush3.bf16.msra.mxu0 %v11596_v0 }
 0xd47   :  { %v5286_v58 = vpack.c.bf16 %v11760_v12, %v11760_v12  ;;  %9535 = vmatprep.subr.bf16.mxu0 %v10453_v14  ;;  %9543 = vmatprep.subr.bf16.mxu1 %v10453_v14 }
 0xd49   :  { %9524 = vmatmul.mubr.msk.bf16.vlgmr.msra.gmra.mxu0 %vm586_vm5, %v5129_v16  ;;  %9532 = vmatmul.mubr.msk.bf16.vlgmr.msra.gmra.mxu1 %vm586_vm5, %v5286_v58 }
 0xd4a   :  { %9536 = vmatpush3.bf16.msra.mxu0 %v11606_v45  ;;  %9544 = vmatpush3.bf16.msra.mxu1 %v11610_v57 }
 0xd4b   :  { %9537 = vmatprep.subr.bf16.mxu0 %v10453_v14  ;;  %9545 = vmatprep.subr.bf16.mxu1 %v10453_v14 }
 0xd4c   :  { %9539 = vmatprep.mubr.msk.bf16.mxu0 %vm10454_vm4, %v10453_v14  ;;  %9547 = vmatprep.mubr.msk.bf16.mxu1 %vm10454_vm4, %v10453_v14 }
 0xd4e   :  { %9538 = vmatpush3.bf16.msra.mxu0 %v11615_v25  ;;  %9546 = vmatpush3.bf16.msra.mxu1 %v11621_v54 }
 0xd4f   :  { %9551 = vmatprep.subr.bf16.mxu0 %v10453_v14  ;;  %9559 = vmatprep.subr.bf16.mxu1 %v10453_v14 }
 0xd51   :  { %9540 = vmatmul.mubr.msk.bf16.vlgmr.msra.gmra.mxu0 %vm586_vm5, %v5286_v58  ;;  %9548 = vmatmul.mubr.msk.bf16.vlgmr.msra.gmra.mxu1 %vm586_vm5, %v5286_v58 }
 0xd52   :  { %9552 = vmatpush3.bf16.msra.mxu0 %v11562_v18  ;;  %9560 = vmatpush3.bf16.msra.mxu1 %v11564_v26 }
 0xd53   :  { %9553 = vmatprep.subr.bf16.mxu0 %v10453_v14  ;;  %9561 = vmatprep.subr.bf16.mxu1 %v10453_v14 }
 0xd54   :  { %9555 = vmatprep.mubr.msk.bf16.mxu0 %vm10454_vm4, %v10453_v14  ;;  %9563 = vmatprep.mubr.msk.bf16.mxu1 %vm10454_vm4, %v10453_v14 }
 0xd56   :  { %9554 = vmatpush3.bf16.msra.mxu0 %v11572_v49  ;;  %9562 = vmatpush3.bf16.msra.mxu1 %v11574_v19 }
 0xd57   :  { %9575 = vmatprep.subr.bf16.mxu1 %v10453_v14  ;;  %9567 = vmatprep.subr.bf16.mxu0 %v10453_v14 }
 0xe01   :  { %v5167_v28 = vpop.f32.mrf.mxu0  ;;  %v5207_v53 = vpop.f32.mrf.mxu1 }
 0xe02   :  { %v5214_v43 = vrot.slane %v5167_v28, 4  ;;  %v5224_v5 = vrot.slane %v5207_v53, 4 }
 0xe03   :  { %v9509_v15 = vpop.f32.mrf.mxu0  ;;  %v9517_v27 = vpop.f32.mrf.mxu1 }
 0xe04   :  { %v5216_v60 = vadd.f32 %v5214_v43, %v11709_v31  ;;  %v5226_v56 = vadd.f32 %v5224_v5, %v11713_v8 }
 0xe05   :  { %v5170_v48 = vpop.f32.mrf.mxu0  ;;  %v5210_v37 = vpop.f32.mrf.mxu1 }
 0xe06   :  { %v8251_v55 = vmul.f32 -1.442695, %v5216_v60  ;;  %v8252_v58 = vmul.f32 -1.442695, %v5226_v56 }
 0xe07   :  { %v9510_v29 = vpop.f32.mrf.mxu0  ;;  %v9518_v24 = vpop.f32.mrf.mxu1 }
 0xe08   :  { %10211 = vpow2.f32 %v8251_v55 }
 0xe09   :  { %v5267_v30 = vpop.f32.mrf.mxu0  ;;  %v5324_v21 = vpop.f32.mrf.mxu1 }
 0xe0a   :  { %v5371_v42 = vrot.slane %v5324_v21, 4 }
 0xe0b   :  { %v9525_v16 = vpop.f32.mrf.mxu0  ;;  %v9533_v38 = vpop.f32.mrf.mxu1 }
 0xe0c   :  { %v5373_v59 = vadd.f32 %v5371_v42, %v11716_v9  ;;  %v5268_v38 = vadd.f32 %v11727_v61, %v5267_v30 }
 0xe0d   :  { %v5270_v13 = vpop.f32.mrf.mxu0  ;;  %v5327_v41 = vpop.f32.mrf.mxu1 }
 0xe0e   :  { %v8256_v31 = vmul.f32 -1.442695, %v5373_v59  ;;  %v5274_v13 = vrot.slane %v5268_v38, 4 }
 0xe0f   :  { %v9526_v28 = vpop.f32.mrf.mxu0  ;;  %v9534_v43 = vpop.f32.mrf.mxu1 }
 0xe10   :  { %10213 = vpow2.f32 %v8256_v31 }
 0xe11   :  { %v5364_v53 = vpop.f32.mrf.mxu0  ;;  %v5424_v15 = vpop.f32.mrf.mxu1  ;;  %10215 = vpow2.f32 %v8252_v58 }
 0xe12   :  { %v5381_v27 = vrot.slane %v5364_v53, 4  ;;  %v5425_v28 = vadd.f32 %v11737_v46, %v5424_v15 }
 0xe13   :  { %v9541_v60 = vpop.f32.mrf.mxu0  ;;  %v9549_v48 = vpop.f32.mrf.mxu1 }
 0xe14   :  { %v5383_v8 = vadd.f32 %v5381_v27, %v11721_v11  ;;  %v5431_v53 = vrot.slane %v5425_v28, 4 }
 0xe15   :  { %v10212_v37 = vpop.eup %10211  ;;  %v5367_v55 = vpop.f32.mrf.mxu0 }
 0xe16   :  { %v5427_v5 = vpop.f32.mrf.mxu1  ;;  %v5220_v29 = vadd.f32 1.0, %v10212_v37  ;;  %v8257_v9 = vmul.f32 -1.442695, %v5383_v8  ;;  %v5282_v8 = vrot.slane %v11746_v50, 4 }
 0xe17   :  { %v9542_v24 = vpop.f32.mrf.mxu0 }
 0xe18   :  { %v9550_v21 = vpop.f32.mrf.mxu1  ;;  %10217 = vrcp.f32 %v5220_v29  ;;  %v5439_v24 = vrot.slane %v11760_v12, 4 }
 0xe19   :  { %10219 = vpow2.f32 %v8257_v9 }
 0xe1d   :  { %v10214_v56 = vpop.eup %10213 }
 0xe1e   :  { %v5377_v42 = vadd.f32 1.0, %v10214_v56  ;;  %v10216_v16 = vpop.eup %10215 }
 0xe1f   :  { %v5230_v59 = vadd.f32 1.0, %v10216_v16 }
 0xe20   :  { %10221 = vrcp.f32 %v5377_v42 }
 0xe21   :  { %10223 = vrcp.f32 %v5230_v59 }
 0xe25   :  { %v10218_v41 = vpop.eup %10217 }
 0xe26   :  { %v5276_v11 = vmul.f32 %v10218_v41, %v5274_v13  ;;  %v10220_v58 = vpop.eup %10219  ;;  %v11858_v41 = vadd.f32 %v11647_v52, %v11660_v34  ;;  %v11867_v52 = vadd.f32 %v11672_v44, %v11684_v47 }
 0xe27   :  { %v5387_v43 = vadd.f32 1.0, %v10220_v58 }
 0xe28   :  { %v5277_v31 = vadd.f32 %v5276_v11, %v11732_v62 }
 0xe2a   :  { %10225 = vtanh.f32 %v5277_v31 }
 0xe2b   :  { %10227 = vrcp.f32 %v5387_v43 }
 0xe2d   :  { %v10222_v27 = vpop.eup %10221 }
 0xe2e   :  { %v5433_v60 = vmul.f32 %v10222_v27, %v5431_v53  ;;  %v10224_v30 = vpop.eup %10223 }
 0xe2f   :  { %v5279_v37 = vsub.f32 1.0, %v10224_v30  ;;  %v5284_v5 = vmul.f32 %v10224_v30, %v5282_v8 }
 0xe30   :  { %v5434_v48 = vadd.f32 %v5433_v60, %v11743_v17 }
 0xe32   :  { %10229 = vtanh.f32 %v5434_v48  ;;  %v11863_v48 = vadd.f32 %v11652_v2, %v11662_v35 }
 0xe37   :  { %v10226_v55 = vpop.eup %10225 }
 0xe38   :  { %v5280_v29 = vmul.f32 %v10226_v55, %v5279_v37  ;;  %v10228_v62 = vpop.eup %10227 }
 0xe39   :  { %v5436_v21 = vsub.f32 1.0, %v10228_v62  ;;  %v5441_v17 = vmul.f32 %v10228_v62, %v5439_v24 }
 0xe3a   :  { %v11805_v9 = vadd.f32 %v5284_v5, %v5280_v29 }
 0xe3c   :  { %v5443_v15 = vpack.c.bf16 %v11805_v9, %v11805_v9 }
 0xe3e   :  { %v5445_v56 = vrot.slane %v5443_v15, 2 }
 0xe3f   :  { %v10230_v42 = vpop.eup %10229 }
 0xe40   :  { %v5437_v16 = vmul.f32 %v10230_v42, %v5436_v21  ;;  %9556 = vmatmul.mubr.msk.bf16.vlgmr.msra.gmra.mxu0 %vm586_vm5, %v5445_v56  ;;  %9564 = vmatmul.mubr.msk.bf16.vlgmr.msra.gmra.mxu1 %vm586_vm5, %v5445_v56  ;;  %v11873_v42 = vadd.f32 %v11689_v4, %v11704_v20 }
 0xe41   :  { %9576 = vmatpush3.bf16.msra.mxu1 %v11584_v3  ;;  %9568 = vmatpush3.bf16.msra.mxu0 %v11586_v36 }
 0xe42   :  { %v11814_v38 = vadd.f32 %v5441_v17, %v5437_v16  ;;  %9577 = vmatprep.subr.bf16.mxu1 %v10453_v14  ;;  %9569 = vmatprep.subr.bf16.mxu0 %v10453_v14 }
 0xe43   :  { %9571 = vmatprep.mubr.msk.bf16.mxu0 %vm10454_vm4, %v10453_v14  ;;  %9579 = vmatprep.mubr.msk.bf16.mxu1 %vm10454_vm4, %v10453_v14 }
 0xe44   :  { %v5593_v59 = vpack.c.bf16 %v11814_v38, %v11814_v38 }
 0xe45   :  { %9578 = vmatpush3.bf16.msra.mxu1 %v11594_v22  ;;  %9570 = vmatpush3.bf16.msra.mxu0 %v11596_v0 }
 0xe46   :  { %v5595_v13 = vrot.slane %v5593_v59, 2  ;;  %9583 = vmatprep.subr.bf16.mxu0 %v10453_v14  ;;  %9591 = vmatprep.subr.bf16.mxu1 %v10453_v14 }
 0xe48   :  { %9572 = vmatmul.mubr.msk.bf16.vlgmr.msra.gmra.mxu0 %vm586_vm5, %v5445_v56  ;;  %9580 = vmatmul.mubr.msk.bf16.vlgmr.msra.gmra.mxu1 %vm586_vm5, %v5595_v13 }
 0xe49   :  { %9584 = vmatpush3.bf16.msra.mxu0 %v11606_v45  ;;  %9592 = vmatpush3.bf16.msra.mxu1 %v11610_v57 }
 0xe4a   :  { %9585 = vmatprep.subr.bf16.mxu0 %v10453_v14  ;;  %9593 = vmatprep.subr.bf16.mxu1 %v10453_v14 }
 0xe4b   :  { %9587 = vmatprep.mubr.msk.bf16.mxu0 %vm10454_vm4, %v10453_v14  ;;  %9595 = vmatprep.mubr.msk.bf16.mxu1 %vm10454_vm4, %v10453_v14 }
 0xe4d   :  { %9586 = vmatpush3.bf16.msra.mxu0 %v11615_v25  ;;  %9594 = vmatpush3.bf16.msra.mxu1 %v11621_v54 }
 0xe4e   :  { %9599 = vmatprep.subr.bf16.mxu0 %v10453_v14  ;;  %9607 = vmatprep.subr.bf16.mxu1 %v10453_v14 }
 0xe50   :  { %9588 = vmatmul.mubr.msk.bf16.vlgmr.msra.gmra.mxu0 %vm586_vm5, %v5595_v13  ;;  %9596 = vmatmul.mubr.msk.bf16.vlgmr.msra.gmra.mxu1 %vm586_vm5, %v5595_v13 }
 0xe51   :  { %9600 = vmatpush3.bf16.msra.mxu0 %v11562_v18  ;;  %9608 = vmatpush3.bf16.msra.mxu1 %v11564_v26 }
 0xe52   :  { %9601 = vmatprep.subr.bf16.mxu0 %v10453_v14  ;;  %9609 = vmatprep.subr.bf16.mxu1 %v10453_v14 }
 0xe53   :  { %9603 = vmatprep.mubr.msk.bf16.mxu0 %vm10454_vm4, %v10453_v14  ;;  %9611 = vmatprep.mubr.msk.bf16.mxu1 %vm10454_vm4, %v10453_v14 }
 0xe55   :  { %9602 = vmatpush3.bf16.msra.mxu0 %v11572_v49  ;;  %9610 = vmatpush3.bf16.msra.mxu1 %v11574_v19 }
 0xe56   :  { %9623 = vmatprep.subr.bf16.mxu1 %v10453_v14  ;;  %9615 = vmatprep.subr.bf16.mxu0 %v10453_v14 }
 0xf00   :  { %v5483_v11 = vpop.f32.mrf.mxu0  ;;  %v5523_v58 = vpop.f32.mrf.mxu1 }
 0xf01   :  { %v5529_v31 = vadd.f32 %v5483_v11, %v11858_v41  ;;  %v5536_v34 = vadd.f32 %v5523_v58, %v11863_v48 }
 0xf02   :  { %v9557_v28 = vpop.f32.mrf.mxu0  ;;  %v9565_v43 = vpop.f32.mrf.mxu1 }
 0xf03   :  { %v8261_v53 = vmul.f32 -1.442695, %v5529_v31  ;;  %v8262_v15 = vmul.f32 -1.442695, %v5536_v34  ;;  %v11879_v34 = vadd.f32 %v11667_v40, %v11682_v51 }
 0xf04   :  { %v5486_v27 = vpop.f32.mrf.mxu0  ;;  %v5526_v60 = vpop.f32.mrf.mxu1 }
 0xf05   :  { %10231 = vpow2.f32 %v8261_v53 }
 0xf06   :  { %v9558_v30 = vpop.f32.mrf.mxu0  ;;  %v9566_v8 = vpop.f32.mrf.mxu1 }
 0xf08   :  { %v5577_v37 = vpop.f32.mrf.mxu0  ;;  %v5633_v55 = vpop.f32.mrf.mxu1 }
 0xf09   :  { %v5679_v5 = vadd.f32 %v5633_v55, %v11867_v52  ;;  %v5578_v30 = vadd.f32 %v11727_v61, %v5577_v37 }
 0xf0a   :  { %v9573_v29 = vpop.f32.mrf.mxu0  ;;  %v9581_v62 = vpop.f32.mrf.mxu1 }
 0xf0b   :  { %v8266_v24 = vmul.f32 -1.442695, %v5679_v5 }
 0xf0c   :  { %v5580_v21 = vpop.f32.mrf.mxu0  ;;  %v5636_v2 = vpop.f32.mrf.mxu1 }
 0xf0d   :  { %10233 = vpow2.f32 %v8266_v24  ;;  %v11885_v21 = vadd.f32 %v11694_v63, %v11706_v7  ;;  %v5739_v7 = vrot.slane %v11814_v38, 4 }
 0xf0e   :  { %v9574_v35 = vpop.f32.mrf.mxu0  ;;  %v9582_v56 = vpop.f32.mrf.mxu1  ;;  %10235 = vpow2.f32 %v8262_v15 }
 0xf0f   :  { %v5589_v35 = vrot.slane %v11805_v9, 4 }
 0xf10   :  { %v5673_v44 = vpop.f32.mrf.mxu0  ;;  %v5727_v47 = vpop.f32.mrf.mxu1 }
 0xf11   :  { %v5686_v17 = vadd.f32 %v5673_v44, %v11873_v42  ;;  %v5728_v15 = vadd.f32 %v11737_v46, %v5727_v47 }
 0xf12   :  { %v10232_v16 = vpop.eup %10231  ;;  %v9589_v59 = vpop.f32.mrf.mxu0 }
 0xf13   :  { %v9597_v13 = vpop.f32.mrf.mxu1  ;;  %v5533_v11 = vadd.f32 1.0, %v10232_v16  ;;  %v8267_v58 = vmul.f32 -1.442695, %v5686_v17 }
 0xf14   :  { %v5676_v31 = vpop.f32.mrf.mxu0 }
 0xf15   :  { %v5730_v28 = vpop.f32.mrf.mxu1  ;;  %10237 = vrcp.f32 %v5533_v11 }
 0xf16   :  { %v9590_v43 = vpop.f32.mrf.mxu0  ;;  %10239 = vpow2.f32 %v8267_v58 }
 0xf17   :  { %v9598_v53 = vpop.f32.mrf.mxu1 }
 0xf1a   :  { %v10234_v27 = vpop.eup %10233 }
 0xf1b   :  { %v5683_v60 = vadd.f32 1.0, %v10234_v27  ;;  %v10236_v4 = vpop.eup %10235 }
 0xf1c   :  { %v5540_v20 = vadd.f32 1.0, %v10236_v4 }
 0xf1d   :  { %10241 = vrcp.f32 %v5683_v60 }
 0xf1e   :  { %10243 = vrcp.f32 %v5540_v20 }
 0xf22   :  { %v10238_v8 = vpop.eup %10237 }
 0xf23   :  { %v5583_v55 = vmul.f32 %v10238_v8, %v5578_v30  ;;  %v10240_v5 = vpop.eup %10239 }
 0xf24   :  { %v5690_v62 = vadd.f32 1.0, %v10240_v5 }
 0xf25   :  { %v5584_v29 = vadd.f32 %v5583_v55, %v11879_v34 }
 0xf27   :  { %10245 = vtanh.f32 %v5584_v29 }
 0xf28   :  { %10247 = vrcp.f32 %v5690_v62 }
 0xf2a   :  { %v10242_v24 = vpop.eup %10241 }
 0xf2b   :  { %v5733_v37 = vmul.f32 %v10242_v24, %v5728_v15  ;;  %v10244_v40 = vpop.eup %10243 }
 0xf2c   :  { %v5586_v51 = vsub.f32 1.0, %v10244_v40  ;;  %v5591_v44 = vmul.f32 %v10244_v40, %v5589_v35 }
 0xf2d   :  { %v5734_v2 = vadd.f32 %v5733_v37, %v11885_v21 }
 0xf2f   :  { %10249 = vtanh.f32 %v5734_v2 }
 0xf34   :  { %v10246_v56 = vpop.eup %10245 }
 0xf35   :  { %v5587_v17 = vmul.f32 %v10246_v56, %v5586_v51  ;;  %v10248_v47 = vpop.eup %10247 }
 0xf36   :  { %v5736_v63 = vsub.f32 1.0, %v10248_v47  ;;  %v5741_v11 = vmul.f32 %v10248_v47, %v5739_v7 }
 0xf37   :  { %v11889_v16 = vadd.f32 %v5591_v44, %v5587_v17 }
 0xf39   :  { %v5743_v59 = vpack.c.bf16 %v11889_v16, %v11889_v16 }
 0xf3b   :  { %9604 = vmatmul.mubr.msk.bf16.vlgmr.msra.gmra.mxu0 %vm586_vm5, %v5743_v59  ;;  %9612 = vmatmul.mubr.msk.bf16.vlgmr.msra.gmra.mxu1 %vm586_vm5, %v5743_v59 }
 0xf3c   :  { %v10250_v13 = vpop.eup %10249  ;;  %9624 = vmatpush3.bf16.msra.mxu1 %v11584_v3  ;;  %9616 = vmatpush3.bf16.msra.mxu0 %v11586_v36 }
 0xf3d   :  { %v5737_v58 = vmul.f32 %v10250_v13, %v5736_v63  ;;  %9625 = vmatprep.subr.bf16.mxu1 %v10453_v14  ;;  %9617 = vmatprep.subr.bf16.mxu0 %v10453_v14 }
 0xf3e   :  { %9619 = vmatprep.mubr.msk.bf16.mxu0 %vm10454_vm4, %v10453_v14  ;;  %9627 = vmatprep.mubr.msk.bf16.mxu1 %vm10454_vm4, %v10453_v14 }
 0xf3f   :  { %v11904_v31 = vadd.f32 %v5741_v11, %v5737_v58 }
 0xf40   :  { %9626 = vmatpush3.bf16.msra.mxu1 %v11594_v22  ;;  %9618 = vmatpush3.bf16.msra.mxu0 %v11596_v0 }
 0xf41   :  { %v5900_v28 = vpack.c.bf16 %v11904_v31, %v11904_v31  ;;  %9631 = vmatprep.subr.bf16.mxu0 %v10453_v14  ;;  %9639 = vmatprep.subr.bf16.mxu1 %v10453_v14 }
 0xf43   :  { %9620 = vmatmul.mubr.msk.bf16.vlgmr.msra.gmra.mxu0 %vm586_vm5, %v5743_v59  ;;  %9628 = vmatmul.mubr.msk.bf16.vlgmr.msra.gmra.mxu1 %vm586_vm5, %v5900_v28 }
 0xf44   :  { %9632 = vmatpush3.bf16.msra.mxu0 %v11606_v45  ;;  %9640 = vmatpush3.bf16.msra.mxu1 %v11610_v57 }
 0xf45   :  { %9633 = vmatprep.subr.bf16.mxu0 %v10453_v14  ;;  %9641 = vmatprep.subr.bf16.mxu1 %v10453_v14 }
 0xf46   :  { %9635 = vmatprep.mubr.msk.bf16.mxu0 %vm10454_vm4, %v10453_v14  ;;  %9643 = vmatprep.mubr.msk.bf16.mxu1 %vm10454_vm4, %v10453_v14 }
 0xf48   :  { %9634 = vmatpush3.bf16.msra.mxu0 %v11615_v25  ;;  %9642 = vmatpush3.bf16.msra.mxu1 %v11621_v54 }
 0xf49   :  { %9647 = vmatprep.subr.bf16.mxu0 %v10453_v14  ;;  %9655 = vmatprep.subr.bf16.mxu1 %v10453_v14 }
 0xf4b   :  { %9636 = vmatmul.mubr.msk.bf16.vlgmr.msra.gmra.mxu0 %vm586_vm5, %v5900_v28  ;;  %9644 = vmatmul.mubr.msk.bf16.vlgmr.msra.gmra.mxu1 %vm586_vm5, %v5900_v28 }
 0xf4c   :  { %9648 = vmatpush3.bf16.msra.mxu0 %v11562_v18  ;;  %9656 = vmatpush3.bf16.msra.mxu1 %v11564_v26 }
 0xf4d   :  { %9649 = vmatprep.subr.bf16.mxu0 %v10453_v14  ;;  %9657 = vmatprep.subr.bf16.mxu1 %v10453_v14 }
 0xf4e   :  { %9651 = vmatprep.mubr.msk.bf16.mxu0 %vm10454_vm4, %v10453_v14  ;;  %9659 = vmatprep.mubr.msk.bf16.mxu1 %vm10454_vm4, %v10453_v14 }
 0xf50   :  { %9650 = vmatpush3.bf16.msra.mxu0 %v11572_v49  ;;  %9658 = vmatpush3.bf16.msra.mxu1 %v11574_v19 }
 0xf51   :  { %9671 = vmatprep.subr.bf16.mxu1 %v10453_v14  ;;  %9663 = vmatprep.subr.bf16.mxu0 %v10453_v14 }
 0xffb   :  { %v5781_v43 = vpop.f32.mrf.mxu0  ;;  %v5821_v53 = vpop.f32.mrf.mxu1 }
 0xffc   :  { %v5828_v27 = vrot.slane %v5781_v43, 4  ;;  %v5838_v5 = vrot.slane %v5821_v53, 4 }
 0xffd   :  { %v9605_v60 = vpop.f32.mrf.mxu0  ;;  %v9613_v4 = vpop.f32.mrf.mxu1 }
 0xffe   :  { %v5830_v20 = vadd.f32 %v5828_v27, %v11858_v41  ;;  %v5840_v37 = vadd.f32 %v5838_v5, %v11863_v48 }
 0xfff   :  { %v5784_v30 = vpop.f32.mrf.mxu0  ;;  %v5824_v8 = vpop.f32.mrf.mxu1 }
0x1000   :  { %v8271_v55 = vmul.f32 -1.442695, %v5830_v20  ;;  %v8272_v17 = vmul.f32 -1.442695, %v5840_v37 }
0x1001   :  { %v9606_v29 = vpop.f32.mrf.mxu0  ;;  %v9614_v62 = vpop.f32.mrf.mxu1 }
0x1002   :  { %10251 = vpow2.f32 %v8271_v55 }
0x1003   :  { %v5881_v15 = vpop.f32.mrf.mxu0  ;;  %v5938_v24 = vpop.f32.mrf.mxu1 }
0x1004   :  { %v5985_v2 = vrot.slane %v5938_v24, 4  ;;  %v5882_v55 = vadd.f32 %v11727_v61, %v5881_v15 }
0x1005   :  { %v9621_v40 = vpop.f32.mrf.mxu0  ;;  %v9629_v51 = vpop.f32.mrf.mxu1 }
0x1006   :  { %v5987_v35 = vadd.f32 %v5985_v2, %v11867_v52  ;;  %v5888_v29 = vrot.slane %v5882_v55, 4 }
0x1007   :  { %v5884_v56 = vpop.f32.mrf.mxu0  ;;  %v5941_v44 = vpop.f32.mrf.mxu1 }
0x1008   :  { %v8276_v41 = vmul.f32 -1.442695, %v5987_v35 }
0x1009   :  { %v9622_v47 = vpop.f32.mrf.mxu0  ;;  %v9630_v59 = vpop.f32.mrf.mxu1 }
0x100a   :  { %10253 = vpow2.f32 %v8276_v41 }
0x100b   :  { %v5978_v63 = vpop.f32.mrf.mxu0  ;;  %v6038_v7 = vpop.f32.mrf.mxu1  ;;  %10255 = vpow2.f32 %v8272_v17  ;;  %v5896_v17 = vrot.slane %v11889_v16, 4 }
0x100c   :  { %v5995_v13 = vrot.slane %v5978_v63, 4  ;;  %v6039_v2 = vadd.f32 %v11737_v46, %v6038_v7 }
0x100d   :  { %v9637_v11 = vpop.f32.mrf.mxu0  ;;  %v9645_v58 = vpop.f32.mrf.mxu1 }
0x100e   :  { %v5997_v48 = vadd.f32 %v5995_v13, %v11873_v42  ;;  %v6045_v51 = vrot.slane %v6039_v2, 4 }
0x100f   :  { %v10252_v28 = vpop.eup %10251  ;;  %v5981_v43 = vpop.f32.mrf.mxu0 }
0x1010   :  { %v6041_v53 = vpop.f32.mrf.mxu1  ;;  %v5834_v27 = vadd.f32 1.0, %v10252_v28  ;;  %v8277_v52 = vmul.f32 -1.442695, %v5997_v48  ;;  %v6053_v28 = vrot.slane %v11904_v31, 4 }
0x1011   :  { %v9638_v60 = vpop.f32.mrf.mxu0 }
0x1012   :  { %v9646_v4 = vpop.f32.mrf.mxu1  ;;  %10257 = vrcp.f32 %v5834_v27 }
0x1013   :  { %10259 = vpow2.f32 %v8277_v52 }
0x1017   :  { %v10254_v20 = vpop.eup %10253 }
0x1018   :  { %v5991_v30 = vadd.f32 1.0, %v10254_v20  ;;  %v10256_v8 = vpop.eup %10255 }
0x1019   :  { %v5844_v5 = vadd.f32 1.0, %v10256_v8 }
0x101a   :  { %10261 = vrcp.f32 %v5991_v30 }
0x101b   :  { %10263 = vrcp.f32 %v5844_v5 }
0x101f   :  { %v10258_v62 = vpop.eup %10257 }
0x1020   :  { %v5890_v42 = vmul.f32 %v10258_v62, %v5888_v29  ;;  %v10260_v24 = vpop.eup %10259 }
0x1021   :  { %v6001_v40 = vadd.f32 1.0, %v10260_v24 }
0x1022   :  { %v5891_v37 = vadd.f32 %v5890_v42, %v11879_v34  ;;  %v6715_v34 = vsel %vm144_vm0, %v11746_v50, %v11805_v9 }
0x1023   :  { %v6716_v58 = vsel %vm146_vm2, %v6715_v34, %v11805_v9 }
0x1024   :  { %10265 = vtanh.f32 %v5891_v37 }
0x1025   :  { %10267 = vrcp.f32 %v6001_v40 }
0x1027   :  { %v10262_v35 = vpop.eup %10261 }
0x1028   :  { %v6047_v56 = vmul.f32 %v10262_v35, %v6045_v51  ;;  %v10264_v15 = vpop.eup %10263 }
0x1029   :  { %v5893_v41 = vsub.f32 1.0, %v10264_v15  ;;  %v5898_v59 = vmul.f32 %v10264_v15, %v5896_v17 }
0x102a   :  { %v6048_v44 = vadd.f32 %v6047_v56, %v11885_v21 }
0x102c   :  { %10269 = vtanh.f32 %v6048_v44 }
0x1031   :  { %v10266_v47 = vpop.eup %10265 }
0x1032   :  { %v5894_v63 = vmul.f32 %v10266_v47, %v5893_v41  ;;  %v10268_v7 = vpop.eup %10267 }
0x1033   :  { %v6050_v43 = vsub.f32 1.0, %v10268_v7  ;;  %v6055_v52 = vmul.f32 %v10268_v7, %v6053_v28 }
0x1034   :  { %v11949_v13 = vadd.f32 %v5898_v59, %v5894_v63 }
0x1036   :  { %v6057_v11 = vpack.c.bf16 %v11949_v13, %v11949_v13  ;;  %v6717_v21 = vsel %vm144_vm0, %v11889_v16, %v11949_v13  ;;  %v6941_v16 = vsel %vm144_vm0, %v11760_v12, %v11814_v38 }
0x1037   :  { %v6718_v48 = vsel %vm146_vm2, %v6717_v21, %v11949_v13  ;;  %v6942_v12 = vsel %vm146_vm2, %v6941_v16, %v11814_v38 }
0x1038   :  { %v6059_v53 = vrot.slane %v6057_v11, 2  ;;  %v11964_v27 = vpack.c.bf16 %v6718_v48, %v6716_v58 }
0x1039   :  { %v10270_v50 = vpop.eup %10269 }
0x103a   :  { %v6051_v60 = vmul.f32 %v10270_v50, %v6050_v43  ;;  %9652 = vmatmul.mubr.msk.bf16.vlgmr.msra.gmra.mxu0 %vm586_vm5, %v6059_v53  ;;  %9660 = vmatmul.mubr.msk.bf16.vlgmr.msra.gmra.mxu1 %vm586_vm5, %v6059_v53 }
0x103b   :  { %9672 = vmatpush3.bf16.msra.mxu1 %v11584_v3  ;;  %9664 = vmatpush3.bf16.msra.mxu0 %v11586_v36 }
0x103c   :  { %v11970_v9 = vadd.f32 %v6055_v52, %v6051_v60  ;;  %9673 = vmatprep.subr.bf16.mxu1 %v10453_v14  ;;  %9665 = vmatprep.subr.bf16.mxu0 %v10453_v14 }
0x103d   :  { %9667 = vmatprep.mubr.msk.bf16.mxu0 %vm10454_vm4, %v10453_v14  ;;  %9675 = vmatprep.mubr.msk.bf16.mxu1 %vm10454_vm4, %v10453_v14 }
0x103e   :  { %v6207_v4 = vpack.c.bf16 %v11970_v9, %v11970_v9  ;;  %v6943_v20 = vsel %vm144_vm0, %v11904_v31, %v11970_v9 }
0x103f   :  { %9674 = vmatpush3.bf16.msra.mxu1 %v11594_v22  ;;  %9666 = vmatpush3.bf16.msra.mxu0 %v11596_v0  ;;  %v6944_v30 = vsel %vm146_vm2, %v6943_v20, %v11970_v9 }
0x1040   :  { %v6209_v8 = vrot.slane %v6207_v4, 2  ;;  %9679 = vmatprep.subr.bf16.mxu0 %v10453_v14  ;;  %9687 = vmatprep.subr.bf16.mxu1 %v10453_v14  ;;  %v11994_v55 = vpack.c.bf16 %v6944_v30, %v6942_v12 }
0x1042   :  { %9668 = vmatmul.mubr.msk.bf16.vlgmr.msra.gmra.mxu0 %vm586_vm5, %v6059_v53  ;;  %9676 = vmatmul.mubr.msk.bf16.vlgmr.msra.gmra.mxu1 %vm586_vm5, %v6209_v8 }
0x1043   :  { %9680 = vmatpush3.bf16.msra.mxu0 %v11606_v45  ;;  %9688 = vmatpush3.bf16.msra.mxu1 %v11610_v57 }
0x1044   :  { %9681 = vmatprep.subr.bf16.mxu0 %v10453_v14  ;;  %9689 = vmatprep.subr.bf16.mxu1 %v10453_v14 }
0x1045   :  { %9683 = vmatprep.mubr.msk.bf16.mxu0 %vm10454_vm4, %v10453_v14  ;;  %9691 = vmatprep.mubr.msk.bf16.mxu1 %vm10454_vm4, %v10453_v14 }
0x1047   :  { %9682 = vmatpush3.bf16.msra.mxu0 %v11615_v25  ;;  %9690 = vmatpush3.bf16.msra.mxu1 %v11621_v54 }
0x1048   :  { %9695 = vmatprep.subr.bf16.mxu0 %v10453_v14  ;;  %9703 = vmatprep.subr.bf16.mxu1 %v10453_v14 }
0x104a   :  { %9684 = vmatmul.mubr.msk.bf16.vlgmr.msra.gmra.mxu0 %vm586_vm5, %v6209_v8  ;;  %9692 = vmatmul.mubr.msk.bf16.vlgmr.msra.gmra.mxu1 %vm586_vm5, %v6209_v8 }
0x104b   :  { %9696 = vmatpush3.bf16.msra.mxu0 %v11562_v18  ;;  %9704 = vmatpush3.bf16.msra.mxu1 %v11564_v26 }
0x104c   :  { %9697 = vmatprep.subr.bf16.mxu0 %v10453_v14  ;;  %9705 = vmatprep.subr.bf16.mxu1 %v10453_v14 }
0x104d   :  { %9699 = vmatprep.mubr.msk.bf16.mxu0 %vm10454_vm4, %v10453_v14  ;;  %9707 = vmatprep.mubr.msk.bf16.mxu1 %vm10454_vm4, %v10453_v14 }
0x104f   :  { %9698 = vmatpush3.bf16.msra.mxu0 %v11572_v49  ;;  %9706 = vmatpush3.bf16.msra.mxu1 %v11574_v19 }
0x1050   :  { %9719 = vmatprep.subr.bf16.mxu1 %v10453_v14  ;;  %9711 = vmatprep.subr.bf16.mxu0 %v10453_v14 }
0x10fa   :  { %v6097_v18 = vpop.f32.mrf.mxu0  ;;  %v6137_v26 = vpop.f32.mrf.mxu1 }
0x10fb   :  { %v6143_v38 = vadd.f32 %v6097_v18, %v11655_v6  ;;  %v6150_v49 = vadd.f32 %v6137_v26, %v11658_v39 }
0x10fc   :  { %v9653_v31 = vpop.f32.mrf.mxu0  ;;  %v9661_v5 = vpop.f32.mrf.mxu1 }
0x10fd   :  { %v8281_v29 = vmul.f32 -1.442695, %v6143_v38  ;;  %v8282_v56 = vmul.f32 -1.442695, %v6150_v49 }
0x10fe   :  { %v6100_v62 = vpop.f32.mrf.mxu0  ;;  %v6140_v42 = vpop.f32.mrf.mxu1 }
0x10ff   :  { %10271 = vpow2.f32 %v8281_v29 }
0x1100   :  { %v9654_v24 = vpop.f32.mrf.mxu0  ;;  %v9662_v37 = vpop.f32.mrf.mxu1 }
0x1102   :  { %v6191_v2 = vpop.f32.mrf.mxu0  ;;  %v6247_v19 = vpop.f32.mrf.mxu1 }
0x1103   :  { %v6293_v40 = vadd.f32 %v6247_v19, %v11678_v1  ;;  %v6192_v20 = vadd.f32 %v11727_v61, %v6191_v2  ;;  %v6203_v61 = vrot.slane %v11949_v13, 4 }
0x1104   :  { %v9669_v51 = vpop.f32.mrf.mxu0  ;;  %v9677_v35 = vpop.f32.mrf.mxu1 }
0x1105   :  { %v8286_v44 = vmul.f32 -1.442695, %v6293_v40  ;;  %v6353_v51 = vrot.slane %v11970_v9, 4 }
0x1106   :  { %v6194_v15 = vpop.f32.mrf.mxu0  ;;  %v6250_v17 = vpop.f32.mrf.mxu1 }
0x1107   :  { %10273 = vpow2.f32 %v8286_v44  ;;  %v6679_v15 = vld [vmem:[#allocation2 + $0x80] sm:$0xff] }
0x1108   :  { %v9670_v41 = vpop.f32.mrf.mxu0  ;;  %v9678_v47 = vpop.f32.mrf.mxu1  ;;  %10275 = vpow2.f32 %v8282_v56 }
0x1109   :  { %v6680_v41 = vld [vmem:[#allocation2 + $0x88] sm:$0xff] }
0x110a   :  { %v6287_v59 = vpop.f32.mrf.mxu0  ;;  %v6341_v63 = vpop.f32.mrf.mxu1  ;;  %v6683_v47 = vpack.c.bf16 %v6680_v41, %v6679_v15 }
0x110b   :  { %v6300_v34 = vadd.f32 %v6287_v59, %v11697_v10  ;;  %v6342_v38 = vadd.f32 %v11737_v46, %v6341_v63  ;;  %v6688_v59 = vld [vmem:[#allocation2 + $0xb0] sm:$0xff]  ;;  %v6689_v63 = vld [vmem:[#allocation2 + $0xb8] sm:$0xff] }
0x110c   :  { %v10272_v7 = vpop.eup %10271  ;;  %v9685_v11 = vpop.f32.mrf.mxu0 }
0x110d   :  { %v9693_v21 = vpop.f32.mrf.mxu1  ;;  %v6147_v58 = vadd.f32 1.0, %v10272_v7  ;;  %v8287_v48 = vmul.f32 -1.442695, %v6300_v34  ;;  %v6900_v34 = vld [vmem:[#allocation2 + $0x130] sm:$0xff]  ;;  %v12074_v7 = vpack.c.bf16 %v6689_v63, %v6688_v59  ;;  %v6901_v11 = vld [vmem:[#allocation2 + $0x138] sm:$0xff] }
0x110e   :  { %v6290_v28 = vpop.f32.mrf.mxu0  ;;  %v12076_v21 = vpack.c.bf16 %v6901_v11, %v6900_v34 }
0x110f   :  { %v6344_v43 = vpop.f32.mrf.mxu1  ;;  %10277 = vrcp.f32 %v6147_v58 }
0x1110   :  { %v9686_v53 = vpop.f32.mrf.mxu0  ;;  %10279 = vpow2.f32 %v8287_v48 }
0x1111   :  { %v9694_v50 = vpop.f32.mrf.mxu1 }
0x1114   :  { %v10274_v52 = vpop.eup %10273 }
0x1115   :  { %v6297_v60 = vadd.f32 1.0, %v10274_v52  ;;  %v10276_v16 = vpop.eup %10275 }
0x1116   :  { %v6154_v4 = vadd.f32 1.0, %v10276_v16 }
0x1117   :  { %10281 = vrcp.f32 %v6297_v60 }
0x1118   :  { %10283 = vrcp.f32 %v6154_v4 }
0x111c   :  { %v10278_v12 = vpop.eup %10277 }
0x111d   :  { %v6197_v30 = vmul.f32 %v10278_v12, %v6192_v20  ;;  %v10280_v8 = vpop.eup %10279 }
0x111e   :  { %v6304_v26 = vadd.f32 1.0, %v10280_v8 }
0x111f   :  { %v6198_v18 = vadd.f32 %v6197_v30, %v11675_v23 }
0x1121   :  { %10285 = vtanh.f32 %v6198_v18 }
0x1122   :  { %10287 = vrcp.f32 %v6304_v26 }
0x1124   :  { %v10282_v31 = vpop.eup %10281 }
0x1125   :  { %v6347_v5 = vmul.f32 %v10282_v31, %v6342_v38  ;;  %v10284_v62 = vpop.eup %10283 }
0x1126   :  { %v6200_v42 = vsub.f32 1.0, %v10284_v62  ;;  %v6205_v37 = vmul.f32 %v10284_v62, %v6203_v61 }
0x1127   :  { %v6348_v29 = vadd.f32 %v6347_v5, %v11700_v32 }
0x1129   :  { %10289 = vtanh.f32 %v6348_v29 }
0x112e   :  { %v10286_v24 = vpop.eup %10285 }
0x112f   :  { %v6201_v49 = vmul.f32 %v10286_v24, %v6200_v42  ;;  %v10288_v19 = vpop.eup %10287 }
0x1130   :  { %v6350_v46 = vsub.f32 1.0, %v10288_v19  ;;  %v6355_v13 = vmul.f32 %v10288_v19, %v6353_v51 }
0x1131   :  { %v12033_v2 = vadd.f32 %v6205_v37, %v6201_v49 }
0x1133   :  { %v6357_v40 = vpack.c.bf16 %v12033_v2, %v12033_v2 }
0x1135   :  { %9700 = vmatmul.mubr.msk.bf16.vlgmr.msra.gmra.mxu0 %vm586_vm5, %v6357_v40  ;;  %9708 = vmatmul.mubr.msk.bf16.vlgmr.msra.gmra.mxu1 %vm586_vm5, %v6357_v40 }
0x1136   :  { %v10290_v35 = vpop.eup %10289  ;;  %9720 = vmatpush3.bf16.msra.mxu1 %v11584_v3  ;;  %9712 = vmatpush3.bf16.msra.mxu0 %v11586_v36  ;;  %v6674_v36 = vld [vmem:[#allocation2 + $0x70] sm:$0xff] }
0x1137   :  { %v6351_v56 = vmul.f32 %v10290_v35, %v6350_v46  ;;  %9721 = vmatprep.subr.bf16.mxu1 %v10453_v14  ;;  %9713 = vmatprep.subr.bf16.mxu0 %v10453_v14 }
0x1138   :  { %9715 = vmatprep.mubr.msk.bf16.mxu0 %vm10454_vm4, %v10453_v14  ;;  %9723 = vmatprep.mubr.msk.bf16.mxu1 %vm10454_vm4, %v10453_v14 }
0x1139   :  { %v12048_v9 = vadd.f32 %v6355_v13, %v6351_v56 }
0x113a   :  { %9722 = vmatpush3.bf16.msra.mxu1 %v11594_v22  ;;  %9714 = vmatpush3.bf16.msra.mxu0 %v11596_v0  ;;  %v6675_v22 = vld [vmem:[#allocation2 + $0x78] sm:$0xff]  ;;  %v6681_v0 = vld [vmem:[#allocation2 + $0x90] sm:$0xff] }
0x113b   :  { %v6514_v3 = vpack.c.bf16 %v12048_v9, %v12048_v9  ;;  %9727 = vmatprep.subr.bf16.mxu0 %v10453_v14  ;;  %9735 = vmatprep.subr.bf16.mxu1 %v10453_v14 }
0x113d   :  { %9716 = vmatmul.mubr.msk.bf16.vlgmr.msra.gmra.mxu0 %vm586_vm5, %v6357_v40  ;;  %9724 = vmatmul.mubr.msk.bf16.vlgmr.msra.gmra.mxu1 %vm586_vm5, %v6514_v3 }
0x113e   :  { %9728 = vmatpush3.bf16.msra.mxu0 %v11606_v45  ;;  %9736 = vmatpush3.bf16.msra.mxu1 %v11610_v57  ;;  %v6677_v45 = vpack.c.bf16 %v6675_v22, %v6674_v36  ;;  %v6682_v57 = vld [vmem:[#allocation2 + $0x98] sm:$0xff] }
0x113f   :  { %9729 = vmatprep.subr.bf16.mxu0 %v10453_v14  ;;  %9737 = vmatprep.subr.bf16.mxu1 %v10453_v14  ;;  %v6684_v44 = vpack.c.bf16 %v6682_v57, %v6681_v0  ;;  %v10381_v57 = vld [vmem:[%s12402_s5 + $0x1] ss:$0 sm:$0xff] }
0x1140   :  { %9731 = vmatprep.mubr.msk.bf16.mxu0 %vm10454_vm4, %v10453_v14  ;;  %9739 = vmatprep.mubr.msk.bf16.mxu1 %vm10454_vm4, %v10453_v14 }
0x1142   :  { %9730 = vmatpush3.bf16.msra.mxu0 %v11615_v25  ;;  %9738 = vmatpush3.bf16.msra.mxu1 %v11621_v54  ;;  %v6672_v25 = vld [vmem:[#allocation2 + $0x60] sm:$0xff]  ;;  %v6673_v54 = vld [vmem:[#allocation2 + $0x68] sm:$0xff] }
0x1143   :  { %9743 = vmatprep.subr.bf16.mxu0 %v6677_v45  ;;  %9751 = vmatprep.subr.bf16.mxu1 %v6684_v44  ;;  %v6676_v17 = vpack.c.bf16 %v6673_v54, %v6672_v25 }
0x1145   :  { %9732 = vmatmul.mubr.msk.bf16.vlgmr.msra.gmra.mxu0 %vm586_vm5, %v6514_v3  ;;  %9740 = vmatmul.mubr.msk.bf16.vlgmr.msra.gmra.mxu1 %vm586_vm5, %v6514_v3 }
0x1146   :  { %9747 = vmatprep.mubr.msk.bf16.mxu0 %vm586_vm5, %v11964_v27  ;;  %9755 = vmatprep.mubr.msk.bf16.mxu1 %vm586_vm5, %v11964_v27 }
0x1147   :  { %9744 = vmatpush3.bf16.msra.mxu0 %v6677_v45  ;;  %9752 = vmatpush3.bf16.msra.mxu1 %v6684_v44 }
0x1148   :  { %9745 = vmatprep.subr.bf16.mxu0 %v6676_v17  ;;  %9753 = vmatprep.subr.bf16.mxu1 %v6683_v47 }
0x114b   :  { %9746 = vmatpush3.bf16.msra.mxu0 %v6676_v17  ;;  %9754 = vmatpush3.bf16.msra.mxu1 %v6683_v47  ;;  %v10382_v47 = vld [vmem:[%s12402_s5 + $0x4] ss:$0 sm:$0xff] }
0x114c   :  { %9759 = vmatprep.subr.bf16.mxu0 %v12074_v7  ;;  %9767 = vmatprep.subr.bf16.mxu1 %v12076_v21 }
0x11f5   :  { %v6395_v58 = vpop.f32.mrf.mxu0  ;;  %v6435_v48 = vpop.f32.mrf.mxu1 }
0x11f6   :  { %v6442_v28 = vrot.slane %v6395_v58, 4  ;;  %v6452_v4 = vrot.slane %v6435_v48, 4 }
0x11f7   :  { %v9701_v43 = vpop.f32.mrf.mxu0  ;;  %v9709_v53 = vpop.f32.mrf.mxu1 }
0x11f8   :  { %v6444_v50 = vadd.f32 %v6442_v28, %v11655_v6  ;;  %v6454_v18 = vadd.f32 %v6452_v4, %v11658_v39  ;;  %v6510_v43 = vrot.slane %v12033_v2, 4  ;;  %v6686_v4 = vld [vmem:[#allocation2 + $0xa0] sm:$0xff] }
0x11f9   :  { %v6398_v52 = vpop.f32.mrf.mxu0  ;;  %v6438_v60 = vpop.f32.mrf.mxu1 }
0x11fa   :  { %v8291_v16 = vmul.f32 -1.442695, %v6444_v50  ;;  %v8292_v42 = vmul.f32 -1.442695, %v6454_v18 }
0x11fb   :  { %v9702_v20 = vpop.f32.mrf.mxu0  ;;  %v9710_v12 = vpop.f32.mrf.mxu1 }
0x11fc   :  { %10291 = vpow2.f32 %v8291_v16  ;;  %v6687_v12 = vld [vmem:[#allocation2 + $0xa8] sm:$0xff] }
0x11fd   :  { %v6495_v30 = vpop.f32.mrf.mxu0  ;;  %v6552_v8 = vpop.f32.mrf.mxu1 }
0x11fe   :  { %v6599_v26 = vrot.slane %v6552_v8, 4  ;;  %v6496_v44 = vadd.f32 %v10381_v57, %v6495_v30  ;;  %v6898_v30 = vld [vmem:[#allocation2 + $0x120] sm:$0xff]  ;;  %v6899_v8 = vld [vmem:[#allocation2 + $0x128] sm:$0xff] }
0x11ff   :  { %v9717_v38 = vpop.f32.mrf.mxu0  ;;  %v9725_v31 = vpop.f32.mrf.mxu1  ;;  %v6700_v57 = vld [vmem:[#allocation5 + $0xe0] sm:$0xff] }
0x1200   :  { %v6601_v5 = vadd.f32 %v6599_v26, %v11678_v1  ;;  %v6907_v31 = vld [vmem:[#allocation2 + $0x150] sm:$0xff] }
0x1201   :  { %v6498_v29 = vpop.f32.mrf.mxu0  ;;  %v6555_v62 = vpop.f32.mrf.mxu1 }
0x1202   :  { %v8296_v6 = vmul.f32 -1.442695, %v6601_v5  ;;  %v6690_v29 = vpack.c.bf16 %v6687_v12, %v6686_v4  ;;  %v6902_v62 = vpack.c.bf16 %v6899_v8, %v6898_v30  ;;  %v6933_v4 = vld [vmem:[#allocation5 + $0x220] sm:$0xff] }
0x1203   :  { %v9718_v61 = vpop.f32.mrf.mxu0  ;;  %v9726_v24 = vpop.f32.mrf.mxu1  ;;  %v8305_v8 = vld [vmem:[%s12401_s4 + $0x7] ss:$0 sm:$0xff] }
0x1204   :  { %10293 = vpow2.f32 %v8296_v6  ;;  %v6914_v6 = vld [vmem:[#allocation2 + $0x170] sm:$0xff]  ;;  %v6915_v61 = vld [vmem:[#allocation2 + $0x178] sm:$0xff] }
0x1205   :  { %v6592_v37 = vpop.f32.mrf.mxu0  ;;  %v6652_v49 = vpop.f32.mrf.mxu1  ;;  %10295 = vpow2.f32 %v8292_v42  ;;  %v6908_v42 = vld [vmem:[#allocation2 + $0x158] sm:$0xff] }
0x1206   :  { %v6609_v19 = vrot.slane %v6592_v37, 4  ;;  %v6653_v59 = vadd.f32 %v10382_v47, %v6652_v49  ;;  %v6910_v49 = vpack.c.bf16 %v6908_v42, %v6907_v31 }
0x1207   :  { %v9733_v40 = vpop.f32.mrf.mxu0  ;;  %v9741_v46 = vpop.f32.mrf.mxu1 }
0x1208   :  { %v6611_v39 = vadd.f32 %v6609_v19, %v11697_v10  ;;  %v6502_v10 = vrot.slane %v6496_v44, 4  ;;  %v6659_v34 = vrot.slane %v6653_v59, 4  ;;  %v6917_v19 = vpack.c.bf16 %v6915_v61, %v6914_v6  ;;  %v6905_v40 = vld [vmem:[#allocation2 + $0x140] sm:$0xff]  ;;  %v6701_v44 = vld [vmem:[#allocation5 + $0xe8] sm:$0xff] }
0x1209   :  { %v10292_v51 = vpop.eup %10291  ;;  %v6595_v35 = vpop.f32.mrf.mxu0  ;;  %v6919_v59 = vld [vmem:[#allocation5 + $0x1e0] sm:$0xff]  ;;  %v12209_v61 = vld [vmem:[%s12401_s4 + $0x8] ss:$0 sm:$0xff] }
0x120a   :  { %v6655_v13 = vpop.f32.mrf.mxu1  ;;  %v6448_v56 = vadd.f32 1.0, %v10292_v51  ;;  %v8297_v1 = vmul.f32 -1.442695, %v6611_v39  ;;  %v6906_v39 = vld [vmem:[#allocation2 + $0x148] sm:$0xff]  ;;  %v6912_v51 = vld [vmem:[#allocation2 + $0x160] sm:$0xff] }
0x120b   :  { %v9734_v3 = vpop.f32.mrf.mxu0  ;;  %v6909_v35 = vpack.c.bf16 %v6906_v39, %v6905_v40 }
0x120c   :  { %v9742_v36 = vpop.f32.mrf.mxu1  ;;  %10297 = vrcp.f32 %v6448_v56  ;;  %v6695_v56 = vld [vmem:[#allocation5 + $0xd0] sm:$0xff]  ;;  %v6703_v3 = vld [vmem:[#allocation5 + $0xf8] sm:$0xff] }
0x120d   :  { %10299 = vpow2.f32 %v8297_v1  ;;  %v6702_v1 = vld [vmem:[#allocation5 + $0xf0] sm:$0xff] }
0x1211   :  { %v10294_v22 = vpop.eup %10293 }
0x1212   :  { %v6605_v0 = vadd.f32 1.0, %v10294_v22  ;;  %v10296_v45 = vpop.eup %10295  ;;  %v12116_v22 = vpack.c.bf16 %v6703_v3, %v6702_v1 }
0x1213   :  { %v6458_v25 = vadd.f32 1.0, %v10296_v45  ;;  %v6694_v45 = vld [vmem:[#allocation5 + $0xc8] sm:$0xff] }
0x1214   :  { %10301 = vrcp.f32 %v6605_v0  ;;  %v6693_v0 = vld [vmem:[#allocation5 + $0xc0] sm:$0xff] }
0x1215   :  { %10303 = vrcp.f32 %v6458_v25  ;;  %v12126_v25 = vpack.c.bf16 %v6701_v44, %v6700_v57 }
0x1219   :  { %v10298_v54 = vpop.eup %10297 }
0x121a   :  { %v6504_v15 = vmul.f32 %v10298_v54, %v6502_v10  ;;  %v10300_v17 = vpop.eup %10299  ;;  %v6921_v10 = vld [vmem:[#allocation5 + $0x1f0] sm:$0xff]  ;;  %v6922_v54 = vld [vmem:[#allocation5 + $0x1f8] sm:$0xff] }
0x121b   :  { %v6615_v63 = vadd.f32 1.0, %v10300_v17  ;;  %v6710_v17 = vld [vmem:[#allocation5 + $0x118] sm:$0xff] }
0x121c   :  { %v6505_v41 = vadd.f32 %v6504_v15, %v11675_v23  ;;  %v6709_v15 = vld [vmem:[#allocation5 + $0x110] sm:$0xff] }
0x121d   :  { %v12138_v47 = vpack.c.bf16 %v6710_v17, %v6709_v15 }
0x121e   :  { %10305 = vtanh.f32 %v6505_v41  ;;  %v12136_v41 = vpack.c.bf16 %v6922_v54, %v6921_v10 }
0x121f   :  { %10307 = vrcp.f32 %v6615_v63  ;;  %v6920_v63 = vld [vmem:[#allocation5 + $0x1e8] sm:$0xff] }
0x1221   :  { %v10302_v11 = vpop.eup %10301 }
0x1222   :  { %v6661_v58 = vmul.f32 %v10302_v11, %v6659_v34  ;;  %v10304_v28 = vpop.eup %10303  ;;  %v6707_v34 = vld [vmem:[#allocation5 + $0x100] sm:$0xff]  ;;  %v6708_v11 = vld [vmem:[#allocation5 + $0x108] sm:$0xff] }
0x1223   :  { %v6507_v53 = vsub.f32 1.0, %v10304_v28  ;;  %v6512_v23 = vmul.f32 %v10304_v28, %v6510_v43  ;;  %v6928_v28 = vld [vmem:[#allocation5 + $0x210] sm:$0xff]  ;;  %v6929_v43 = vld [vmem:[#allocation5 + $0x218] sm:$0xff] }
0x1224   :  { %v6662_v48 = vadd.f32 %v6661_v58, %v11700_v32  ;;  %v6667_v32 = vrot.slane %v12048_v9, 4  ;;  %v12146_v58 = vpack.c.bf16 %v6920_v63, %v6919_v59 }
0x1226   :  { %10309 = vtanh.f32 %v6662_v48  ;;  %v12148_v48 = vpack.c.bf16 %v6708_v11, %v6707_v34 }
0x122b   :  { %v10306_v50 = vpop.eup %10305 }
0x122c   :  { %v6508_v52 = vmul.f32 %v10306_v50, %v6507_v53  ;;  %v10308_v16 = vpop.eup %10307  ;;  %v6935_v53 = vld [vmem:[#allocation5 + $0x230] sm:$0xff]  ;;  %v6936_v50 = vld [vmem:[#allocation5 + $0x238] sm:$0xff] }
0x122d   :  { %v6664_v26 = vsub.f32 1.0, %v10308_v16  ;;  %v6669_v24 = vmul.f32 %v10308_v16, %v6667_v32  ;;  %v12162_v16 = vpack.c.bf16 %v6936_v50, %v6935_v53 }
0x122e   :  { %v6513_v60 = vadd.f32 %v6512_v23, %v6508_v52  ;;  %v12158_v23 = vpack.c.bf16 %v6929_v43, %v6928_v28  ;;  %v6926_v52 = vld [vmem:[#allocation5 + $0x200] sm:$0xff] }
0x1230   :  { %v6719_v20 = vsel %vm144_vm0, %v12033_v2, %v6513_v60 }
0x1231   :  { %v6720_v18 = vsel %vm146_vm2, %v6719_v20, %v6513_v60  ;;  %v6927_v60 = vld [vmem:[#allocation5 + $0x208] sm:$0xff] }
0x1232   :  { %v6722_v38 = vpack.c.bf16 %v6720_v18, %v6720_v18  ;;  %v6934_v20 = vld [vmem:[#allocation5 + $0x228] sm:$0xff]  ;;  %v12167_v12 = vpack.c.bf16 %v6927_v60, %v6926_v52 }
0x1233   :  { %v10310_v5 = vpop.eup %10309  ;;  %v12173_v30 = vpack.c.bf16 %v6934_v20, %v6933_v4 }
0x1234   :  { %v6665_v37 = vmul.f32 %v10310_v5, %v6664_v26  ;;  %9748 = vmatmul.mubr.msk.bf16.vlgmr.msra.gmra.mxu0 %vm586_vm5, %v6722_v38  ;;  %9756 = vmatmul.mubr.msk.bf16.vlgmr.msra.gmra.mxu1 %vm586_vm5, %v6722_v38 }
0x1235   :  { %9760 = vmatpush3.bf16.msra.mxu0 %v12074_v7  ;;  %9768 = vmatpush3.bf16.msra.mxu1 %v12076_v21  ;;  %v6913_v7 = vld [vmem:[#allocation2 + $0x168] sm:$0xff] }
0x1236   :  { %v6670_v2 = vadd.f32 %v6669_v24, %v6665_v37  ;;  %9763 = vmatprep.mubr.msk.bf16.mxu0 %vm586_vm5, %v11964_v27  ;;  %9771 = vmatprep.mubr.msk.bf16.mxu1 %vm586_vm5, %v11994_v55  ;;  %v6916_v13 = vpack.c.bf16 %v6913_v7, %v6912_v51  ;;  %v8314_v24 = vld [vmem:[%s12401_s4 + $0xf] ss:$0 sm:$0xff] }
0x1237   :  { %9761 = vmatprep.subr.bf16.mxu0 %v6690_v29  ;;  %9769 = vmatprep.subr.bf16.mxu1 %v6902_v62 }
0x1238   :  { %v6945_v46 = vsel %vm144_vm0, %v12048_v9, %v6670_v2  ;;  %v6696_v9 = vld [vmem:[#allocation5 + $0xd8] sm:$0xff] }
0x1239   :  { %9762 = vmatpush3.bf16.msra.mxu0 %v6690_v29  ;;  %9770 = vmatpush3.bf16.msra.mxu1 %v6902_v62  ;;  %v6946_v21 = vsel %vm146_vm2, %v6945_v46, %v6670_v2  ;;  %v12114_v36 = vpack.c.bf16 %v6696_v9, %v6695_v56  ;;  %v12231_v56 = vld [vmem:[%s12401_s4 + $0x11] ss:$0 sm:$0xff] }
0x123a   :  { %9775 = vmatprep.subr.bf16.mxu0 %v6910_v49  ;;  %9783 = vmatprep.subr.bf16.mxu1 %v6917_v19  ;;  %v6948_v27 = vpack.c.bf16 %v6946_v21, %v6946_v21 }
0x123c   :  { %9764 = vmatmul.mubr.msk.bf16.vlgmr.msra.gmra.mxu0 %vm586_vm5, %v6722_v38  ;;  %9772 = vmatmul.mubr.msk.bf16.vlgmr.msra.gmra.mxu1 %vm586_vm5, %v6948_v27 }
0x123d   :  { %9776 = vmatpush3.bf16.msra.mxu0 %v6910_v49  ;;  %9784 = vmatpush3.bf16.msra.mxu1 %v6917_v19 }
0x123e   :  { %9779 = vmatprep.mubr.msk.bf16.mxu0 %vm586_vm5, %v11994_v55  ;;  %9787 = vmatprep.mubr.msk.bf16.mxu1 %vm586_vm5, %v11994_v55  ;;  %v12124_v55 = vpack.c.bf16 %v6694_v45, %v6693_v0 }
0x123f   :  { %9777 = vmatprep.subr.bf16.mxu0 %v6909_v35  ;;  %9785 = vmatprep.subr.bf16.mxu1 %v6916_v13 }
0x1241   :  { %9778 = vmatpush3.bf16.msra.mxu0 %v6909_v35  ;;  %9786 = vmatpush3.bf16.msra.mxu1 %v6916_v13  ;;  %v8318_v13 = vld [vmem:[%s12401_s4 + $0x10] ss:$0 sm:$0xff] }
0x1242   :  { %9791 = vmatprep.subr.bf16.mxu0 %v10453_v14  ;;  %9799 = vmatprep.subr.bf16.mxu1 %v10453_v14 }
0x1244   :  { %9780 = vmatmul.mubr.msk.bf16.vlgmr.msra.gmra.mxu0 %vm586_vm5, %v6948_v27  ;;  %9788 = vmatmul.mubr.msk.bf16.vlgmr.msra.gmra.mxu1 %vm586_vm5, %v6948_v27 }
0x1245   :  { %9792 = vmatpush3.bf16.msra.mxu0 %v12114_v36  ;;  %9800 = vmatpush3.bf16.msra.mxu1 %v12116_v22 }
0x1246   :  { %9793 = vmatprep.subr.bf16.mxu0 %v10453_v14  ;;  %9801 = vmatprep.subr.bf16.mxu1 %v10453_v14 }
0x1247   :  { %9795 = vmatprep.mubr.msk.bf16.mxu0 %vm10454_vm4, %v10453_v14  ;;  %9803 = vmatprep.mubr.msk.bf16.mxu1 %vm10454_vm4, %v10453_v14 }
0x1249   :  { %9794 = vmatpush3.bf16.msra.mxu0 %v12124_v55  ;;  %9802 = vmatpush3.bf16.msra.mxu1 %v12126_v25 }
0x124a   :  { %9815 = vmatprep.subr.bf16.mxu1 %v10453_v14  ;;  %9807 = vmatprep.subr.bf16.mxu0 %v10453_v14 }
0x124c   :  { %9796 = vmatmul.mubr.bf16.vlgmr.msra.gmra.mxu0 %v10455_v33  ;;  %9804 = vmatmul.mubr.bf16.vlgmr.msra.gmra.mxu1 %v10455_v33 }
0x124d   :  { %9816 = vmatpush3.bf16.msra.mxu1 %v12136_v41  ;;  %9808 = vmatpush3.bf16.msra.mxu0 %v12138_v47 }
0x124e   :  { %9817 = vmatprep.subr.bf16.mxu1 %v10453_v14  ;;  %9809 = vmatprep.subr.bf16.mxu0 %v10453_v14 }
0x124f   :  { %9811 = vmatprep.mubr.msk.bf16.mxu0 %vm10454_vm4, %v10453_v14  ;;  %9819 = vmatprep.mubr.msk.bf16.mxu1 %vm10454_vm4, %v10453_v14 }
0x1251   :  { %9818 = vmatpush3.bf16.msra.mxu1 %v12146_v58  ;;  %9810 = vmatpush3.bf16.msra.mxu0 %v12148_v48 }
0x1252   :  { %9823 = vmatprep.subr.bf16.mxu0 %v10453_v14  ;;  %9831 = vmatprep.subr.bf16.mxu1 %v10453_v14 }
0x1254   :  { %9812 = vmatmul.mubr.bf16.vlgmr.msra.gmra.mxu0 %v10455_v33  ;;  %9820 = vmatmul.mubr.bf16.vlgmr.msra.gmra.mxu1 %v10455_v33 }
0x1255   :  { %9824 = vmatpush3.bf16.msra.mxu0 %v12158_v23  ;;  %9827 = vmatprep.mubr.msk.bf16.mxu0 %vm10454_vm4, %v10453_v14 }
0x1256   :  { %9825 = vmatprep.subr.bf16.mxu0 %v10453_v14  ;;  %9832 = vmatpush3.bf16.msra.mxu1 %v12162_v16 }
0x1257   :  { %9833 = vmatprep.subr.bf16.mxu1 %v10453_v14  ;;  %9835 = vmatprep.mubr.msk.bf16.mxu1 %vm10454_vm4, %v10453_v14 }
0x1259   :  { %9826 = vmatpush3.bf16.msra.mxu0 %v12167_v12 }
0x125a   :  { %9834 = vmatpush3.bf16.msra.mxu1 %v12173_v30  ;;  %9839 = vmatprep.subr.bf16.mxu0 %v10453_v14 }
0x125b   :  { %9847 = vmatprep.subr.bf16.mxu1 %v10453_v14 }
0x125c   :  { %9828 = vmatmul.mubr.bf16.vlgmr.msra.gmra.mxu0 %v10455_v33 }
0x125d   :  { %9836 = vmatmul.mubr.bf16.vlgmr.msra.gmra.mxu1 %v10455_v33  ;;  %9840 = vmatpush3.bf16.msra.mxu0 %v12114_v36  ;;  %v8301_v33 = vld [vmem:[%s12401_s4 + $0x6] ss:$0 sm:$0xff] }
0x125e   :  { %9848 = vmatpush3.bf16.msra.mxu1 %v12116_v22  ;;  %9841 = vmatprep.subr.bf16.mxu0 %v10453_v14 }
0x125f   :  { %9849 = vmatprep.subr.bf16.mxu1 %v10453_v14  ;;  %9843 = vmatprep.mubr.msk.bf16.mxu0 %vm10454_vm4, %v10453_v14 }
0x1260   :  { %9851 = vmatprep.mubr.msk.bf16.mxu1 %vm10454_vm4, %v10453_v14 }
0x1261   :  { %9842 = vmatpush3.bf16.msra.mxu0 %v12124_v55 }
0x1262   :  { %9850 = vmatpush3.bf16.msra.mxu1 %v12126_v25  ;;  %9855 = vmatprep.subr.bf16.mxu0 %v10453_v14 }
0x1263   :  { %9863 = vmatprep.subr.bf16.mxu1 %v10453_v14 }
0x12f4   :  { %v9749_v18 = vpop.f32.mrf.mxu0  ;;  %v9757_v32 = vpop.f32.mrf.mxu1 }
0x12f5   :  { %v12202_v26 = vadd.f32 %v9749_v18, %v8301_v33  ;;  %v12204_v38 = vadd.f32 %v9757_v32, %v8305_v8 }
0x12f6   :  { %v6771_v31 = vpop.f32.mrf.mxu0  ;;  %v6827_v5 = vpop.f32.mrf.mxu1 }
0x12f7   :  { %v6772_v63 = vadd.f32 %v8301_v33, %v6771_v31  ;;  %v6828_v18 = vadd.f32 %v8305_v8, %v6827_v5 }
0x12f8   :  { %v9750_v29 = vpop.f32.mrf.mxu0  ;;  %v9758_v62 = vpop.f32.mrf.mxu1 }
0x12fa   :  { %v6774_v42 = vpop.f32.mrf.mxu0  ;;  %v6830_v6 = vpop.f32.mrf.mxu1 }
0x12fb   :  { %v12214_v37 = vadd.f32 %v8301_v33, %v6774_v42  ;;  %v12216_v2 = vadd.f32 %v8305_v8, %v6830_v6 }
0x12fc   :  { %v9765_v49 = vpop.f32.mrf.mxu0  ;;  %v9773_v19 = vpop.f32.mrf.mxu1 }
0x12fd   :  { %v12219_v40 = vadd.f32 %v9765_v49, %v12209_v61  ;;  %v12221_v46 = vadd.f32 %v9773_v19, %v8314_v24 }
0x12fe   :  { %v12223_v39 = vpop.f32.mrf.mxu0  ;;  %v6997_v51 = vpop.f32.mrf.mxu1 }
0x12ff   :  { %v6998_v62 = vadd.f32 %v8314_v24, %v6997_v51 }
0x1300   :  { %v9766_v7 = vpop.f32.mrf.mxu0  ;;  %v9774_v21 = vpop.f32.mrf.mxu1 }
0x1302   :  { %v6886_v27 = vpop.f32.mrf.mxu0  ;;  %v7000_v35 = vpop.f32.mrf.mxu1 }
0x1303   :  { %v12234_v9 = vadd.f32 %v12209_v61, %v6886_v27  ;;  %v12236_v1 = vadd.f32 %v8314_v24, %v7000_v35 }
0x1304   :  { %v9781_v3 = vpop.f32.mrf.mxu0  ;;  %v9789_v0 = vpop.f32.mrf.mxu1 }
0x1305   :  { %v12238_v45 = vadd.f32 %v9781_v3, %v8318_v13  ;;  %v12241_v57 = vadd.f32 %v9789_v0, %v12231_v56 }
0x1306   :  { %v7053_v44 = vpop.f32.mrf.mxu0  ;;  %v12243_v10 = vpop.f32.mrf.mxu1 }
0x1308   :  { %v9782_v54 = vpop.f32.mrf.mxu0  ;;  %v9790_v15 = vpop.f32.mrf.mxu1 }
0x1309   :  { %v7054_v54 = vadd.f32 %v8318_v13, %v7053_v44 }
0x130a   :  { %v7056_v17 = vpop.f32.mrf.mxu0  ;;  %v7112_v59 = vpop.f32.mrf.mxu1 }
0x130b   :  { %v12245_v34 = vadd.f32 %v8318_v13, %v7056_v17  ;;  %v12248_v11 = vadd.f32 %v12231_v56, %v7112_v59  ;;  %v12253_v13 = vld [vmem:[%s12402_s5 + $0x2] ss:$0 sm:$0xff] }
0x130c   :  { %v7157_v28 = vpop.f32.mrf.mxu0  ;;  %v7197_v43 = vpop.f32.mrf.mxu1 }
0x130d   :  { %v7203_v53 = vadd.f32 %v7157_v28, %v6772_v63  ;;  %v7210_v42 = vadd.f32 %v7197_v43, %v6828_v18 }
0x130e   :  { %v9797_v50 = vpop.f32.mrf.mxu0  ;;  %v9805_v52 = vpop.f32.mrf.mxu1 }
0x130f   :  { %v8325_v60 = vmul.f32 -1.442695, %v7203_v53  ;;  %v8326_v7 = vmul.f32 -1.442695, %v7210_v42  ;;  %v12261_v42 = vld [vmem:[%s12402_s5 + $0x5] ss:$0 sm:$0xff] }
0x1310   :  { %v7160_v4 = vpop.f32.mrf.mxu0  ;;  %v7200_v20 = vpop.f32.mrf.mxu1  ;;  %s10456_s5 = smov 32  }
0x1311   :  { %10311 = vpow2.f32 %v8325_v60 }
0x1312   :  { %v9798_v32 = vpop.f32.mrf.mxu0  ;;  %v9806_v29 = vpop.f32.mrf.mxu1 }
0x1313   :  { %v6884_v32 = vadd.f32 %v12209_v61, %v12223_v39 }
0x1314   :  { %v7257_v33 = vpop.f32.mrf.mxu0  ;;  %v7304_v31 = vpop.f32.mrf.mxu1 }
0x1315   :  { %v7350_v6 = vadd.f32 %v7304_v31, %v6998_v62  ;;  %v7258_v20 = vadd.f32 %v12253_v13, %v7257_v33  ;;  %v7110_v33 = vadd.f32 %v12231_v56, %v12243_v10 }
0x1316   :  { %v9813_v49 = vpop.f32.mrf.mxu0  ;;  %v9821_v19 = vpop.f32.mrf.mxu1 }
0x1317   :  { %v8328_v21 = vmul.f32 -1.442695, %v7350_v6 }
0x1318   :  { %v7260_v27 = vpop.f32.mrf.mxu0  ;;  %v7307_v35 = vpop.f32.mrf.mxu1 }
0x1319   :  { %10313 = vpow2.f32 %v8328_v21 }
0x131a   :  { %v9814_v3 = vpop.f32.mrf.mxu0  ;;  %v9822_v0 = vpop.f32.mrf.mxu1  ;;  %10315 = vpow2.f32 %v8326_v7 }
0x131c   :  { %v7344_v8 = vpop.f32.mrf.mxu0 }
0x131d   :  { %v7357_v5 = vadd.f32 %v7344_v8, %v7054_v54  ;;  %v7404_v15 = vpop.f32.mrf.mxu1 }
0x131e   :  { %v10312_v17 = vpop.eup %10311  ;;  %v9829_v24 = vpop.f32.mrf.mxu0  ;;  %v7405_v49 = vadd.f32 %v12261_v42, %v7404_v15 }
0x131f   :  { %v7207_v51 = vadd.f32 1.0, %v10312_v17  ;;  %v8329_v59 = vmul.f32 -1.442695, %v7357_v5  ;;  %v9837_v63 = vpop.f32.mrf.mxu1 }
0x1320   :  { %v7347_v28 = vpop.f32.mrf.mxu0 }
0x1321   :  { %10317 = vrcp.f32 %v7207_v51  ;;  %v7407_v43 = vpop.f32.mrf.mxu1 }
0x1322   :  { %v9830_v53 = vpop.f32.mrf.mxu0  ;;  %10319 = vpow2.f32 %v8329_v59 }
0x1323   :  { %v9838_v50 = vpop.f32.mrf.mxu1 }
0x1326   :  { %v10314_v52 = vpop.eup %10313 }
0x1327   :  { %v7354_v60 = vadd.f32 1.0, %v10314_v52  ;;  %v10316_v4 = vpop.eup %10315 }
0x1328   :  { %v7214_v44 = vadd.f32 1.0, %v10316_v4 }
0x1329   :  { %10321 = vrcp.f32 %v7354_v60 }
0x132a   :  { %10323 = vrcp.f32 %v7214_v44 }
0x132e   :  { %v10318_v18 = vpop.eup %10317 }
0x132f   :  { %v7263_v29 = vmul.f32 %v10318_v18, %v7258_v20  ;;  %v10320_v62 = vpop.eup %10319 }
0x1330   :  { %v7361_v6 = vadd.f32 1.0, %v10320_v62 }
0x1331   :  { %v7264_v31 = vadd.f32 %v7263_v29, %v6884_v32 }
0x1333   :  { %10325 = vtanh.f32 %v7264_v31 }
0x1334   :  { %10327 = vrcp.f32 %v7361_v6 }
0x1336   :  { %v10322_v19 = vpop.eup %10321 }
0x1337   :  { %v7410_v7 = vmul.f32 %v10322_v19, %v7405_v49  ;;  %v10324_v39 = vpop.eup %10323 }
0x1338   :  { %v7266_v21 = vsub.f32 1.0, %v10324_v39  ;;  %v7268_v35 = vmul.f32 0.0, %v10324_v39 }
0x1339   :  { %v7411_v61 = vadd.f32 %v7410_v7, %v7110_v33 }
0x133b   :  { %10329 = vtanh.f32 %v7411_v61 }
0x1340   :  { %v10326_v27 = vpop.eup %10325 }
0x1341   :  { %v7267_v3 = vmul.f32 %v10326_v27, %v7266_v21  ;;  %v10328_v54 = vpop.eup %10327 }
0x1342   :  { %v7413_v56 = vsub.f32 1.0, %v10328_v54  ;;  %v7415_v15 = vmul.f32 0.0, %v10328_v54 }
0x1343   :  { %v12266_v0 = vadd.f32 %v7268_v35, %v7267_v3 }
0x1345   :  { %v7417_v8 = vpack.c.bf16 %v12266_v0, %v12266_v0 }
0x1347   :  { %9844 = vmatmul.mubr.msk.bf16.vlgmr.msra.gmra.mxu0 %vm586_vm5, %v7417_v8  ;;  %9852 = vmatmul.mubr.msk.bf16.vlgmr.msra.gmra.mxu1 %vm586_vm5, %v7417_v8 }
0x1348   :  { %v10330_v10 = vpop.eup %10329  ;;  %9864 = vmatpush3.bf16.msra.mxu1 %v12136_v41  ;;  %9856 = vmatpush3.bf16.msra.mxu0 %v12138_v47 }
0x1349   :  { %9865 = vmatprep.subr.bf16.mxu1 %v10453_v14  ;;  %9857 = vmatprep.subr.bf16.mxu0 %v10453_v14  ;;  %v7414_v5 = vmul.f32 %v10330_v10, %v7413_v56 }
0x134a   :  { %9859 = vmatprep.mubr.msk.bf16.mxu0 %vm10454_vm4, %v10453_v14  ;;  %9867 = vmatprep.mubr.msk.bf16.mxu1 %vm10454_vm4, %v10453_v14 }
0x134b   :  { %v12280_v17 = vadd.f32 %v7415_v15, %v7414_v5 }
0x134c   :  { %9866 = vmatpush3.bf16.msra.mxu1 %v12146_v58  ;;  %9858 = vmatpush3.bf16.msra.mxu0 %v12148_v48 }
0x134d   :  { %7998 = vrot.lane.b32.xlu0 %v12280_v17, %s10456_s5  ;;  %v7562_v24 = vpack.c.bf16 %v12280_v17, %v12280_v17  ;;  %9871 = vmatprep.subr.bf16.mxu0 %v10453_v14 }
0x134e   :  { %9879 = vmatprep.subr.bf16.mxu1 %v10453_v14 }
0x134f   :  { %9860 = vmatmul.mubr.msk.bf16.vlgmr.msra.gmra.mxu0 %vm586_vm5, %v7417_v8  ;;  %9868 = vmatmul.mubr.msk.bf16.vlgmr.msra.gmra.mxu1 %vm586_vm5, %v7562_v24 }
0x1350   :  { %9872 = vmatpush3.bf16.msra.mxu0 %v12158_v23  ;;  %9880 = vmatpush3.bf16.msra.mxu1 %v12162_v16 }
0x1351   :  { %9873 = vmatprep.subr.bf16.mxu0 %v10453_v14  ;;  %9881 = vmatprep.subr.bf16.mxu1 %v10453_v14 }
0x1352   :  { %9875 = vmatprep.mubr.msk.bf16.mxu0 %vm10454_vm4, %v10453_v14  ;;  %9883 = vmatprep.mubr.msk.bf16.mxu1 %vm10454_vm4, %v10453_v14 }
0x1354   :  { %9874 = vmatpush3.bf16.msra.mxu0 %v12167_v12  ;;  %9882 = vmatpush3.bf16.msra.mxu1 %v12173_v30 }
0x1355   :  { %9895 = vmatprep.subr.bf16.mxu1 %v10453_v14  ;;  %9887 = vmatprep.subr.bf16.mxu0 %v10453_v14 }
0x1357   :  { %9876 = vmatmul.mubr.msk.bf16.vlgmr.msra.gmra.mxu0 %vm586_vm5, %v7562_v24  ;;  %9884 = vmatmul.mubr.msk.bf16.vlgmr.msra.gmra.mxu1 %vm586_vm5, %v7562_v24 }
0x1358   :  { %9896 = vmatpush3.bf16.msra.mxu1 %v12116_v22  ;;  %9888 = vmatpush3.bf16.msra.mxu0 %v12114_v36 }
0x1359   :  { %9897 = vmatprep.subr.bf16.mxu1 %v10453_v14  ;;  %9889 = vmatprep.subr.bf16.mxu0 %v10453_v14 }
0x135a   :  { %9891 = vmatprep.mubr.msk.bf16.mxu0 %vm10454_vm4, %v10453_v14  ;;  %9899 = vmatprep.mubr.msk.bf16.mxu1 %vm10454_vm4, %v10453_v14 }
0x135c   :  { %9898 = vmatpush3.bf16.msra.mxu1 %v12126_v25  ;;  %9890 = vmatpush3.bf16.msra.mxu0 %v12124_v55 }
0x135d   :  { %9911 = vmatprep.subr.bf16.mxu1 %v10453_v14  ;;  %9903 = vmatprep.subr.bf16.mxu0 %v10453_v14 }
0x13bf   :  { %v7999_v36 = vpop.permute.xlu0 %7998 }
0x13c0   :  { %v8001_v22 = vsel %vm586_vm5, %v12266_v0, %v7999_v36 }
0x13c1   :  { %8003 = vst.msk [vmem:[#allocation7] sm:$0x3] %vm8002_vm6, %v8001_v22 }
0x13c2   :  { %8006 = vst.msk [vmem:[#allocation7] sm:$0xc] %vm8005_vm7, %v8001_v22 }
0x13c3   :  { %8009 = vst.msk [vmem:[#allocation7] sm:$0x30] %vm8008_vm8, %v8001_v22 }
0x13c4   :  { %8012 = vst.msk [vmem:[#allocation7] sm:$0xc0] %vm8011_vm9, %v8001_v22 }
0x1407   :  { %v7455_v55 = vpop.f32.mrf.mxu0  ;;  %v7495_v25 = vpop.f32.mrf.mxu1 }
0x1408   :  { %v7501_v51 = vadd.f32 %v7455_v55, %v12214_v37  ;;  %v7508_v60 = vadd.f32 %v7495_v25, %v12216_v2 }
0x1409   :  { %v9845_v59 = vpop.f32.mrf.mxu0  ;;  %v9853_v63 = vpop.f32.mrf.mxu1 }
0x140a   :  { %v8333_v28 = vmul.f32 -1.442695, %v7501_v51  ;;  %v8334_v29 = vmul.f32 -1.442695, %v7508_v60 }
0x140b   :  { %v7458_v43 = vpop.f32.mrf.mxu0  ;;  %v7498_v53 = vpop.f32.mrf.mxu1 }
0x140c   :  { %10331 = vpow2.f32 %v8333_v28 }
0x140d   :  { %v9846_v50 = vpop.f32.mrf.mxu0  ;;  %v9854_v52 = vpop.f32.mrf.mxu1 }
0x140f   :  { %v7549_v4 = vpop.f32.mrf.mxu0  ;;  %v7600_v44 = vpop.f32.mrf.mxu1 }
0x1410   :  { %v7646_v20 = vadd.f32 %v7600_v44, %v12236_v1  ;;  %v7550_v15 = vadd.f32 %v12253_v13, %v7549_v4 }
0x1411   :  { %v9861_v18 = vpop.f32.mrf.mxu0  ;;  %v9869_v32 = vpop.f32.mrf.mxu1 }
0x1412   :  { %v8338_v62 = vmul.f32 -1.442695, %v7646_v20 }
0x1413   :  { %v7552_v31 = vpop.f32.mrf.mxu0  ;;  %v7603_v37 = vpop.f32.mrf.mxu1 }
0x1414   :  { %10333 = vpow2.f32 %v8338_v62 }
0x1415   :  { %v9862_v6 = vpop.f32.mrf.mxu0  ;;  %v9870_v49 = vpop.f32.mrf.mxu1  ;;  %10335 = vpow2.f32 %v8334_v29 }
0x1417   :  { %v7640_v19 = vpop.f32.mrf.mxu0  ;;  %v7694_v33 = vpop.f32.mrf.mxu1 }
0x1418   :  { %v7653_v7 = vadd.f32 %v7640_v19, %v12245_v34  ;;  %v7695_v25 = vadd.f32 %v12261_v42, %v7694_v33 }
0x1419   :  { %v10332_v61 = vpop.eup %10331  ;;  %v9877_v2 = vpop.f32.mrf.mxu0 }
0x141a   :  { %v9885_v39 = vpop.f32.mrf.mxu1  ;;  %v7505_v21 = vadd.f32 1.0, %v10332_v61  ;;  %v8339_v27 = vmul.f32 -1.442695, %v7653_v7 }
0x141b   :  { %v7643_v1 = vpop.f32.mrf.mxu0 }
0x141c   :  { %v7697_v35 = vpop.f32.mrf.mxu1  ;;  %10337 = vrcp.f32 %v7505_v21 }
0x141d   :  { %v9878_v3 = vpop.f32.mrf.mxu0  ;;  %10339 = vpow2.f32 %v8339_v27 }
0x141e   :  { %v9886_v54 = vpop.f32.mrf.mxu1 }
0x1421   :  { %v10334_v8 = vpop.eup %10333 }
0x1422   :  { %v7650_v56 = vadd.f32 1.0, %v10334_v8  ;;  %v10336_v10 = vpop.eup %10335 }
0x1423   :  { %v7512_v5 = vadd.f32 1.0, %v10336_v10 }
0x1424   :  { %10341 = vrcp.f32 %v7650_v56 }
0x1425   :  { %10343 = vrcp.f32 %v7512_v5 }
0x1429   :  { %v10338_v24 = vpop.eup %10337 }
0x142a   :  { %v7555_v34 = vmul.f32 %v10338_v24, %v7550_v15  ;;  %v10340_v36 = vpop.eup %10339 }
0x142b   :  { %v7657_v55 = vadd.f32 1.0, %v10340_v36 }
0x142c   :  { %v7556_v22 = vadd.f32 %v7555_v34, %v12234_v9 }
0x142e   :  { %10345 = vtanh.f32 %v7556_v22 }
0x142f   :  { %10347 = vrcp.f32 %v7657_v55 }
0x1431   :  { %v10342_v51 = vpop.eup %10341 }
0x1432   :  { %v7700_v59 = vmul.f32 %v10342_v51, %v7695_v25  ;;  %v10344_v28 = vpop.eup %10343 }
0x1433   :  { %v7558_v43 = vsub.f32 1.0, %v10344_v28  ;;  %v7560_v50 = vmul.f32 %v10344_v28, %v12266_v0 }
0x1434   :  { %v7701_v63 = vadd.f32 %v7700_v59, %v12248_v11 }
0x1436   :  { %10349 = vtanh.f32 %v7701_v63 }
0x143b   :  { %v10346_v53 = vpop.eup %10345 }
0x143c   :  { %v7559_v52 = vmul.f32 %v10346_v53, %v7558_v43  ;;  %v10348_v4 = vpop.eup %10347 }
0x143d   :  { %v7703_v44 = vsub.f32 1.0, %v10348_v4  ;;  %v7705_v0 = vmul.f32 %v10348_v4, %v12280_v17 }
0x143e   :  { %v12333_v60 = vadd.f32 %v7560_v50, %v7559_v52 }
0x1440   :  { %v7707_v9 = vpack.c.bf16 %v12333_v60, %v12333_v60 }
0x1442   :  { %9892 = vmatmul.mubr.msk.bf16.vlgmr.msra.gmra.mxu0 %vm586_vm5, %v7707_v9  ;;  %9900 = vmatmul.mubr.msk.bf16.vlgmr.msra.gmra.mxu1 %vm586_vm5, %v7707_v9 }
0x1443   :  { %v10350_v20 = vpop.eup %10349  ;;  %9912 = vmatpush3.bf16.msra.mxu1 %v12136_v41  ;;  %9904 = vmatpush3.bf16.msra.mxu0 %v12138_v47 }
0x1444   :  { %9913 = vmatprep.subr.bf16.mxu1 %v10453_v14  ;;  %9905 = vmatprep.subr.bf16.mxu0 %v10453_v14  ;;  %v7704_v11 = vmul.f32 %v10350_v20, %v7703_v44 }
0x1445   :  { %9907 = vmatprep.mubr.msk.bf16.mxu0 %vm10454_vm4, %v10453_v14  ;;  %9915 = vmatprep.mubr.msk.bf16.mxu1 %vm10454_vm4, %v10453_v14 }
0x1446   :  { %v12348_v18 = vadd.f32 %v7705_v0, %v7704_v11 }
0x1447   :  { %9914 = vmatpush3.bf16.msra.mxu1 %v12146_v58  ;;  %9906 = vmatpush3.bf16.msra.mxu0 %v12148_v48 }
0x1448   :  { %8014 = vrot.lane.b32.xlu0 %v12348_v18, %s10456_s5  ;;  %v7852_v41 = vpack.c.bf16 %v12348_v18, %v12348_v18  ;;  %9919 = vmatprep.subr.bf16.mxu0 %v10453_v14 }
0x1449   :  { %9927 = vmatprep.subr.bf16.mxu1 %v10453_v14 }
0x144a   :  { %9908 = vmatmul.mubr.msk.bf16.vlgmr.msra.gmra.mxu0 %vm586_vm5, %v7707_v9  ;;  %9916 = vmatmul.mubr.msk.bf16.vlgmr.msra.gmra.mxu1 %vm586_vm5, %v7852_v41 }
0x144b   :  { %9920 = vmatpush3.bf16.msra.mxu0 %v12158_v23  ;;  %9928 = vmatpush3.bf16.msra.mxu1 %v12162_v16 }
0x144c   :  { %9921 = vmatprep.subr.bf16.mxu0 %v10453_v14  ;;  %9929 = vmatprep.subr.bf16.mxu1 %v10453_v14 }
0x144d   :  { %9923 = vmatprep.mubr.msk.bf16.mxu0 %vm10454_vm4, %v10453_v14  ;;  %9931 = vmatprep.mubr.msk.bf16.mxu1 %vm10454_vm4, %v10453_v14 }
0x144f   :  { %9922 = vmatpush3.bf16.msra.mxu0 %v12167_v12  ;;  %9930 = vmatpush3.bf16.msra.mxu1 %v12173_v30 }
0x1452   :  { %9924 = vmatmul.mubr.msk.bf16.vlgmr.msra.gmra.mxu0 %vm586_vm5, %v7852_v41  ;;  %9932 = vmatmul.mubr.msk.bf16.vlgmr.msra.gmra.mxu1 %vm586_vm5, %v7852_v41 }
0x14ba   :  { %v8015_v47 = vpop.permute.xlu0 %8014 }
0x14bb   :  { %v8017_v58 = vsel %vm586_vm5, %v12333_v60, %v8015_v47 }
0x14bc   :  { %8019 = vst.msk [vmem:[#allocation7 + $0x8] sm:$0x3] %vm8002_vm6, %v8017_v58 }
0x14bd   :  { %8021 = vst.msk [vmem:[#allocation7 + $0x8] sm:$0xc] %vm8005_vm7, %v8017_v58 }
0x14be   :  { %8023 = vst.msk [vmem:[#allocation7 + $0x8] sm:$0x30] %vm8008_vm8, %v8017_v58 }
0x14bf   :  { %8025 = vst.msk [vmem:[#allocation7 + $0x8] sm:$0xc0] %vm8011_vm9, %v8017_v58 }
0x1502   :  { %v7745_v14 = vpop.f32.mrf.mxu0  ;;  %v7785_v48 = vpop.f32.mrf.mxu1 }
0x1503   :  { %v7791_v23 = vadd.f32 %v7745_v14, %v12202_v26  ;;  %v7798_v16 = vadd.f32 %v7785_v48, %v12204_v38 }
0x1504   :  { %v9893_v12 = vpop.f32.mrf.mxu0  ;;  %v9901_v30 = vpop.f32.mrf.mxu1 }
0x1505   :  { %v8343_v17 = vmul.f32 -1.442695, %v7791_v23  ;;  %v8344_v7 = vmul.f32 -1.442695, %v7798_v16 }
0x1506   :  { %v7748_v32 = vpop.f32.mrf.mxu0  ;;  %v7788_v29 = vpop.f32.mrf.mxu1 }
0x1507   :  { %10351 = vpow2.f32 %v8343_v17 }
0x1508   :  { %v9894_v62 = vpop.f32.mrf.mxu0  ;;  %v9902_v31 = vpop.f32.mrf.mxu1 }
0x150a   :  { %v7839_v37 = vpop.f32.mrf.mxu0  ;;  %v7890_v6 = vpop.f32.mrf.mxu1 }
0x150b   :  { %v7936_v49 = vadd.f32 %v7890_v6, %v12221_v46  ;;  %v7840_v55 = vadd.f32 %v12253_v13, %v7839_v37 }
0x150c   :  { %v9909_v19 = vpop.f32.mrf.mxu0  ;;  %v9917_v33 = vpop.f32.mrf.mxu1 }
0x150d   :  { %v8348_v61 = vmul.f32 -1.442695, %v7936_v49 }
0x150e   :  { %v7842_v2 = vpop.f32.mrf.mxu0  ;;  %v7893_v26 = vpop.f32.mrf.mxu1 }
0x150f   :  { %10353 = vpow2.f32 %v8348_v61 }
0x1510   :  { %v9910_v38 = vpop.f32.mrf.mxu0  ;;  %v9918_v39 = vpop.f32.mrf.mxu1  ;;  %10355 = vpow2.f32 %v8344_v7 }
0x1512   :  { %v7930_v21 = vpop.f32.mrf.mxu0  ;;  %v7984_v27 = vpop.f32.mrf.mxu1 }
0x1513   :  { %v7943_v1 = vadd.f32 %v7930_v21, %v12238_v45  ;;  %v7985_v28 = vadd.f32 %v12261_v42, %v7984_v27 }
0x1514   :  { %v10352_v35 = vpop.eup %10351  ;;  %v9925_v3 = vpop.f32.mrf.mxu0 }
0x1515   :  { %v9933_v54 = vpop.f32.mrf.mxu1  ;;  %v7795_v8 = vadd.f32 1.0, %v10352_v35  ;;  %v8349_v56 = vmul.f32 -1.442695, %v7943_v1 }
0x1516   :  { %v7933_v46 = vpop.f32.mrf.mxu0 }
0x1517   :  { %v7987_v10 = vpop.f32.mrf.mxu1  ;;  %10357 = vrcp.f32 %v7795_v8 }
0x1518   :  { %v9926_v5 = vpop.f32.mrf.mxu0  ;;  %10359 = vpow2.f32 %v8349_v56 }
0x1519   :  { %v9934_v15 = vpop.f32.mrf.mxu1 }
0x151c   :  { %v10354_v24 = vpop.eup %10353 }
0x151d   :  { %v7940_v34 = vadd.f32 1.0, %v10354_v24  ;;  %v10356_v36 = vpop.eup %10355 }
0x151e   :  { %v7802_v22 = vadd.f32 1.0, %v10356_v36 }
0x151f   :  { %10361 = vrcp.f32 %v7940_v34 }
0x1520   :  { %10363 = vrcp.f32 %v7802_v22 }
0x1524   :  { %v10358_v25 = vpop.eup %10357 }
0x1525   :  { %v7845_v45 = vmul.f32 %v10358_v25, %v7840_v55  ;;  %v10360_v51 = vpop.eup %10359 }
0x1526   :  { %v7947_v63 = vadd.f32 1.0, %v10360_v51 }
0x1527   :  { %v7846_v59 = vadd.f32 %v7845_v45, %v12219_v40 }
0x1529   :  { %10365 = vtanh.f32 %v7846_v59 }
0x152a   :  { %10367 = vrcp.f32 %v7947_v63 }
0x152c   :  { %v10362_v43 = vpop.eup %10361 }
0x152d   :  { %v7990_v53 = vmul.f32 %v10362_v43, %v7985_v28  ;;  %v10364_v52 = vpop.eup %10363 }
0x152e   :  { %v7848_v4 = vsub.f32 1.0, %v10364_v52  ;;  %v7850_v44 = vmul.f32 %v10364_v52, %v12333_v60 }
0x152f   :  { %v7991_v50 = vadd.f32 %v7990_v53, %v12241_v57 }
0x1531   :  { %10369 = vtanh.f32 %v7991_v50 }
0x1536   :  { %v10366_v9 = vpop.eup %10365 }
0x1537   :  { %v7849_v13 = vmul.f32 %v10366_v9, %v7848_v4  ;;  %v10368_v11 = vpop.eup %10367 }
0x1538   :  { %v7993_v0 = vsub.f32 1.0, %v10368_v11  ;;  %v7995_v47 = vmul.f32 %v10368_v11, %v12348_v18 }
0x1539   :  { %v7851_v20 = vadd.f32 %v7850_v44, %v7849_v13 }
0x153e   :  { %v10370_v40 = vpop.eup %10369 }
0x153f   :  { %v7994_v41 = vmul.f32 %v10370_v40, %v7993_v0 }
0x1541   :  { %v7996_v42 = vadd.f32 %v7995_v47, %v7994_v41 }
0x1543   :  { %8027 = vrot.lane.b32.xlu1 %v7996_v42, %s10456_s5 }
0x15b5   :  { %v8028_v57 = vpop.permute.xlu1 %8027 }
0x15b6   :  { %v8030_v58 = vsel %vm586_vm5, %v7851_v20, %v8028_v57 }
0x15b7   :  { %8032 = vst.msk [vmem:[#allocation7 + $0x10] sm:$0x3] %vm8002_vm6, %v8030_v58 }
0x15b8   :  { %8034 = vst.msk [vmem:[#allocation7 + $0x10] sm:$0xc] %vm8005_vm7, %v8030_v58 }
0x15b9   :  { %10434 = shalt.err (!%p10431_p0)
}
0x15ba   :  { %s10458_s23 = smov 2  }
0x15bb   :  { %8046 = dma.vmem_to_hbm [thread:$0]  %s8041_s21, 320, %s12403_s6, [#allocation4], %s10456_s5, %s10456_s5, %s10458_s23  }
0x15bc   :  { %10447 = dma.done.wait [#allocation4], 320  }
0x15bd   :  { %10448 = vsyncadd [#allocation4], 4294966976 }
0x15be   :  { %8050 = vsyncpa [#allocation3], 1 }
0x15bf   :  { %8051 = vsyncpa [#allocation6], 1 }
0x15c0   :  { %8052 = vsyncpa [#allocation4], 1 }

</bundles_post_ra>
